<compile_context>
chip_gen: v6e
topology: v6e:2x2x1
jax: 0.10.0
libtpu: 0.0.40
codegen_flags: <defaults>
</compile_context>

<pallas_src>
import functools

import jax
import jax.numpy as jnp
from jax.experimental import pallas as pl
from jax.experimental.pallas import tpu as pltpu

WIDTH = 256          # self.width
NUM_HEADS = 8        # self.num_heads
HEAD_DIM = WIDTH // NUM_HEADS
NUM_LAYERS = 3       # self.num_layers
MLP_WIDTH = 4 * WIDTH
LN_EPS = 1e-5

# bf16 MXU operands with f32 accumulation (2-4x MXU throughput, half the weight
# DMA).  Set False for a near-bit-exact f32 path (tolerance 2e-3).
USE_BF16_MATMUL = True
MATMUL_DTYPE = jnp.bfloat16 if USE_BF16_MATMUL else jnp.float32
ROW_TILE_CAP = 256   # 128 suffices on v5e; 256 fills the v6e/v7x MXU rows.

_PARALLEL_1D = pltpu.CompilerParams(dimension_semantics=("parallel",))


def _round_up(x, m):
    return (x + m - 1) // m * m


# --------------------------------------------------------------------------- #
# In-kernel math helpers
# --------------------------------------------------------------------------- #
def _ln(x, g, b):
    mu = jnp.mean(x, axis=-1, keepdims=True)
    xc = x - mu
    var = jnp.mean(xc * xc, axis=-1, keepdims=True)
    return xc * jax.lax.rsqrt(var + LN_EPS) * g + b


def _erf(x):
    # Abramowitz & Stegun 7.1.26 polynomial erf, |err| < 1.5e-7.
    # Matches torch.nn.GELU(approximate='none') within f32 precision.
    a1, a2, a3, a4, a5 = 0.254829592, -0.284496736, 1.421413741, -1.453152027, 1.061405429
    pcoef = 0.3275911
    sgn = jnp.where(x >= 0.0, 1.0, -1.0)
    ax = jnp.abs(x)
    t = 1.0 / (1.0 + pcoef * ax)
    poly = ((((a5 * t + a4) * t + a3) * t + a2) * t + a1) * t
    return sgn * (1.0 - poly * jnp.exp(-ax * ax))


def _gelu(x):
    return 0.5 * x * (1.0 + _erf(x * 0.7071067811865476))


def _mxu(a, w):
    """MXU matmul: cast the (f32) LHS to the weight dtype, accumulate in f32."""
    return jnp.dot(a.astype(w.dtype), w, preferred_element_type=jnp.float32)


# --------------------------------------------------------------------------- #
# Fused Pallas kernels
# --------------------------------------------------------------------------- #
def _upscale_kernel(x_ref, w1_ref, b1_ref, w2_ref, b2_ref, pos_ref,
                    g_ref, b_ref, o_ref):
    """upscale (Linear-ReLU-Linear) + positional embedding + ln_pre, one batch/step."""
    x = x_ref[0]                                               # (S, C) f32
    h = jnp.maximum(_mxu(x, w1_ref[...]) + b1_ref[...], 0.0)
    h = _mxu(h, w2_ref[...]) + b2_ref[...] + pos_ref[...]      # fused positional add
    o_ref[0] = _ln(h, g_ref[...], b_ref[...]).astype(o_ref.dtype)


def _attn_block_kernel(h_ref, g1_ref, b1_ref, w_in_ref, b_in_ref,
                       w_out_ref, b_out_ref, o_ref, *, num_heads, head_dim):
    """ln_1 + in-proj + multi-head attention + out-proj + residual, one batch/step.

    All heads are processed in-kernel, so Q/K/V never round-trip HBM and the
    output stays 256 lanes wide.
    """
    h = h_ref[0]                                               # (S, W) f32
    y = _ln(h, g1_ref[...], b1_ref[...])
    qkv = _mxu(y, w_in_ref[...]) + b_in_ref[...]               # (S, 3W) f32
    w = num_heads * head_dim
    scale = head_dim ** -0.5
    heads = []
    for hd in range(num_heads):
        lo = hd * head_dim
        q = qkv[:, lo:lo + head_dim] * scale                   # scale folded into q
        k = qkv[:, w + lo:w + lo + head_dim]
        v = qkv[:, 2 * w + lo:2 * w + lo + head_dim]
        s = jax.lax.dot_general(                               # (S, S) scores (NT)
            q.astype(MATMUL_DTYPE), k.astype(MATMUL_DTYPE),
            (((1,), (1,)), ((), ())), preferred_element_type=jnp.float32)
        s = s - jnp.max(s, axis=-1, keepdims=True)
        p = jnp.exp(s)
        p = p * pl.reciprocal(jnp.sum(p, axis=-1, keepdims=True),
                              approx=USE_BF16_MATMUL)
        heads.append(_mxu(p, v.astype(MATMUL_DTYPE)))          # (S, head_dim) f32
    attn = jnp.concatenate(heads, axis=-1)                     # (S, W)
    out = _mxu(attn, w_out_ref[...]) + b_out_ref[...] + h      # fused residual
    o_ref[0] = out.astype(o_ref.dtype)


def _mlp_block_kernel(*refs, final_ln):
    """ln_2 + c_fc + GELU + c_proj + residual (+ optional ln_post), row-tiled."""
    if final_ln:
        (h_ref, g2_ref, b2_ref, wfc_ref, bfc_ref, wpj_ref, bpj_ref,
         gp_ref, bp_ref, o_ref) = refs
    else:
        (h_ref, g2_ref, b2_ref, wfc_ref, bfc_ref, wpj_ref, bpj_ref,
         o_ref) = refs
    h = h_ref[...]                                             # (bm, W) f32
    y = _ln(h, g2_ref[...], b2_ref[...])
    fc = _gelu(_mxu(y, wfc_ref[...]) + bfc_ref[...])
    out = _mxu(fc, wpj_ref[...]) + bpj_ref[...] + h            # fused residual
    if final_ln:
        out = _ln(out, gp_ref[...], bp_ref[...])
    o_ref[...] = out.astype(o_ref.dtype)


# --------------------------------------------------------------------------- #
# pallas_call wrappers
# --------------------------------------------------------------------------- #
def upscale_ln_pre(x_tok, params):
    B, S, C = x_tok.shape
    cdt = MATMUL_DTYPE
    vec = lambda: pl.BlockSpec((1, WIDTH), lambda b: (0, 0))
    return pl.pallas_call(
        _upscale_kernel,
        out_shape=jax.ShapeDtypeStruct((B, S, WIDTH), jnp.float32),
        grid=(B,),
        in_specs=[
            pl.BlockSpec((1, S, C), lambda b: (b, 0, 0)),
            pl.BlockSpec((C, WIDTH), lambda b: (0, 0)),
            vec(),
            pl.BlockSpec((WIDTH, WIDTH), lambda b: (0, 0)),
            vec(),
            pl.BlockSpec((S, WIDTH), lambda b: (0, 0)),   # pos: resident, no tiling
            vec(),
            vec(),
        ],
        out_specs=pl.BlockSpec((1, S, WIDTH), lambda b: (b, 0, 0)),
        compiler_params=_PARALLEL_1D,
    )(x_tok,
      params["up_w1"].astype(cdt), params["up_b1"].reshape(1, WIDTH),
      params["up_w2"].astype(cdt), params["up_b2"].reshape(1, WIDTH),
      params["pos"], params["ln_pre_g"], params["ln_pre_b"])


def attn_block(h, lyr):
    B, S, W = h.shape
    cdt = MATMUL_DTYPE
    kern = functools.partial(_attn_block_kernel,
                             num_heads=NUM_HEADS, head_dim=HEAD_DIM)
    vec = lambda n: pl.BlockSpec((1, n), lambda b: (0, 0))
    # TODO(synk): for very large S (grid_size**3 >~ 2k) tile the KV axis
    # flash-style instead of materializing the (S, S) score block in VMEM.
    return pl.pallas_call(
        kern,
        out_shape=jax.ShapeDtypeStruct((B, S, W), jnp.float32),
        grid=(B,),
        in_specs=[
            pl.BlockSpec((1, S, W), lambda b: (b, 0, 0)),
            vec(W), vec(W),
            pl.BlockSpec((W, 3 * W), lambda b: (0, 0)),
            vec(3 * W),
            pl.BlockSpec((W, W), lambda b: (0, 0)),
            vec(W),
        ],
        out_specs=pl.BlockSpec((1, S, W), lambda b: (b, 0, 0)),
        compiler_params=_PARALLEL_1D,
    )(h, lyr["ln1_g"], lyr["ln1_b"],
      lyr["w_in"].astype(cdt), lyr["b_in"].reshape(1, 3 * W),
      lyr["w_out"].astype(cdt), lyr["b_out"].reshape(1, W))


def mlp_block(h2d, lyr, *, final_ln_params=None):
    M, W = h2d.shape
    cdt = MATMUL_DTYPE
    bm = min(_round_up(M, 8), ROW_TILE_CAP)        # large row tile (not 8)
    Mp = _round_up(M, bm)                          # pad: never drop tail rows
    hp = jnp.pad(h2d, ((0, Mp - M), (0, 0))) if Mp != M else h2d
    final_ln = final_ln_params is not None
    vec = lambda n: pl.BlockSpec((1, n), lambda i: (0, 0))
    in_specs = [
        pl.BlockSpec((bm, W), lambda i: (i, 0)),
        vec(W), vec(W),
        pl.BlockSpec((W, MLP_WIDTH), lambda i: (0, 0)),
        vec(MLP_WIDTH),
        pl.BlockSpec((MLP_WIDTH, W), lambda i: (0, 0)),
        vec(W),
    ]
    args = [hp, lyr["ln2_g"], lyr["ln2_b"],
            lyr["w_fc"].astype(cdt), lyr["b_fc"].reshape(1, MLP_WIDTH),
            lyr["w_proj"].astype(cdt), lyr["b_proj"].reshape(1, W)]
    if final_ln:
        in_specs += [vec(W), vec(W)]
        args += [final_ln_params[0], final_ln_params[1]]
    out = pl.pallas_call(
        functools.partial(_mlp_block_kernel, final_ln=final_ln),
        out_shape=jax.ShapeDtypeStruct((Mp, W), jnp.float32),
        grid=(Mp // bm,),
        in_specs=in_specs,
        out_specs=pl.BlockSpec((bm, W), lambda i: (i, 0)),
        compiler_params=_PARALLEL_1D,
    )(*args)
    return out[:M] if Mp != M else out


# --------------------------------------------------------------------------- #
# FeatPredHead forward (Pallas)
# --------------------------------------------------------------------------- #
def feat_pred_head_forward(x, params):
    B, C, H, W_, D3 = x.shape
    S = H * W_ * D3
    # rearrange 'b c h w d -> b (h w d) c' — layout only, single pass over input.
    x_tok = jnp.transpose(x, (0, 2, 3, 4, 1)).reshape(B, S, C)

    h = upscale_ln_pre(x_tok, params)               # upscale + pos + ln_pre fused
    n_layers = len(params["layers"])
    for li, lyr in enumerate(params["layers"]):
        h = attn_block(h, lyr)                      # ln_1 + MHA + residual fused
        fin = ((params["ln_post_g"], params["ln_post_b"])
               if li == n_layers - 1 else None)     # fuse ln_post into last MLP
        h = mlp_block(h.reshape(B * S, WIDTH), lyr,
                      final_ln_params=fin).reshape(B, S, WIDTH)
    return h


# --------------------------------------------------------------------------- #
# Pure-JAX reference (mirrors PyTorch math exactly, f32, exact erf GELU)
# --------------------------------------------------------------------------- #
def reference_forward(x, params):
    B, C, H, W, D3 = x.shape
    S = H * W * D3

    def ln(z, g, b):
        mu = jnp.mean(z, axis=-1, keepdims=True)
        var = jnp.mean((z - mu) ** 2, axis=-1, keepdims=True)
        return (z - mu) * jax.lax.rsqrt(var + LN_EPS) * g + b

    h = jnp.transpose(x, (0, 2, 3, 4, 1)).reshape(B, S, C)
    h = jnp.maximum(h @ params["up_w1"] + params["up_b1"], 0.0)
    h = h @ params["up_w2"] + params["up_b2"]
    h = h + params["pos"][None]
    h = ln(h, params["ln_pre_g"], params["ln_pre_b"])
    for lyr in params["layers"]:
        y = ln(h, lyr["ln1_g"], lyr["ln1_b"])
        qkv = (y @ lyr["w_in"] + lyr["b_in"]).reshape(B, S, 3, NUM_HEADS, HEAD_DIM)
        q = jnp.transpose(qkv[:, :, 0], (0, 2, 1, 3))
        k = jnp.transpose(qkv[:, :, 1], (0, 2, 1, 3))
        v = jnp.transpose(qkv[:, :, 2], (0, 2, 1, 3))
        s = jnp.einsum("bhqd,bhkd->bhqk", q, k) * (HEAD_DIM ** -0.5)
        p = jax.nn.softmax(s, axis=-1)
        o = jnp.einsum("bhqk,bhkd->bhqd", p, v)
        o = jnp.transpose(o, (0, 2, 1, 3)).reshape(B, S, WIDTH)
        h = h + (o @ lyr["w_out"] + lyr["b_out"])
        y = ln(h, lyr["ln2_g"], lyr["ln2_b"])
        m = y @ lyr["w_fc"] + lyr["b_fc"]
        m = 0.5 * m * (1.0 + jax.scipy.special.erf(m * 0.7071067811865476))
        h = h + (m @ lyr["w_proj"] + lyr["b_proj"])
    return ln(h, params["ln_post_g"], params["ln_post_b"])


# --------------------------------------------------------------------------- #
# Deterministic parameter init (shapes from FeatPredHead.__init__)
# --------------------------------------------------------------------------- #
def init_params(key, input_dim, seq_len):
    keys = iter(jax.random.split(key, 64))

    def w(shape, scale):
        return scale * jax.random.normal(next(keys), shape, dtype=jnp.float32)

    ones = lambda: jnp.ones((1, WIDTH), jnp.float32)
    zeros = lambda: jnp.zeros((1, WIDTH), jnp.float32)

    params = {
        "up_w1": w((input_dim, WIDTH), input_dim ** -0.5),
        "up_b1": w((WIDTH,), 0.02),
        "up_w2": w((WIDTH, WIDTH), WIDTH ** -0.5),
        "up_b2": w((WIDTH,), 0.02),
        "pos": w((seq_len, WIDTH), WIDTH ** -0.5),
        "ln_pre_g": ones(), "ln_pre_b": zeros(),
        "ln_post_g": ones(), "ln_post_b": zeros(),
        "layers": [],
    }
    for _ in range(NUM_LAYERS):
        params["layers"].append({
            "ln1_g": ones(), "ln1_b": zeros(),
            "w_in": w((WIDTH, 3 * WIDTH), WIDTH ** -0.5),
            "b_in": w((3 * WIDTH,), 0.02),
            "w_out": w((WIDTH, WIDTH), WIDTH ** -0.5),
            "b_out": w((WIDTH,), 0.02),
            "ln2_g": ones(), "ln2_b": zeros(),
            "w_fc": w((WIDTH, MLP_WIDTH), WIDTH ** -0.5),
            "b_fc": w((MLP_WIDTH,), 0.02),
            "w_proj": w((MLP_WIDTH, WIDTH), MLP_WIDTH ** -0.5),
            "b_proj": w((WIDTH,), 0.02),
        })
    return params


if __name__ == "__main__":
    resolution, down_factor, input_dim = 32, 16, 32
    grid_size = resolution // down_factor           # 2
    S = grid_size ** 3                               # 8 tokens
    B = 2

    root = jax.random.PRNGKey(0)
    k_param, k_x = jax.random.split(root)
    params = init_params(k_param, input_dim, S)
    x = jax.random.normal(k_x, (B, input_dim, grid_size, grid_size, grid_size),
                          dtype=jnp.float32)

    fwd = jax.jit(feat_pred_head_forward)
    out = fwd(x, params)
    out = jax.block_until_ready(out)

    ref = jax.block_until_ready(reference_forward(x, params))
    assert out.shape == (B, S, WIDTH), out.shape
    max_diff = float(jnp.max(jnp.abs(out - ref)))
    # bf16 MXU operands introduce ~1e-2 absolute deviation on the post-LN output
    # (values O(1)); the f32 path matches the exact reference to ~1e-5.
    tol = 8e-2 if USE_BF16_MATMUL else 2e-3
    assert max_diff < tol, f"mismatch vs reference: {max_diff} (tol {tol})"

    print("KERNEL_OK")
</pallas_src>

<mosaic_0001>
module attributes {stable_mosaic.version = 11 : i64} {
  func.func @_upscale_kernel(%arg0: i32, %arg1: memref<1x8x32xf32, #tpu.memory_space<vmem>>, %arg2: memref<32x256xbf16, #tpu.memory_space<vmem>>, %arg3: memref<1x256xf32, #tpu.memory_space<vmem>>, %arg4: memref<256x256xbf16, #tpu.memory_space<vmem>>, %arg5: memref<1x256xf32, #tpu.memory_space<vmem>>, %arg6: memref<8x256xf32, #tpu.memory_space<vmem>>, %arg7: memref<1x256xf32, #tpu.memory_space<vmem>>, %arg8: memref<1x256xf32, #tpu.memory_space<vmem>>, %arg9: memref<1x8x256xf32, #tpu.memory_space<vmem>>) attributes {dimension_semantics = [#tpu.dimension_semantics<parallel>], iteration_bounds = array<i64: 2>, scalar_prefetch = 0 : i64, scratch_operands = 0 : i64, tpu.core_type = #tpu.core_type<tc>, window_params = [{transform_indices = @transform_0, window_bounds = array<i64: 1, 8, 32>}, {pipeline_mode = #tpu.pipeline_mode<synchronous>, transform_indices = @transform_1, window_bounds = array<i64: 32, 256>}, {pipeline_mode = #tpu.pipeline_mode<synchronous>, transform_indices = @transform_2, window_bounds = array<i64: 1, 256>}, {pipeline_mode = #tpu.pipeline_mode<synchronous>, transform_indices = @transform_3, window_bounds = array<i64: 256, 256>}, {pipeline_mode = #tpu.pipeline_mode<synchronous>, transform_indices = @transform_4, window_bounds = array<i64: 1, 256>}, {pipeline_mode = #tpu.pipeline_mode<synchronous>, transform_indices = @transform_5, window_bounds = array<i64: 8, 256>}, {pipeline_mode = #tpu.pipeline_mode<synchronous>, transform_indices = @transform_6, window_bounds = array<i64: 1, 256>}, {pipeline_mode = #tpu.pipeline_mode<synchronous>, transform_indices = @transform_7, window_bounds = array<i64: 1, 256>}, {transform_indices = @transform_8, window_bounds = array<i64: 1, 8, 256>}]} {
    %c0 = arith.constant 0 : index
    %c0_0 = arith.constant 0 : index
    %c0_1 = arith.constant 0 : index
    %0 = vector.load %arg1[%c0, %c0_0, %c0_1] : memref<1x8x32xf32, #tpu.memory_space<vmem>>, vector<1x8x32xf32>
    %1 = vector.shape_cast %0 : vector<1x8x32xf32> to vector<8x32xf32>
    %c0_2 = arith.constant 0 : index
    %c0_3 = arith.constant 0 : index
    %2 = vector.load %arg2[%c0_2, %c0_3] : memref<32x256xbf16, #tpu.memory_space<vmem>>, vector<32x256xbf16>
    %3 = arith.truncf %1 : vector<8x32xf32> to vector<8x32xbf16>
    %cst = arith.constant dense<0.000000e+00> : vector<8x256xf32>
    %4 = tpu.matmul %3, %2, %cst {dimension_numbers = #tpu.dot_dimension_numbers<[1], [0], [0], [1], [0, 0, 1, 1], [], []>} : vector<8x32xbf16>, vector<32x256xbf16>, vector<8x256xf32> -> vector<8x256xf32>
    %c0_4 = arith.constant 0 : index
    %c0_5 = arith.constant 0 : index
    %5 = vector.load %arg3[%c0_4, %c0_5] : memref<1x256xf32, #tpu.memory_space<vmem>>, vector<1x256xf32>
    %6 = vector.broadcast %5 : vector<1x256xf32> to vector<8x256xf32>
    %7 = arith.addf %4, %6 : vector<8x256xf32>
    %cst_6 = arith.constant 0.000000e+00 : f32
    %8 = vector.broadcast %cst_6 : f32 to vector<8x256xf32>
    %9 = arith.maximumf %7, %8 : vector<8x256xf32>
    %c0_7 = arith.constant 0 : index
    %c0_8 = arith.constant 0 : index
    %10 = vector.load %arg4[%c0_7, %c0_8] : memref<256x256xbf16, #tpu.memory_space<vmem>>, vector<256x256xbf16>
    %11 = arith.truncf %9 : vector<8x256xf32> to vector<8x256xbf16>
    %cst_9 = arith.constant dense<0.000000e+00> : vector<8x256xf32>
    %12 = tpu.matmul %11, %10, %cst_9 {dimension_numbers = #tpu.dot_dimension_numbers<[1], [0], [0], [1], [0, 0, 1, 1], [], []>} : vector<8x256xbf16>, vector<256x256xbf16>, vector<8x256xf32> -> vector<8x256xf32>
    %c0_10 = arith.constant 0 : index
    %c0_11 = arith.constant 0 : index
    %13 = vector.load %arg5[%c0_10, %c0_11] : memref<1x256xf32, #tpu.memory_space<vmem>>, vector<1x256xf32>
    %14 = vector.broadcast %13 : vector<1x256xf32> to vector<8x256xf32>
    %15 = arith.addf %12, %14 : vector<8x256xf32>
    %c0_12 = arith.constant 0 : index
    %c0_13 = arith.constant 0 : index
    %16 = vector.load %arg6[%c0_12, %c0_13] : memref<8x256xf32, #tpu.memory_space<vmem>>, vector<8x256xf32>
    %17 = arith.addf %15, %16 : vector<8x256xf32>
    %c0_14 = arith.constant 0 : index
    %c0_15 = arith.constant 0 : index
    %18 = vector.load %arg7[%c0_14, %c0_15] : memref<1x256xf32, #tpu.memory_space<vmem>>, vector<1x256xf32>
    %c0_16 = arith.constant 0 : index
    %c0_17 = arith.constant 0 : index
    %19 = vector.load %arg8[%c0_16, %c0_17] : memref<1x256xf32, #tpu.memory_space<vmem>>, vector<1x256xf32>
    %cst_18 = arith.constant dense<0.000000e+00> : vector<8xf32>
    %20 = vector.multi_reduction <add>, %17, %cst_18 [1] : vector<8x256xf32> to vector<8xf32>
    %21 = vector.shape_cast %20 : vector<8xf32> to vector<8x1xf32>
    %cst_19 = arith.constant 2.560000e+02 : f32
    %22 = vector.broadcast %cst_19 : f32 to vector<8x1xf32>
    %23 = arith.divf %21, %22 : vector<8x1xf32>
    %24 = vector.broadcast %23 : vector<8x1xf32> to vector<8x256xf32>
    %25 = arith.subf %17, %24 : vector<8x256xf32>
    %26 = arith.mulf %25, %25 : vector<8x256xf32>
    %cst_20 = arith.constant dense<0.000000e+00> : vector<8xf32>
    %27 = vector.multi_reduction <add>, %26, %cst_20 [1] : vector<8x256xf32> to vector<8xf32>
    %28 = vector.shape_cast %27 : vector<8xf32> to vector<8x1xf32>
    %cst_21 = arith.constant 2.560000e+02 : f32
    %29 = vector.broadcast %cst_21 : f32 to vector<8x1xf32>
    %30 = arith.divf %28, %29 : vector<8x1xf32>
    %cst_22 = arith.constant 9.99999974E-6 : f32
    %31 = vector.broadcast %cst_22 : f32 to vector<8x1xf32>
    %32 = arith.addf %30, %31 : vector<8x1xf32>
    %33 = math.rsqrt %32 : vector<8x1xf32>
    %34 = vector.broadcast %33 : vector<8x1xf32> to vector<8x256xf32>
    %35 = arith.mulf %25, %34 : vector<8x256xf32>
    %36 = vector.broadcast %18 : vector<1x256xf32> to vector<8x256xf32>
    %37 = arith.mulf %35, %36 : vector<8x256xf32>
    %38 = vector.broadcast %19 : vector<1x256xf32> to vector<8x256xf32>
    %39 = arith.addf %37, %38 : vector<8x256xf32>
    %c0_23 = arith.constant 0 : index
    %c0_24 = arith.constant 0 : index
    %c0_25 = arith.constant 0 : index
    %40 = vector.load %arg9[%c0_23, %c0_24, %c0_25] : memref<1x8x256xf32, #tpu.memory_space<vmem>>, vector<1x8x256xf32>
    %41 = vector.shape_cast %40 : vector<1x8x256xf32> to vector<8x256xf32>
    %42 = vector.shape_cast %39 : vector<8x256xf32> to vector<1x8x256xf32>
    tpu.vector_store %arg9[%c0_23, %c0_24, %c0_25], %42 {strides = array<i32>} : memref<1x8x256xf32, #tpu.memory_space<vmem>>, vector<1x8x256xf32>,
    return
  }
  func.func @transform_0(%arg0: i32) -> (i32, i32, i32) {
    %c0_i32 = arith.constant 0 : i32
    %c0_i32_0 = arith.constant 0 : i32
    %c0_i32_1 = arith.constant 0 : i32
    return %arg0, %c0_i32, %c0_i32_0 : i32, i32, i32
  }
  func.func @transform_1(%arg0: i32) -> (i32, i32) {
    %c0_i32 = arith.constant 0 : i32
    %c0_i32_0 = arith.constant 0 : i32
    %c0_i32_1 = arith.constant 0 : i32
    return %c0_i32, %c0_i32_0 : i32, i32
  }
  func.func @transform_2(%arg0: i32) -> (i32, i32) {
    %c0_i32 = arith.constant 0 : i32
    %c0_i32_0 = arith.constant 0 : i32
    %c0_i32_1 = arith.constant 0 : i32
    return %c0_i32, %c0_i32_0 : i32, i32
  }
  func.func @transform_3(%arg0: i32) -> (i32, i32) {
    %c0_i32 = arith.constant 0 : i32
    %c0_i32_0 = arith.constant 0 : i32
    %c0_i32_1 = arith.constant 0 : i32
    return %c0_i32, %c0_i32_0 : i32, i32
  }
  func.func @transform_4(%arg0: i32) -> (i32, i32) {
    %c0_i32 = arith.constant 0 : i32
    %c0_i32_0 = arith.constant 0 : i32
    %c0_i32_1 = arith.constant 0 : i32
    return %c0_i32, %c0_i32_0 : i32, i32
  }
  func.func @transform_5(%arg0: i32) -> (i32, i32) {
    %c0_i32 = arith.constant 0 : i32
    %c0_i32_0 = arith.constant 0 : i32
    %c0_i32_1 = arith.constant 0 : i32
    return %c0_i32, %c0_i32_0 : i32, i32
  }
  func.func @transform_6(%arg0: i32) -> (i32, i32) {
    %c0_i32 = arith.constant 0 : i32
    %c0_i32_0 = arith.constant 0 : i32
    %c0_i32_1 = arith.constant 0 : i32
    return %c0_i32, %c0_i32_0 : i32, i32
  }
  func.func @transform_7(%arg0: i32) -> (i32, i32) {
    %c0_i32 = arith.constant 0 : i32
    %c0_i32_0 = arith.constant 0 : i32
    %c0_i32_1 = arith.constant 0 : i32
    return %c0_i32, %c0_i32_0 : i32, i32
  }
  func.func @transform_8(%arg0: i32) -> (i32, i32, i32) {
    %c0_i32 = arith.constant 0 : i32
    %c0_i32_0 = arith.constant 0 : i32
    %c0_i32_1 = arith.constant 0 : i32
    return %arg0, %c0_i32, %c0_i32_0 : i32, i32, i32
  }
}

module attributes {stable_mosaic.version = 11 : i64} {
  func.func @_attn_block_kernel(%arg0: i32, %arg1: memref<1x8x256xf32, #tpu.memory_space<vmem>>, %arg2: memref<1x256xf32, #tpu.memory_space<vmem>>, %arg3: memref<1x256xf32, #tpu.memory_space<vmem>>, %arg4: memref<256x768xbf16, #tpu.memory_space<vmem>>, %arg5: memref<1x768xf32, #tpu.memory_space<vmem>>, %arg6: memref<256x256xbf16, #tpu.memory_space<vmem>>, %arg7: memref<1x256xf32, #tpu.memory_space<vmem>>, %arg8: memref<1x8x256xf32, #tpu.memory_space<vmem>>) attributes {dimension_semantics = [#tpu.dimension_semantics<parallel>], iteration_bounds = array<i64: 2>, scalar_prefetch = 0 : i64, scratch_operands = 0 : i64, tpu.core_type = #tpu.core_type<tc>, window_params = [{transform_indices = @transform_0, window_bounds = array<i64: 1, 8, 256>}, {pipeline_mode = #tpu.pipeline_mode<synchronous>, transform_indices = @transform_1, window_bounds = array<i64: 1, 256>}, {pipeline_mode = #tpu.pipeline_mode<synchronous>, transform_indices = @transform_2, window_bounds = array<i64: 1, 256>}, {pipeline_mode = #tpu.pipeline_mode<synchronous>, transform_indices = @transform_3, window_bounds = array<i64: 256, 768>}, {pipeline_mode = #tpu.pipeline_mode<synchronous>, transform_indices = @transform_4, window_bounds = array<i64: 1, 768>}, {pipeline_mode = #tpu.pipeline_mode<synchronous>, transform_indices = @transform_5, window_bounds = array<i64: 256, 256>}, {pipeline_mode = #tpu.pipeline_mode<synchronous>, transform_indices = @transform_6, window_bounds = array<i64: 1, 256>}, {transform_indices = @transform_7, window_bounds = array<i64: 1, 8, 256>}]} {
    %c0 = arith.constant 0 : index
    %c0_0 = arith.constant 0 : index
    %c0_1 = arith.constant 0 : index
    %0 = vector.load %arg1[%c0, %c0_0, %c0_1] : memref<1x8x256xf32, #tpu.memory_space<vmem>>, vector<1x8x256xf32>
    %1 = vector.shape_cast %0 : vector<1x8x256xf32> to vector<8x256xf32>
    %c0_2 = arith.constant 0 : index
    %c0_3 = arith.constant 0 : index
    %2 = vector.load %arg2[%c0_2, %c0_3] : memref<1x256xf32, #tpu.memory_space<vmem>>, vector<1x256xf32>
    %c0_4 = arith.constant 0 : index
    %c0_5 = arith.constant 0 : index
    %3 = vector.load %arg3[%c0_4, %c0_5] : memref<1x256xf32, #tpu.memory_space<vmem>>, vector<1x256xf32>
    %cst = arith.constant dense<0.000000e+00> : vector<8xf32>
    %4 = vector.multi_reduction <add>, %1, %cst [1] : vector<8x256xf32> to vector<8xf32>
    %5 = vector.shape_cast %4 : vector<8xf32> to vector<8x1xf32>
    %cst_6 = arith.constant 2.560000e+02 : f32
    %6 = vector.broadcast %cst_6 : f32 to vector<8x1xf32>
    %7 = arith.divf %5, %6 : vector<8x1xf32>
    %8 = vector.broadcast %7 : vector<8x1xf32> to vector<8x256xf32>
    %9 = arith.subf %1, %8 : vector<8x256xf32>
    %10 = arith.mulf %9, %9 : vector<8x256xf32>
    %cst_7 = arith.constant dense<0.000000e+00> : vector<8xf32>
    %11 = vector.multi_reduction <add>, %10, %cst_7 [1] : vector<8x256xf32> to vector<8xf32>
    %12 = vector.shape_cast %11 : vector<8xf32> to vector<8x1xf32>
    %cst_8 = arith.constant 2.560000e+02 : f32
    %13 = vector.broadcast %cst_8 : f32 to vector<8x1xf32>
    %14 = arith.divf %12, %13 : vector<8x1xf32>
    %cst_9 = arith.constant 9.99999974E-6 : f32
    %15 = vector.broadcast %cst_9 : f32 to vector<8x1xf32>
    %16 = arith.addf %14, %15 : vector<8x1xf32>
    %17 = math.rsqrt %16 : vector<8x1xf32>
    %18 = vector.broadcast %17 : vector<8x1xf32> to vector<8x256xf32>
    %19 = arith.mulf %9, %18 : vector<8x256xf32>
    %20 = vector.broadcast %2 : vector<1x256xf32> to vector<8x256xf32>
    %21 = arith.mulf %19, %20 : vector<8x256xf32>
    %22 = vector.broadcast %3 : vector<1x256xf32> to vector<8x256xf32>
    %23 = arith.addf %21, %22 : vector<8x256xf32>
    %c0_10 = arith.constant 0 : index
    %c0_11 = arith.constant 0 : index
    %24 = vector.load %arg4[%c0_10, %c0_11] : memref<256x768xbf16, #tpu.memory_space<vmem>>, vector<256x768xbf16>
    %25 = arith.truncf %23 : vector<8x256xf32> to vector<8x256xbf16>
    %cst_12 = arith.constant dense<0.000000e+00> : vector<8x768xf32>
    %26 = tpu.matmul %25, %24, %cst_12 {dimension_numbers = #tpu.dot_dimension_numbers<[1], [0], [0], [1], [0, 0, 1, 1], [], []>} : vector<8x256xbf16>, vector<256x768xbf16>, vector<8x768xf32> -> vector<8x768xf32>
    %c0_13 = arith.constant 0 : index
    %c0_14 = arith.constant 0 : index
    %27 = vector.load %arg5[%c0_13, %c0_14] : memref<1x768xf32, #tpu.memory_space<vmem>>, vector<1x768xf32>
    %28 = vector.broadcast %27 : vector<1x768xf32> to vector<8x768xf32>
    %29 = arith.addf %26, %28 : vector<8x768xf32>
    %30 = vector.extract_strided_slice %29 {offsets = [0, 0], sizes = [8, 32], strides = [1, 1]} : vector<8x768xf32> to vector<8x32xf32>
    %cst_15 = arith.constant 0.176776692 : f32
    %31 = vector.broadcast %cst_15 : f32 to vector<8x32xf32>
    %32 = arith.mulf %30, %31 : vector<8x32xf32>
    %33 = vector.extract_strided_slice %29 {offsets = [0, 256], sizes = [8, 32], strides = [1, 1]} : vector<8x768xf32> to vector<8x32xf32>
    %34 = vector.extract_strided_slice %29 {offsets = [0, 512], sizes = [8, 32], strides = [1, 1]} : vector<8x768xf32> to vector<8x32xf32>
    %35 = arith.truncf %32 : vector<8x32xf32> to vector<8x32xbf16>
    %36 = arith.truncf %33 : vector<8x32xf32> to vector<8x32xbf16>
    %cst_16 = arith.constant dense<0.000000e+00> : vector<8x8xf32>
    %37 = tpu.matmul %35, %36, %cst_16 {dimension_numbers = #tpu.dot_dimension_numbers<[1], [1], [0], [0], [0, 0, 1, 0], [], []>} : vector<8x32xbf16>, vector<8x32xbf16>, vector<8x8xf32> -> vector<8x8xf32>
    %cst_17 = arith.constant dense<0xFF800000> : vector<8xf32>
    %38 = vector.multi_reduction <maximumf>, %37, %cst_17 [1] : vector<8x8xf32> to vector<8xf32>
    %39 = vector.shape_cast %38 : vector<8xf32> to vector<8x1xf32>
    %40 = vector.broadcast %39 : vector<8x1xf32> to vector<8x8xf32>
    %41 = arith.subf %37, %40 : vector<8x8xf32>
    %42 = math.exp %41 : vector<8x8xf32>
    %cst_18 = arith.constant dense<0.000000e+00> : vector<8xf32>
    %43 = vector.multi_reduction <add>, %42, %cst_18 [1] : vector<8x8xf32> to vector<8xf32>
    %44 = vector.shape_cast %43 : vector<8xf32> to vector<8x1xf32>
    %45 = tpu.reciprocal %44 {approx = true} : vector<8x1xf32> -> vector<8x1xf32>
    %46 = vector.broadcast %45 : vector<8x1xf32> to vector<8x8xf32>
    %47 = arith.mulf %42, %46 : vector<8x8xf32>
    %48 = arith.truncf %34 : vector<8x32xf32> to vector<8x32xbf16>
    %49 = arith.truncf %47 : vector<8x8xf32> to vector<8x8xbf16>
    %cst_19 = arith.constant dense<0.000000e+00> : vector<8x32xf32>
    %50 = tpu.matmul %49, %48, %cst_19 {dimension_numbers = #tpu.dot_dimension_numbers<[1], [0], [0], [1], [0, 0, 1, 1], [], []>} : vector<8x8xbf16>, vector<8x32xbf16>, vector<8x32xf32> -> vector<8x32xf32>
    %51 = vector.extract_strided_slice %29 {offsets = [0, 32], sizes = [8, 32], strides = [1, 1]} : vector<8x768xf32> to vector<8x32xf32>
    %cst_20 = arith.constant 0.176776692 : f32
    %52 = vector.broadcast %cst_20 : f32 to vector<8x32xf32>
    %53 = arith.mulf %51, %52 : vector<8x32xf32>
    %54 = vector.extract_strided_slice %29 {offsets = [0, 288], sizes = [8, 32], strides = [1, 1]} : vector<8x768xf32> to vector<8x32xf32>
    %55 = vector.extract_strided_slice %29 {offsets = [0, 544], sizes = [8, 32], strides = [1, 1]} : vector<8x768xf32> to vector<8x32xf32>
    %56 = arith.truncf %53 : vector<8x32xf32> to vector<8x32xbf16>
    %57 = arith.truncf %54 : vector<8x32xf32> to vector<8x32xbf16>
    %cst_21 = arith.constant dense<0.000000e+00> : vector<8x8xf32>
    %58 = tpu.matmul %56, %57, %cst_21 {dimension_numbers = #tpu.dot_dimension_numbers<[1], [1], [0], [0], [0, 0, 1, 0], [], []>} : vector<8x32xbf16>, vector<8x32xbf16>, vector<8x8xf32> -> vector<8x8xf32>
    %cst_22 = arith.constant dense<0xFF800000> : vector<8xf32>
    %59 = vector.multi_reduction <maximumf>, %58, %cst_22 [1] : vector<8x8xf32> to vector<8xf32>
    %60 = vector.shape_cast %59 : vector<8xf32> to vector<8x1xf32>
    %61 = vector.broadcast %60 : vector<8x1xf32> to vector<8x8xf32>
    %62 = arith.subf %58, %61 : vector<8x8xf32>
    %63 = math.exp %62 : vector<8x8xf32>
    %cst_23 = arith.constant dense<0.000000e+00> : vector<8xf32>
    %64 = vector.multi_reduction <add>, %63, %cst_23 [1] : vector<8x8xf32> to vector<8xf32>
    %65 = vector.shape_cast %64 : vector<8xf32> to vector<8x1xf32>
    %66 = tpu.reciprocal %65 {approx = true} : vector<8x1xf32> -> vector<8x1xf32>
    %67 = vector.broadcast %66 : vector<8x1xf32> to vector<8x8xf32>
    %68 = arith.mulf %63, %67 : vector<8x8xf32>
    %69 = arith.truncf %55 : vector<8x32xf32> to vector<8x32xbf16>
    %70 = arith.truncf %68 : vector<8x8xf32> to vector<8x8xbf16>
    %cst_24 = arith.constant dense<0.000000e+00> : vector<8x32xf32>
    %71 = tpu.matmul %70, %69, %cst_24 {dimension_numbers = #tpu.dot_dimension_numbers<[1], [0], [0], [1], [0, 0, 1, 1], [], []>} : vector<8x8xbf16>, vector<8x32xbf16>, vector<8x32xf32> -> vector<8x32xf32>
    %72 = vector.extract_strided_slice %29 {offsets = [0, 64], sizes = [8, 32], strides = [1, 1]} : vector<8x768xf32> to vector<8x32xf32>
    %cst_25 = arith.constant 0.176776692 : f32
    %73 = vector.broadcast %cst_25 : f32 to vector<8x32xf32>
    %74 = arith.mulf %72, %73 : vector<8x32xf32>
    %75 = vector.extract_strided_slice %29 {offsets = [0, 320], sizes = [8, 32], strides = [1, 1]} : vector<8x768xf32> to vector<8x32xf32>
    %76 = vector.extract_strided_slice %29 {offsets = [0, 576], sizes = [8, 32], strides = [1, 1]} : vector<8x768xf32> to vector<8x32xf32>
    %77 = arith.truncf %74 : vector<8x32xf32> to vector<8x32xbf16>
    %78 = arith.truncf %75 : vector<8x32xf32> to vector<8x32xbf16>
    %cst_26 = arith.constant dense<0.000000e+00> : vector<8x8xf32>
    %79 = tpu.matmul %77, %78, %cst_26 {dimension_numbers = #tpu.dot_dimension_numbers<[1], [1], [0], [0], [0, 0, 1, 0], [], []>} : vector<8x32xbf16>, vector<8x32xbf16>, vector<8x8xf32> -> vector<8x8xf32>
    %cst_27 = arith.constant dense<0xFF800000> : vector<8xf32>
    %80 = vector.multi_reduction <maximumf>, %79, %cst_27 [1] : vector<8x8xf32> to vector<8xf32>
    %81 = vector.shape_cast %80 : vector<8xf32> to vector<8x1xf32>
    %82 = vector.broadcast %81 : vector<8x1xf32> to vector<8x8xf32>
    %83 = arith.subf %79, %82 : vector<8x8xf32>
    %84 = math.exp %83 : vector<8x8xf32>
    %cst_28 = arith.constant dense<0.000000e+00> : vector<8xf32>
    %85 = vector.multi_reduction <add>, %84, %cst_28 [1] : vector<8x8xf32> to vector<8xf32>
    %86 = vector.shape_cast %85 : vector<8xf32> to vector<8x1xf32>
    %87 = tpu.reciprocal %86 {approx = true} : vector<8x1xf32> -> vector<8x1xf32>
    %88 = vector.broadcast %87 : vector<8x1xf32> to vector<8x8xf32>
    %89 = arith.mulf %84, %88 : vector<8x8xf32>
    %90 = arith.truncf %76 : vector<8x32xf32> to vector<8x32xbf16>
    %91 = arith.truncf %89 : vector<8x8xf32> to vector<8x8xbf16>
    %cst_29 = arith.constant dense<0.000000e+00> : vector<8x32xf32>
    %92 = tpu.matmul %91, %90, %cst_29 {dimension_numbers = #tpu.dot_dimension_numbers<[1], [0], [0], [1], [0, 0, 1, 1], [], []>} : vector<8x8xbf16>, vector<8x32xbf16>, vector<8x32xf32> -> vector<8x32xf32>
    %93 = vector.extract_strided_slice %29 {offsets = [0, 96], sizes = [8, 32], strides = [1, 1]} : vector<8x768xf32> to vector<8x32xf32>
    %cst_30 = arith.constant 0.176776692 : f32
    %94 = vector.broadcast %cst_30 : f32 to vector<8x32xf32>
    %95 = arith.mulf %93, %94 : vector<8x32xf32>
    %96 = vector.extract_strided_slice %29 {offsets = [0, 352], sizes = [8, 32], strides = [1, 1]} : vector<8x768xf32> to vector<8x32xf32>
    %97 = vector.extract_strided_slice %29 {offsets = [0, 608], sizes = [8, 32], strides = [1, 1]} : vector<8x768xf32> to vector<8x32xf32>
    %98 = arith.truncf %95 : vector<8x32xf32> to vector<8x32xbf16>
    %99 = arith.truncf %96 : vector<8x32xf32> to vector<8x32xbf16>
    %cst_31 = arith.constant dense<0.000000e+00> : vector<8x8xf32>
    %100 = tpu.matmul %98, %99, %cst_31 {dimension_numbers = #tpu.dot_dimension_numbers<[1], [1], [0], [0], [0, 0, 1, 0], [], []>} : vector<8x32xbf16>, vector<8x32xbf16>, vector<8x8xf32> -> vector<8x8xf32>
    %cst_32 = arith.constant dense<0xFF800000> : vector<8xf32>
    %101 = vector.multi_reduction <maximumf>, %100, %cst_32 [1] : vector<8x8xf32> to vector<8xf32>
    %102 = vector.shape_cast %101 : vector<8xf32> to vector<8x1xf32>
    %103 = vector.broadcast %102 : vector<8x1xf32> to vector<8x8xf32>
    %104 = arith.subf %100, %103 : vector<8x8xf32>
    %105 = math.exp %104 : vector<8x8xf32>
    %cst_33 = arith.constant dense<0.000000e+00> : vector<8xf32>
    %106 = vector.multi_reduction <add>, %105, %cst_33 [1] : vector<8x8xf32> to vector<8xf32>
    %107 = vector.shape_cast %106 : vector<8xf32> to vector<8x1xf32>
    %108 = tpu.reciprocal %107 {approx = true} : vector<8x1xf32> -> vector<8x1xf32>
    %109 = vector.broadcast %108 : vector<8x1xf32> to vector<8x8xf32>
    %110 = arith.mulf %105, %109 : vector<8x8xf32>
    %111 = arith.truncf %97 : vector<8x32xf32> to vector<8x32xbf16>
    %112 = arith.truncf %110 : vector<8x8xf32> to vector<8x8xbf16>
    %cst_34 = arith.constant dense<0.000000e+00> : vector<8x32xf32>
    %113 = tpu.matmul %112, %111, %cst_34 {dimension_numbers = #tpu.dot_dimension_numbers<[1], [0], [0], [1], [0, 0, 1, 1], [], []>} : vector<8x8xbf16>, vector<8x32xbf16>, vector<8x32xf32> -> vector<8x32xf32>
    %114 = vector.extract_strided_slice %29 {offsets = [0, 128], sizes = [8, 32], strides = [1, 1]} : vector<8x768xf32> to vector<8x32xf32>
    %cst_35 = arith.constant 0.176776692 : f32
    %115 = vector.broadcast %cst_35 : f32 to vector<8x32xf32>
    %116 = arith.mulf %114, %115 : vector<8x32xf32>
    %117 = vector.extract_strided_slice %29 {offsets = [0, 384], sizes = [8, 32], strides = [1, 1]} : vector<8x768xf32> to vector<8x32xf32>
    %118 = vector.extract_strided_slice %29 {offsets = [0, 640], sizes = [8, 32], strides = [1, 1]} : vector<8x768xf32> to vector<8x32xf32>
    %119 = arith.truncf %116 : vector<8x32xf32> to vector<8x32xbf16>
    %120 = arith.truncf %117 : vector<8x32xf32> to vector<8x32xbf16>
    %cst_36 = arith.constant dense<0.000000e+00> : vector<8x8xf32>
    %121 = tpu.matmul %119, %120, %cst_36 {dimension_numbers = #tpu.dot_dimension_numbers<[1], [1], [0], [0], [0, 0, 1, 0], [], []>} : vector<8x32xbf16>, vector<8x32xbf16>, vector<8x8xf32> -> vector<8x8xf32>
    %cst_37 = arith.constant dense<0xFF800000> : vector<8xf32>
    %122 = vector.multi_reduction <maximumf>, %121, %cst_37 [1] : vector<8x8xf32> to vector<8xf32>
    %123 = vector.shape_cast %122 : vector<8xf32> to vector<8x1xf32>
    %124 = vector.broadcast %123 : vector<8x1xf32> to vector<8x8xf32>
    %125 = arith.subf %121, %124 : vector<8x8xf32>
    %126 = math.exp %125 : vector<8x8xf32>
    %cst_38 = arith.constant dense<0.000000e+00> : vector<8xf32>
    %127 = vector.multi_reduction <add>, %126, %cst_38 [1] : vector<8x8xf32> to vector<8xf32>
    %128 = vector.shape_cast %127 : vector<8xf32> to vector<8x1xf32>
    %129 = tpu.reciprocal %128 {approx = true} : vector<8x1xf32> -> vector<8x1xf32>
    %130 = vector.broadcast %129 : vector<8x1xf32> to vector<8x8xf32>
    %131 = arith.mulf %126, %130 : vector<8x8xf32>
    %132 = arith.truncf %118 : vector<8x32xf32> to vector<8x32xbf16>
    %133 = arith.truncf %131 : vector<8x8xf32> to vector<8x8xbf16>
    %cst_39 = arith.constant dense<0.000000e+00> : vector<8x32xf32>
    %134 = tpu.matmul %133, %132, %cst_39 {dimension_numbers = #tpu.dot_dimension_numbers<[1], [0], [0], [1], [0, 0, 1, 1], [], []>} : vector<8x8xbf16>, vector<8x32xbf16>, vector<8x32xf32> -> vector<8x32xf32>
    %135 = vector.extract_strided_slice %29 {offsets = [0, 160], sizes = [8, 32], strides = [1, 1]} : vector<8x768xf32> to vector<8x32xf32>
    %cst_40 = arith.constant 0.176776692 : f32
    %136 = vector.broadcast %cst_40 : f32 to vector<8x32xf32>
    %137 = arith.mulf %135, %136 : vector<8x32xf32>
    %138 = vector.extract_strided_slice %29 {offsets = [0, 416], sizes = [8, 32], strides = [1, 1]} : vector<8x768xf32> to vector<8x32xf32>
    %139 = vector.extract_strided_slice %29 {offsets = [0, 672], sizes = [8, 32], strides = [1, 1]} : vector<8x768xf32> to vector<8x32xf32>
    %140 = arith.truncf %137 : vector<8x32xf32> to vector<8x32xbf16>
    %141 = arith.truncf %138 : vector<8x32xf32> to vector<8x32xbf16>
    %cst_41 = arith.constant dense<0.000000e+00> : vector<8x8xf32>
    %142 = tpu.matmul %140, %141, %cst_41 {dimension_numbers = #tpu.dot_dimension_numbers<[1], [1], [0], [0], [0, 0, 1, 0], [], []>} : vector<8x32xbf16>, vector<8x32xbf16>, vector<8x8xf32> -> vector<8x8xf32>
    %cst_42 = arith.constant dense<0xFF800000> : vector<8xf32>
    %143 = vector.multi_reduction <maximumf>, %142, %cst_42 [1] : vector<8x8xf32> to vector<8xf32>
    %144 = vector.shape_cast %143 : vector<8xf32> to vector<8x1xf32>
    %145 = vector.broadcast %144 : vector<8x1xf32> to vector<8x8xf32>
    %146 = arith.subf %142, %145 : vector<8x8xf32>
    %147 = math.exp %146 : vector<8x8xf32>
    %cst_43 = arith.constant dense<0.000000e+00> : vector<8xf32>
    %148 = vector.multi_reduction <add>, %147, %cst_43 [1] : vector<8x8xf32> to vector<8xf32>
    %149 = vector.shape_cast %148 : vector<8xf32> to vector<8x1xf32>
    %150 = tpu.reciprocal %149 {approx = true} : vector<8x1xf32> -> vector<8x1xf32>
    %151 = vector.broadcast %150 : vector<8x1xf32> to vector<8x8xf32>
    %152 = arith.mulf %147, %151 : vector<8x8xf32>
    %153 = arith.truncf %139 : vector<8x32xf32> to vector<8x32xbf16>
    %154 = arith.truncf %152 : vector<8x8xf32> to vector<8x8xbf16>
    %cst_44 = arith.constant dense<0.000000e+00> : vector<8x32xf32>
    %155 = tpu.matmul %154, %153, %cst_44 {dimension_numbers = #tpu.dot_dimension_numbers<[1], [0], [0], [1], [0, 0, 1, 1], [], []>} : vector<8x8xbf16>, vector<8x32xbf16>, vector<8x32xf32> -> vector<8x32xf32>
    %156 = vector.extract_strided_slice %29 {offsets = [0, 192], sizes = [8, 32], strides = [1, 1]} : vector<8x768xf32> to vector<8x32xf32>
    %cst_45 = arith.constant 0.176776692 : f32
    %157 = vector.broadcast %cst_45 : f32 to vector<8x32xf32>
    %158 = arith.mulf %156, %157 : vector<8x32xf32>
    %159 = vector.extract_strided_slice %29 {offsets = [0, 448], sizes = [8, 32], strides = [1, 1]} : vector<8x768xf32> to vector<8x32xf32>
    %160 = vector.extract_strided_slice %29 {offsets = [0, 704], sizes = [8, 32], strides = [1, 1]} : vector<8x768xf32> to vector<8x32xf32>
    %161 = arith.truncf %158 : vector<8x32xf32> to vector<8x32xbf16>
    %162 = arith.truncf %159 : vector<8x32xf32> to vector<8x32xbf16>
    %cst_46 = arith.constant dense<0.000000e+00> : vector<8x8xf32>
    %163 = tpu.matmul %161, %162, %cst_46 {dimension_numbers = #tpu.dot_dimension_numbers<[1], [1], [0], [0], [0, 0, 1, 0], [], []>} : vector<8x32xbf16>, vector<8x32xbf16>, vector<8x8xf32> -> vector<8x8xf32>
    %cst_47 = arith.constant dense<0xFF800000> : vector<8xf32>
    %164 = vector.multi_reduction <maximumf>, %163, %cst_47 [1] : vector<8x8xf32> to vector<8xf32>
    %165 = vector.shape_cast %164 : vector<8xf32> to vector<8x1xf32>
    %166 = vector.broadcast %165 : vector<8x1xf32> to vector<8x8xf32>
    %167 = arith.subf %163, %166 : vector<8x8xf32>
    %168 = math.exp %167 : vector<8x8xf32>
    %cst_48 = arith.constant dense<0.000000e+00> : vector<8xf32>
    %169 = vector.multi_reduction <add>, %168, %cst_48 [1] : vector<8x8xf32> to vector<8xf32>
    %170 = vector.shape_cast %169 : vector<8xf32> to vector<8x1xf32>
    %171 = tpu.reciprocal %170 {approx = true} : vector<8x1xf32> -> vector<8x1xf32>
    %172 = vector.broadcast %171 : vector<8x1xf32> to vector<8x8xf32>
    %173 = arith.mulf %168, %172 : vector<8x8xf32>
    %174 = arith.truncf %160 : vector<8x32xf32> to vector<8x32xbf16>
    %175 = arith.truncf %173 : vector<8x8xf32> to vector<8x8xbf16>
    %cst_49 = arith.constant dense<0.000000e+00> : vector<8x32xf32>
    %176 = tpu.matmul %175, %174, %cst_49 {dimension_numbers = #tpu.dot_dimension_numbers<[1], [0], [0], [1], [0, 0, 1, 1], [], []>} : vector<8x8xbf16>, vector<8x32xbf16>, vector<8x32xf32> -> vector<8x32xf32>
    %177 = vector.extract_strided_slice %29 {offsets = [0, 224], sizes = [8, 32], strides = [1, 1]} : vector<8x768xf32> to vector<8x32xf32>
    %cst_50 = arith.constant 0.176776692 : f32
    %178 = vector.broadcast %cst_50 : f32 to vector<8x32xf32>
    %179 = arith.mulf %177, %178 : vector<8x32xf32>
    %180 = vector.extract_strided_slice %29 {offsets = [0, 480], sizes = [8, 32], strides = [1, 1]} : vector<8x768xf32> to vector<8x32xf32>
    %181 = vector.extract_strided_slice %29 {offsets = [0, 736], sizes = [8, 32], strides = [1, 1]} : vector<8x768xf32> to vector<8x32xf32>
    %182 = arith.truncf %179 : vector<8x32xf32> to vector<8x32xbf16>
    %183 = arith.truncf %180 : vector<8x32xf32> to vector<8x32xbf16>
    %cst_51 = arith.constant dense<0.000000e+00> : vector<8x8xf32>
    %184 = tpu.matmul %182, %183, %cst_51 {dimension_numbers = #tpu.dot_dimension_numbers<[1], [1], [0], [0], [0, 0, 1, 0], [], []>} : vector<8x32xbf16>, vector<8x32xbf16>, vector<8x8xf32> -> vector<8x8xf32>
    %cst_52 = arith.constant dense<0xFF800000> : vector<8xf32>
    %185 = vector.multi_reduction <maximumf>, %184, %cst_52 [1] : vector<8x8xf32> to vector<8xf32>
    %186 = vector.shape_cast %185 : vector<8xf32> to vector<8x1xf32>
    %187 = vector.broadcast %186 : vector<8x1xf32> to vector<8x8xf32>
    %188 = arith.subf %184, %187 : vector<8x8xf32>
    %189 = math.exp %188 : vector<8x8xf32>
    %cst_53 = arith.constant dense<0.000000e+00> : vector<8xf32>
    %190 = vector.multi_reduction <add>, %189, %cst_53 [1] : vector<8x8xf32> to vector<8xf32>
    %191 = vector.shape_cast %190 : vector<8xf32> to vector<8x1xf32>
    %192 = tpu.reciprocal %191 {approx = true} : vector<8x1xf32> -> vector<8x1xf32>
    %193 = vector.broadcast %192 : vector<8x1xf32> to vector<8x8xf32>
    %194 = arith.mulf %189, %193 : vector<8x8xf32>
    %195 = arith.truncf %181 : vector<8x32xf32> to vector<8x32xbf16>
    %196 = arith.truncf %194 : vector<8x8xf32> to vector<8x8xbf16>
    %cst_54 = arith.constant dense<0.000000e+00> : vector<8x32xf32>
    %197 = tpu.matmul %196, %195, %cst_54 {dimension_numbers = #tpu.dot_dimension_numbers<[1], [0], [0], [1], [0, 0, 1, 1], [], []>} : vector<8x8xbf16>, vector<8x32xbf16>, vector<8x32xf32> -> vector<8x32xf32>
    %198 = tpu.concatenate %50, %71, %92, %113, %134, %155, %176, %197 in 1 : vector<8x32xf32>, vector<8x32xf32>, vector<8x32xf32>, vector<8x32xf32>, vector<8x32xf32>, vector<8x32xf32>, vector<8x32xf32>, vector<8x32xf32> -> vector<8x256xf32>
    %c0_55 = arith.constant 0 : index
    %c0_56 = arith.constant 0 : index
    %199 = vector.load %arg6[%c0_55, %c0_56] : memref<256x256xbf16, #tpu.memory_space<vmem>>, vector<256x256xbf16>
    %200 = arith.truncf %198 : vector<8x256xf32> to vector<8x256xbf16>
    %cst_57 = arith.constant dense<0.000000e+00> : vector<8x256xf32>
    %201 = tpu.matmul %200, %199, %cst_57 {dimension_numbers = #tpu.dot_dimension_numbers<[1], [0], [0], [1], [0, 0, 1, 1], [], []>} : vector<8x256xbf16>, vector<256x256xbf16>, vector<8x256xf32> -> vector<8x256xf32>
    %c0_58 = arith.constant 0 : index
    %c0_59 = arith.constant 0 : index
    %202 = vector.load %arg7[%c0_58, %c0_59] : memref<1x256xf32, #tpu.memory_space<vmem>>, vector<1x256xf32>
    %203 = vector.broadcast %202 : vector<1x256xf32> to vector<8x256xf32>
    %204 = arith.addf %201, %203 : vector<8x256xf32>
    %205 = arith.addf %204, %1 : vector<8x256xf32>
    %c0_60 = arith.constant 0 : index
    %c0_61 = arith.constant 0 : index
    %c0_62 = arith.constant 0 : index
    %206 = vector.load %arg8[%c0_60, %c0_61, %c0_62] : memref<1x8x256xf32, #tpu.memory_space<vmem>>, vector<1x8x256xf32>
    %207 = vector.shape_cast %206 : vector<1x8x256xf32> to vector<8x256xf32>
    %208 = vector.shape_cast %205 : vector<8x256xf32> to vector<1x8x256xf32>
    tpu.vector_store %arg8[%c0_60, %c0_61, %c0_62], %208 {strides = array<i32>} : memref<1x8x256xf32, #tpu.memory_space<vmem>>, vector<1x8x256xf32>,
    return
  }
  func.func @transform_0(%arg0: i32) -> (i32, i32, i32) {
    %c0_i32 = arith.constant 0 : i32
    %c0_i32_0 = arith.constant 0 : i32
    %c0_i32_1 = arith.constant 0 : i32
    return %arg0, %c0_i32, %c0_i32_0 : i32, i32, i32
  }
  func.func @transform_1(%arg0: i32) -> (i32, i32) {
    %c0_i32 = arith.constant 0 : i32
    %c0_i32_0 = arith.constant 0 : i32
    %c0_i32_1 = arith.constant 0 : i32
    return %c0_i32, %c0_i32_0 : i32, i32
  }
  func.func @transform_2(%arg0: i32) -> (i32, i32) {
    %c0_i32 = arith.constant 0 : i32
    %c0_i32_0 = arith.constant 0 : i32
    %c0_i32_1 = arith.constant 0 : i32
    return %c0_i32, %c0_i32_0 : i32, i32
  }
  func.func @transform_3(%arg0: i32) -> (i32, i32) {
    %c0_i32 = arith.constant 0 : i32
    %c0_i32_0 = arith.constant 0 : i32
    %c0_i32_1 = arith.constant 0 : i32
    return %c0_i32, %c0_i32_0 : i32, i32
  }
  func.func @transform_4(%arg0: i32) -> (i32, i32) {
    %c0_i32 = arith.constant 0 : i32
    %c0_i32_0 = arith.constant 0 : i32
    %c0_i32_1 = arith.constant 0 : i32
    return %c0_i32, %c0_i32_0 : i32, i32
  }
  func.func @transform_5(%arg0: i32) -> (i32, i32) {
    %c0_i32 = arith.constant 0 : i32
    %c0_i32_0 = arith.constant 0 : i32
    %c0_i32_1 = arith.constant 0 : i32
    return %c0_i32, %c0_i32_0 : i32, i32
  }
  func.func @transform_6(%arg0: i32) -> (i32, i32) {
    %c0_i32 = arith.constant 0 : i32
    %c0_i32_0 = arith.constant 0 : i32
    %c0_i32_1 = arith.constant 0 : i32
    return %c0_i32, %c0_i32_0 : i32, i32
  }
  func.func @transform_7(%arg0: i32) -> (i32, i32, i32) {
    %c0_i32 = arith.constant 0 : i32
    %c0_i32_0 = arith.constant 0 : i32
    %c0_i32_1 = arith.constant 0 : i32
    return %arg0, %c0_i32, %c0_i32_0 : i32, i32, i32
  }
}

module attributes {stable_mosaic.version = 11 : i64} {
  func.func @_mlp_block_kernel(%arg0: i32, %arg1: memref<16x256xf32, #tpu.memory_space<vmem>>, %arg2: memref<1x256xf32, #tpu.memory_space<vmem>>, %arg3: memref<1x256xf32, #tpu.memory_space<vmem>>, %arg4: memref<256x1024xbf16, #tpu.memory_space<vmem>>, %arg5: memref<1x1024xf32, #tpu.memory_space<vmem>>, %arg6: memref<1024x256xbf16, #tpu.memory_space<vmem>>, %arg7: memref<1x256xf32, #tpu.memory_space<vmem>>, %arg8: memref<16x256xf32, #tpu.memory_space<vmem>>) attributes {dimension_semantics = [#tpu.dimension_semantics<parallel>], iteration_bounds = array<i64: 1>, scalar_prefetch = 0 : i64, scratch_operands = 0 : i64, tpu.core_type = #tpu.core_type<tc>, window_params = [{transform_indices = @transform_0, window_bounds = array<i64: 16, 256>}, {pipeline_mode = #tpu.pipeline_mode<synchronous>, transform_indices = @transform_1, window_bounds = array<i64: 1, 256>}, {pipeline_mode = #tpu.pipeline_mode<synchronous>, transform_indices = @transform_2, window_bounds = array<i64: 1, 256>}, {pipeline_mode = #tpu.pipeline_mode<synchronous>, transform_indices = @transform_3, window_bounds = array<i64: 256, 1024>}, {pipeline_mode = #tpu.pipeline_mode<synchronous>, transform_indices = @transform_4, window_bounds = array<i64: 1, 1024>}, {pipeline_mode = #tpu.pipeline_mode<synchronous>, transform_indices = @transform_5, window_bounds = array<i64: 1024, 256>}, {pipeline_mode = #tpu.pipeline_mode<synchronous>, transform_indices = @transform_6, window_bounds = array<i64: 1, 256>}, {transform_indices = @transform_7, window_bounds = array<i64: 16, 256>}]} {
    %c0 = arith.constant 0 : index
    %c0_0 = arith.constant 0 : index
    %0 = vector.load %arg1[%c0, %c0_0] : memref<16x256xf32, #tpu.memory_space<vmem>>, vector<16x256xf32>
    %c0_1 = arith.constant 0 : index
    %c0_2 = arith.constant 0 : index
    %1 = vector.load %arg2[%c0_1, %c0_2] : memref<1x256xf32, #tpu.memory_space<vmem>>, vector<1x256xf32>
    %c0_3 = arith.constant 0 : index
    %c0_4 = arith.constant 0 : index
    %2 = vector.load %arg3[%c0_3, %c0_4] : memref<1x256xf32, #tpu.memory_space<vmem>>, vector<1x256xf32>
    %cst = arith.constant dense<0.000000e+00> : vector<16xf32>
    %3 = vector.multi_reduction <add>, %0, %cst [1] : vector<16x256xf32> to vector<16xf32>
    %4 = vector.shape_cast %3 : vector<16xf32> to vector<16x1xf32>
    %cst_5 = arith.constant 2.560000e+02 : f32
    %5 = vector.broadcast %cst_5 : f32 to vector<16x1xf32>
    %6 = arith.divf %4, %5 : vector<16x1xf32>
    %7 = vector.broadcast %6 : vector<16x1xf32> to vector<16x256xf32>
    %8 = arith.subf %0, %7 : vector<16x256xf32>
    %9 = arith.mulf %8, %8 : vector<16x256xf32>
    %cst_6 = arith.constant dense<0.000000e+00> : vector<16xf32>
    %10 = vector.multi_reduction <add>, %9, %cst_6 [1] : vector<16x256xf32> to vector<16xf32>
    %11 = vector.shape_cast %10 : vector<16xf32> to vector<16x1xf32>
    %cst_7 = arith.constant 2.560000e+02 : f32
    %12 = vector.broadcast %cst_7 : f32 to vector<16x1xf32>
    %13 = arith.divf %11, %12 : vector<16x1xf32>
    %cst_8 = arith.constant 9.99999974E-6 : f32
    %14 = vector.broadcast %cst_8 : f32 to vector<16x1xf32>
    %15 = arith.addf %13, %14 : vector<16x1xf32>
    %16 = math.rsqrt %15 : vector<16x1xf32>
    %17 = vector.broadcast %16 : vector<16x1xf32> to vector<16x256xf32>
    %18 = arith.mulf %8, %17 : vector<16x256xf32>
    %19 = vector.broadcast %1 : vector<1x256xf32> to vector<16x256xf32>
    %20 = arith.mulf %18, %19 : vector<16x256xf32>
    %21 = vector.broadcast %2 : vector<1x256xf32> to vector<16x256xf32>
    %22 = arith.addf %20, %21 : vector<16x256xf32>
    %c0_9 = arith.constant 0 : index
    %c0_10 = arith.constant 0 : index
    %23 = vector.load %arg4[%c0_9, %c0_10] : memref<256x1024xbf16, #tpu.memory_space<vmem>>, vector<256x1024xbf16>
    %24 = arith.truncf %22 : vector<16x256xf32> to vector<16x256xbf16>
    %cst_11 = arith.constant dense<0.000000e+00> : vector<16x1024xf32>
    %25 = tpu.matmul %24, %23, %cst_11 {dimension_numbers = #tpu.dot_dimension_numbers<[1], [0], [0], [1], [0, 0, 1, 1], [], []>} : vector<16x256xbf16>, vector<256x1024xbf16>, vector<16x1024xf32> -> vector<16x1024xf32>
    %c0_12 = arith.constant 0 : index
    %c0_13 = arith.constant 0 : index
    %26 = vector.load %arg5[%c0_12, %c0_13] : memref<1x1024xf32, #tpu.memory_space<vmem>>, vector<1x1024xf32>
    %27 = vector.broadcast %26 : vector<1x1024xf32> to vector<16x1024xf32>
    %28 = arith.addf %25, %27 : vector<16x1024xf32>
    %cst_14 = arith.constant 5.000000e-01 : f32
    %29 = vector.broadcast %cst_14 : f32 to vector<16x1024xf32>
    %30 = arith.mulf %29, %28 : vector<16x1024xf32>
    %cst_15 = arith.constant 0.707106769 : f32
    %31 = vector.broadcast %cst_15 : f32 to vector<16x1024xf32>
    %32 = arith.mulf %28, %31 : vector<16x1024xf32>
    %cst_16 = arith.constant 0.000000e+00 : f32
    %33 = vector.broadcast %cst_16 : f32 to vector<16x1024xf32>
    %34 = arith.cmpf oge, %32, %33 : vector<16x1024xf32>
    %cst_17 = arith.constant 1.000000e+00 : f32
    %cst_18 = arith.constant -1.000000e+00 : f32
    %35 = vector.broadcast %cst_17 : f32 to vector<16x1024xf32>
    %36 = vector.broadcast %cst_18 : f32 to vector<16x1024xf32>
    %37 = arith.select %34, %35, %36 : vector<16x1024xi1>, vector<16x1024xf32>
    %38 = math.absf %32 : vector<16x1024xf32>
    %cst_19 = arith.constant 0.327591091 : f32
    %39 = vector.broadcast %cst_19 : f32 to vector<16x1024xf32>
    %40 = arith.mulf %39, %38 : vector<16x1024xf32>
    %cst_20 = arith.constant 1.000000e+00 : f32
    %41 = vector.broadcast %cst_20 : f32 to vector<16x1024xf32>
    %42 = arith.addf %41, %40 : vector<16x1024xf32>
    %cst_21 = arith.constant 1.000000e+00 : f32
    %43 = vector.broadcast %cst_21 : f32 to vector<16x1024xf32>
    %44 = arith.divf %43, %42 : vector<16x1024xf32>
    %cst_22 = arith.constant 1.06140542 : f32
    %45 = vector.broadcast %cst_22 : f32 to vector<16x1024xf32>
    %46 = arith.mulf %45, %44 : vector<16x1024xf32>
    %cst_23 = arith.constant -1.45315206 : f32
    %47 = vector.broadcast %cst_23 : f32 to vector<16x1024xf32>
    %48 = arith.addf %46, %47 : vector<16x1024xf32>
    %49 = arith.mulf %48, %44 : vector<16x1024xf32>
    %cst_24 = arith.constant 1.42141378 : f32
    %50 = vector.broadcast %cst_24 : f32 to vector<16x1024xf32>
    %51 = arith.addf %49, %50 : vector<16x1024xf32>
    %52 = arith.mulf %51, %44 : vector<16x1024xf32>
    %cst_25 = arith.constant -0.284496725 : f32
    %53 = vector.broadcast %cst_25 : f32 to vector<16x1024xf32>
    %54 = arith.addf %52, %53 : vector<16x1024xf32>
    %55 = arith.mulf %54, %44 : vector<16x1024xf32>
    %cst_26 = arith.constant 0.254829586 : f32
    %56 = vector.broadcast %cst_26 : f32 to vector<16x1024xf32>
    %57 = arith.addf %55, %56 : vector<16x1024xf32>
    %58 = arith.mulf %57, %44 : vector<16x1024xf32>
    %cst_27 = arith.constant 0.000000e+00 : f32
    %59 = vector.broadcast %cst_27 : f32 to vector<16x1024xf32>
    %60 = arith.subf %59, %38 : vector<16x1024xf32>
    %61 = arith.mulf %60, %38 : vector<16x1024xf32>
    %62 = math.exp %61 : vector<16x1024xf32>
    %63 = arith.mulf %58, %62 : vector<16x1024xf32>
    %cst_28 = arith.constant 1.000000e+00 : f32
    %64 = vector.broadcast %cst_28 : f32 to vector<16x1024xf32>
    %65 = arith.subf %64, %63 : vector<16x1024xf32>
    %66 = arith.mulf %37, %65 : vector<16x1024xf32>
    %cst_29 = arith.constant 1.000000e+00 : f32
    %67 = vector.broadcast %cst_29 : f32 to vector<16x1024xf32>
    %68 = arith.addf %67, %66 : vector<16x1024xf32>
    %69 = arith.mulf %30, %68 : vector<16x1024xf32>
    %c0_30 = arith.constant 0 : index
    %c0_31 = arith.constant 0 : index
    %70 = vector.load %arg6[%c0_30, %c0_31] : memref<1024x256xbf16, #tpu.memory_space<vmem>>, vector<1024x256xbf16>
    %71 = arith.truncf %69 : vector<16x1024xf32> to vector<16x1024xbf16>
    %cst_32 = arith.constant dense<0.000000e+00> : vector<16x256xf32>
    %72 = tpu.matmul %71, %70, %cst_32 {dimension_numbers = #tpu.dot_dimension_numbers<[1], [0], [0], [1], [0, 0, 1, 1], [], []>} : vector<16x1024xbf16>, vector<1024x256xbf16>, vector<16x256xf32> -> vector<16x256xf32>
    %c0_33 = arith.constant 0 : index
    %c0_34 = arith.constant 0 : index
    %73 = vector.load %arg7[%c0_33, %c0_34] : memref<1x256xf32, #tpu.memory_space<vmem>>, vector<1x256xf32>
    %74 = vector.broadcast %73 : vector<1x256xf32> to vector<16x256xf32>
    %75 = arith.addf %72, %74 : vector<16x256xf32>
    %76 = arith.addf %75, %0 : vector<16x256xf32>
    %c0_35 = arith.constant 0 : index
    %c0_36 = arith.constant 0 : index
    %77 = vector.load %arg8[%c0_35, %c0_36] : memref<16x256xf32, #tpu.memory_space<vmem>>, vector<16x256xf32>
    tpu.vector_store %arg8[%c0_35, %c0_36], %76 {strides = array<i32>} : memref<16x256xf32, #tpu.memory_space<vmem>>, vector<16x256xf32>,
    return
  }
  func.func @transform_0(%arg0: i32) -> (i32, i32) {
    %c0_i32 = arith.constant 0 : i32
    %c0_i32_0 = arith.constant 0 : i32
    return %arg0, %c0_i32 : i32, i32
  }
  func.func @transform_1(%arg0: i32) -> (i32, i32) {
    %c0_i32 = arith.constant 0 : i32
    %c0_i32_0 = arith.constant 0 : i32
    %c0_i32_1 = arith.constant 0 : i32
    return %c0_i32, %c0_i32_0 : i32, i32
  }
  func.func @transform_2(%arg0: i32) -> (i32, i32) {
    %c0_i32 = arith.constant 0 : i32
    %c0_i32_0 = arith.constant 0 : i32
    %c0_i32_1 = arith.constant 0 : i32
    return %c0_i32, %c0_i32_0 : i32, i32
  }
  func.func @transform_3(%arg0: i32) -> (i32, i32) {
    %c0_i32 = arith.constant 0 : i32
    %c0_i32_0 = arith.constant 0 : i32
    %c0_i32_1 = arith.constant 0 : i32
    return %c0_i32, %c0_i32_0 : i32, i32
  }
  func.func @transform_4(%arg0: i32) -> (i32, i32) {
    %c0_i32 = arith.constant 0 : i32
    %c0_i32_0 = arith.constant 0 : i32
    %c0_i32_1 = arith.constant 0 : i32
    return %c0_i32, %c0_i32_0 : i32, i32
  }
  func.func @transform_5(%arg0: i32) -> (i32, i32) {
    %c0_i32 = arith.constant 0 : i32
    %c0_i32_0 = arith.constant 0 : i32
    %c0_i32_1 = arith.constant 0 : i32
    return %c0_i32, %c0_i32_0 : i32, i32
  }
  func.func @transform_6(%arg0: i32) -> (i32, i32) {
    %c0_i32 = arith.constant 0 : i32
    %c0_i32_0 = arith.constant 0 : i32
    %c0_i32_1 = arith.constant 0 : i32
    return %c0_i32, %c0_i32_0 : i32, i32
  }
  func.func @transform_7(%arg0: i32) -> (i32, i32) {
    %c0_i32 = arith.constant 0 : i32
    %c0_i32_0 = arith.constant 0 : i32
    return %arg0, %c0_i32 : i32, i32
  }
}

module attributes {stable_mosaic.version = 11 : i64} {
  func.func @_mlp_block_kernel(%arg0: i32, %arg1: memref<16x256xf32, #tpu.memory_space<vmem>>, %arg2: memref<1x256xf32, #tpu.memory_space<vmem>>, %arg3: memref<1x256xf32, #tpu.memory_space<vmem>>, %arg4: memref<256x1024xbf16, #tpu.memory_space<vmem>>, %arg5: memref<1x1024xf32, #tpu.memory_space<vmem>>, %arg6: memref<1024x256xbf16, #tpu.memory_space<vmem>>, %arg7: memref<1x256xf32, #tpu.memory_space<vmem>>, %arg8: memref<1x256xf32, #tpu.memory_space<vmem>>, %arg9: memref<1x256xf32, #tpu.memory_space<vmem>>, %arg10: memref<16x256xf32, #tpu.memory_space<vmem>>) attributes {dimension_semantics = [#tpu.dimension_semantics<parallel>], iteration_bounds = array<i64: 1>, scalar_prefetch = 0 : i64, scratch_operands = 0 : i64, tpu.core_type = #tpu.core_type<tc>, window_params = [{transform_indices = @transform_0, window_bounds = array<i64: 16, 256>}, {pipeline_mode = #tpu.pipeline_mode<synchronous>, transform_indices = @transform_1, window_bounds = array<i64: 1, 256>}, {pipeline_mode = #tpu.pipeline_mode<synchronous>, transform_indices = @transform_2, window_bounds = array<i64: 1, 256>}, {pipeline_mode = #tpu.pipeline_mode<synchronous>, transform_indices = @transform_3, window_bounds = array<i64: 256, 1024>}, {pipeline_mode = #tpu.pipeline_mode<synchronous>, transform_indices = @transform_4, window_bounds = array<i64: 1, 1024>}, {pipeline_mode = #tpu.pipeline_mode<synchronous>, transform_indices = @transform_5, window_bounds = array<i64: 1024, 256>}, {pipeline_mode = #tpu.pipeline_mode<synchronous>, transform_indices = @transform_6, window_bounds = array<i64: 1, 256>}, {pipeline_mode = #tpu.pipeline_mode<synchronous>, transform_indices = @transform_7, window_bounds = array<i64: 1, 256>}, {pipeline_mode = #tpu.pipeline_mode<synchronous>, transform_indices = @transform_8, window_bounds = array<i64: 1, 256>}, {transform_indices = @transform_9, window_bounds = array<i64: 16, 256>}]} {
    %c0 = arith.constant 0 : index
    %c0_0 = arith.constant 0 : index
    %0 = vector.load %arg1[%c0, %c0_0] : memref<16x256xf32, #tpu.memory_space<vmem>>, vector<16x256xf32>
    %c0_1 = arith.constant 0 : index
    %c0_2 = arith.constant 0 : index
    %1 = vector.load %arg2[%c0_1, %c0_2] : memref<1x256xf32, #tpu.memory_space<vmem>>, vector<1x256xf32>
    %c0_3 = arith.constant 0 : index
    %c0_4 = arith.constant 0 : index
    %2 = vector.load %arg3[%c0_3, %c0_4] : memref<1x256xf32, #tpu.memory_space<vmem>>, vector<1x256xf32>
    %cst = arith.constant dense<0.000000e+00> : vector<16xf32>
    %3 = vector.multi_reduction <add>, %0, %cst [1] : vector<16x256xf32> to vector<16xf32>
    %4 = vector.shape_cast %3 : vector<16xf32> to vector<16x1xf32>
    %cst_5 = arith.constant 2.560000e+02 : f32
    %5 = vector.broadcast %cst_5 : f32 to vector<16x1xf32>
    %6 = arith.divf %4, %5 : vector<16x1xf32>
    %7 = vector.broadcast %6 : vector<16x1xf32> to vector<16x256xf32>
    %8 = arith.subf %0, %7 : vector<16x256xf32>
    %9 = arith.mulf %8, %8 : vector<16x256xf32>
    %cst_6 = arith.constant dense<0.000000e+00> : vector<16xf32>
    %10 = vector.multi_reduction <add>, %9, %cst_6 [1] : vector<16x256xf32> to vector<16xf32>
    %11 = vector.shape_cast %10 : vector<16xf32> to vector<16x1xf32>
    %cst_7 = arith.constant 2.560000e+02 : f32
    %12 = vector.broadcast %cst_7 : f32 to vector<16x1xf32>
    %13 = arith.divf %11, %12 : vector<16x1xf32>
    %cst_8 = arith.constant 9.99999974E-6 : f32
    %14 = vector.broadcast %cst_8 : f32 to vector<16x1xf32>
    %15 = arith.addf %13, %14 : vector<16x1xf32>
    %16 = math.rsqrt %15 : vector<16x1xf32>
    %17 = vector.broadcast %16 : vector<16x1xf32> to vector<16x256xf32>
    %18 = arith.mulf %8, %17 : vector<16x256xf32>
    %19 = vector.broadcast %1 : vector<1x256xf32> to vector<16x256xf32>
    %20 = arith.mulf %18, %19 : vector<16x256xf32>
    %21 = vector.broadcast %2 : vector<1x256xf32> to vector<16x256xf32>
    %22 = arith.addf %20, %21 : vector<16x256xf32>
    %c0_9 = arith.constant 0 : index
    %c0_10 = arith.constant 0 : index
    %23 = vector.load %arg4[%c0_9, %c0_10] : memref<256x1024xbf16, #tpu.memory_space<vmem>>, vector<256x1024xbf16>
    %24 = arith.truncf %22 : vector<16x256xf32> to vector<16x256xbf16>
    %cst_11 = arith.constant dense<0.000000e+00> : vector<16x1024xf32>
    %25 = tpu.matmul %24, %23, %cst_11 {dimension_numbers = #tpu.dot_dimension_numbers<[1], [0], [0], [1], [0, 0, 1, 1], [], []>} : vector<16x256xbf16>, vector<256x1024xbf16>, vector<16x1024xf32> -> vector<16x1024xf32>
    %c0_12 = arith.constant 0 : index
    %c0_13 = arith.constant 0 : index
    %26 = vector.load %arg5[%c0_12, %c0_13] : memref<1x1024xf32, #tpu.memory_space<vmem>>, vector<1x1024xf32>
    %27 = vector.broadcast %26 : vector<1x1024xf32> to vector<16x1024xf32>
    %28 = arith.addf %25, %27 : vector<16x1024xf32>
    %cst_14 = arith.constant 5.000000e-01 : f32
    %29 = vector.broadcast %cst_14 : f32 to vector<16x1024xf32>
    %30 = arith.mulf %29, %28 : vector<16x1024xf32>
    %cst_15 = arith.constant 0.707106769 : f32
    %31 = vector.broadcast %cst_15 : f32 to vector<16x1024xf32>
    %32 = arith.mulf %28, %31 : vector<16x1024xf32>
    %cst_16 = arith.constant 0.000000e+00 : f32
    %33 = vector.broadcast %cst_16 : f32 to vector<16x1024xf32>
    %34 = arith.cmpf oge, %32, %33 : vector<16x1024xf32>
    %cst_17 = arith.constant 1.000000e+00 : f32
    %cst_18 = arith.constant -1.000000e+00 : f32
    %35 = vector.broadcast %cst_17 : f32 to vector<16x1024xf32>
    %36 = vector.broadcast %cst_18 : f32 to vector<16x1024xf32>
    %37 = arith.select %34, %35, %36 : vector<16x1024xi1>, vector<16x1024xf32>
    %38 = math.absf %32 : vector<16x1024xf32>
    %cst_19 = arith.constant 0.327591091 : f32
    %39 = vector.broadcast %cst_19 : f32 to vector<16x1024xf32>
    %40 = arith.mulf %39, %38 : vector<16x1024xf32>
    %cst_20 = arith.constant 1.000000e+00 : f32
    %41 = vector.broadcast %cst_20 : f32 to vector<16x1024xf32>
    %42 = arith.addf %41, %40 : vector<16x1024xf32>
    %cst_21 = arith.constant 1.000000e+00 : f32
    %43 = vector.broadcast %cst_21 : f32 to vector<16x1024xf32>
    %44 = arith.divf %43, %42 : vector<16x1024xf32>
    %cst_22 = arith.constant 1.06140542 : f32
    %45 = vector.broadcast %cst_22 : f32 to vector<16x1024xf32>
    %46 = arith.mulf %45, %44 : vector<16x1024xf32>
    %cst_23 = arith.constant -1.45315206 : f32
    %47 = vector.broadcast %cst_23 : f32 to vector<16x1024xf32>
    %48 = arith.addf %46, %47 : vector<16x1024xf32>
    %49 = arith.mulf %48, %44 : vector<16x1024xf32>
    %cst_24 = arith.constant 1.42141378 : f32
    %50 = vector.broadcast %cst_24 : f32 to vector<16x1024xf32>
    %51 = arith.addf %49, %50 : vector<16x1024xf32>
    %52 = arith.mulf %51, %44 : vector<16x1024xf32>
    %cst_25 = arith.constant -0.284496725 : f32
    %53 = vector.broadcast %cst_25 : f32 to vector<16x1024xf32>
    %54 = arith.addf %52, %53 : vector<16x1024xf32>
    %55 = arith.mulf %54, %44 : vector<16x1024xf32>
    %cst_26 = arith.constant 0.254829586 : f32
    %56 = vector.broadcast %cst_26 : f32 to vector<16x1024xf32>
    %57 = arith.addf %55, %56 : vector<16x1024xf32>
    %58 = arith.mulf %57, %44 : vector<16x1024xf32>
    %cst_27 = arith.constant 0.000000e+00 : f32
    %59 = vector.broadcast %cst_27 : f32 to vector<16x1024xf32>
    %60 = arith.subf %59, %38 : vector<16x1024xf32>
    %61 = arith.mulf %60, %38 : vector<16x1024xf32>
    %62 = math.exp %61 : vector<16x1024xf32>
    %63 = arith.mulf %58, %62 : vector<16x1024xf32>
    %cst_28 = arith.constant 1.000000e+00 : f32
    %64 = vector.broadcast %cst_28 : f32 to vector<16x1024xf32>
    %65 = arith.subf %64, %63 : vector<16x1024xf32>
    %66 = arith.mulf %37, %65 : vector<16x1024xf32>
    %cst_29 = arith.constant 1.000000e+00 : f32
    %67 = vector.broadcast %cst_29 : f32 to vector<16x1024xf32>
    %68 = arith.addf %67, %66 : vector<16x1024xf32>
    %69 = arith.mulf %30, %68 : vector<16x1024xf32>
    %c0_30 = arith.constant 0 : index
    %c0_31 = arith.constant 0 : index
    %70 = vector.load %arg6[%c0_30, %c0_31] : memref<1024x256xbf16, #tpu.memory_space<vmem>>, vector<1024x256xbf16>
    %71 = arith.truncf %69 : vector<16x1024xf32> to vector<16x1024xbf16>
    %cst_32 = arith.constant dense<0.000000e+00> : vector<16x256xf32>
    %72 = tpu.matmul %71, %70, %cst_32 {dimension_numbers = #tpu.dot_dimension_numbers<[1], [0], [0], [1], [0, 0, 1, 1], [], []>} : vector<16x1024xbf16>, vector<1024x256xbf16>, vector<16x256xf32> -> vector<16x256xf32>
    %c0_33 = arith.constant 0 : index
    %c0_34 = arith.constant 0 : index
    %73 = vector.load %arg7[%c0_33, %c0_34] : memref<1x256xf32, #tpu.memory_space<vmem>>, vector<1x256xf32>
    %74 = vector.broadcast %73 : vector<1x256xf32> to vector<16x256xf32>
    %75 = arith.addf %72, %74 : vector<16x256xf32>
    %76 = arith.addf %75, %0 : vector<16x256xf32>
    %c0_35 = arith.constant 0 : index
    %c0_36 = arith.constant 0 : index
    %77 = vector.load %arg8[%c0_35, %c0_36] : memref<1x256xf32, #tpu.memory_space<vmem>>, vector<1x256xf32>
    %c0_37 = arith.constant 0 : index
    %c0_38 = arith.constant 0 : index
    %78 = vector.load %arg9[%c0_37, %c0_38] : memref<1x256xf32, #tpu.memory_space<vmem>>, vector<1x256xf32>
    %cst_39 = arith.constant dense<0.000000e+00> : vector<16xf32>
    %79 = vector.multi_reduction <add>, %76, %cst_39 [1] : vector<16x256xf32> to vector<16xf32>
    %80 = vector.shape_cast %79 : vector<16xf32> to vector<16x1xf32>
    %cst_40 = arith.constant 2.560000e+02 : f32
    %81 = vector.broadcast %cst_40 : f32 to vector<16x1xf32>
    %82 = arith.divf %80, %81 : vector<16x1xf32>
    %83 = vector.broadcast %82 : vector<16x1xf32> to vector<16x256xf32>
    %84 = arith.subf %76, %83 : vector<16x256xf32>
    %85 = arith.mulf %84, %84 : vector<16x256xf32>
    %cst_41 = arith.constant dense<0.000000e+00> : vector<16xf32>
    %86 = vector.multi_reduction <add>, %85, %cst_41 [1] : vector<16x256xf32> to vector<16xf32>
    %87 = vector.shape_cast %86 : vector<16xf32> to vector<16x1xf32>
    %cst_42 = arith.constant 2.560000e+02 : f32
    %88 = vector.broadcast %cst_42 : f32 to vector<16x1xf32>
    %89 = arith.divf %87, %88 : vector<16x1xf32>
    %cst_43 = arith.constant 9.99999974E-6 : f32
    %90 = vector.broadcast %cst_43 : f32 to vector<16x1xf32>
    %91 = arith.addf %89, %90 : vector<16x1xf32>
    %92 = math.rsqrt %91 : vector<16x1xf32>
    %93 = vector.broadcast %92 : vector<16x1xf32> to vector<16x256xf32>
    %94 = arith.mulf %84, %93 : vector<16x256xf32>
    %95 = vector.broadcast %77 : vector<1x256xf32> to vector<16x256xf32>
    %96 = arith.mulf %94, %95 : vector<16x256xf32>
    %97 = vector.broadcast %78 : vector<1x256xf32> to vector<16x256xf32>
    %98 = arith.addf %96, %97 : vector<16x256xf32>
    %c0_44 = arith.constant 0 : index
    %c0_45 = arith.constant 0 : index
    %99 = vector.load %arg10[%c0_44, %c0_45] : memref<16x256xf32, #tpu.memory_space<vmem>>, vector<16x256xf32>
    tpu.vector_store %arg10[%c0_44, %c0_45], %98 {strides = array<i32>} : memref<16x256xf32, #tpu.memory_space<vmem>>, vector<16x256xf32>,
    return
  }
  func.func @transform_0(%arg0: i32) -> (i32, i32) {
    %c0_i32 = arith.constant 0 : i32
    %c0_i32_0 = arith.constant 0 : i32
    return %arg0, %c0_i32 : i32, i32
  }
  func.func @transform_1(%arg0: i32) -> (i32, i32) {
    %c0_i32 = arith.constant 0 : i32
    %c0_i32_0 = arith.constant 0 : i32
    %c0_i32_1 = arith.constant 0 : i32
    return %c0_i32, %c0_i32_0 : i32, i32
  }
  func.func @transform_2(%arg0: i32) -> (i32, i32) {
    %c0_i32 = arith.constant 0 : i32
    %c0_i32_0 = arith.constant 0 : i32
    %c0_i32_1 = arith.constant 0 : i32
    return %c0_i32, %c0_i32_0 : i32, i32
  }
  func.func @transform_3(%arg0: i32) -> (i32, i32) {
    %c0_i32 = arith.constant 0 : i32
    %c0_i32_0 = arith.constant 0 : i32
    %c0_i32_1 = arith.constant 0 : i32
    return %c0_i32, %c0_i32_0 : i32, i32
  }
  func.func @transform_4(%arg0: i32) -> (i32, i32) {
    %c0_i32 = arith.constant 0 : i32
    %c0_i32_0 = arith.constant 0 : i32
    %c0_i32_1 = arith.constant 0 : i32
    return %c0_i32, %c0_i32_0 : i32, i32
  }
  func.func @transform_5(%arg0: i32) -> (i32, i32) {
    %c0_i32 = arith.constant 0 : i32
    %c0_i32_0 = arith.constant 0 : i32
    %c0_i32_1 = arith.constant 0 : i32
    return %c0_i32, %c0_i32_0 : i32, i32
  }
  func.func @transform_6(%arg0: i32) -> (i32, i32) {
    %c0_i32 = arith.constant 0 : i32
    %c0_i32_0 = arith.constant 0 : i32
    %c0_i32_1 = arith.constant 0 : i32
    return %c0_i32, %c0_i32_0 : i32, i32
  }
  func.func @transform_7(%arg0: i32) -> (i32, i32) {
    %c0_i32 = arith.constant 0 : i32
    %c0_i32_0 = arith.constant 0 : i32
    %c0_i32_1 = arith.constant 0 : i32
    return %c0_i32, %c0_i32_0 : i32, i32
  }
  func.func @transform_8(%arg0: i32) -> (i32, i32) {
    %c0_i32 = arith.constant 0 : i32
    %c0_i32_0 = arith.constant 0 : i32
    %c0_i32_1 = arith.constant 0 : i32
    return %c0_i32, %c0_i32_0 : i32, i32
  }
  func.func @transform_9(%arg0: i32) -> (i32, i32) {
    %c0_i32 = arith.constant 0 : i32
    %c0_i32_0 = arith.constant 0 : i32
    return %arg0, %c0_i32 : i32, i32
  }
}

</mosaic_0001>

<bundles_post_ra>
// kernel: feat_pred_head_forward.7
= control target key start
LH: loop header
LB: loop body
LE: loop exit
PB: predicated region body
PF: predicated region fallthrough
CT: control target
= control target key end

     0   :  { %s909_s27 = smov 0   ;;  %s1056_s0 = inlined_call_operand.vmem [shape: f32[2,8,32], index: 0, kind: input, shape index: {}]   ;;  %s1057_s1 = inlined_call_operand.vmem [shape: bf16[32,256], index: 1, kind: input, shape index: {}]   ;;  %s1058_s2 = inlined_call_operand.vmem [shape: f32[1,256], index: 2, kind: input, shape index: {}]   ;;  %s1059_s3 = inlined_call_operand.vmem [shape: bf16[256,256], index: 3, kind: input, shape index: {}]   ;;  %s1060_s4 = inlined_call_operand.vmem [shape: f32[1,256], index: 4, kind: input, shape index: {}]   ;;  %s1061_s5 = inlined_call_operand.vmem [shape: f32[8,256], index: 5, kind: input, shape index: {}]   ;;  %s1062_s6 = inlined_call_operand.vmem [shape: f32[1,256], index: 6, kind: input, shape index: {}]   ;;  %s1063_s7 = inlined_call_operand.vmem [shape: f32[1,256], index: 7, kind: input, shape index: {}]   ;;  %s1064_s8 = inlined_call_operand.vmem [shape: f32[2,8,256], index: 8, kind: output, shape index: {}]  }
   0x1 LB: > { %s742_s28 = sadd.s32 4294967295, %s861_s27   ;;  %p746_p0 = scmp.ge.s32.totalorder %s861_s27, 1  ;;  %s861_s27 = sphi %s909_s27, %s18_s27  }
   0x2   : > { %p261_p1 = scmp.lt.s32.totalorder %s861_s27, 3 }
   0x4   : > { %p262_p2 = pnand %p746_p0, %p261_p1 }
   0x5   : > { %p294_p3 = scmp.lt.s32.totalorder (!%p262_p2), %s742_s28, 1 }
   0x6   : > { %265 = sbr.rel (%p262_p2) target bundleno = 732 (0x2dc), region = 52 }
   0xb   : > { %v799_v0 = vld [vmem:[%s1057_s1 + $0x14] ss:$8 sps:$4 sm:$0xff]   ;;  %v801_v1 = vld [vmem:[%s1057_s1 + $0x10] ss:$8 sps:$4 sm:$0xff]   ;;  %v863_v2 = vmov 0   ;;  %s1066_s28 = smov (!%p294_p3, %s742_s28), 1  ;;  %v312_v39 = vlaneseq }
   0xc   : > { %378 = vmatprep.mubr.bf16.mxu0 %v863_v2  ;;  %358 = vmatprep.subr.bf16.mxu0 %v799_v0  ;;  %v802_v3 = vld [vmem:[%s1057_s1 + $0x4] ss:$8 sps:$4 sm:$0xff]   ;;  %v804_v4 = vld [vmem:[%s1057_s1] ss:$8 sps:$4 sm:$0xff]   ;;  %v805_v5 = vld [vmem:[%s1059_s3 + $0x74] ss:$8 sps:$4 sm:$0xff]  }
   0xd   : > { %359 = vmatpush1.bf16.msra.mxu0 %v801_v1  ;;  %v807_v6 = vld [vmem:[%s1059_s3 + $0x70] ss:$8 sps:$4 sm:$0xff]   ;;  %s747_s19 = sshll.u32 %s1066_s28, 3  ;;  %v808_v7 = vld [vmem:[%s1059_s3 + $0x64] ss:$8 sps:$4 sm:$0xff]   ;;  %595 = vmatprep.subr.bf16.mxu1 %v805_v5  ;;  %vm342_vm0 = vcmask 261120  }
   0xe   : > { %360 = vmatprep.subr.bf16.mxu0 %v802_v3  ;;  %s297_s24 = scalar_lea.vmem %s1056_s0, %s747_s19  ;;  %596 = vmatpush1.bf16.msra.mxu1 %v807_v6  ;;  %v810_v9 = vld [vmem:[%s1059_s3 + $0x60] ss:$8 sps:$4 sm:$0xff]   ;;  %v811_v11 = vld [vmem:[%s1059_s3 + $0x54] ss:$8 sps:$4 sm:$0xff]   ;;  %v813_v12 = vld [vmem:[%s1059_s3 + $0x50] ss:$8 sps:$4 sm:$0xff]  }
   0xf   : > { %v304_v8 = vld [vmem:[%s297_s24] sm:$0xff]  ;;  %597 = vmatprep.subr.bf16.mxu1 %v808_v7  ;;  %v817_v15 = vld [vmem:[%s1059_s3 + $0x34] ss:$8 sps:$4 sm:$0xff]   ;;  %v819_v16 = vld [vmem:[%s1059_s3 + $0x30] ss:$8 sps:$4 sm:$0xff]   ;;  %v313_v40 = vshrl.u32 %v312_v39, 7 }
  0x10   : > { %v309_v10 = vpack.c.bf16 %v304_v8, %v304_v8  ;;  %v814_v13 = vld [vmem:[%s1059_s3 + $0x44] ss:$8 sps:$4 sm:$0xff]   ;;  %v816_v14 = vld [vmem:[%s1059_s3 + $0x40] ss:$8 sps:$4 sm:$0xff]   ;;  %v823_v19 = vld [vmem:[%s1059_s3 + $0x14] ss:$8 sps:$4 sm:$0xff]  }
  0x11   : > { %361 = vmatpush1.bf16.msra.mxu0 %v804_v4  ;;  %v820_v17 = vld [vmem:[%s1059_s3 + $0x24] ss:$8 sps:$4 sm:$0xff]   ;;  %v822_v18 = vld [vmem:[%s1059_s3 + $0x20] ss:$8 sps:$4 sm:$0xff]   ;;  %v825_v20 = vld [vmem:[%s1059_s3 + $0x10] ss:$8 sps:$4 sm:$0xff]  }
  0x12   : > { %598 = vmatpush1.bf16.msra.mxu1 %v810_v9  ;;  %v826_v21 = vld [vmem:[%s1059_s3 + $0x4] ss:$8 sps:$4 sm:$0xff]   ;;  %v828_v22 = vld [vmem:[%s1059_s3] ss:$8 sps:$4 sm:$0xff]   ;;  %v829_v23 = vld [vmem:[%s1059_s3 + $0xf4] ss:$8 sps:$4 sm:$0xff]  }
  0x13   : > { %599 = vmatprep.subr.bf16.mxu1 %v811_v11  ;;  %v831_v24 = vld [vmem:[%s1059_s3 + $0xf0] ss:$8 sps:$4 sm:$0xff]   ;;  %v832_v25 = vld [vmem:[%s1059_s3 + $0xe4] ss:$8 sps:$4 sm:$0xff]   ;;  %v834_v26 = vld [vmem:[%s1059_s3 + $0xe0] ss:$8 sps:$4 sm:$0xff]  }
  0x14   : > { %754 = vmatmul.mubr.msk.bf16.vlgmr.msra.gmra.mxu0 %vm342_vm0, %v309_v10  ;;  %v835_v27 = vld [vmem:[%s1059_s3 + $0xd4] ss:$8 sps:$4 sm:$0xff]   ;;  %v837_v28 = vld [vmem:[%s1059_s3 + $0xd0] ss:$8 sps:$4 sm:$0xff]   ;;  %v838_v29 = vld [vmem:[%s1059_s3 + $0xc4] ss:$8 sps:$4 sm:$0xff]  }
  0x15   : > { %v840_v30 = vld [vmem:[%s1059_s3 + $0xc0] ss:$8 sps:$4 sm:$0xff]   ;;  %v841_v31 = vld [vmem:[%s1059_s3 + $0xb4] ss:$8 sps:$4 sm:$0xff]   ;;  %v843_v32 = vld [vmem:[%s1059_s3 + $0xb0] ss:$8 sps:$4 sm:$0xff]  }
  0x16   : > { %600 = vmatpush1.bf16.msra.mxu1 %v813_v12  ;;  %v844_v33 = vld [vmem:[%s1059_s3 + $0xa4] ss:$8 sps:$4 sm:$0xff]   ;;  %v846_v34 = vld [vmem:[%s1059_s3 + $0xa0] ss:$8 sps:$4 sm:$0xff]   ;;  %v847_v35 = vld [vmem:[%s1059_s3 + $0x94] ss:$8 sps:$4 sm:$0xff]  }
  0x17   : > { %601 = vmatprep.subr.bf16.mxu1 %v814_v13  ;;  %v849_v36 = vld [vmem:[%s1059_s3 + $0x90] ss:$8 sps:$4 sm:$0xff]   ;;  %v850_v37 = vld [vmem:[%s1059_s3 + $0x84] ss:$8 sps:$4 sm:$0xff]   ;;  %v852_v38 = vld [vmem:[%s1059_s3 + $0x80] ss:$8 sps:$4 sm:$0xff]  }
  0x18   : > { %v314_v41 = vsub.s32 0, %v313_v40  ;;  %v310_v42 = vld [vmem:[%s1058_s2] sm:$0x3]  ;;  %v318_v43 = vsub.s32 1, %v313_v40  ;;  %v637_v63 = vld [vmem:[%s1061_s5 + $0x8] sm:$0xff]  ;;  %s789_s15 = sshll.u32 %s1066_s28, 4 }
  0x19   : > { %v423_v56 = vld [vmem:[%s1060_s4] sm:$0x3]  ;;  %s302_s18 = scalar_lea.vmem %s1064_s8, %s789_s15 }
  0x1a   : > { %602 = vmatpush1.bf16.msra.mxu1 %v816_v14  ;;  %v315_v44 = vrot.slane %v310_v42, %v314_v41  ;;  %v319_v45 = vrot.slane %v310_v42, %v318_v43  ;;  %v428_v57 = vrot.slane %v423_v56, %v314_v41  ;;  %v432_v58 = vrot.slane %v423_v56, %v318_v43  ;;  %v636_v62 = vld [vmem:[%s1061_s5] sm:$0xff] }
  0x1b   : > { %603 = vmatprep.subr.bf16.mxu1 %v817_v15 }
  0x1e   : > { %604 = vmatpush1.bf16.msra.mxu1 %v819_v16  ;;  %v640_v16 = vld [vmem:[%s1062_s6] sm:$0x3] }
  0x1f   : > { %605 = vmatprep.subr.bf16.mxu1 %v820_v17  ;;  %v641_v17 = vld [vmem:[%s1063_s7] sm:$0x3] }
  0x22   : > { %606 = vmatpush1.bf16.msra.mxu1 %v822_v18  ;;  %v663_v18 = vrot.slane %v640_v16, %v314_v41 }
  0x23   : > { %607 = vmatprep.subr.bf16.mxu1 %v823_v19  ;;  %v667_v19 = vrot.slane %v640_v16, %v318_v43 }
  0x26   : > { %608 = vmatpush1.bf16.msra.mxu1 %v825_v20 }
  0x27   : > { %609 = vmatprep.subr.bf16.mxu1 %v826_v21  ;;  %v676_v21 = vrot.slane %v641_v17, %v314_v41 }
  0x2a   : > { %610 = vmatpush1.bf16.msra.mxu1 %v828_v22  ;;  %v680_v22 = vrot.slane %v641_v17, %v318_v43 }
  0x2b   : > { %611 = vmatprep.subr.bf16.mxu1 %v829_v23 }
  0x2e   : > { %612 = vmatpush2.bf16.msra.mxu1 %v831_v24 }
  0x2f   : > { %613 = vmatprep.subr.bf16.mxu1 %v832_v25 }
  0x32   : > { %614 = vmatpush2.bf16.msra.mxu1 %v834_v26 }
  0x33   : > { %615 = vmatprep.subr.bf16.mxu1 %v835_v27 }
  0x36   : > { %616 = vmatpush2.bf16.msra.mxu1 %v837_v28 }
  0x37   : > { %617 = vmatprep.subr.bf16.mxu1 %v838_v29 }
  0x3a   : > { %618 = vmatpush2.bf16.msra.mxu1 %v840_v30 }
  0x3b   : > { %619 = vmatprep.subr.bf16.mxu1 %v841_v31 }
  0x3e   : > { %620 = vmatpush2.bf16.msra.mxu1 %v843_v32 }
  0x3f   : > { %621 = vmatprep.subr.bf16.mxu1 %v844_v33 }
  0x42   : > { %622 = vmatpush2.bf16.msra.mxu1 %v846_v34 }
  0x43   : > { %623 = vmatprep.subr.bf16.mxu1 %v847_v35 }
  0x46   : > { %624 = vmatpush2.bf16.msra.mxu1 %v849_v36 }
  0x47   : > { %625 = vmatprep.subr.bf16.mxu1 %v850_v37 }
  0x4a   : > { %626 = vmatpush2.bf16.msra.mxu1 %v852_v38 }
  0xd4   : > { %v380_v46 = vpop.f32.mrf.mxu0 }
  0xd5   : > { %v381_v47 = vadd.f32 %v380_v46, %v315_v44 }
  0xd6   : > { %v382_v48 = vpop.f32.mrf.mxu0 }
  0xd7   : > { %v383_v49 = vadd.f32 %v382_v48, %v319_v45  ;;  %v387_v50 = vmax.f32 %v381_v47, 0.0 }
  0xd8   : > { %v384_v51 = vpop.f32.mrf.mxu0 }
  0xd9   : > { %v388_v52 = vmax.f32 %v383_v49, 0.0  ;;  %v421_v55 = vpack.c.bf16 %v387_v50, %v387_v50 }
  0xda   : > { %v385_v53 = vpop.f32.mrf.mxu0 }
  0xdb   : > { %v422_v54 = vpack.c.bf16 %v388_v52, %v388_v52 }
  0xdd   : > { %627 = vmatprep.mubr.bf16.mxu1 %v422_v54 }
  0xde   : > { %628 = vmatmul.mubr.bf16.vlgmr.msra.gmra.mxu1 %v421_v55 }
 0x19e   : > { %v629_v59 = vpop.f32.mrf.mxu1 }
 0x19f   : > { %v630_v60 = vadd.f32 %v629_v59, %v428_v57 }
 0x1a0   : > { %v631_v61 = vpop.f32.mrf.mxu1 }
 0x1a1   : > { %v632_v0 = vadd.f32 %v631_v61, %v432_v58  ;;  %v638_v2 = vadd.f32 %v636_v62, %v630_v60 }
 0x1a2   : > { %v633_v1 = vpop.f32.mrf.mxu1 }
 0x1a3   : > { %v639_v3 = vadd.f32 %v637_v63, %v632_v0 }
 0x1a4   : > { %v634_v4 = vpop.f32.mrf.mxu1 }
 0x1a5   : > { %v642_v5 = vadd.f32 %v639_v3, %v638_v2 }
 0x1a7   : > { %643 = vadd.xlane.f32.xlu0 %v642_v5 }
 0x230   : > { %v644_v6 = vpop.xlane.xlu0 %643 }
 0x231   : > { %v646_v7 = vmul.f32 0.00390625, %v644_v6 }
 0x233   : > { %v647_v8 = vsub.f32 %v638_v2, %v646_v7  ;;  %v648_v9 = vsub.f32 %v639_v3, %v646_v7 }
 0x235   : > { %v649_v10 = vmul.f32 %v647_v8, %v647_v8  ;;  %v650_v11 = vmul.f32 %v648_v9, %v648_v9 }
 0x237   : > { %v651_v12 = vadd.f32 %v650_v11, %v649_v10 }
 0x239   : > { %652 = vadd.xlane.f32.xlu0 %v651_v12 }
 0x2c2   : > { %v653_v13 = vpop.xlane.xlu0 %652 }
 0x2c3   : > { %v654_v14 = vmul.f32 0.00390625, %v653_v13 }
 0x2c5   : > { %v655_v15 = vadd.f32 1e-05, %v654_v14 }
 0x2c7   : > { %853 = vrsqrt.f32 %v655_v15 }
 0x2d4   : > { %v854_v20 = vpop.eup %853 }
 0x2d5   : > { %v657_v23 = vmul.f32 %v854_v20, %v647_v8  ;;  %v658_v24 = vmul.f32 %v854_v20, %v648_v9 }
 0x2d7   : > { %v670_v25 = vmul.f32 %v663_v18, %v657_v23  ;;  %v671_v26 = vmul.f32 %v667_v19, %v658_v24 }
 0x2d9   : > { %v683_v27 = vadd.f32 %v676_v21, %v670_v25  ;;  %v684_v28 = vadd.f32 %v680_v22, %v671_v26 }
 0x2db   : > { %685 = vst [vmem:[%s302_s18] sm:$0xff] %v683_v27  ;;  %686 = vst [vmem:[%s302_s18 + $0x8] sm:$0xff] %v684_v28 }
 0x2dc PF: > { %s18_s27 = sadd.s32 1, %s861_s27  }
 0x2dd   : > { %p15_p4 = scmp.ge.s32.totalorder %s18_s27, 4  }
 0x2df   :  { %17 = sbr.rel (!%p15_p4) target bundleno = 1 (0x1), region = 82 }

// kernel: feat_pred_head_forward.8
= control target key start
LH: loop header
LB: loop body
LE: loop exit
PB: predicated region body
PF: predicated region fallthrough
CT: control target
= control target key end

     0   :  { %s2877_s24 = smov 0   ;;  %s3533_s0 = inlined_call_operand.vmem [shape: f32[2,8,256], index: 0, kind: input, shape index: {}]   ;;  %s3534_s1 = inlined_call_operand.vmem [shape: f32[1,256], index: 1, kind: input, shape index: {}]   ;;  %s3535_s2 = inlined_call_operand.vmem [shape: f32[1,256], index: 2, kind: input, shape index: {}]   ;;  %s3536_s3 = inlined_call_operand.vmem [shape: bf16[256,768], index: 3, kind: input, shape index: {}]   ;;  %s3537_s4 = inlined_call_operand.vmem [shape: f32[1,768], index: 4, kind: input, shape index: {}]   ;;  %s3538_s5 = inlined_call_operand.vmem [shape: bf16[256,256], index: 5, kind: input, shape index: {}]   ;;  %s3539_s6 = inlined_call_operand.vmem [shape: f32[1,256], index: 6, kind: input, shape index: {}]   ;;  %s3540_s7 = inlined_call_operand.vmem [shape: f32[2,8,256], index: 7, kind: output, shape index: {}]  }
   0x1 LB: > { %s2283_s25 = sadd.s32 4294967295, %s2830_s24   ;;  %p2287_p0 = scmp.ge.s32.totalorder %s2830_s24, 1  ;;  %s2830_s24 = sphi %s2877_s24, %s17_s24  }
   0x2   : > { %p237_p1 = scmp.lt.s32.totalorder %s2830_s24, 3 }
   0x4   : > { %p238_p2 = pnand %p2287_p0, %p237_p1 }
   0x5   : > { %p269_p3 = scmp.lt.s32.totalorder (!%p238_p2), %s2283_s25, 1  ;;  %s2834_s15 = smov (!%p238_p2), 96  }
   0x6   : > { %241 = sbr.rel (%p238_p2) target bundleno = 5161 (0x1429), region = 48  ;;  %s2835_s16 = smov (!%p238_p2), 64  }
   0x7   : > { %s2836_s17 = smov (!%p238_p2), 32  }
   0xb   : > { %s3542_s25 = smov (!%p269_p3, %s2283_s25), 1  ;;  %v2596_v3 = vld [vmem:[%s3536_s3 + $0x154] ss:$24 sps:$4 sm:$0xff]   ;;  %v2598_v4 = vld [vmem:[%s3536_s3 + $0x150] ss:$24 sps:$4 sm:$0xff]   ;;  %vm2833_vm0 = vmmov 0  }
   0xc   : > { %s2438_s26 = sshll.u32 %s3542_s25, 4  ;;  %v2599_v5 = vld [vmem:[%s3536_s3 + $0x15c] ss:$24 sps:$4 sm:$0xff]   ;;  %v2601_v6 = vld [vmem:[%s3536_s3 + $0x158] ss:$24 sps:$4 sm:$0xff]   ;;  %937 = vmatprep.subr.bf16.mxu0 %v2596_v3  ;;  %vm1063_vm1 = vcmask 261120  }
   0xd   : > { %s2893_s29 = scalar_lea.vmem %s3533_s0, %s2438_s26  ;;  %v2602_v7 = vld [vmem:[%s3536_s3 + $0x124] ss:$24 sps:$4 sm:$0xff]   ;;  %978 = vmatprep.subr.bf16.mxu1 %v2599_v5  ;;  %938 = vmatpush1.bf16.msra.mxu0 %v2598_v4  ;;  %v2604_v9 = vld [vmem:[%s3536_s3 + $0x120] ss:$24 sps:$4 sm:$0xff]   ;;  %v2608_v11 = vld [vmem:[%s3536_s3 + $0xf4] ss:$24 sps:$4 sm:$0xff]   ;;  %s278_s12 = scalar_lea.vmem %s3540_s7, %s2438_s26 }
   0xe   : > { %v2896_v0 = vld [vmem:[%s2893_s29] sm:$0xff]  ;;  %v2899_v1 = vld [vmem:[%s2893_s29 + $0x8] sm:$0xff]  ;;  %979 = vmatpush1.bf16.msra.mxu1 %v2601_v6  ;;  %939 = vmatprep.subr.bf16.mxu0 %v2602_v7  ;;  %v2611_v12 = vld [vmem:[%s3536_s3 + $0xfc] ss:$24 sps:$4 sm:$0xff]   ;;  %vm1127_vm2 = vcmask 1043456   ;;  %vm1110_vm3 = vcmask 64512  }
   0xf   : > { %v284_v2 = vadd.f32 %v2899_v1, %v2896_v0  ;;  %v2605_v8 = vld [vmem:[%s3536_s3 + $0x12c] ss:$24 sps:$4 sm:$0xff]   ;;  %v2607_v10 = vld [vmem:[%s3536_s3 + $0x128] ss:$24 sps:$4 sm:$0xff]   ;;  %v2613_v14 = vld [vmem:[%s3536_s3 + $0xf8] ss:$24 sps:$4 sm:$0xff]  }
  0x10   : > { %980 = vmatprep.subr.bf16.mxu1 %v2605_v8  ;;  %v2610_v13 = vld [vmem:[%s3536_s3 + $0xf0] ss:$24 sps:$4 sm:$0xff]   ;;  %v2614_v15 = vld [vmem:[%s3536_s3 + $0xc4] ss:$24 sps:$4 sm:$0xff]   ;;  %v2616_v17 = vld [vmem:[%s3536_s3 + $0xc0] ss:$24 sps:$4 sm:$0xff]  }
  0x11   : > { %285 = vadd.xlane.f32.xlu0 %v284_v2  ;;  %940 = vmatpush1.bf16.msra.mxu0 %v2604_v9  ;;  %v2617_v16 = vld [vmem:[%s3536_s3 + $0xcc] ss:$24 sps:$4 sm:$0xff]   ;;  %v2619_v18 = vld [vmem:[%s3536_s3 + $0xc8] ss:$24 sps:$4 sm:$0xff]   ;;  %v2623_v20 = vld [vmem:[%s3536_s3 + $0x9c] ss:$24 sps:$4 sm:$0xff]  }
  0x12   : > { %981 = vmatpush1.bf16.msra.mxu1 %v2607_v10  ;;  %941 = vmatprep.subr.bf16.mxu0 %v2608_v11  ;;  %v2620_v19 = vld [vmem:[%s3536_s3 + $0x94] ss:$24 sps:$4 sm:$0xff]   ;;  %v2622_v21 = vld [vmem:[%s3536_s3 + $0x90] ss:$24 sps:$4 sm:$0xff]   ;;  %v2626_v23 = vld [vmem:[%s3536_s3 + $0x64] ss:$24 sps:$4 sm:$0xff]  }
  0x13   : > { %982 = vmatprep.subr.bf16.mxu1 %v2611_v12  ;;  %v2625_v22 = vld [vmem:[%s3536_s3 + $0x98] ss:$24 sps:$4 sm:$0xff]   ;;  %v2629_v24 = vld [vmem:[%s3536_s3 + $0x6c] ss:$24 sps:$4 sm:$0xff]   ;;  %v2631_v26 = vld [vmem:[%s3536_s3 + $0x68] ss:$24 sps:$4 sm:$0xff]  }
  0x14   : > { %v2628_v25 = vld [vmem:[%s3536_s3 + $0x60] ss:$24 sps:$4 sm:$0xff]   ;;  %v2632_v27 = vld [vmem:[%s3536_s3 + $0x34] ss:$24 sps:$4 sm:$0xff]   ;;  %v2634_v29 = vld [vmem:[%s3536_s3 + $0x30] ss:$24 sps:$4 sm:$0xff]  }
  0x15   : > { %942 = vmatpush1.bf16.msra.mxu0 %v2610_v13  ;;  %v2635_v28 = vld [vmem:[%s3536_s3 + $0x3c] ss:$24 sps:$4 sm:$0xff]   ;;  %v2637_v30 = vld [vmem:[%s3536_s3 + $0x38] ss:$24 sps:$4 sm:$0xff]   ;;  %v2641_v32 = vld [vmem:[%s3536_s3 + $0xc] ss:$24 sps:$4 sm:$0xff]  }
  0x16   : > { %983 = vmatpush1.bf16.msra.mxu1 %v2613_v14  ;;  %943 = vmatprep.subr.bf16.mxu0 %v2614_v15  ;;  %v2638_v31 = vld [vmem:[%s3536_s3 + $0x4] ss:$24 sps:$4 sm:$0xff]   ;;  %v2640_v33 = vld [vmem:[%s3536_s3] ss:$24 sps:$4 sm:$0xff]   ;;  %v2644_v35 = vld [vmem:[%s3536_s3 + $0x2d4] ss:$24 sps:$4 sm:$0xff]   ;;  %v302_v14 = vlaneseq }
  0x17   : > { %984 = vmatprep.subr.bf16.mxu1 %v2617_v16  ;;  %v2643_v34 = vld [vmem:[%s3536_s3 + $0x8] ss:$24 sps:$4 sm:$0xff]   ;;  %v2647_v36 = vld [vmem:[%s3536_s3 + $0x2dc] ss:$24 sps:$4 sm:$0xff]   ;;  %v2649_v38 = vld [vmem:[%s3536_s3 + $0x2d8] ss:$24 sps:$4 sm:$0xff]  }
  0x18   : > { %v2646_v37 = vld [vmem:[%s3536_s3 + $0x2d0] ss:$24 sps:$4 sm:$0xff]   ;;  %v2650_v39 = vld [vmem:[%s3536_s3 + $0x2a4] ss:$24 sps:$4 sm:$0xff]   ;;  %v2652_v41 = vld [vmem:[%s3536_s3 + $0x2a0] ss:$24 sps:$4 sm:$0xff]  }
  0x19   : > { %944 = vmatpush1.bf16.msra.mxu0 %v2616_v17  ;;  %v2653_v40 = vld [vmem:[%s3536_s3 + $0x2ac] ss:$24 sps:$4 sm:$0xff]   ;;  %v2655_v49 = vld [vmem:[%s3536_s3 + $0x2a8] ss:$24 sps:$4 sm:$0xff]   ;;  %v2659_v52 = vld [vmem:[%s3536_s3 + $0x27c] ss:$24 sps:$4 sm:$0xff]  }
  0x1a   : > { %985 = vmatpush1.bf16.msra.mxu1 %v2619_v18  ;;  %945 = vmatprep.subr.bf16.mxu0 %v2620_v19  ;;  %v2656_v50 = vld [vmem:[%s3536_s3 + $0x274] ss:$24 sps:$4 sm:$0xff]   ;;  %v2658_v51 = vld [vmem:[%s3536_s3 + $0x270] ss:$24 sps:$4 sm:$0xff]   ;;  %v2662_v54 = vld [vmem:[%s3536_s3 + $0x244] ss:$24 sps:$4 sm:$0xff]  }
  0x1b   : > { %986 = vmatprep.subr.bf16.mxu1 %v2623_v20  ;;  %v2661_v53 = vld [vmem:[%s3536_s3 + $0x278] ss:$24 sps:$4 sm:$0xff]   ;;  %v2665_v56 = vld [vmem:[%s3536_s3 + $0x24c] ss:$24 sps:$4 sm:$0xff]   ;;  %v2667_v57 = vld [vmem:[%s3536_s3 + $0x248] ss:$24 sps:$4 sm:$0xff]  }
  0x1c   : > { %v2664_v55 = vld [vmem:[%s3536_s3 + $0x240] ss:$24 sps:$4 sm:$0xff]   ;;  %v2668_v58 = vld [vmem:[%s3536_s3 + $0x214] ss:$24 sps:$4 sm:$0xff]   ;;  %v2670_v60 = vld [vmem:[%s3536_s3 + $0x210] ss:$24 sps:$4 sm:$0xff]  }
  0x1d   : > { %946 = vmatpush1.bf16.msra.mxu0 %v2622_v21  ;;  %v2671_v59 = vld [vmem:[%s3536_s3 + $0x21c] ss:$24 sps:$4 sm:$0xff]   ;;  %v2673_v61 = vld [vmem:[%s3536_s3 + $0x218] ss:$24 sps:$4 sm:$0xff]   ;;  %v2677_v63 = vld [vmem:[%s3536_s3 + $0x1ec] ss:$24 sps:$4 sm:$0xff]  }
  0x1e   : > { %987 = vmatpush1.bf16.msra.mxu1 %v2625_v22  ;;  %947 = vmatprep.subr.bf16.mxu0 %v2626_v23  ;;  %v2674_v62 = vld [vmem:[%s3536_s3 + $0x1e4] ss:$24 sps:$4 sm:$0xff]   ;;  %v2680_v2 = vld [vmem:[%s3536_s3 + $0x1b4] ss:$24 sps:$4 sm:$0xff]   ;;  %v2682_v4 = vld [vmem:[%s3536_s3 + $0x1b0] ss:$24 sps:$4 sm:$0xff]  }
  0x1f   : > { %988 = vmatprep.subr.bf16.mxu1 %v2629_v24  ;;  %v2683_v3 = vld [vmem:[%s3536_s3 + $0x1bc] ss:$24 sps:$4 sm:$0xff]   ;;  %v2685_v5 = vld [vmem:[%s3536_s3 + $0x1b8] ss:$24 sps:$4 sm:$0xff]   ;;  %v2689_v7 = vld [vmem:[%s3536_s3 + $0x18c] ss:$24 sps:$4 sm:$0xff]  }
  0x20   : > { %v2686_v6 = vld [vmem:[%s3536_s3 + $0x184] ss:$24 sps:$4 sm:$0xff]   ;;  %v2688_v8 = vld [vmem:[%s3536_s3 + $0x180] ss:$24 sps:$4 sm:$0xff]   ;;  %v3108_v15 = vshrl.u32 %v302_v14, 7  ;;  %vm1970_vm4 = vcmask 523264  }
  0x21   : > { %948 = vmatpush1.bf16.msra.mxu0 %v2628_v25  ;;  %v2691_v9 = vld [vmem:[%s3536_s3 + $0x188] ss:$24 sps:$4 sm:$0xff]   ;;  %v2694_v10 = vld [vmem:[%s3536_s3 + $0x164] ss:$24 sps:$4 sm:$0xff]   ;;  %vm1972_vm5 = vcmask 785408  }
  0x22   : > { %989 = vmatpush1.bf16.msra.mxu1 %v2631_v26  ;;  %949 = vmatprep.subr.bf16.mxu0 %v2632_v27  ;;  %v3111_v16 = vsub.s32 1, %v3108_v15  ;;  %v3114_v17 = vsub.s32 0, %v3108_v15  ;;  %v282_v18 = vld [vmem:[%s3534_s1] sm:$0x3] }
  0x23   : > { %990 = vmatprep.subr.bf16.mxu1 %v2635_v28  ;;  %v283_v19 = vld [vmem:[%s3535_s2] sm:$0x3] }
  0x24   : > { %v309_v20 = vrot.slane %v282_v18, %v3111_v16  ;;  %v305_v21 = vrot.slane %v282_v18, %v3114_v17  ;;  %v322_v24 = vrot.slane %v283_v19, %v3111_v16  ;;  %v318_v26 = vrot.slane %v283_v19, %v3114_v17 }
  0x25   : > { %950 = vmatpush1.bf16.msra.mxu0 %v2634_v29 }
  0x26   : > { %991 = vmatpush1.bf16.msra.mxu1 %v2637_v30  ;;  %951 = vmatprep.subr.bf16.mxu0 %v2638_v31 }
  0x27   : > { %992 = vmatprep.subr.bf16.mxu1 %v2641_v32  ;;  %v2692_v32 = vld [vmem:[%s3536_s3 + $0x160] ss:$24 sps:$4 sm:$0xff]  }
  0x29   : > { %952 = vmatpush1.bf16.msra.mxu0 %v2640_v33 }
  0x2a   : > { %993 = vmatpush1.bf16.msra.mxu1 %v2643_v34  ;;  %953 = vmatprep.subr.bf16.mxu0 %v2644_v35  ;;  %v2697_v34 = vld [vmem:[%s3536_s3 + $0x134] ss:$24 sps:$4 sm:$0xff]   ;;  %v2695_v35 = vld [vmem:[%s3536_s3 + $0x130] ss:$24 sps:$4 sm:$0xff]  }
  0x2b   : > { %994 = vmatprep.subr.bf16.mxu1 %v2647_v36  ;;  %v2700_v36 = vld [vmem:[%s3536_s3 + $0x104] ss:$24 sps:$4 sm:$0xff]  }
  0x2d   : > { %954 = vmatpush2.bf16.msra.mxu0 %v2646_v37  ;;  %v2698_v37 = vld [vmem:[%s3536_s3 + $0x100] ss:$24 sps:$4 sm:$0xff]  }
  0x2e   : > { %995 = vmatpush2.bf16.msra.mxu1 %v2649_v38  ;;  %955 = vmatprep.subr.bf16.mxu0 %v2650_v39  ;;  %v2703_v38 = vld [vmem:[%s3536_s3 + $0xd4] ss:$24 sps:$4 sm:$0xff]   ;;  %v2701_v39 = vld [vmem:[%s3536_s3 + $0xd0] ss:$24 sps:$4 sm:$0xff]  }
  0x2f   : > { %996 = vmatprep.subr.bf16.mxu1 %v2653_v40  ;;  %v2706_v40 = vld [vmem:[%s3536_s3 + $0xa4] ss:$24 sps:$4 sm:$0xff]  }
  0x31   : > { %956 = vmatpush2.bf16.msra.mxu0 %v2652_v41  ;;  %v2704_v41 = vld [vmem:[%s3536_s3 + $0xa0] ss:$24 sps:$4 sm:$0xff]  }
  0x32   : > { %997 = vmatpush2.bf16.msra.mxu1 %v2655_v49  ;;  %957 = vmatprep.subr.bf16.mxu0 %v2656_v50  ;;  %v2716_v49 = vld [vmem:[%s3536_s3 + $0x2e0] ss:$24 sps:$4 sm:$0xff]   ;;  %v2721_v50 = vld [vmem:[%s3536_s3 + $0x2b4] ss:$24 sps:$4 sm:$0xff]  }
  0x33   : > { %998 = vmatprep.subr.bf16.mxu1 %v2659_v52  ;;  %v2724_v52 = vld [vmem:[%s3536_s3 + $0x284] ss:$24 sps:$4 sm:$0xff]  }
  0x35   : > { %958 = vmatpush2.bf16.msra.mxu0 %v2658_v51  ;;  %v2719_v51 = vld [vmem:[%s3536_s3 + $0x2b0] ss:$24 sps:$4 sm:$0xff]  }
  0x36   : > { %999 = vmatpush2.bf16.msra.mxu1 %v2661_v53  ;;  %959 = vmatprep.subr.bf16.mxu0 %v2662_v54  ;;  %v2722_v53 = vld [vmem:[%s3536_s3 + $0x280] ss:$24 sps:$4 sm:$0xff]   ;;  %v2727_v54 = vld [vmem:[%s3536_s3 + $0x254] ss:$24 sps:$4 sm:$0xff]  }
  0x37   : > { %1000 = vmatprep.subr.bf16.mxu1 %v2665_v56  ;;  %v2730_v56 = vld [vmem:[%s3536_s3 + $0x224] ss:$24 sps:$4 sm:$0xff]  }
  0x39   : > { %960 = vmatpush2.bf16.msra.mxu0 %v2664_v55  ;;  %v2725_v55 = vld [vmem:[%s3536_s3 + $0x250] ss:$24 sps:$4 sm:$0xff]  }
  0x3a   : > { %1001 = vmatpush2.bf16.msra.mxu1 %v2667_v57  ;;  %961 = vmatprep.subr.bf16.mxu0 %v2668_v58  ;;  %v2728_v57 = vld [vmem:[%s3536_s3 + $0x220] ss:$24 sps:$4 sm:$0xff]   ;;  %v2733_v58 = vld [vmem:[%s3536_s3 + $0x1f4] ss:$24 sps:$4 sm:$0xff]  }
  0x3b   : > { %1002 = vmatprep.subr.bf16.mxu1 %v2671_v59  ;;  %v2731_v59 = vld [vmem:[%s3536_s3 + $0x1f0] ss:$24 sps:$4 sm:$0xff]  }
  0x3d   : > { %962 = vmatpush2.bf16.msra.mxu0 %v2670_v60  ;;  %v2736_v60 = vld [vmem:[%s3536_s3 + $0x1c4] ss:$24 sps:$4 sm:$0xff]  }
  0x3e   : > { %1003 = vmatpush2.bf16.msra.mxu1 %v2673_v61  ;;  %963 = vmatprep.subr.bf16.mxu0 %v2674_v62  ;;  %v2734_v61 = vld [vmem:[%s3536_s3 + $0x1c0] ss:$24 sps:$4 sm:$0xff]   ;;  %v2739_v62 = vld [vmem:[%s3536_s3 + $0x194] ss:$24 sps:$4 sm:$0xff]  }
  0x3f   : > { %1004 = vmatprep.subr.bf16.mxu1 %v2677_v63  ;;  %v2737_v63 = vld [vmem:[%s3536_s3 + $0x190] ss:$24 sps:$4 sm:$0xff]  }
  0x9a   : > { %v286_v42 = vpop.xlane.xlu0 %285 }
  0x9b   : > { %v288_v43 = vmul.f32 0.00390625, %v286_v42  ;;  %v2709_v42 = vld [vmem:[%s3536_s3 + $0x74] ss:$24 sps:$4 sm:$0xff]  }
  0x9d   : > { %v3021_v44 = vsub.f32 %v2896_v0, %v288_v43  ;;  %v3024_v45 = vsub.f32 %v2899_v1, %v288_v43  ;;  %v2676_v0 = vld [vmem:[%s3536_s3 + $0x1e0] ss:$24 sps:$4 sm:$0xff]   ;;  %v2707_v43 = vld [vmem:[%s3536_s3 + $0x70] ss:$24 sps:$4 sm:$0xff]  }
  0x9e   : > { %v2679_v1 = vld [vmem:[%s3536_s3 + $0x1e8] ss:$24 sps:$4 sm:$0xff]   ;;  %964 = vmatpush2.bf16.msra.mxu0 %v2676_v0  ;;  %v2832_v0 = vmov 0.0  }
  0x9f   : > { %v291_v46 = vmul.f32 %v3021_v44, %v3021_v44  ;;  %v292_v47 = vmul.f32 %v3024_v45, %v3024_v45  ;;  %1005 = vmatpush2.bf16.msra.mxu1 %v2679_v1  ;;  %965 = vmatprep.subr.bf16.mxu0 %v2680_v2  ;;  %v437_v1 = vsub.s32 2, %v3108_v15  ;;  %v3233_v2 = vld [vmem:[%s3537_s4] sm:$0x3f] }
  0xa0   : > { %1006 = vmatprep.subr.bf16.mxu1 %v2683_v3 }
  0xa1   : > { %v293_v48 = vadd.f32 %v292_v47, %v291_v46  ;;  %v2715_v46 = vld [vmem:[%s3536_s3 + $0x14] ss:$24 sps:$4 sm:$0xff]   ;;  %v2713_v47 = vld [vmem:[%s3536_s3 + $0x10] ss:$24 sps:$4 sm:$0xff]   ;;  %v438_v3 = vrot.slane %v3233_v2, %v437_v1 }
  0xa2   : > { %966 = vmatpush2.bf16.msra.mxu0 %v2682_v4  ;;  %v430_v4 = vrot.slane %v3233_v2, %v3114_v17 }
  0xa3   : > { %294 = vadd.xlane.f32.xlu0 %v293_v48  ;;  %1007 = vmatpush2.bf16.msra.mxu1 %v2685_v5  ;;  %v2718_v48 = vld [vmem:[%s3536_s3 + $0x2e4] ss:$24 sps:$4 sm:$0xff]  }
  0xa4   : > { %967 = vmatprep.subr.bf16.mxu0 %v2686_v6  ;;  %1008 = vmatprep.subr.bf16.mxu1 %v2689_v7 }
  0xa6   : > { %968 = vmatpush2.bf16.msra.mxu0 %v2688_v8 }
  0xa7   : > { %1009 = vmatpush2.bf16.msra.mxu1 %v2691_v9  ;;  %1019 = vmatprep.subr.bf16.mxu0 %v2694_v10 }
  0xa8   : > { %2472 = vmatprep.subr.bf16.mxu1 %v2832_v0 }
 0x12c   : > { %v295_v11 = vpop.xlane.xlu0 %294 }
 0x12d   : > { %v296_v12 = vmul.f32 0.00390625, %v295_v11 }
 0x12f   : > { %v297_v13 = vadd.f32 1e-05, %v296_v12 }
 0x131   : > { %2788 = vrsqrt.f32 %v297_v13 }
 0x13e   : > { %v2789_v22 = vpop.eup %2788 }
 0x13f   : > { %v300_v23 = vmul.f32 %v2789_v22, %v3024_v45  ;;  %v299_v25 = vmul.f32 %v2789_v22, %v3021_v44  ;;  %v2712_v44 = vld [vmem:[%s3536_s3 + $0x44] ss:$24 sps:$4 sm:$0xff]   ;;  %v2710_v45 = vld [vmem:[%s3536_s3 + $0x40] ss:$24 sps:$4 sm:$0xff]   ;;  %v445_v22 = vsub.s32 4, %v3108_v15 }
 0x141   : > { %v313_v27 = vmul.f32 %v309_v20, %v300_v23  ;;  %v312_v28 = vmul.f32 %v305_v21, %v299_v25  ;;  %v446_v23 = vrot.slane %v3233_v2, %v445_v22 }
 0x143   : > { %v326_v29 = vadd.f32 %v322_v24, %v313_v27  ;;  %v325_v30 = vadd.f32 %v318_v26, %v312_v28 }
 0x145   : > { %v424_v31 = vpack.c.bf16 %v326_v29, %v326_v29  ;;  %v3131_v33 = vpack.c.bf16 %v325_v30, %v325_v30 }
 0x147   : > { %969 = vmatprep.mubr.bf16.mxu0 %v424_v31  ;;  %1010 = vmatprep.mubr.bf16.mxu1 %v424_v31 }
 0x148   : > { %970 = vmatmul.mubr.bf16.vlgmr.msra.gmra.mxu0 %v3131_v33  ;;  %1011 = vmatmul.mubr.bf16.vlgmr.msra.gmra.mxu1 %v3131_v33 }
 0x149   : > { %1020 = vmatpush1.bf16.msra.mxu0 %v2692_v32  ;;  %1051 = vmatprep.mubr.bf16.mxu0 %v424_v31 }
 0x14a   : > { %1021 = vmatprep.subr.bf16.mxu0 %v2697_v34  ;;  %2474 = vmatprep.mubr.msk.bf16.mxu1 %vm2833_vm0, %v2832_v0 }
 0x14d   : > { %1022 = vmatpush1.bf16.msra.mxu0 %v2695_v35 }
 0x14e   : > { %1023 = vmatprep.subr.bf16.mxu0 %v2700_v36 }
 0x151   : > { %1024 = vmatpush1.bf16.msra.mxu0 %v2698_v37 }
 0x152   : > { %1025 = vmatprep.subr.bf16.mxu0 %v2703_v38 }
 0x155   : > { %1026 = vmatpush1.bf16.msra.mxu0 %v2701_v39 }
 0x156   : > { %1027 = vmatprep.subr.bf16.mxu0 %v2706_v40 }
 0x159   : > { %1028 = vmatpush1.bf16.msra.mxu0 %v2704_v41 }
 0x15a   : > { %1029 = vmatprep.subr.bf16.mxu0 %v2709_v42 }
 0x15d   : > { %1030 = vmatpush1.bf16.msra.mxu0 %v2707_v43 }
 0x15e   : > { %1031 = vmatprep.subr.bf16.mxu0 %v2712_v44 }
 0x161   : > { %1032 = vmatpush1.bf16.msra.mxu0 %v2710_v45 }
 0x162   : > { %1033 = vmatprep.subr.bf16.mxu0 %v2715_v46 }
 0x165   : > { %1034 = vmatpush1.bf16.msra.mxu0 %v2713_v47 }
 0x166   : > { %1035 = vmatprep.subr.bf16.mxu0 %v2718_v48 }
 0x169   : > { %1036 = vmatpush2.bf16.msra.mxu0 %v2716_v49 }
 0x16a   : > { %1037 = vmatprep.subr.bf16.mxu0 %v2721_v50 }
 0x16d   : > { %1038 = vmatpush2.bf16.msra.mxu0 %v2719_v51 }
 0x16e   : > { %1039 = vmatprep.subr.bf16.mxu0 %v2724_v52 }
 0x171   : > { %1040 = vmatpush2.bf16.msra.mxu0 %v2722_v53 }
 0x172   : > { %1041 = vmatprep.subr.bf16.mxu0 %v2727_v54 }
 0x175   : > { %1042 = vmatpush2.bf16.msra.mxu0 %v2725_v55 }
 0x176   : > { %1043 = vmatprep.subr.bf16.mxu0 %v2730_v56 }
 0x179   : > { %1044 = vmatpush2.bf16.msra.mxu0 %v2728_v57 }
 0x17a   : > { %1045 = vmatprep.subr.bf16.mxu0 %v2733_v58 }
 0x17d   : > { %1046 = vmatpush2.bf16.msra.mxu0 %v2731_v59 }
 0x17e   : > { %1047 = vmatprep.subr.bf16.mxu0 %v2736_v60 }
 0x181   : > { %1048 = vmatpush2.bf16.msra.mxu0 %v2734_v61 }
 0x182   : > { %1049 = vmatprep.subr.bf16.mxu0 %v2739_v62 }
 0x185   : > { %1050 = vmatpush2.bf16.msra.mxu0 %v2737_v63 }
 0x188   : > { %1052 = vmatmul.mubr.bf16.vlgmr.msra.gmra.mxu0 %v3131_v33 }
 0x208   : > { %v971_v5 = vpop.f32.mrf.mxu0  ;;  %v1012_v6 = vpop.f32.mrf.mxu1 }
 0x209   : > { %v1013_v7 = vadd.f32 %v1012_v6, %v438_v3  ;;  %v972_v10 = vadd.f32 %v971_v5, %v430_v4 }
 0x20a   : > { %v3238_v8 = vpop.f32.mrf.mxu0  ;;  %v3240_v9 = vpop.f32.mrf.mxu1 }
 0x20b   : > { %v3242_v11 = vpack.c.bf16 %v1013_v7, %v1013_v7  ;;  %v1060_v20 = vmul.f32 0.17677669, %v972_v10 }
 0x20c   : > { %v975_v12 = vpop.f32.mrf.mxu0  ;;  %v1016_v13 = vpop.f32.mrf.mxu1 }
 0x20d   : > { %1175 = vrot.lane.b32.xlu0 %v3242_v11, %s2834_s15  ;;  %v1068_v14 = vsel %vm1063_vm1, %v3242_v11, 0  ;;  %v3249_v21 = vpack.c.bf16 %v1060_v20, %v1060_v20 }
 0x20e   : > { %v976_v18 = vpop.f32.mrf.mxu0  ;;  %v1017_v19 = vpop.f32.mrf.mxu1  ;;  %2473 = vmatpush3.bf16.xpose.msra.mxu1 %v1068_v14 }
 0x20f   : > { %2478 = vmatprep.subr.bf16.mxu1 %v2832_v0 }
 0x215   : > { %2475 = vmatmul.mubr.msk.bf16.vlgmr.msra.gmra.mxu1 %vm1063_vm1, %v3249_v21 }
 0x216   : > { %2480 = vmatprep.mubr.msk.bf16.mxu1 %vm2833_vm0, %v2832_v0 }
 0x248   : > { %v1053_v24 = vpop.f32.mrf.mxu0 }
 0x249   : > { %v1054_v25 = vadd.f32 %v1053_v24, %v446_v23 }
 0x24a   : > { %v3257_v26 = vpop.f32.mrf.mxu0 }
 0x24b   : > { %v3259_v27 = vpack.c.bf16 %v1054_v25, %v1054_v25 }
 0x24c   : > { %v1057_v28 = vpop.f32.mrf.mxu0 }
 0x24d   : > { %v1129_v29 = vsel %vm1127_vm2, %v3259_v27, 0 }
 0x24e   : > { %v1058_v30 = vpop.f32.mrf.mxu0  ;;  %2479 = vmatpush3.bf16.msra.mxu1 %v1129_v29 }
 0x24f   : > { %2484 = vmatprep.subr.bf16.mxu1 %v2832_v0 }
 0x27f   : > { %v1176_v44 = vpop.permute.xlu0 %1175 }
 0x280   : > { %v1181_v46 = vsel %vm1063_vm1, %v1176_v44, 0 }
 0x2d5   : > { %v1104_v31 = vpop.f32.mrf.mxu1 }
 0x2d6   : > { %v1111_v32 = vsel %vm1110_vm3, %v1104_v31, -inf }
 0x2d7   : > { %1112 = vmax.xlane.f32.xlu1 %v1111_v32  ;;  %v2476_v33 = vpop.f32.mrf.mxu1 }
 0x2d9   : > { %v1107_v34 = vpop.f32.mrf.mxu1 }
 0x2db   : > { %v2477_v35 = vpop.f32.mrf.mxu1 }
 0x360   : > { %v1113_v36 = vpop.xlane.xlu1 %1112 }
 0x361   : > { %v1114_v37 = vsub.f32 %v1104_v31, %v1113_v36 }
 0x363   : > { %v1115_v38 = vmul.f32 1.442695, %v1114_v37 }
 0x365   : > { %2790 = vpow2.f32 %v1115_v38 }
 0x372   : > { %v2791_v39 = vpop.eup %2790 }
 0x373   : > { %v1117_v40 = vsel %vm1110_vm3, %v2791_v39, 0.0 }
 0x374   : > { %1118 = vadd.xlane.f32.xlu1 %v1117_v40 }
 0x385   : > { %1172 = vrot.lane.b32.xlu1 %v3249_v21, %s2834_s15 }
 0x3fd   : > { %v1119_v41 = vpop.xlane.xlu1 %1118 }
 0x3fe   : > { %2792 = vrcp.f32 %v1119_v41 }
 0x401   : > { %v1173_v47 = vpop.permute.xlu1 %1172 }
 0x40b   : > { %v2793_v42 = vpop.eup %2792 }
 0x40c   : > { %v1121_v43 = vmul.f32 %v2793_v42, %v2791_v39 }
 0x40e   : > { %v1123_v45 = vpack.c.bf16 %v1121_v43, %v1121_v43 }
 0x410   : > { %2481 = vmatmul.mubr.msk.bf16.vlgmr.msra.gmra.mxu1 %vm1110_vm3, %v1123_v45 }
 0x411   : > { %2485 = vmatpush3.bf16.xpose.msra.mxu1 %v1181_v46  ;;  %2486 = vmatprep.mubr.msk.bf16.mxu1 %vm2833_vm0, %v2832_v0 }
 0x412   : > { %2490 = vmatprep.subr.bf16.mxu1 %v2832_v0 }
 0x418   : > { %2487 = vmatmul.mubr.msk.bf16.vlgmr.msra.gmra.mxu1 %vm1063_vm1, %v1173_v47 }
 0x419   : > { %2492 = vmatprep.mubr.msk.bf16.mxu1 %vm2833_vm0, %v2832_v0 }
 0x4d0   : > { %v3276_v48 = vpop.f32.mrf.mxu1 }
 0x4d2   : > { %v2482_v49 = vpop.f32.mrf.mxu1 }
 0x4d3   : > { %v434_v49 = vrot.slane %v3233_v2, %v3111_v16 }
 0x4d4   : > { %v1168_v50 = vpop.f32.mrf.mxu1 }
 0x4d5   : > { %v974_v50 = vadd.f32 %v3238_v8, %v434_v49 }
 0x4d6   : > { %v2483_v51 = vpop.f32.mrf.mxu1 }
 0x4d7   : > { %v1504_v51 = vmul.f32 0.17677669, %v974_v50 }
 0x4d8   : > { %v1217_v52 = vpop.f32.mrf.mxu1 }
 0x4d9   : > { %v1223_v53 = vsel %vm1110_vm3, %v1217_v52, -inf }
 0x4da   : > { %1224 = vmax.xlane.f32.xlu1 %v1223_v53  ;;  %v2488_v54 = vpop.f32.mrf.mxu1 }
 0x4dc   : > { %v1220_v55 = vpop.f32.mrf.mxu1 }
 0x4de   : > { %v2489_v56 = vpop.f32.mrf.mxu1 }
 0x4eb   : > { %1286 = vrot.lane.b32.xlu1 %v3242_v11, %s2835_s16 }
 0x4ef   : > { %1284 = vrot.lane.b32.xlu1 %v3249_v21, %s2835_s16 }
 0x563   : > { %v1225_v57 = vpop.xlane.xlu1 %1224 }
 0x564   : > { %v1226_v58 = vsub.f32 %v1217_v52, %v1225_v57  ;;  %v3324_v52 = vpack.c.bf16 %v1504_v51, %v1504_v51 }
 0x566   : > { %v1227_v59 = vmul.f32 1.442695, %v1226_v58 }
 0x567   : > { %v1287_v5 = vpop.permute.xlu1 %1286 }
 0x568   : > { %2794 = vpow2.f32 %v1227_v59  ;;  %v1292_v7 = vsel %vm1063_vm1, %v1287_v5, 0  ;;  %v441_v59 = vsub.s32 3, %v3108_v15 }
 0x56b   : > { %v1285_v10 = vpop.permute.xlu1 %1284 }
 0x575   : > { %v2795_v60 = vpop.eup %2794 }
 0x576   : > { %v1229_v61 = vsel %vm1110_vm3, %v2795_v60, 0.0 }
 0x577   : > { %1230 = vadd.xlane.f32.xlu0 %v1229_v61 }
 0x58d   : > { %1236 = vrot.lane.b32.xlu0 %v3259_v27, %s2834_s15 }
 0x600   : > { %v1231_v62 = vpop.xlane.xlu0 %1230 }
 0x601   : > { %2796 = vrcp.f32 %v1231_v62  ;;  %v449_v62 = vsub.s32 5, %v3108_v15 }
 0x604   : > { %v1237_v63 = vpop.permute.xlu0 %1236 }
 0x605   : > { %v1242_v1 = vsel %vm1127_vm2, %v1237_v63, 0 }
 0x606   : > { %2491 = vmatpush3.bf16.msra.mxu1 %v1242_v1 }
 0x607   : > { %2496 = vmatprep.subr.bf16.mxu1 %v2832_v0 }
 0x60e   : > { %v2797_v3 = vpop.eup %2796 }
 0x60f   : > { %v1233_v4 = vmul.f32 %v2797_v3, %v2795_v60  ;;  %v442_v60 = vrot.slane %v3233_v2, %v441_v59  ;;  %v450_v3 = vrot.slane %v3233_v2, %v449_v62 }
 0x611   : > { %v1234_v6 = vpack.c.bf16 %v1233_v4, %v1233_v4  ;;  %v1015_v61 = vadd.f32 %v3240_v9, %v442_v60 }
 0x613   : > { %2493 = vmatmul.mubr.msk.bf16.vlgmr.msra.gmra.mxu1 %vm1110_vm3, %v1234_v6  ;;  %v3335_v1 = vpack.c.bf16 %v1015_v61, %v1015_v61  ;;  %v1056_v6 = vadd.f32 %v3257_v26, %v450_v3 }
 0x614   : > { %2497 = vmatpush3.bf16.xpose.msra.mxu1 %v1292_v7  ;;  %2498 = vmatprep.mubr.msk.bf16.mxu1 %vm2833_vm0, %v2832_v0 }
 0x615   : > { %2502 = vmatprep.subr.bf16.mxu1 %v2832_v0  ;;  %v1511_v7 = vsel %vm1063_vm1, %v3335_v1, 0  ;;  %v3345_v15 = vpack.c.bf16 %v1056_v6, %v1056_v6 }
 0x617   : > { %v1570_v2 = vsel %vm1127_vm2, %v3345_v15, 0 }
 0x61b   : > { %2499 = vmatmul.mubr.msk.bf16.vlgmr.msra.gmra.mxu1 %vm1063_vm1, %v1285_v10 }
 0x61c   : > { %2504 = vmatprep.mubr.msk.bf16.mxu1 %vm2833_vm0, %v2832_v0 }
 0x6d3   : > { %v3296_v12 = vpop.f32.mrf.mxu1 }
 0x6d5   : > { %v2494_v13 = vpop.f32.mrf.mxu1 }
 0x6d7   : > { %v1281_v14 = vpop.f32.mrf.mxu1 }
 0x6d9   : > { %v2495_v18 = vpop.f32.mrf.mxu1 }
 0x6db   : > { %v1328_v19 = vpop.f32.mrf.mxu1 }
 0x6dc   : > { %v1334_v20 = vsel %vm1110_vm3, %v1328_v19, -inf }
 0x6dd   : > { %1335 = vmax.xlane.f32.xlu1 %v1334_v20  ;;  %v2500_v22 = vpop.f32.mrf.mxu1 }
 0x6df   : > { %v1331_v23 = vpop.f32.mrf.mxu1 }
 0x6e1   : > { %v2501_v24 = vpop.f32.mrf.mxu1 }
 0x6ee   : > { %1396 = vrot.lane.b32.xlu1 %v3242_v11, %s2836_s17 }
 0x6f2   : > { %1394 = vrot.lane.b32.xlu1 %v3249_v21, %s2836_s17 }
 0x766   : > { %v1336_v25 = vpop.xlane.xlu1 %1335 }
 0x767   : > { %v1337_v28 = vsub.f32 %v1328_v19, %v1336_v25 }
 0x769   : > { %v1338_v29 = vmul.f32 1.442695, %v1337_v28 }
 0x76a   : > { %v1397_v35 = vpop.permute.xlu1 %1396 }
 0x76b   : > { %2798 = vpow2.f32 %v1338_v29  ;;  %v1402_v37 = vsel %vm1063_vm1, %v1397_v35, 0 }
 0x76e   : > { %v1395_v38 = vpop.permute.xlu1 %1394 }
 0x778   : > { %v2799_v30 = vpop.eup %2798 }
 0x779   : > { %v1340_v31 = vsel %vm1110_vm3, %v2799_v30, 0.0 }
 0x77a   : > { %1341 = vadd.xlane.f32.xlu0 %v1340_v31 }
 0x790   : > { %1346 = vrot.lane.b32.xlu0 %v3259_v27, %s2835_s16 }
 0x803   : > { %v1342_v32 = vpop.xlane.xlu0 %1341 }
 0x804   : > { %2800 = vrcp.f32 %v1342_v32 }
 0x807   : > { %v1347_v33 = vpop.permute.xlu0 %1346 }
 0x808   : > { %v1352_v34 = vsel %vm1127_vm2, %v1347_v33, 0 }
 0x809   : > { %2503 = vmatpush3.bf16.msra.mxu1 %v1352_v34 }
 0x80a   : > { %2508 = vmatprep.subr.bf16.mxu1 %v2832_v0 }
 0x811   : > { %v2801_v11 = vpop.eup %2800 }
 0x812   : > { %v1344_v21 = vmul.f32 %v2801_v11, %v2799_v30 }
 0x814   : > { %v1345_v36 = vpack.c.bf16 %v1344_v21, %v1344_v21 }
 0x816   : > { %2505 = vmatmul.mubr.msk.bf16.vlgmr.msra.gmra.mxu1 %vm1110_vm3, %v1345_v36 }
 0x817   : > { %2509 = vmatpush3.bf16.xpose.msra.mxu1 %v1402_v37  ;;  %2510 = vmatprep.mubr.msk.bf16.mxu1 %vm2833_vm0, %v2832_v0 }
 0x818   : > { %2514 = vmatprep.subr.bf16.mxu1 %v2832_v0 }
 0x81e   : > { %2511 = vmatmul.mubr.msk.bf16.vlgmr.msra.gmra.mxu1 %vm1063_vm1, %v1395_v38 }
 0x81f   : > { %2516 = vmatprep.mubr.msk.bf16.mxu1 %vm2833_vm0, %v2832_v0 }
 0x8d6   : > { %v3316_v39 = vpop.f32.mrf.mxu1 }
 0x8d8   : > { %v2506_v40 = vpop.f32.mrf.mxu1 }
 0x8da   : > { %v1391_v41 = vpop.f32.mrf.mxu1 }
 0x8dc   : > { %v2507_v42 = vpop.f32.mrf.mxu1 }
 0x8de   : > { %v1438_v43 = vpop.f32.mrf.mxu1 }
 0x8df   : > { %v1444_v44 = vsel %vm1110_vm3, %v1438_v43, -inf }
 0x8e0   : > { %1445 = vmax.xlane.f32.xlu0 %v1444_v44  ;;  %v2512_v45 = vpop.f32.mrf.mxu1 }
 0x8e2   : > { %v1441_v46 = vpop.f32.mrf.mxu1 }
 0x8e4   : > { %v2513_v47 = vpop.f32.mrf.mxu1 }
 0x8f6   : > { %1456 = vrot.lane.b32.xlu0 %v3259_v27, %s2836_s17 }
 0x8fa   : > { %1613 = vrot.lane.b32.xlu0 %v3324_v52, %s2834_s15 }
 0x969   : > { %v1446_v53 = vpop.xlane.xlu0 %1445 }
 0x96a   : > { %v1447_v54 = vsub.f32 %v1438_v43, %v1446_v53 }
 0x96c   : > { %v1448_v55 = vmul.f32 1.442695, %v1447_v54 }
 0x96d   : > { %v1457_v56 = vpop.permute.xlu0 %1456 }
 0x96e   : > { %2802 = vpow2.f32 %v1448_v55  ;;  %v1462_v57 = vsel %vm1127_vm2, %v1457_v56, 0 }
 0x96f   : > { %2515 = vmatpush3.bf16.msra.mxu1 %v1462_v57 }
 0x970   : > { %2520 = vmatprep.subr.bf16.mxu1 %v2832_v0 }
 0x971   : > { %v1614_v21 = vpop.permute.xlu0 %1613 }
 0x97b   : > { %v2803_v8 = vpop.eup %2802 }
 0x97c   : > { %v1450_v58 = vsel %vm1110_vm3, %v2803_v8, 0.0 }
 0x97d   : > { %1451 = vadd.xlane.f32.xlu1 %v1450_v58 }
 0xa06   : > { %v1452_v27 = vpop.xlane.xlu1 %1451 }
 0xa07   : > { %2804 = vrcp.f32 %v1452_v27 }
 0xa14   : > { %v2805_v63 = vpop.eup %2804 }
 0xa15   : > { %v1454_v4 = vmul.f32 %v2805_v63, %v2803_v8 }
 0xa17   : > { %v1455_v5 = vpack.c.bf16 %v1454_v4, %v1454_v4 }
 0xa19   : > { %2517 = vmatmul.mubr.msk.bf16.vlgmr.msra.gmra.mxu1 %vm1110_vm3, %v1455_v5 }
 0xa1a   : > { %2521 = vmatpush3.bf16.xpose.msra.mxu1 %v1511_v7  ;;  %2522 = vmatprep.mubr.msk.bf16.mxu1 %vm2833_vm0, %v2832_v0 }
 0xa1b   : > { %2526 = vmatprep.subr.bf16.mxu1 %v2832_v0 }
 0xa21   : > { %2523 = vmatmul.mubr.msk.bf16.vlgmr.msra.gmra.mxu1 %vm1063_vm1, %v3324_v52 }
 0xa22   : > { %2527 = vmatpush3.bf16.msra.mxu1 %v1570_v2  ;;  %2528 = vmatprep.mubr.msk.bf16.mxu1 %vm2833_vm0, %v2832_v0 }
 0xa23   : > { %2532 = vmatprep.subr.bf16.mxu1 %v2832_v0 }
 0xad9   : > { %v3354_v9 = vpop.f32.mrf.mxu1 }
 0xadb   : > { %v2518_v26 = vpop.f32.mrf.mxu1 }
 0xadd   : > { %v1501_v10 = vpop.f32.mrf.mxu1 }
 0xadf   : > { %v2519_v13 = vpop.f32.mrf.mxu1 }
 0xae1   : > { %v1547_v14 = vpop.f32.mrf.mxu1 }
 0xae2   : > { %v1553_v18 = vsel %vm1110_vm3, %v1547_v14, -inf }
 0xae3   : > { %1554 = vmax.xlane.f32.xlu1 %v1553_v18  ;;  %v2524_v19 = vpop.f32.mrf.mxu1 }
 0xae5   : > { %v1550_v20 = vpop.f32.mrf.mxu1 }
 0xae7   : > { %v2525_v22 = vpop.f32.mrf.mxu1 }
 0xb6c   : > { %v1555_v23 = vpop.xlane.xlu1 %1554 }
 0xb6d   : > { %v1556_v24 = vsub.f32 %v1547_v14, %v1555_v23 }
 0xb6f   : > { %v1557_v25 = vmul.f32 1.442695, %v1556_v24 }
 0xb71   : > { %2806 = vpow2.f32 %v1557_v25 }
 0xb7e   : > { %v2807_v28 = vpop.eup %2806 }
 0xb7f   : > { %v1559_v29 = vsel %vm1110_vm3, %v2807_v28, 0.0 }
 0xb80   : > { %1560 = vadd.xlane.f32.xlu1 %v1559_v29 }
 0xb91   : > { %1616 = vrot.lane.b32.xlu1 %v3335_v1, %s2834_s15 }
 0xc09   : > { %v1561_v30 = vpop.xlane.xlu1 %1560 }
 0xc0a   : > { %2808 = vrcp.f32 %v1561_v30 }
 0xc0d   : > { %v1617_v33 = vpop.permute.xlu1 %1616 }
 0xc0e   : > { %v1622_v11 = vsel %vm1063_vm1, %v1617_v33, 0 }
 0xc17   : > { %v2809_v31 = vpop.eup %2808 }
 0xc18   : > { %v1563_v32 = vmul.f32 %v2809_v31, %v2807_v28 }
 0xc1a   : > { %v1565_v34 = vpack.c.bf16 %v1563_v32, %v1563_v32 }
 0xc1c   : > { %2529 = vmatmul.mubr.msk.bf16.vlgmr.msra.gmra.mxu1 %vm1110_vm3, %v1565_v34 }
 0xc1d   : > { %2533 = vmatpush3.bf16.xpose.msra.mxu1 %v1622_v11  ;;  %2534 = vmatprep.mubr.msk.bf16.mxu1 %vm2833_vm0, %v2832_v0 }
 0xc1e   : > { %2538 = vmatprep.subr.bf16.mxu1 %v2832_v0 }
 0xc24   : > { %2535 = vmatmul.mubr.msk.bf16.vlgmr.msra.gmra.mxu1 %vm1063_vm1, %v1614_v21 }
 0xc25   : > { %2540 = vmatprep.mubr.msk.bf16.mxu1 %vm2833_vm0, %v2832_v0 }
 0xcdc   : > { %v3368_v35 = vpop.f32.mrf.mxu1 }
 0xcde   : > { %v2530_v36 = vpop.f32.mrf.mxu1 }
 0xce0   : > { %v1609_v37 = vpop.f32.mrf.mxu1 }
 0xce2   : > { %v2531_v38 = vpop.f32.mrf.mxu1 }
 0xce4   : > { %v1658_v40 = vpop.f32.mrf.mxu1 }
 0xce5   : > { %v1664_v41 = vsel %vm1110_vm3, %v1658_v40, -inf }
 0xce6   : > { %1665 = vmax.xlane.f32.xlu0 %v1664_v41  ;;  %v2536_v42 = vpop.f32.mrf.mxu1 }
 0xce8   : > { %v1661_v43 = vpop.f32.mrf.mxu1 }
 0xcea   : > { %v2537_v44 = vpop.f32.mrf.mxu1 }
 0xcfc   : > { %1677 = vrot.lane.b32.xlu0 %v3345_v15, %s2834_s15 }
 0xd00   : > { %1725 = vrot.lane.b32.xlu0 %v3324_v52, %s2835_s16 }
 0xd6f   : > { %v1666_v45 = vpop.xlane.xlu0 %1665 }
 0xd70   : > { %v1667_v46 = vsub.f32 %v1658_v40, %v1666_v45 }
 0xd72   : > { %v1668_v47 = vmul.f32 1.442695, %v1667_v46  ;;  %v2740_v46 = vld [vmem:[%s3538_s5 + $0x70] ss:$8 sps:$4 sm:$0xff]  }
 0xd73   : > { %v1678_v49 = vpop.permute.xlu0 %1677 }
 0xd74   : > { %2810 = vpow2.f32 %v1668_v47  ;;  %v1683_v50 = vsel %vm1127_vm2, %v1678_v49, 0  ;;  %v2742_v47 = vld [vmem:[%s3538_s5 + $0x74] ss:$8 sps:$4 sm:$0xff]   ;;  %v2743_v49 = vld [vmem:[%s3538_s5 + $0x60] ss:$8 sps:$4 sm:$0xff]  }
 0xd75   : > { %2539 = vmatpush3.bf16.msra.mxu1 %v1683_v50  ;;  %2183 = vmatprep.subr.bf16.mxu0 %v2742_v47  ;;  %v2748_v50 = vld [vmem:[%s3538_s5 + $0x54] ss:$8 sps:$4 sm:$0xff]  }
 0xd76   : > { %2544 = vmatprep.subr.bf16.mxu1 %v2832_v0  ;;  %2184 = vmatpush1.bf16.msra.mxu0 %v2740_v46 }
 0xd77   : > { %v1726_v27 = vpop.permute.xlu0 %1725 }
 0xd81   : > { %v2811_v51 = vpop.eup %2810 }
 0xd82   : > { %v1670_v53 = vsel %vm1110_vm3, %v2811_v51, 0.0 }
 0xd83   : > { %1671 = vadd.xlane.f32.xlu1 %v1670_v53  ;;  %v2751_v53 = vld [vmem:[%s3538_s5 + $0x44] ss:$8 sps:$4 sm:$0xff]  }
 0xd94   : > { %1727 = vrot.lane.b32.xlu1 %v3335_v1, %s2835_s16 }
 0xe0c   : > { %v1672_v54 = vpop.xlane.xlu1 %1671 }
 0xe0d   : > { %2812 = vrcp.f32 %v1672_v54  ;;  %v2749_v54 = vld [vmem:[%s3538_s5 + $0x40] ss:$8 sps:$4 sm:$0xff]  }
 0xe10   : > { %v1728_v57 = vpop.permute.xlu1 %1727 }
 0xe11   : > { %v1733_v58 = vsel %vm1063_vm1, %v1728_v57, 0  ;;  %v2757_v57 = vld [vmem:[%s3538_s5 + $0x24] ss:$8 sps:$4 sm:$0xff]  }
 0xe1a   : > { %v2813_v55 = vpop.eup %2812 }
 0xe1b   : > { %v1674_v56 = vmul.f32 %v2813_v55, %v2811_v51  ;;  %v2746_v51 = vld [vmem:[%s3538_s5 + $0x50] ss:$8 sps:$4 sm:$0xff]   ;;  %v2754_v55 = vld [vmem:[%s3538_s5 + $0x34] ss:$8 sps:$4 sm:$0xff]  }
 0xe1d   : > { %v1675_v8 = vpack.c.bf16 %v1674_v56, %v1674_v56  ;;  %v2752_v56 = vld [vmem:[%s3538_s5 + $0x30] ss:$8 sps:$4 sm:$0xff]  }
 0xe1f   : > { %2541 = vmatmul.mubr.msk.bf16.vlgmr.msra.gmra.mxu1 %vm1110_vm3, %v1675_v8  ;;  %v2755_v8 = vld [vmem:[%s3538_s5 + $0x20] ss:$8 sps:$4 sm:$0xff]  }
 0xe20   : > { %2545 = vmatpush3.bf16.xpose.msra.mxu1 %v1733_v58  ;;  %2546 = vmatprep.mubr.msk.bf16.mxu1 %vm2833_vm0, %v2832_v0  ;;  %v2760_v58 = vld [vmem:[%s3538_s5 + $0x14] ss:$8 sps:$4 sm:$0xff]  }
 0xe21   : > { %2550 = vmatprep.subr.bf16.mxu1 %v2832_v0 }
 0xe27   : > { %2547 = vmatmul.mubr.msk.bf16.vlgmr.msra.gmra.mxu1 %vm1063_vm1, %v1726_v27  ;;  %v2758_v27 = vld [vmem:[%s3538_s5 + $0x10] ss:$8 sps:$4 sm:$0xff]  }
 0xe28   : > { %2552 = vmatprep.mubr.msk.bf16.mxu1 %vm2833_vm0, %v2832_v0 }
 0xedf   : > { %v1719_v59 = vpop.f32.mrf.mxu1 }
 0xee0   : > { %v2581_v21 = vpack.i.bf16 %v3296_v12, %v1719_v59  ;;  %v2763_v59 = vld [vmem:[%s3538_s5 + $0x4] ss:$8 sps:$4 sm:$0xff]  }
 0xee1   : > { %v2542_v60 = vpop.f32.mrf.mxu1 }
 0xee2   : > { %v2761_v60 = vld [vmem:[%s3538_s5] ss:$8 sps:$4 sm:$0xff]  }
 0xee3   : > { %v1722_v61 = vpop.f32.mrf.mxu1 }
 0xee4   : > { %v2766_v61 = vld [vmem:[%s3538_s5 + $0xf4] ss:$8 sps:$4 sm:$0xff]  }
 0xee5   : > { %v2543_v62 = vpop.f32.mrf.mxu1 }
 0xee6   : > { %v2764_v62 = vld [vmem:[%s3538_s5 + $0xf0] ss:$8 sps:$4 sm:$0xff]  }
 0xee7   : > { %v1769_v63 = vpop.f32.mrf.mxu1 }
 0xee8   : > { %v1775_v3 = vsel %vm1110_vm3, %v1769_v63, -inf }
 0xee9   : > { %1776 = vmax.xlane.f32.xlu0 %v1775_v3  ;;  %v2548_v4 = vpop.f32.mrf.mxu1  ;;  %v2767_v3 = vld [vmem:[%s3538_s5 + $0xe0] ss:$8 sps:$4 sm:$0xff]  }
 0xeea   : > { %v2772_v4 = vld [vmem:[%s3538_s5 + $0xd4] ss:$8 sps:$4 sm:$0xff]  }
 0xeeb   : > { %v1772_v5 = vpop.f32.mrf.mxu1 }
 0xeec   : > { %v2770_v5 = vld [vmem:[%s3538_s5 + $0xd0] ss:$8 sps:$4 sm:$0xff]  }
 0xeed   : > { %v2549_v6 = vpop.f32.mrf.mxu1 }
 0xeee   : > { %v2775_v6 = vld [vmem:[%s3538_s5 + $0xc4] ss:$8 sps:$4 sm:$0xff]  }
 0xeff   : > { %1787 = vrot.lane.b32.xlu0 %v3345_v15, %s2835_s16 }
 0xf03   : > { %1835 = vrot.lane.b32.xlu0 %v3324_v52, %s2836_s17 }
 0xf72   : > { %v1777_v7 = vpop.xlane.xlu0 %1776 }
 0xf73   : > { %v1778_v2 = vsub.f32 %v1769_v63, %v1777_v7  ;;  %v2769_v63 = vld [vmem:[%s3538_s5 + $0xe4] ss:$8 sps:$4 sm:$0xff]   ;;  %v2773_v7 = vld [vmem:[%s3538_s5 + $0xc0] ss:$8 sps:$4 sm:$0xff]  }
 0xf75   : > { %v1779_v26 = vmul.f32 1.442695, %v1778_v2  ;;  %v2778_v2 = vld [vmem:[%s3538_s5 + $0xb4] ss:$8 sps:$4 sm:$0xff]  }
 0xf76   : > { %v1788_v10 = vpop.permute.xlu0 %1787 }
 0xf77   : > { %2814 = vpow2.f32 %v1779_v26  ;;  %v1793_v13 = vsel %vm1127_vm2, %v1788_v10, 0  ;;  %v2776_v26 = vld [vmem:[%s3538_s5 + $0xb0] ss:$8 sps:$4 sm:$0xff]   ;;  %v2781_v10 = vld [vmem:[%s3538_s5 + $0xa4] ss:$8 sps:$4 sm:$0xff]  }
 0xf78   : > { %2551 = vmatpush3.bf16.msra.mxu1 %v1793_v13  ;;  %v2779_v13 = vld [vmem:[%s3538_s5 + $0xa0] ss:$8 sps:$4 sm:$0xff]  }
 0xf79   : > { %2556 = vmatprep.subr.bf16.mxu1 %v2832_v0 }
 0xf7a   : > { %v1836_v25 = vpop.permute.xlu0 %1835 }
 0xf84   : > { %v2815_v14 = vpop.eup %2814 }
 0xf85   : > { %v1781_v18 = vsel %vm1110_vm3, %v2815_v14, 0.0 }
 0xf86   : > { %1782 = vadd.xlane.f32.xlu1 %v1781_v18  ;;  %v2782_v18 = vld [vmem:[%s3538_s5 + $0x90] ss:$8 sps:$4 sm:$0xff]  }
 0xf97   : > { %1837 = vrot.lane.b32.xlu1 %v3335_v1, %s2836_s17 }
0x100f   : > { %v1783_v19 = vpop.xlane.xlu1 %1782 }
0x1010   : > { %2816 = vrcp.f32 %v1783_v19  ;;  %v2787_v19 = vld [vmem:[%s3538_s5 + $0x84] ss:$8 sps:$4 sm:$0xff]  }
0x1013   : > { %v1838_v22 = vpop.permute.xlu1 %1837 }
0x1014   : > { %v1843_v24 = vsel %vm1063_vm1, %v1838_v22, 0 }
0x101d   : > { %v2817_v52 = vpop.eup %2816 }
0x101e   : > { %v1785_v20 = vmul.f32 %v2817_v52, %v2815_v14  ;;  %v2784_v14 = vld [vmem:[%s3538_s5 + $0x94] ss:$8 sps:$4 sm:$0xff]   ;;  %v2785_v52 = vld [vmem:[%s3538_s5 + $0x80] ss:$8 sps:$4 sm:$0xff]  }
0x1020   : > { %v1786_v23 = vpack.c.bf16 %v1785_v20, %v1785_v20 }
0x1022   : > { %2553 = vmatmul.mubr.msk.bf16.vlgmr.msra.gmra.mxu1 %vm1110_vm3, %v1786_v23 }
0x1023   : > { %2557 = vmatpush3.bf16.xpose.msra.mxu1 %v1843_v24  ;;  %2558 = vmatprep.mubr.msk.bf16.mxu1 %vm2833_vm0, %v2832_v0 }
0x1024   : > { %2562 = vmatprep.subr.bf16.mxu1 %v2832_v0 }
0x102a   : > { %2559 = vmatmul.mubr.msk.bf16.vlgmr.msra.gmra.mxu1 %vm1063_vm1, %v1836_v25 }
0x102b   : > { %2564 = vmatprep.mubr.msk.bf16.mxu1 %vm2833_vm0, %v2832_v0 }
0x10e2   : > { %v1829_v1 = vpop.f32.mrf.mxu1 }
0x10e3   : > { %v2586_v36 = vpack.i.bf16 %v3316_v39, %v1829_v1 }
0x10e4   : > { %v2554_v28 = vpop.f32.mrf.mxu1 }
0x10e6   : > { %v1832_v29 = vpop.f32.mrf.mxu1 }
0x10e8   : > { %v2555_v30 = vpop.f32.mrf.mxu1 }
0x10ea   : > { %v1879_v31 = vpop.f32.mrf.mxu1 }
0x10eb   : > { %v1885_v32 = vsel %vm1110_vm3, %v1879_v31, -inf }
0x10ec   : > { %1886 = vmax.xlane.f32.xlu1 %v1885_v32  ;;  %v2560_v33 = vpop.f32.mrf.mxu1 }
0x10ee   : > { %v1882_v34 = vpop.f32.mrf.mxu1 }
0x10f0   : > { %v2561_v11 = vpop.f32.mrf.mxu1 }
0x10fd   : > { %2582 = vrot.lane.b32.xlu1 %v2581_v21, %s2836_s17 }
0x1101   : > { %2587 = vrot.lane.b32.xlu1 %v2586_v36, %s2835_s16 }
0x1175   : > { %v1887_v0 = vpop.xlane.xlu1 %1886 }
0x1176   : > { %v1888_v37 = vsub.f32 %v1879_v31, %v1887_v0 }
0x1178   : > { %v1889_v38 = vmul.f32 1.442695, %v1888_v37 }
0x1179   : > { %v2583_v1 = vpop.permute.xlu1 %2582 }
0x117a   : > { %2818 = vpow2.f32 %v1889_v38  ;;  %v2585_v29 = vunpack.i.h.bf16 %v2583_v1  ;;  %v2584_v30 = vunpack.i.l.bf16 %v2583_v1 }
0x117c   : > { %v1969_v34 = vsel %vm1063_vm1, %v3276_v48, %v2585_v29  ;;  %v2011_v48 = vld [vmem:[%s3539_s6] sm:$0x3] }
0x117d   : > { %v2588_v28 = vpop.permute.xlu1 %2587 }
0x117e   : > { %v2590_v31 = vunpack.i.h.bf16 %v2588_v28  ;;  %v2589_v32 = vunpack.i.l.bf16 %v2588_v28 }
0x1180   : > { %v1971_v36 = vsel %vm1970_vm4, %v1969_v34, %v2590_v31 }
0x1187   : > { %v2819_v40 = vpop.eup %2818 }
0x1188   : > { %v1891_v41 = vsel %vm1110_vm3, %v2819_v40, 0.0 }
0x1189   : > { %1892 = vadd.xlane.f32.xlu0 %v1891_v41 }
0x119f   : > { %1897 = vrot.lane.b32.xlu0 %v3345_v15, %s2836_s17  ;;  %v2745_v15 = vld [vmem:[%s3538_s5 + $0x64] ss:$8 sps:$4 sm:$0xff]  }
0x11a0   : > { %2185 = vmatprep.subr.bf16.mxu0 %v2745_v15  ;;  %v2823_v15 = vld [vmem:[%s2893_s29 + $0x8] sm:$0xff] }
0x11a1   : > { %2186 = vmatpush1.bf16.msra.mxu0 %v2743_v49 }
0x11a2   : > { %2187 = vmatprep.subr.bf16.mxu0 %v2748_v50 }
0x11a5   : > { %2188 = vmatpush1.bf16.msra.mxu0 %v2746_v51 }
0x11a6   : > { %2189 = vmatprep.subr.bf16.mxu0 %v2751_v53 }
0x11a9   : > { %2190 = vmatpush1.bf16.msra.mxu0 %v2749_v54 }
0x11aa   : > { %2191 = vmatprep.subr.bf16.mxu0 %v2754_v55 }
0x11ad   : > { %2192 = vmatpush1.bf16.msra.mxu0 %v2752_v56 }
0x11ae   : > { %2193 = vmatprep.subr.bf16.mxu0 %v2757_v57 }
0x11b1   : > { %2194 = vmatpush1.bf16.msra.mxu0 %v2755_v8 }
0x11b2   : > { %2195 = vmatprep.subr.bf16.mxu0 %v2760_v58 }
0x11b5   : > { %2196 = vmatpush1.bf16.msra.mxu0 %v2758_v27 }
0x11b6   : > { %2197 = vmatprep.subr.bf16.mxu0 %v2763_v59 }
0x11b9   : > { %2198 = vmatpush1.bf16.msra.mxu0 %v2761_v60 }
0x11ba   : > { %2199 = vmatprep.subr.bf16.mxu0 %v2766_v61 }
0x11bd   : > { %2200 = vmatpush2.bf16.msra.mxu0 %v2764_v62 }
0x11be   : > { %2201 = vmatprep.subr.bf16.mxu0 %v2769_v63 }
0x11c1   : > { %2202 = vmatpush2.bf16.msra.mxu0 %v2767_v3 }
0x11c2   : > { %2203 = vmatprep.subr.bf16.mxu0 %v2772_v4 }
0x11c5   : > { %2204 = vmatpush2.bf16.msra.mxu0 %v2770_v5 }
0x11c6   : > { %2205 = vmatprep.subr.bf16.mxu0 %v2775_v6 }
0x11c9   : > { %2206 = vmatpush2.bf16.msra.mxu0 %v2773_v7 }
0x11ca   : > { %2207 = vmatprep.subr.bf16.mxu0 %v2778_v2 }
0x11cd   : > { %2208 = vmatpush2.bf16.msra.mxu0 %v2776_v26 }
0x11ce   : > { %2209 = vmatprep.subr.bf16.mxu0 %v2781_v10 }
0x11d1   : > { %2210 = vmatpush2.bf16.msra.mxu0 %v2779_v13 }
0x11d2   : > { %2211 = vmatprep.subr.bf16.mxu0 %v2784_v14 }
0x11d5   : > { %2212 = vmatpush2.bf16.msra.mxu0 %v2782_v18 }
0x11d6   : > { %2213 = vmatprep.subr.bf16.mxu0 %v2787_v19 }
0x11d9   : > { %2214 = vmatpush2.bf16.msra.mxu0 %v2785_v52 }
0x1212   : > { %v1893_v42 = vpop.xlane.xlu0 %1892 }
0x1213   : > { %2820 = vrcp.f32 %v1893_v42  ;;  %v2016_v42 = vrot.slane %v2011_v48, %v3114_v17 }
0x1216   : > { %v1898_v12 = vpop.permute.xlu0 %1897 }
0x1217   : > { %v1903_v43 = vsel %vm1127_vm2, %v1898_v12, 0 }
0x1218   : > { %2563 = vmatpush3.bf16.msra.mxu1 %v1903_v43 }
0x1220   : > { %v2821_v39 = vpop.eup %2820 }
0x1221   : > { %v1895_v44 = vmul.f32 %v2821_v39, %v2819_v40 }
0x1223   : > { %v1896_v45 = vpack.c.bf16 %v1895_v44, %v1895_v44  ;;  %v2822_v44 = vld [vmem:[%s2893_s29] sm:$0xff] }
0x1225   : > { %2565 = vmatmul.mubr.msk.bf16.vlgmr.msra.gmra.mxu1 %vm1110_vm3, %v1896_v45 }
0x12e5   : > { %v1939_v20 = vpop.f32.mrf.mxu1 }
0x12e6   : > { %v2591_v22 = vpack.i.bf16 %v3354_v9, %v1939_v20  ;;  %v1974_v9 = vsel %vm1063_vm1, %v3368_v35, %v2584_v30  ;;  %v2020_v35 = vrot.slane %v2011_v48, %v3111_v16 }
0x12e7   : > { %v2566_v23 = vpop.f32.mrf.mxu1  ;;  %v1975_v0 = vsel %vm1970_vm4, %v1974_v9, %v2589_v32 }
0x12e8   : > { %2592 = vrot.lane.b32.xlu0 %v2591_v22, %s2834_s15 }
0x12e9   : > { %v1942_v24 = vpop.f32.mrf.mxu1 }
0x12eb   : > { %v2567_v25 = vpop.f32.mrf.mxu1 }
0x135a   : > { %v2593_v33 = vpop.permute.xlu0 %2592 }
0x135b   : > { %v2595_v11 = vunpack.i.h.bf16 %v2593_v33  ;;  %v2594_v21 = vunpack.i.l.bf16 %v2593_v33 }
0x135d   : > { %v1973_v37 = vsel %vm1972_vm5, %v1971_v36, %v2595_v11  ;;  %v1976_v38 = vsel %vm1972_vm5, %v1975_v0, %v2594_v21 }
0x135e   : > { %v2009_v40 = vpack.c.bf16 %v1973_v37, %v1973_v37  ;;  %v2010_v41 = vpack.c.bf16 %v1976_v38, %v1976_v38 }
0x1360   : > { %2215 = vmatprep.mubr.bf16.mxu0 %v2010_v41 }
0x1361   : > { %2216 = vmatmul.mubr.bf16.vlgmr.msra.gmra.mxu0 %v2009_v40 }
0x1421   : > { %v2217_v12 = vpop.f32.mrf.mxu0 }
0x1422   : > { %v2218_v43 = vadd.f32 %v2217_v12, %v2016_v42 }
0x1423   : > { %v2219_v39 = vpop.f32.mrf.mxu0 }
0x1424   : > { %v2224_v45 = vadd.f32 %v2822_v44, %v2218_v43  ;;  %v2220_v46 = vadd.f32 %v2219_v39, %v2020_v35 }
0x1425   : > { %v2221_v47 = vpop.f32.mrf.mxu0 }
0x1426   : > { %2226 = vst [vmem:[%s278_s12] sm:$0xff] %v2224_v45  ;;  %v2225_v49 = vadd.f32 %v2823_v15, %v2220_v46 }
0x1427   : > { %v2222_v50 = vpop.f32.mrf.mxu0 }
0x1428   : > { %2227 = vst [vmem:[%s278_s12 + $0x8] sm:$0xff] %v2225_v49 }
0x1429 PF: > { %s17_s24 = sadd.s32 1, %s2830_s24  }
0x142a   : > { %p14_p4 = scmp.ge.s32.totalorder %s17_s24, 4  }
0x142c   :  { %16 = sbr.rel (!%p14_p4) target bundleno = 1 (0x1), region = 78 }

// kernel: feat_pred_head_forward.9
= control target key start
LH: loop header
LB: loop body
LE: loop exit
PB: predicated region body
PF: predicated region fallthrough
CT: control target
= control target key end

     0   :  { %s4296_s0 = inlined_call_operand.vmem [shape: f32[16,256], index: 0, kind: input, shape index: {}]   ;;  %s4297_s3 = inlined_call_operand.vmem [shape: bf16[256,1024], index: 3, kind: input, shape index: {}]   ;;  %s4298_s5 = inlined_call_operand.vmem [shape: bf16[1024,256], index: 5, kind: input, shape index: {}]   ;;  %s4299_s1 = inlined_call_operand.vmem [shape: f32[1,256], index: 1, kind: input, shape index: {}]   ;;  %s4300_s2 = inlined_call_operand.vmem [shape: f32[1,256], index: 2, kind: input, shape index: {}]   ;;  %s4301_s4 = inlined_call_operand.vmem [shape: f32[1,1024], index: 4, kind: input, shape index: {}]   ;;  %s4302_s6 = inlined_call_operand.vmem [shape: f32[1,256], index: 6, kind: input, shape index: {}]   ;;  %s4303_s7 = inlined_call_operand.vmem [shape: f32[16,256], index: 7, kind: output, shape index: {}]  }
   0x1   :  { %v3048_v0 = vld [vmem:[%s4296_s0] sm:$0xff]  ;;  %v3053_v1 = vld [vmem:[%s4296_s0 + $0x8] sm:$0xff]  ;;  %v3058_v2 = vld [vmem:[%s4296_s0 + $0x10] sm:$0xff] }
   0x2   :  { %v32_v3 = vadd.f32 %v3053_v1, %v3048_v0  ;;  %v3065_v4 = vld [vmem:[%s4296_s0 + $0x18] sm:$0xff]  ;;  %v151_v6 = vld [vmem:[%s4297_s3 + $0x1c0] sm:$0xff]  ;;  %v152_v8 = vld [vmem:[%s4297_s3 + $0x1c8] sm:$0xff] }
   0x3   :  { %v35_v5 = vadd.f32 %v3065_v4, %v3058_v2  ;;  %v155_v7 = vld [vmem:[%s4297_s3 + $0x1e0] sm:$0xff]  ;;  %v156_v10 = vld [vmem:[%s4297_s3 + $0x1e8] sm:$0xff] }
   0x4   :  { %33 = vadd.xlane.f32.xlu0 %v32_v3  ;;  %v2540_v9 = vcombine.high %v151_v6, %v155_v7  ;;  %v2539_v11 = vcombine.low %v151_v6, %v155_v7  ;;  %v143_v12 = vld [vmem:[%s4297_s3 + $0x180] sm:$0xff]  ;;  %v2542_v14 = vcombine.high %v152_v8, %v156_v10  ;;  %v2541_v15 = vcombine.low %v152_v8, %v156_v10  ;;  %v144_v17 = vld [vmem:[%s4297_s3 + $0x188] sm:$0xff] }
   0x5   :  { %v147_v13 = vld [vmem:[%s4297_s3 + $0x1a0] sm:$0xff]  ;;  %v148_v18 = vld [vmem:[%s4297_s3 + $0x1a8] sm:$0xff] }
   0x6   :  { %v2532_v16 = vcombine.high %v143_v12, %v147_v13  ;;  %v135_v19 = vld [vmem:[%s4297_s3 + $0x140] sm:$0xff]  ;;  %907 = vmatprep.subr.bf16.mxu0 %v2540_v9  ;;  %v2534_v20 = vcombine.high %v144_v17, %v148_v18  ;;  %v136_v22 = vld [vmem:[%s4297_s3 + $0x148] sm:$0xff]  ;;  %950 = vmatprep.subr.bf16.mxu1 %v2542_v14  ;;  %v2531_v24 = vcombine.low %v143_v12, %v147_v13 }
   0x7   :  { %v139_v21 = vld [vmem:[%s4297_s3 + $0x160] sm:$0xff]  ;;  %v140_v23 = vld [vmem:[%s4297_s3 + $0x168] sm:$0xff]  ;;  %908 = vmatpush1.bf16.msra.mxu0 %v2539_v11  ;;  %951 = vmatpush1.bf16.msra.mxu1 %v2541_v15  ;;  %v2533_v25 = vcombine.low %v144_v17, %v148_v18 }
   0x8   :  { %36 = vadd.xlane.f32.xlu0 %v35_v5  ;;  %909 = vmatprep.subr.bf16.mxu0 %v2532_v16  ;;  %v2524_v26 = vcombine.high %v135_v19, %v139_v21  ;;  %v2526_v27 = vcombine.high %v136_v22, %v140_v23  ;;  %v127_v28 = vld [vmem:[%s4297_s3 + $0x100] sm:$0xff]  ;;  %v128_v30 = vld [vmem:[%s4297_s3 + $0x108] sm:$0xff]  ;;  %v2523_v32 = vcombine.low %v135_v19, %v139_v21 }
   0x9   :  { %952 = vmatprep.subr.bf16.mxu1 %v2534_v20  ;;  %v131_v29 = vld [vmem:[%s4297_s3 + $0x120] sm:$0xff]  ;;  %v132_v31 = vld [vmem:[%s4297_s3 + $0x128] sm:$0xff]  ;;  %v2525_v33 = vcombine.low %v136_v22, %v140_v23 }
   0xa   :  { %v2516_v34 = vcombine.high %v127_v28, %v131_v29  ;;  %v2518_v35 = vcombine.high %v128_v30, %v132_v31  ;;  %v119_v36 = vld [vmem:[%s4297_s3 + $0xc0] sm:$0xff]  ;;  %v120_v38 = vld [vmem:[%s4297_s3 + $0xc8] sm:$0xff]  ;;  %v2515_v40 = vcombine.low %v127_v28, %v131_v29  ;;  %v2517_v41 = vcombine.low %v128_v30, %v132_v31 }
   0xb   :  { %910 = vmatpush1.bf16.msra.mxu0 %v2531_v24  ;;  %953 = vmatpush1.bf16.msra.mxu1 %v2533_v25  ;;  %v123_v37 = vld [vmem:[%s4297_s3 + $0xe0] sm:$0xff]  ;;  %v124_v39 = vld [vmem:[%s4297_s3 + $0xe8] sm:$0xff] }
   0xc   :  { %911 = vmatprep.subr.bf16.mxu0 %v2524_v26  ;;  %954 = vmatprep.subr.bf16.mxu1 %v2526_v27  ;;  %v2508_v42 = vcombine.high %v119_v36, %v123_v37  ;;  %v2510_v43 = vcombine.high %v120_v38, %v124_v39  ;;  %v111_v44 = vld [vmem:[%s4297_s3 + $0x80] sm:$0xff]  ;;  %v112_v46 = vld [vmem:[%s4297_s3 + $0x88] sm:$0xff]  ;;  %v2507_v48 = vcombine.low %v119_v36, %v123_v37 }
   0xd   :  { %v115_v45 = vld [vmem:[%s4297_s3 + $0xa0] sm:$0xff]  ;;  %v116_v47 = vld [vmem:[%s4297_s3 + $0xa8] sm:$0xff]  ;;  %v2509_v49 = vcombine.low %v120_v38, %v124_v39 }
   0xe   :  { %v2500_v50 = vcombine.high %v111_v44, %v115_v45  ;;  %v2502_v51 = vcombine.high %v112_v46, %v116_v47  ;;  %v103_v52 = vld [vmem:[%s4297_s3 + $0x40] sm:$0xff]  ;;  %v104_v54 = vld [vmem:[%s4297_s3 + $0x48] sm:$0xff]  ;;  %v2499_v56 = vcombine.low %v111_v44, %v115_v45  ;;  %v2501_v57 = vcombine.low %v112_v46, %v116_v47 }
   0xf   :  { %912 = vmatpush1.bf16.msra.mxu0 %v2523_v32  ;;  %955 = vmatpush1.bf16.msra.mxu1 %v2525_v33  ;;  %v107_v53 = vld [vmem:[%s4297_s3 + $0x60] sm:$0xff]  ;;  %v108_v55 = vld [vmem:[%s4297_s3 + $0x68] sm:$0xff] }
  0x10   :  { %913 = vmatprep.subr.bf16.mxu0 %v2516_v34  ;;  %956 = vmatprep.subr.bf16.mxu1 %v2518_v35  ;;  %v2492_v58 = vcombine.high %v103_v52, %v107_v53  ;;  %v2494_v59 = vcombine.high %v104_v54, %v108_v55  ;;  %v95_v60 = vld [vmem:[%s4297_s3] sm:$0xff]  ;;  %v96_v62 = vld [vmem:[%s4297_s3 + $0x8] sm:$0xff]  ;;  %v2491_v3 = vcombine.low %v103_v52, %v107_v53 }
  0x11   :  { %v99_v61 = vld [vmem:[%s4297_s3 + $0x20] sm:$0xff]  ;;  %v100_v63 = vld [vmem:[%s4297_s3 + $0x28] sm:$0xff]  ;;  %v2493_v5 = vcombine.low %v104_v54, %v108_v55 }
  0x12   :  { %v2484_v6 = vcombine.high %v95_v60, %v99_v61  ;;  %v2486_v7 = vcombine.high %v96_v62, %v100_v63  ;;  %v215_v8 = vld [vmem:[%s4297_s3 + $0x3c0] sm:$0xff]  ;;  %v216_v10 = vld [vmem:[%s4297_s3 + $0x3c8] sm:$0xff]  ;;  %v2483_v12 = vcombine.low %v95_v60, %v99_v61  ;;  %v2485_v13 = vcombine.low %v96_v62, %v100_v63 }
  0x13   :  { %914 = vmatpush1.bf16.msra.mxu0 %v2515_v40  ;;  %957 = vmatpush1.bf16.msra.mxu1 %v2517_v41  ;;  %v219_v9 = vld [vmem:[%s4297_s3 + $0x3e0] sm:$0xff]  ;;  %v220_v11 = vld [vmem:[%s4297_s3 + $0x3e8] sm:$0xff] }
  0x14   :  { %915 = vmatprep.subr.bf16.mxu0 %v2508_v42  ;;  %958 = vmatprep.subr.bf16.mxu1 %v2510_v43  ;;  %v2604_v14 = vcombine.high %v215_v8, %v219_v9  ;;  %v2606_v15 = vcombine.high %v216_v10, %v220_v11  ;;  %v2603_v16 = vcombine.low %v215_v8, %v219_v9  ;;  %v207_v30 = vld [vmem:[%s4297_s3 + $0x380] sm:$0xff]  ;;  %v212_v32 = vld [vmem:[%s4297_s3 + $0x3a8] sm:$0xff] }
  0x15   :  { %v2605_v17 = vcombine.low %v216_v10, %v220_v11  ;;  %v199_v36 = vld [vmem:[%s4297_s3 + $0x340] sm:$0xff]  ;;  %v200_v38 = vld [vmem:[%s4297_s3 + $0x348] sm:$0xff] }
  0x16   :  { %v203_v37 = vld [vmem:[%s4297_s3 + $0x360] sm:$0xff]  ;;  %v204_v40 = vld [vmem:[%s4297_s3 + $0x368] sm:$0xff] }
  0x17   :  { %916 = vmatpush1.bf16.msra.mxu0 %v2507_v48  ;;  %959 = vmatpush1.bf16.msra.mxu1 %v2509_v49  ;;  %v2588_v39 = vcombine.high %v199_v36, %v203_v37  ;;  %v2590_v41 = vcombine.high %v200_v38, %v204_v40  ;;  %v2587_v42 = vcombine.low %v199_v36, %v203_v37  ;;  %v191_v44 = vld [vmem:[%s4297_s3 + $0x300] sm:$0xff]  ;;  %v192_v46 = vld [vmem:[%s4297_s3 + $0x308] sm:$0xff] }
  0x18   :  { %917 = vmatprep.subr.bf16.mxu0 %v2500_v50  ;;  %960 = vmatprep.subr.bf16.mxu1 %v2502_v51  ;;  %v2589_v43 = vcombine.low %v200_v38, %v204_v40  ;;  %v195_v45 = vld [vmem:[%s4297_s3 + $0x320] sm:$0xff]  ;;  %v196_v48 = vld [vmem:[%s4297_s3 + $0x328] sm:$0xff]  ;;  %v66_v38 = vlaneseq }
  0x19   :  { %v2580_v47 = vcombine.high %v191_v44, %v195_v45  ;;  %v2579_v49 = vcombine.low %v191_v44, %v195_v45  ;;  %v183_v50 = vld [vmem:[%s4297_s3 + $0x2c0] sm:$0xff]  ;;  %v2582_v52 = vcombine.high %v192_v46, %v196_v48  ;;  %v2581_v53 = vcombine.low %v192_v46, %v196_v48  ;;  %v184_v55 = vld [vmem:[%s4297_s3 + $0x2c8] sm:$0xff] }
  0x1a   :  { %v187_v51 = vld [vmem:[%s4297_s3 + $0x2e0] sm:$0xff]  ;;  %v176_v60 = vld [vmem:[%s4297_s3 + $0x288] sm:$0xff] }
  0x1b   :  { %918 = vmatpush1.bf16.msra.mxu0 %v2499_v56  ;;  %961 = vmatpush1.bf16.msra.mxu1 %v2501_v57  ;;  %v2572_v54 = vcombine.high %v183_v50, %v187_v51  ;;  %v188_v56 = vld [vmem:[%s4297_s3 + $0x2e8] sm:$0xff]  ;;  %v175_v57 = vld [vmem:[%s4297_s3 + $0x280] sm:$0xff]  ;;  %v2571_v62 = vcombine.low %v183_v50, %v187_v51 }
  0x1c   :  { %919 = vmatprep.subr.bf16.mxu0 %v2492_v58  ;;  %962 = vmatprep.subr.bf16.mxu1 %v2494_v59  ;;  %v2574_v58 = vcombine.high %v184_v55, %v188_v56  ;;  %v179_v59 = vld [vmem:[%s4297_s3 + $0x2a0] sm:$0xff]  ;;  %v180_v61 = vld [vmem:[%s4297_s3 + $0x2a8] sm:$0xff]  ;;  %v2573_v63 = vcombine.low %v184_v55, %v188_v56 }
  0x1d   :  { %v168_v8 = vld [vmem:[%s4297_s3 + $0x248] sm:$0xff]  ;;  %v2563_v10 = vcombine.low %v175_v57, %v179_v59  ;;  %v2565_v11 = vcombine.low %v176_v60, %v180_v61  ;;  %v31_v44 = vld [vmem:[%s4300_s2] sm:$0x3] }
  0x1e   :  { %v172_v9 = vld [vmem:[%s4297_s3 + $0x268] sm:$0xff] }
  0x1f   :  { %920 = vmatpush1.bf16.msra.mxu0 %v2491_v3  ;;  %963 = vmatpush1.bf16.msra.mxu1 %v2493_v5  ;;  %v2564_v3 = vcombine.high %v175_v57, %v179_v59  ;;  %v2566_v5 = vcombine.high %v176_v60, %v180_v61  ;;  %v149_v61 = vld [vmem:[%s4297_s3 + $0x1b0] sm:$0xff] }
  0x20   :  { %921 = vmatprep.subr.bf16.mxu0 %v2484_v6  ;;  %964 = vmatprep.subr.bf16.mxu1 %v2486_v7  ;;  %v167_v6 = vld [vmem:[%s4297_s3 + $0x240] sm:$0xff] }
  0x21   :  { %v171_v7 = vld [vmem:[%s4297_s3 + $0x260] sm:$0xff] }
  0x23   :  { %922 = vmatpush1.bf16.msra.mxu0 %v2483_v12  ;;  %965 = vmatpush1.bf16.msra.mxu1 %v2485_v13  ;;  %v2556_v12 = vcombine.high %v167_v6, %v171_v7  ;;  %v2558_v13 = vcombine.high %v168_v8, %v172_v9 }
  0x24   :  { %923 = vmatprep.subr.bf16.mxu0 %v2604_v14  ;;  %966 = vmatprep.subr.bf16.mxu1 %v2606_v15  ;;  %v159_v14 = vld [vmem:[%s4297_s3 + $0x200] sm:$0xff] }
  0x25   :  { %v163_v15 = vld [vmem:[%s4297_s3 + $0x220] sm:$0xff] }
  0x27   :  { %924 = vmatpush2.bf16.msra.mxu0 %v2603_v16  ;;  %967 = vmatpush2.bf16.msra.mxu1 %v2605_v17  ;;  %v160_v16 = vld [vmem:[%s4297_s3 + $0x208] sm:$0xff] }
  0x28   :  { %v164_v17 = vld [vmem:[%s4297_s3 + $0x228] sm:$0xff] }
  0x8d   :  { %v34_v18 = vpop.xlane.xlu0 %33 }
  0x8e   :  { %v39_v19 = vmul.f32 0.00390625, %v34_v18  ;;  %v2555_v18 = vcombine.low %v167_v6, %v171_v7  ;;  %v141_v7 = vld [vmem:[%s4297_s3 + $0x170] sm:$0xff] }
  0x90   :  { %v3178_v20 = vsub.f32 %v3048_v0, %v39_v19  ;;  %v3181_v21 = vsub.f32 %v3053_v1, %v39_v19  ;;  %v2557_v19 = vcombine.low %v168_v8, %v172_v9  ;;  %v138_v8 = vld [vmem:[%s4297_s3 + $0x158] sm:$0xff] }
  0x91   :  { %v37_v22 = vpop.xlane.xlu0 %36  ;;  %v142_v9 = vld [vmem:[%s4297_s3 + $0x178] sm:$0xff] }
  0x92   :  { %v40_v23 = vmul.f32 0.00390625, %v37_v22  ;;  %v45_v24 = vmul.f32 %v3178_v20, %v3178_v20  ;;  %v46_v25 = vmul.f32 %v3181_v21, %v3181_v21  ;;  %v2548_v22 = vcombine.high %v159_v14, %v163_v15 }
  0x94   :  { %v3188_v26 = vsub.f32 %v3058_v2, %v40_v23  ;;  %v3191_v27 = vsub.f32 %v3065_v4, %v40_v23  ;;  %v49_v28 = vadd.f32 %v46_v25, %v45_v24  ;;  %v211_v2 = vld [vmem:[%s4297_s3 + $0x3a0] sm:$0xff]  ;;  %v208_v4 = vld [vmem:[%s4297_s3 + $0x388] sm:$0xff]  ;;  %v2550_v23 = vcombine.high %v160_v16, %v164_v17 }
  0x95   :  { %v2596_v31 = vcombine.high %v207_v30, %v211_v2  ;;  %v2598_v33 = vcombine.high %v208_v4, %v212_v32  ;;  %v2595_v34 = vcombine.low %v207_v30, %v211_v2  ;;  %v2597_v35 = vcombine.low %v208_v4, %v212_v32  ;;  %v158_v30 = vld [vmem:[%s4297_s3 + $0x1f8] sm:$0xff] }
  0x96   :  { %50 = vadd.xlane.f32.xlu1 %v49_v28  ;;  %v47_v0 = vmul.f32 %v3188_v26, %v3188_v26  ;;  %v48_v1 = vmul.f32 %v3191_v27, %v3191_v27  ;;  %v2547_v24 = vcombine.low %v159_v14, %v163_v15  ;;  %v2549_v25 = vcombine.low %v160_v16, %v164_v17  ;;  %v153_v28 = vld [vmem:[%s4297_s3 + $0x1d0] sm:$0xff]  ;;  %v130_v16 = vld [vmem:[%s4297_s3 + $0x118] sm:$0xff] }
  0x97   :  { %925 = vmatprep.subr.bf16.mxu0 %v2596_v31  ;;  %968 = vmatprep.subr.bf16.mxu1 %v2598_v33  ;;  %v129_v14 = vld [vmem:[%s4297_s3 + $0x110] sm:$0xff]  ;;  %v134_v17 = vld [vmem:[%s4297_s3 + $0x138] sm:$0xff] }
  0x98   :  { %v52_v29 = vadd.f32 %v48_v1, %v47_v0  ;;  %926 = vmatpush2.bf16.msra.mxu0 %v2595_v34  ;;  %969 = vmatpush2.bf16.msra.mxu1 %v2597_v35  ;;  %v157_v0 = vld [vmem:[%s4297_s3 + $0x1f0] sm:$0xff]  ;;  %v154_v1 = vld [vmem:[%s4297_s3 + $0x1d8] sm:$0xff] }
  0x99   :  { %927 = vmatprep.subr.bf16.mxu0 %v2588_v39  ;;  %970 = vmatprep.subr.bf16.mxu1 %v2590_v41  ;;  %v2543_v2 = vcombine.low %v153_v28, %v157_v0  ;;  %v2545_v4 = vcombine.low %v154_v1, %v158_v30  ;;  %v2546_v31 = vcombine.high %v154_v1, %v158_v30  ;;  %v3293_v39 = vshrl.u32 %v66_v38, 7  ;;  %v133_v15 = vld [vmem:[%s4297_s3 + $0x130] sm:$0xff] }
  0x9a   :  { %53 = vadd.xlane.f32.xlu1 %v52_v29  ;;  %v2544_v29 = vcombine.high %v153_v28, %v157_v0  ;;  %v122_v28 = vld [vmem:[%s4297_s3 + $0xd8] sm:$0xff]  ;;  %v2519_v1 = vcombine.low %v129_v14, %v133_v15  ;;  %v105_v38 = vld [vmem:[%s4297_s3 + $0x50] sm:$0xff] }
  0x9b   :  { %v3296_v40 = vsub.s32 1, %v3293_v39  ;;  %v3299_v41 = vsub.s32 0, %v3293_v39  ;;  %v126_v0 = vld [vmem:[%s4297_s3 + $0xf8] sm:$0xff] }
  0x9c   :  { %928 = vmatpush2.bf16.msra.mxu0 %v2587_v42  ;;  %971 = vmatpush2.bf16.msra.mxu1 %v2589_v43  ;;  %v30_v42 = vld [vmem:[%s4299_s1] sm:$0x3] }
  0x9d   :  { %929 = vmatprep.subr.bf16.mxu0 %v2580_v47  ;;  %972 = vmatprep.subr.bf16.mxu1 %v2582_v52  ;;  %v73_v46 = vrot.slane %v30_v42, %v3296_v40  ;;  %v69_v48 = vrot.slane %v30_v42, %v3299_v41  ;;  %v88_v50 = vrot.slane %v31_v44, %v3296_v40  ;;  %v109_v42 = vld [vmem:[%s4297_s3 + $0x70] sm:$0xff] }
  0x9e   :  { %v84_v51 = vrot.slane %v31_v44, %v3299_v41  ;;  %v110_v44 = vld [vmem:[%s4297_s3 + $0x78] sm:$0xff] }
  0xa0   :  { %930 = vmatpush2.bf16.msra.mxu0 %v2579_v49  ;;  %973 = vmatpush2.bf16.msra.mxu1 %v2581_v53 }
  0xa1   :  { %931 = vmatprep.subr.bf16.mxu0 %v2572_v54  ;;  %974 = vmatprep.subr.bf16.mxu1 %v2574_v58 }
  0xa4   :  { %932 = vmatpush2.bf16.msra.mxu0 %v2571_v62  ;;  %975 = vmatpush2.bf16.msra.mxu1 %v2573_v63 }
  0xa5   :  { %933 = vmatprep.subr.bf16.mxu0 %v2564_v3  ;;  %976 = vmatprep.subr.bf16.mxu1 %v2566_v5  ;;  %v137_v3 = vld [vmem:[%s4297_s3 + $0x150] sm:$0xff] }
  0xa8   :  { %934 = vmatpush2.bf16.msra.mxu0 %v2563_v10  ;;  %977 = vmatpush2.bf16.msra.mxu1 %v2565_v11 }
  0xa9   :  { %935 = vmatprep.subr.bf16.mxu0 %v2556_v12  ;;  %978 = vmatprep.subr.bf16.mxu1 %v2558_v13  ;;  %v2528_v12 = vcombine.high %v137_v3, %v141_v7  ;;  %v2530_v13 = vcombine.high %v138_v8, %v142_v9 }
  0xac   :  { %936 = vmatpush2.bf16.msra.mxu0 %v2555_v18  ;;  %979 = vmatpush2.bf16.msra.mxu1 %v2557_v19  ;;  %v2527_v18 = vcombine.low %v137_v3, %v141_v7  ;;  %v2529_v19 = vcombine.low %v138_v8, %v142_v9  ;;  %v210_v3 = vld [vmem:[%s4297_s3 + $0x398] sm:$0xff] }
  0xad   :  { %937 = vmatprep.subr.bf16.mxu0 %v2548_v22  ;;  %980 = vmatprep.subr.bf16.mxu1 %v2550_v23  ;;  %v2520_v22 = vcombine.high %v129_v14, %v133_v15  ;;  %v2522_v23 = vcombine.high %v130_v16, %v134_v17 }
  0xb0   :  { %938 = vmatpush2.bf16.msra.mxu0 %v2547_v24  ;;  %981 = vmatpush2.bf16.msra.mxu1 %v2549_v25  ;;  %v121_v24 = vld [vmem:[%s4297_s3 + $0xd0] sm:$0xff] }
  0xb1   :  { %993 = vmatprep.subr.bf16.mxu0 %v2544_v29  ;;  %1036 = vmatprep.subr.bf16.mxu1 %v2546_v31  ;;  %v125_v25 = vld [vmem:[%s4297_s3 + $0xf0] sm:$0xff]  ;;  %v2521_v29 = vcombine.low %v130_v16, %v134_v17 }
  0xb2   :  { %v2512_v30 = vcombine.high %v121_v24, %v125_v25  ;;  %v117_v31 = vld [vmem:[%s4297_s3 + $0xb0] sm:$0xff] }
 0x11f   :  { %v51_v32 = vpop.xlane.xlu1 %50 }
 0x120   :  { %v55_v33 = vmul.f32 0.00390625, %v51_v32  ;;  %v114_v32 = vld [vmem:[%s4297_s3 + $0x98] sm:$0xff] }
 0x122   :  { %v57_v34 = vadd.f32 1e-05, %v55_v33  ;;  %v118_v33 = vld [vmem:[%s4297_s3 + $0xb8] sm:$0xff] }
 0x123   :  { %v54_v35 = vpop.xlane.xlu1 %53 }
 0x124   :  { %2932 = vrsqrt.f32 %v57_v34  ;;  %v56_v36 = vmul.f32 0.00390625, %v54_v35  ;;  %v2511_v34 = vcombine.low %v121_v24, %v125_v25  ;;  %v2513_v35 = vcombine.low %v122_v28, %v126_v0 }
 0x126   :  { %v58_v37 = vadd.f32 1e-05, %v56_v36 }
 0x128   :  { %2934 = vrsqrt.f32 %v58_v37  ;;  %v2506_v37 = vcombine.high %v114_v32, %v118_v33 }
 0x131   :  { %v2933_v43 = vpop.eup %2932 }
 0x132   :  { %v62_v45 = vmul.f32 %v2933_v43, %v3181_v21  ;;  %v61_v47 = vmul.f32 %v2933_v43, %v3178_v20  ;;  %v145_v20 = vld [vmem:[%s4297_s3 + $0x190] sm:$0xff]  ;;  %v106_v43 = vld [vmem:[%s4297_s3 + $0x58] sm:$0xff] }
 0x133   :  { %v2536_v5 = vcombine.high %v145_v20, %v149_v61  ;;  %v2535_v10 = vcombine.low %v145_v20, %v149_v61 }
 0x134   :  { %v77_v53 = vmul.f32 %v73_v46, %v62_v45  ;;  %v76_v55 = vmul.f32 %v69_v48, %v61_v47  ;;  %v2496_v47 = vcombine.high %v105_v38, %v109_v42 }
 0x135   :  { %v2935_v49 = vpop.eup %2934 }
 0x136   :  { %v64_v52 = vmul.f32 %v2935_v49, %v3191_v27  ;;  %v63_v54 = vmul.f32 %v2935_v49, %v3188_v26  ;;  %v92_v21 = vadd.f32 %v88_v50, %v77_v53  ;;  %v91_v59 = vadd.f32 %v84_v51, %v76_v55  ;;  %v146_v27 = vld [vmem:[%s4297_s3 + $0x198] sm:$0xff]  ;;  %v97_v49 = vld [vmem:[%s4297_s3 + $0x10] sm:$0xff] }
 0x137   :  { %v150_v26 = vld [vmem:[%s4297_s3 + $0x1b8] sm:$0xff]  ;;  %v2495_v53 = vcombine.low %v105_v38, %v109_v42 }
 0x138   :  { %v79_v56 = vmul.f32 %v73_v46, %v64_v52  ;;  %v78_v57 = vmul.f32 %v69_v48, %v63_v54  ;;  %v2538_v6 = vcombine.high %v146_v27, %v150_v26  ;;  %v2537_v11 = vcombine.low %v146_v27, %v150_v26  ;;  %v102_v52 = vld [vmem:[%s4297_s3 + $0x38] sm:$0xff]  ;;  %v209_v26 = vld [vmem:[%s4297_s3 + $0x390] sm:$0xff] }
 0x139   :  { %v2505_v46 = vcombine.low %v114_v32, %v118_v33  ;;  %v2498_v48 = vcombine.high %v106_v43, %v110_v44  ;;  %v2497_v54 = vcombine.low %v106_v43, %v110_v44 }
 0x13a   :  { %v94_v58 = vadd.f32 %v88_v50, %v79_v56  ;;  %v93_v60 = vadd.f32 %v84_v51, %v78_v57  ;;  %v101_v50 = vld [vmem:[%s4297_s3 + $0x30] sm:$0xff]  ;;  %v98_v51 = vld [vmem:[%s4297_s3 + $0x18] sm:$0xff] }
 0x13b   :  { %v2488_v55 = vcombine.high %v97_v49, %v101_v50  ;;  %v2490_v56 = vcombine.high %v98_v51, %v102_v52  ;;  %v217_v57 = vld [vmem:[%s4297_s3 + $0x3d0] sm:$0xff]  ;;  %v2489_v20 = vcombine.low %v98_v51, %v102_v52 }
 0x13c   :  { %v224_v62 = vpack.c.bf16 %v94_v58, %v92_v21  ;;  %v3327_v63 = vpack.c.bf16 %v93_v60, %v91_v59  ;;  %v221_v21 = vld [vmem:[%s4297_s3 + $0x3f0] sm:$0xff]  ;;  %v218_v58 = vld [vmem:[%s4297_s3 + $0x3d8] sm:$0xff]  ;;  %v2487_v60 = vcombine.low %v97_v49, %v101_v50 }
 0x13d   :  { %v222_v59 = vld [vmem:[%s4297_s3 + $0x3f8] sm:$0xff]  ;;  %v2608_v61 = vcombine.high %v217_v57, %v221_v21 }
 0x13e   :  { %939 = vmatprep.mubr.bf16.mxu0 %v224_v62  ;;  %982 = vmatprep.mubr.bf16.mxu1 %v224_v62  ;;  %v2610_v27 = vcombine.high %v218_v58, %v222_v59  ;;  %v2609_v7 = vcombine.low %v218_v58, %v222_v59 }
 0x13f   :  { %940 = vmatmul.mubr.bf16.vlgmr.msra.gmra.mxu0 %v3327_v63  ;;  %983 = vmatmul.mubr.bf16.vlgmr.msra.gmra.mxu1 %v3327_v63 }
 0x140   :  { %994 = vmatpush1.bf16.msra.mxu0 %v2543_v2  ;;  %1037 = vmatpush1.bf16.msra.mxu1 %v2545_v4  ;;  %v2514_v2 = vcombine.high %v122_v28, %v126_v0  ;;  %v113_v4 = vld [vmem:[%s4297_s3 + $0x90] sm:$0xff] }
 0x141   :  { %1025 = vmatprep.mubr.bf16.mxu0 %v224_v62  ;;  %1068 = vmatprep.mubr.bf16.mxu1 %v224_v62  ;;  %v2504_v36 = vcombine.high %v113_v4, %v117_v31  ;;  %v2503_v45 = vcombine.low %v113_v4, %v117_v31  ;;  %v213_v62 = vld [vmem:[%s4297_s3 + $0x3b0] sm:$0xff] }
 0x142   :  { %995 = vmatprep.subr.bf16.mxu0 %v2536_v5  ;;  %1038 = vmatprep.subr.bf16.mxu1 %v2538_v6  ;;  %v214_v5 = vld [vmem:[%s4297_s3 + $0x3b8] sm:$0xff]  ;;  %v2607_v6 = vcombine.low %v217_v57, %v221_v21  ;;  %v2600_v8 = vcombine.high %v209_v26, %v213_v62  ;;  %v2599_v14 = vcombine.low %v209_v26, %v213_v62 }
 0x143   :  { %v2602_v9 = vcombine.high %v210_v3, %v214_v5  ;;  %v2601_v15 = vcombine.low %v210_v3, %v214_v5  ;;  %v2740_v26 = vld [vmem:[%s4298_s5 + $0x70] ss:$8 sps:$4 sm:$0xff]   ;;  %v2748_v3 = vld [vmem:[%s4298_s5 + $0x64] ss:$8 sps:$4 sm:$0xff]  }
 0x144   :  { %996 = vmatpush1.bf16.msra.mxu0 %v2535_v10  ;;  %1039 = vmatpush1.bf16.msra.mxu1 %v2537_v11  ;;  %v201_v10 = vld [vmem:[%s4297_s3 + $0x350] sm:$0xff]  ;;  %v2751_v5 = vld [vmem:[%s4298_s5 + $0x164] ss:$8 sps:$4 sm:$0xff]  }
 0x145   :  { %997 = vmatprep.subr.bf16.mxu0 %v2528_v12  ;;  %1040 = vmatprep.subr.bf16.mxu1 %v2530_v13  ;;  %v205_v11 = vld [vmem:[%s4297_s3 + $0x370] sm:$0xff]  ;;  %v202_v12 = vld [vmem:[%s4297_s3 + $0x358] sm:$0xff] }
 0x146   :  { %v206_v13 = vld [vmem:[%s4297_s3 + $0x378] sm:$0xff]  ;;  %v2592_v16 = vcombine.high %v201_v10, %v205_v11  ;;  %v2591_v24 = vcombine.low %v201_v10, %v205_v11  ;;  %v2760_v11 = vld [vmem:[%s4298_s5 + $0x44] ss:$8 sps:$4 sm:$0xff]  }
 0x147   :  { %v2594_v17 = vcombine.high %v202_v12, %v206_v13  ;;  %v2593_v25 = vcombine.low %v202_v12, %v206_v13  ;;  %v2743_v62 = vld [vmem:[%s4298_s5 + $0x170] ss:$8 sps:$4 sm:$0xff]   ;;  %v2763_v12 = vld [vmem:[%s4298_s5 + $0x144] ss:$8 sps:$4 sm:$0xff]   ;;  %v2758_v13 = vld [vmem:[%s4298_s5 + $0x40] ss:$8 sps:$4 sm:$0xff]  }
 0x148   :  { %998 = vmatpush1.bf16.msra.mxu0 %v2527_v18  ;;  %1041 = vmatpush1.bf16.msra.mxu1 %v2529_v19  ;;  %v193_v18 = vld [vmem:[%s4297_s3 + $0x310] sm:$0xff] }
 0x149   :  { %999 = vmatprep.subr.bf16.mxu0 %v2520_v22  ;;  %1042 = vmatprep.subr.bf16.mxu1 %v2522_v23  ;;  %v197_v19 = vld [vmem:[%s4297_s3 + $0x330] sm:$0xff]  ;;  %v194_v22 = vld [vmem:[%s4297_s3 + $0x318] sm:$0xff] }
 0x14a   :  { %v198_v23 = vld [vmem:[%s4297_s3 + $0x338] sm:$0xff]  ;;  %v2584_v28 = vcombine.high %v193_v18, %v197_v19  ;;  %v2583_v4 = vcombine.low %v193_v18, %v197_v19  ;;  %v2772_v19 = vld [vmem:[%s4298_s5 + $0x24] ss:$8 sps:$4 sm:$0xff]  }
 0x14b   :  { %v2586_v0 = vcombine.high %v194_v22, %v198_v23  ;;  %v2585_v31 = vcombine.low %v194_v22, %v198_v23  ;;  %v2755_v10 = vld [vmem:[%s4298_s5 + $0x150] ss:$8 sps:$4 sm:$0xff]   ;;  %v2775_v22 = vld [vmem:[%s4298_s5 + $0x124] ss:$8 sps:$4 sm:$0xff]   ;;  %v2770_v23 = vld [vmem:[%s4298_s5 + $0x20] ss:$8 sps:$4 sm:$0xff]  }
 0x14c   :  { %1000 = vmatpush1.bf16.msra.mxu0 %v2519_v1  ;;  %1043 = vmatpush1.bf16.msra.mxu1 %v2521_v29  ;;  %v185_v1 = vld [vmem:[%s4297_s3 + $0x2d0] sm:$0xff] }
 0x14d   :  { %1001 = vmatprep.subr.bf16.mxu0 %v2512_v30  ;;  %1044 = vmatprep.subr.bf16.mxu1 %v2514_v2  ;;  %v189_v29 = vld [vmem:[%s4297_s3 + $0x2f0] sm:$0xff]  ;;  %v186_v30 = vld [vmem:[%s4297_s3 + $0x2d8] sm:$0xff] }
 0x14e   :  { %v190_v2 = vld [vmem:[%s4297_s3 + $0x2f8] sm:$0xff]  ;;  %v2576_v32 = vcombine.high %v185_v1, %v189_v29  ;;  %v2575_v38 = vcombine.low %v185_v1, %v189_v29  ;;  %v2784_v29 = vld [vmem:[%s4298_s5 + $0x4] ss:$8 sps:$4 sm:$0xff]  }
 0x14f   :  { %v2578_v33 = vcombine.high %v186_v30, %v190_v2  ;;  %v2577_v42 = vcombine.low %v186_v30, %v190_v2  ;;  %v2767_v18 = vld [vmem:[%s4298_s5 + $0x130] ss:$8 sps:$4 sm:$0xff]   ;;  %v2787_v30 = vld [vmem:[%s4298_s5 + $0x104] ss:$8 sps:$4 sm:$0xff]   ;;  %v2782_v2 = vld [vmem:[%s4298_s5] ss:$8 sps:$4 sm:$0xff]  }
 0x150   :  { %1002 = vmatpush1.bf16.msra.mxu0 %v2511_v34  ;;  %1045 = vmatpush1.bf16.msra.mxu1 %v2513_v35  ;;  %v177_v34 = vld [vmem:[%s4297_s3 + $0x290] sm:$0xff] }
 0x151   :  { %1003 = vmatprep.subr.bf16.mxu0 %v2504_v36  ;;  %1046 = vmatprep.subr.bf16.mxu1 %v2506_v37  ;;  %v181_v35 = vld [vmem:[%s4297_s3 + $0x2b0] sm:$0xff]  ;;  %v178_v36 = vld [vmem:[%s4297_s3 + $0x298] sm:$0xff] }
 0x152   :  { %v182_v37 = vld [vmem:[%s4297_s3 + $0x2b8] sm:$0xff]  ;;  %v2568_v43 = vcombine.high %v177_v34, %v181_v35  ;;  %v2567_v49 = vcombine.low %v177_v34, %v181_v35  ;;  %v2796_v35 = vld [vmem:[%s4298_s5 + $0xe4] ss:$8 sps:$4 sm:$0xff]  }
 0x153   :  { %v2570_v44 = vcombine.high %v178_v36, %v182_v37  ;;  %v2569_v50 = vcombine.low %v178_v36, %v182_v37  ;;  %v2779_v1 = vld [vmem:[%s4298_s5 + $0x110] ss:$8 sps:$4 sm:$0xff]   ;;  %v2799_v36 = vld [vmem:[%s4298_s5 + $0x1e4] ss:$8 sps:$4 sm:$0xff]   ;;  %v2794_v37 = vld [vmem:[%s4298_s5 + $0xe0] ss:$8 sps:$4 sm:$0xff]  }
 0x154   :  { %1004 = vmatpush1.bf16.msra.mxu0 %v2503_v45  ;;  %1047 = vmatpush1.bf16.msra.mxu1 %v2505_v46  ;;  %v169_v45 = vld [vmem:[%s4297_s3 + $0x250] sm:$0xff] }
 0x155   :  { %1005 = vmatprep.subr.bf16.mxu0 %v2496_v47  ;;  %1048 = vmatprep.subr.bf16.mxu1 %v2498_v48  ;;  %v173_v46 = vld [vmem:[%s4297_s3 + $0x270] sm:$0xff]  ;;  %v170_v47 = vld [vmem:[%s4297_s3 + $0x258] sm:$0xff] }
 0x156   :  { %v174_v48 = vld [vmem:[%s4297_s3 + $0x278] sm:$0xff]  ;;  %v2560_v51 = vcombine.high %v169_v45, %v173_v46  ;;  %v2559_v57 = vcombine.low %v169_v45, %v173_v46  ;;  %v2808_v46 = vld [vmem:[%s4298_s5 + $0xc4] ss:$8 sps:$4 sm:$0xff]  }
 0x157   :  { %v2562_v52 = vcombine.high %v170_v47, %v174_v48  ;;  %v2561_v21 = vcombine.low %v170_v47, %v174_v48  ;;  %v2791_v34 = vld [vmem:[%s4298_s5 + $0x1f0] ss:$8 sps:$4 sm:$0xff]   ;;  %v2811_v47 = vld [vmem:[%s4298_s5 + $0x1c4] ss:$8 sps:$4 sm:$0xff]   ;;  %v2806_v48 = vld [vmem:[%s4298_s5 + $0xc0] ss:$8 sps:$4 sm:$0xff]  }
 0x158   :  { %1006 = vmatpush1.bf16.msra.mxu0 %v2495_v53  ;;  %1049 = vmatpush1.bf16.msra.mxu1 %v2497_v54  ;;  %v161_v53 = vld [vmem:[%s4297_s3 + $0x210] sm:$0xff] }
 0x159   :  { %1007 = vmatprep.subr.bf16.mxu0 %v2488_v55  ;;  %1050 = vmatprep.subr.bf16.mxu1 %v2490_v56  ;;  %v165_v54 = vld [vmem:[%s4297_s3 + $0x230] sm:$0xff]  ;;  %v162_v55 = vld [vmem:[%s4297_s3 + $0x218] sm:$0xff] }
 0x15a   :  { %v166_v56 = vld [vmem:[%s4297_s3 + $0x238] sm:$0xff]  ;;  %v2552_v58 = vcombine.high %v161_v53, %v165_v54 }
 0x15b   :  { %v2554_v59 = vcombine.high %v162_v55, %v166_v56  ;;  %v2803_v45 = vld [vmem:[%s4298_s5 + $0x1d0] ss:$8 sps:$4 sm:$0xff]  }
 0x15c   :  { %1008 = vmatpush1.bf16.msra.mxu0 %v2487_v60  ;;  %1051 = vmatpush1.bf16.msra.mxu1 %v2489_v20  ;;  %v2551_v60 = vcombine.low %v161_v53, %v165_v54  ;;  %v2553_v20 = vcombine.low %v162_v55, %v166_v56  ;;  %v2815_v53 = vld [vmem:[%s4298_s5 + $0x1b0] ss:$8 sps:$4 sm:$0xff]   ;;  %v2820_v54 = vld [vmem:[%s4298_s5 + $0xa4] ss:$8 sps:$4 sm:$0xff]   ;;  %v2818_v56 = vld [vmem:[%s4298_s5 + $0xa0] ss:$8 sps:$4 sm:$0xff]  }
 0x15d   :  { %1009 = vmatprep.subr.bf16.mxu0 %v2608_v61  ;;  %1052 = vmatprep.subr.bf16.mxu1 %v2610_v27  ;;  %v2742_v61 = vld [vmem:[%s4298_s5 + $0x74] ss:$8 sps:$4 sm:$0xff]   ;;  %v2823_v55 = vld [vmem:[%s4298_s5 + $0x1a4] ss:$8 sps:$4 sm:$0xff]  }
 0x15e   :  { %v2745_v27 = vld [vmem:[%s4298_s5 + $0x174] ss:$8 sps:$4 sm:$0xff]  }
 0x160   :  { %1010 = vmatpush2.bf16.msra.mxu0 %v2607_v6  ;;  %1053 = vmatpush2.bf16.msra.mxu1 %v2609_v7  ;;  %v2746_v6 = vld [vmem:[%s4298_s5 + $0x60] ss:$8 sps:$4 sm:$0xff]  }
 0x161   :  { %1011 = vmatprep.subr.bf16.mxu0 %v2600_v8  ;;  %1054 = vmatprep.subr.bf16.mxu1 %v2602_v9  ;;  %v2749_v7 = vld [vmem:[%s4298_s5 + $0x160] ss:$8 sps:$4 sm:$0xff]   ;;  %v2757_v8 = vld [vmem:[%s4298_s5 + $0x154] ss:$8 sps:$4 sm:$0xff]   ;;  %v2752_v9 = vld [vmem:[%s4298_s5 + $0x50] ss:$8 sps:$4 sm:$0xff]  }
 0x164   :  { %1012 = vmatpush2.bf16.msra.mxu0 %v2599_v14  ;;  %1055 = vmatpush2.bf16.msra.mxu1 %v2601_v15  ;;  %v2761_v14 = vld [vmem:[%s4298_s5 + $0x140] ss:$8 sps:$4 sm:$0xff]   ;;  %v2766_v15 = vld [vmem:[%s4298_s5 + $0x34] ss:$8 sps:$4 sm:$0xff]  }
 0x165   :  { %1013 = vmatprep.subr.bf16.mxu0 %v2592_v16  ;;  %1056 = vmatprep.subr.bf16.mxu1 %v2594_v17  ;;  %v2769_v16 = vld [vmem:[%s4298_s5 + $0x134] ss:$8 sps:$4 sm:$0xff]   ;;  %v2764_v17 = vld [vmem:[%s4298_s5 + $0x30] ss:$8 sps:$4 sm:$0xff]  }
 0x168   :  { %1014 = vmatpush2.bf16.msra.mxu0 %v2591_v24  ;;  %1057 = vmatpush2.bf16.msra.mxu1 %v2593_v25  ;;  %v2773_v24 = vld [vmem:[%s4298_s5 + $0x120] ss:$8 sps:$4 sm:$0xff]   ;;  %v2778_v25 = vld [vmem:[%s4298_s5 + $0x14] ss:$8 sps:$4 sm:$0xff]  }
 0x169   :  { %1015 = vmatprep.subr.bf16.mxu0 %v2584_v28  ;;  %1058 = vmatprep.subr.bf16.mxu1 %v2586_v0  ;;  %v2781_v28 = vld [vmem:[%s4298_s5 + $0x114] ss:$8 sps:$4 sm:$0xff]   ;;  %v2776_v0 = vld [vmem:[%s4298_s5 + $0x10] ss:$8 sps:$4 sm:$0xff]  }
 0x16c   :  { %1016 = vmatpush2.bf16.msra.mxu0 %v2583_v4  ;;  %1059 = vmatpush2.bf16.msra.mxu1 %v2585_v31  ;;  %v2785_v4 = vld [vmem:[%s4298_s5 + $0x100] ss:$8 sps:$4 sm:$0xff]   ;;  %v2790_v31 = vld [vmem:[%s4298_s5 + $0xf4] ss:$8 sps:$4 sm:$0xff]  }
 0x16d   :  { %1017 = vmatprep.subr.bf16.mxu0 %v2576_v32  ;;  %1060 = vmatprep.subr.bf16.mxu1 %v2578_v33  ;;  %v2793_v32 = vld [vmem:[%s4298_s5 + $0x1f4] ss:$8 sps:$4 sm:$0xff]   ;;  %v2788_v33 = vld [vmem:[%s4298_s5 + $0xf0] ss:$8 sps:$4 sm:$0xff]  }
 0x170   :  { %1018 = vmatpush2.bf16.msra.mxu0 %v2575_v38  ;;  %1061 = vmatpush2.bf16.msra.mxu1 %v2577_v42  ;;  %v2797_v38 = vld [vmem:[%s4298_s5 + $0x1e0] ss:$8 sps:$4 sm:$0xff]   ;;  %v2802_v42 = vld [vmem:[%s4298_s5 + $0xd4] ss:$8 sps:$4 sm:$0xff]  }
 0x171   :  { %1019 = vmatprep.subr.bf16.mxu0 %v2568_v43  ;;  %1062 = vmatprep.subr.bf16.mxu1 %v2570_v44  ;;  %v2805_v43 = vld [vmem:[%s4298_s5 + $0x1d4] ss:$8 sps:$4 sm:$0xff]   ;;  %v2800_v44 = vld [vmem:[%s4298_s5 + $0xd0] ss:$8 sps:$4 sm:$0xff]  }
 0x174   :  { %1020 = vmatpush2.bf16.msra.mxu0 %v2567_v49  ;;  %1063 = vmatpush2.bf16.msra.mxu1 %v2569_v50  ;;  %v2809_v49 = vld [vmem:[%s4298_s5 + $0x1c0] ss:$8 sps:$4 sm:$0xff]   ;;  %v2814_v50 = vld [vmem:[%s4298_s5 + $0xb4] ss:$8 sps:$4 sm:$0xff]  }
 0x175   :  { %1021 = vmatprep.subr.bf16.mxu0 %v2560_v51  ;;  %1064 = vmatprep.subr.bf16.mxu1 %v2562_v52  ;;  %v2817_v51 = vld [vmem:[%s4298_s5 + $0x1b4] ss:$8 sps:$4 sm:$0xff]   ;;  %v2812_v52 = vld [vmem:[%s4298_s5 + $0xb0] ss:$8 sps:$4 sm:$0xff]  }
 0x178   :  { %1022 = vmatpush2.bf16.msra.mxu0 %v2559_v57  ;;  %1065 = vmatpush2.bf16.msra.mxu1 %v2561_v21  ;;  %v2821_v57 = vld [vmem:[%s4298_s5 + $0x1a0] ss:$8 sps:$4 sm:$0xff]   ;;  %v2826_v21 = vld [vmem:[%s4298_s5 + $0x94] ss:$8 sps:$4 sm:$0xff]  }
 0x179   :  { %1023 = vmatprep.subr.bf16.mxu0 %v2552_v58  ;;  %1066 = vmatprep.subr.bf16.mxu1 %v2554_v59  ;;  %v2829_v58 = vld [vmem:[%s4298_s5 + $0x194] ss:$8 sps:$4 sm:$0xff]   ;;  %v2824_v59 = vld [vmem:[%s4298_s5 + $0x90] ss:$8 sps:$4 sm:$0xff]  }
 0x17c   :  { %1024 = vmatpush2.bf16.msra.mxu0 %v2551_v60  ;;  %1067 = vmatpush2.bf16.msra.mxu1 %v2553_v20  ;;  %v2827_v60 = vld [vmem:[%s4298_s5 + $0x190] ss:$8 sps:$4 sm:$0xff]   ;;  %v2832_v20 = vld [vmem:[%s4298_s5 + $0x84] ss:$8 sps:$4 sm:$0xff]  }
 0x17d   :  { %2299 = vmatprep.subr.bf16.mxu0 %v2742_v61  ;;  %2342 = vmatprep.subr.bf16.mxu1 %v2745_v27  ;;  %v2835_v61 = vld [vmem:[%s4298_s5 + $0x184] ss:$8 sps:$4 sm:$0xff]   ;;  %v2830_v27 = vld [vmem:[%s4298_s5 + $0x80] ss:$8 sps:$4 sm:$0xff]  }
 0x17f   :  { %1026 = vmatmul.mubr.bf16.vlgmr.msra.gmra.mxu0 %v3327_v63  ;;  %1069 = vmatmul.mubr.bf16.vlgmr.msra.gmra.mxu1 %v3327_v63  ;;  %v2754_v63 = vld [vmem:[%s4298_s5 + $0x54] ss:$8 sps:$4 sm:$0xff]  }
 0x180   :  { %2300 = vmatpush1.bf16.msra.mxu0 %v2740_v26  ;;  %2343 = vmatpush1.bf16.msra.mxu1 %v2743_v62  ;;  %v2833_v26 = vld [vmem:[%s4298_s5 + $0x180] ss:$8 sps:$4 sm:$0xff]   ;;  %v2838_v62 = vld [vmem:[%s4298_s5 + $0x274] ss:$8 sps:$4 sm:$0xff]  }
 0x181   :  { %2301 = vmatprep.subr.bf16.mxu0 %v2748_v3  ;;  %2344 = vmatprep.subr.bf16.mxu1 %v2751_v5  ;;  %v2841_v3 = vld [vmem:[%s4298_s5 + $0x374] ss:$8 sps:$4 sm:$0xff]   ;;  %v237_v5 = vsub.s32 2, %v3293_v39 }
 0x184   :  { %2302 = vmatpush1.bf16.msra.mxu0 %v2746_v6  ;;  %2345 = vmatpush1.bf16.msra.mxu1 %v2749_v7  ;;  %v3703_v6 = vld [vmem:[%s4301_s4] sm:$0xff]  ;;  %v241_v7 = vsub.s32 3, %v3293_v39 }
 0x185   :  { %2303 = vmatprep.subr.bf16.mxu0 %v2754_v63  ;;  %2346 = vmatprep.subr.bf16.mxu1 %v2757_v8  ;;  %v230_v63 = vrot.slane %v3703_v6, %v3299_v41  ;;  %v238_v8 = vrot.slane %v3703_v6, %v237_v5 }
 0x188   :  { %2304 = vmatpush1.bf16.msra.mxu0 %v2752_v9  ;;  %2347 = vmatpush1.bf16.msra.mxu1 %v2755_v10 }
 0x189   :  { %2305 = vmatprep.subr.bf16.mxu0 %v2760_v11  ;;  %2348 = vmatprep.subr.bf16.mxu1 %v2763_v12  ;;  %v234_v11 = vrot.slane %v3703_v6, %v3296_v40  ;;  %v242_v12 = vrot.slane %v3703_v6, %v241_v7 }
 0x18c   :  { %2306 = vmatpush1.bf16.msra.mxu0 %v2758_v13  ;;  %2349 = vmatpush1.bf16.msra.mxu1 %v2761_v14 }
 0x18d   :  { %2307 = vmatprep.subr.bf16.mxu0 %v2766_v15  ;;  %2350 = vmatprep.subr.bf16.mxu1 %v2769_v16 }
 0x190   :  { %2308 = vmatpush1.bf16.msra.mxu0 %v2764_v17  ;;  %2351 = vmatpush1.bf16.msra.mxu1 %v2767_v18 }
 0x191   :  { %2309 = vmatprep.subr.bf16.mxu0 %v2772_v19  ;;  %2352 = vmatprep.subr.bf16.mxu1 %v2775_v22 }
 0x194   :  { %2310 = vmatpush1.bf16.msra.mxu0 %v2770_v23  ;;  %2353 = vmatpush1.bf16.msra.mxu1 %v2773_v24 }
 0x195   :  { %2311 = vmatprep.subr.bf16.mxu0 %v2778_v25  ;;  %2354 = vmatprep.subr.bf16.mxu1 %v2781_v28 }
 0x198   :  { %2312 = vmatpush1.bf16.msra.mxu0 %v2776_v0  ;;  %2355 = vmatpush1.bf16.msra.mxu1 %v2779_v1 }
 0x199   :  { %2313 = vmatprep.subr.bf16.mxu0 %v2784_v29  ;;  %2356 = vmatprep.subr.bf16.mxu1 %v2787_v30 }
 0x19c   :  { %2314 = vmatpush1.bf16.msra.mxu0 %v2782_v2  ;;  %2357 = vmatpush1.bf16.msra.mxu1 %v2785_v4 }
 0x19d   :  { %2315 = vmatprep.subr.bf16.mxu0 %v2790_v31  ;;  %2358 = vmatprep.subr.bf16.mxu1 %v2793_v32 }
 0x1a0   :  { %2316 = vmatpush2.bf16.msra.mxu0 %v2788_v33  ;;  %2359 = vmatpush2.bf16.msra.mxu1 %v2791_v34 }
 0x1a1   :  { %2317 = vmatprep.subr.bf16.mxu0 %v2796_v35  ;;  %2360 = vmatprep.subr.bf16.mxu1 %v2799_v36 }
 0x1a4   :  { %2318 = vmatpush2.bf16.msra.mxu0 %v2794_v37  ;;  %2361 = vmatpush2.bf16.msra.mxu1 %v2797_v38 }
 0x1a5   :  { %2319 = vmatprep.subr.bf16.mxu0 %v2802_v42  ;;  %2362 = vmatprep.subr.bf16.mxu1 %v2805_v43 }
 0x1a8   :  { %2320 = vmatpush2.bf16.msra.mxu0 %v2800_v44  ;;  %2363 = vmatpush2.bf16.msra.mxu1 %v2803_v45 }
 0x1a9   :  { %2321 = vmatprep.subr.bf16.mxu0 %v2808_v46  ;;  %2364 = vmatprep.subr.bf16.mxu1 %v2811_v47 }
 0x1ac   :  { %2322 = vmatpush2.bf16.msra.mxu0 %v2806_v48  ;;  %2365 = vmatpush2.bf16.msra.mxu1 %v2809_v49 }
 0x1ad   :  { %2323 = vmatprep.subr.bf16.mxu0 %v2814_v50  ;;  %2366 = vmatprep.subr.bf16.mxu1 %v2817_v51 }
 0x1b0   :  { %2324 = vmatpush2.bf16.msra.mxu0 %v2812_v52  ;;  %2367 = vmatpush2.bf16.msra.mxu1 %v2815_v53 }
 0x1b1   :  { %2325 = vmatprep.subr.bf16.mxu0 %v2820_v54  ;;  %2368 = vmatprep.subr.bf16.mxu1 %v2823_v55 }
 0x1b4   :  { %2326 = vmatpush2.bf16.msra.mxu0 %v2818_v56  ;;  %2369 = vmatpush2.bf16.msra.mxu1 %v2821_v57  ;;  %v245_v57 = vsub.s32 4, %v3293_v39 }
 0x1b5   :  { %2327 = vmatprep.subr.bf16.mxu0 %v2826_v21  ;;  %2370 = vmatprep.subr.bf16.mxu1 %v2829_v58 }
 0x1b8   :  { %2328 = vmatpush2.bf16.msra.mxu0 %v2824_v59  ;;  %2371 = vmatpush2.bf16.msra.mxu1 %v2827_v60 }
 0x1b9   :  { %2329 = vmatprep.subr.bf16.mxu0 %v2832_v20  ;;  %2372 = vmatprep.subr.bf16.mxu1 %v2835_v61  ;;  %v253_v20 = vsub.s32 6, %v3293_v39 }
 0x1bc   :  { %2330 = vmatpush2.bf16.msra.mxu0 %v2830_v27  ;;  %2373 = vmatpush2.bf16.msra.mxu1 %v2833_v26 }
 0x1bd   :  { %2385 = vmatprep.subr.bf16.mxu0 %v2838_v62  ;;  %2428 = vmatprep.subr.bf16.mxu1 %v2841_v3 }
 0x1ff   :  { %v941_v9 = vpop.f32.mrf.mxu0  ;;  %v984_v10 = vpop.f32.mrf.mxu1 }
 0x200   :  { %v3712_v13 = vadd.f32 %v941_v9, %v230_v63  ;;  %v3714_v14 = vadd.f32 %v984_v10, %v238_v8 }
 0x201   :  { %v943_v15 = vpop.f32.mrf.mxu0  ;;  %v986_v16 = vpop.f32.mrf.mxu1 }
 0x202   :  { %v3717_v17 = vmul.f32 0.70710677, %v3712_v13  ;;  %v3720_v18 = vmul.f32 0.70710677, %v3714_v14  ;;  %v3722_v19 = vadd.f32 %v943_v15, %v234_v11  ;;  %v3724_v22 = vadd.f32 %v986_v16, %v242_v12 }
 0x203   :  { %v945_v28 = vpop.f32.mrf.mxu0  ;;  %v988_v32 = vpop.f32.mrf.mxu1 }
 0x204   :  { %v1143_v23 = vand.u32 2147483647, %v3717_v17  ;;  %v3728_v24 = vand.u32 2147483647, %v3720_v18  ;;  %v3731_v25 = vmul.f32 0.70710677, %v3722_v19  ;;  %v3741_v36 = vadd.f32 %v945_v28, %v230_v63 }
 0x205   :  { %v3736_v30 = vmul.f32 0.70710677, %v3724_v22  ;;  %v947_v33 = vpop.f32.mrf.mxu0  ;;  %v3743_v37 = vadd.f32 %v988_v32, %v238_v8  ;;  %v990_v48 = vpop.f32.mrf.mxu1  ;;  %v3780_v63 = vrot.slane %v3703_v6, %v245_v57  ;;  %v249_v28 = vsub.s32 5, %v3293_v39 }
 0x206   :  { %v1159_v0 = vmul.f32 0.3275911, %v1143_v23  ;;  %v1161_v1 = vmul.f32 0.3275911, %v3728_v24  ;;  %v1144_v29 = vand.u32 2147483647, %v3731_v25  ;;  %v3745_v38 = vadd.f32 %v947_v33, %v234_v11 }
 0x207   :  { %v3739_v35 = vand.u32 2147483647, %v3736_v30  ;;  %v3749_v43 = vmul.f32 0.70710677, %v3741_v36  ;;  %v3752_v45 = vmul.f32 0.70710677, %v3743_v37  ;;  %v3762_v52 = vadd.f32 %v990_v48, %v242_v12 }
 0x208   :  { %v1175_v2 = vadd.f32 1.0, %v1159_v0  ;;  %v1177_v4 = vadd.f32 1.0, %v1161_v1  ;;  %v1160_v31 = vmul.f32 0.3275911, %v1144_v29  ;;  %v3756_v47 = vmul.f32 0.70710677, %v3745_v38 }
 0x209   :  { %v1162_v42 = vmul.f32 0.3275911, %v3739_v35  ;;  %v1151_v46 = vand.u32 2147483647, %v3749_v43  ;;  %v1153_v50 = vand.u32 2147483647, %v3752_v45  ;;  %v3785_v11 = vrot.slane %v3703_v6, %v253_v20 }
 0x20a   :  { %2936 = vrcp.f32 %v1175_v2  ;;  %v1176_v34 = vadd.f32 1.0, %v1160_v31  ;;  %v3760_v51 = vand.u32 2147483647, %v3756_v47  ;;  %v1368_v58 = vsub.f32 0.0, %v1144_v29 }
 0x20b   :  { %2938 = vrcp.f32 %v1177_v4  ;;  %v1178_v44 = vadd.f32 1.0, %v1162_v42  ;;  %v1167_v49 = vmul.f32 0.3275911, %v1151_v46  ;;  %v1169_v54 = vmul.f32 0.3275911, %v1153_v50 }
 0x20c   :  { %2940 = vrcp.f32 %v1176_v34  ;;  %v1168_v55 = vmul.f32 0.3275911, %v3760_v51  ;;  %v3769_v60 = vmul.f32 0.70710677, %v3762_v52  ;;  %v1367_v26 = vsub.f32 0.0, %v1143_v23 }
 0x20d   :  { %2942 = vrcp.f32 %v1178_v44  ;;  %v1183_v53 = vadd.f32 1.0, %v1167_v49  ;;  %v1185_v56 = vadd.f32 1.0, %v1169_v54  ;;  %v1375_v5 = vsub.f32 0.0, %v1151_v46 }
 0x20e   :  { %v1184_v59 = vadd.f32 1.0, %v1168_v55  ;;  %v3777_v7 = vand.u32 2147483647, %v3769_v60  ;;  %v1384_v10 = vmul.f32 %v1368_v58, %v1144_v29  ;;  %v1383_v0 = vmul.f32 %v1367_v26, %v1143_v23 }
 0x20f   :  { %2944 = vrcp.f32 %v1183_v53  ;;  %v1369_v2 = vsub.f32 0.0, %v3728_v24  ;;  %v1370_v4 = vsub.f32 0.0, %v3739_v35  ;;  %v1391_v33 = vmul.f32 %v1375_v5, %v1151_v46 }
 0x210   :  { %2946 = vrcp.f32 %v1185_v56  ;;  %v1170_v16 = vmul.f32 0.3275911, %v3777_v7  ;;  %v1401_v42 = vmul.f32 1.442695, %v1384_v10  ;;  %v1377_v48 = vsub.f32 0.0, %v1153_v50 }
 0x211   :  { %2948 = vrcp.f32 %v1184_v59  ;;  %v1376_v49 = vsub.f32 0.0, %v3760_v51  ;;  %v1399_v55 = vmul.f32 1.442695, %v1383_v0  ;;  %v1385_v56 = vmul.f32 %v1369_v2, %v3728_v24 }
 0x212   :  { %v1186_v34 = vadd.f32 1.0, %v1170_v16  ;;  %v1386_v58 = vmul.f32 %v1370_v4, %v3739_v35  ;;  %v1415_v59 = vmul.f32 1.442695, %v1391_v33  ;;  %v3803_v20 = vrot.slane %v3703_v6, %v249_v28 }
 0x213   :  { %v1393_v5 = vmul.f32 %v1377_v48, %v1153_v50  ;;  %v1392_v10 = vmul.f32 %v1376_v49, %v3760_v51  ;;  %vm1111_vm0 = vcmp.ge.f32.partialorder %v3717_v17, 0.0  ;;  %vm1113_vm1 = vcmp.ge.f32.partialorder %v3720_v18, 0.0 }
 0x214   :  { %2950 = vrcp.f32 %v1186_v34  ;;  %v1405_v16 = vmul.f32 1.442695, %v1386_v58  ;;  %vm1112_vm2 = vcmp.ge.f32.partialorder %v3731_v25, 0.0  ;;  %vm1119_vm3 = vcmp.ge.f32.partialorder %v3749_v43, 0.0 }
 0x215   :  { %2952 = vpow2.f32 %v1401_v42  ;;  %v1417_v42 = vmul.f32 1.442695, %v1392_v10  ;;  %vm1114_vm4 = vcmp.ge.f32.partialorder %v3736_v30, 0.0  ;;  %vm1121_vm5 = vcmp.ge.f32.partialorder %v3752_v45, 0.0 }
 0x216   :  { %2954 = vpow2.f32 %v1399_v55  ;;  %vm1120_vm6 = vcmp.ge.f32.partialorder %v3756_v47, 0.0  ;;  %vm1122_vm7 = vcmp.ge.f32.partialorder %v3769_v60, 0.0  ;;  %v1087_v30 = vmul.f32 0.5, %v3741_v36 }
 0x217   :  { %v3766_v21 = vpop.eup %2936  ;;  %2956 = vpow2.f32 %v1415_v59 }
 0x218   :  { %v3772_v61 = vpop.eup %2938  ;;  %v1223_v27 = vmul.f32 1.0614054, %v3766_v21 }
 0x219   :  { %v1225_v62 = vmul.f32 1.0614054, %v3772_v61  ;;  %v3782_v8 = vpop.eup %2940 }
 0x21a   :  { %v1239_v3 = vadd.f32 -1.4531521, %v1223_v27  ;;  %v1224_v15 = vmul.f32 1.0614054, %v3782_v8  ;;  %v3794_v29 = vpop.eup %2942  ;;  %v257_v27 = vsub.s32 7, %v3293_v39 }
 0x21b   :  { %v1241_v9 = vadd.f32 -1.4531521, %v1225_v62  ;;  %v1226_v44 = vmul.f32 1.0614054, %v3794_v29 }
 0x21c   :  { %v1255_v12 = vmul.f32 %v3766_v21, %v1239_v3  ;;  %v1240_v32 = vadd.f32 -1.4531521, %v1224_v15  ;;  %v3806_v26 = vpop.eup %2944  ;;  %v3830_v59 = vrot.slane %v3703_v6, %v257_v27 }
 0x21d   :  { %v1257_v1 = vmul.f32 %v3772_v61, %v1241_v9  ;;  %v1242_v57 = vadd.f32 -1.4531521, %v1226_v44  ;;  %v1231_v35 = vmul.f32 1.0614054, %v3806_v26  ;;  %v3813_v39 = vpop.eup %2946 }
 0x21e   :  { %v1271_v31 = vadd.f32 1.4214138, %v1255_v12  ;;  %v1256_v54 = vmul.f32 %v3782_v8, %v1240_v32  ;;  %v1403_v12 = vmul.f32 1.442695, %v1385_v56  ;;  %v1233_v4 = vmul.f32 1.0614054, %v3813_v39  ;;  %v3819_v32 = vpop.eup %2948 }
 0x21f   :  { %v1273_v53 = vadd.f32 1.4214138, %v1257_v1  ;;  %v1258_v3 = vmul.f32 %v3794_v29, %v1242_v57  ;;  %v1247_v0 = vadd.f32 -1.4531521, %v1231_v35  ;;  %v1378_v1 = vsub.f32 0.0, %v3777_v7 }
 0x220   :  { %v1287_v23 = vmul.f32 %v3766_v21, %v1271_v31  ;;  %v1272_v46 = vadd.f32 1.4214138, %v1256_v54  ;;  %v1419_v31 = vmul.f32 1.442695, %v1393_v5  ;;  %2958 = vpow2.f32 %v1403_v12 }
 0x221   :  { %v1289_v9 = vmul.f32 %v3772_v61, %v1273_v53  ;;  %v1274_v15 = vadd.f32 1.4214138, %v1258_v3  ;;  %v1263_v34 = vmul.f32 %v3806_v26, %v1247_v0  ;;  %v1249_v48 = vadd.f32 -1.4531521, %v1233_v4 }
 0x222   :  { %v1303_v62 = vadd.f32 -0.28449672, %v1287_v23  ;;  %v1288_v24 = vmul.f32 %v3782_v8, %v1272_v46  ;;  %v1232_v49 = vmul.f32 1.0614054, %v3819_v32  ;;  %2960 = vpow2.f32 %v1405_v16 }
 0x223   :  { %v1290_v2 = vmul.f32 %v3794_v29, %v1274_v15  ;;  %v1305_v51 = vadd.f32 -0.28449672, %v1289_v9  ;;  %v1279_v53 = vadd.f32 1.4214138, %v1263_v34  ;;  %v1394_v54 = vmul.f32 %v1378_v1, %v3777_v7 }
 0x224   :  { %v1304_v28 = vadd.f32 -0.28449672, %v1288_v24  ;;  %v1319_v50 = vmul.f32 %v3766_v21, %v1303_v62  ;;  %v1265_v56 = vmul.f32 %v3813_v39, %v1249_v48  ;;  %2962 = vpow2.f32 %v1419_v31  ;;  %v3832_v62 = vpop.eup %2950 }
 0x225   :  { %v1306_v44 = vadd.f32 -0.28449672, %v1290_v2  ;;  %v1248_v57 = vadd.f32 -1.4531521, %v1232_v49  ;;  %v1295_v46 = vmul.f32 %v3806_v26, %v1279_v53  ;;  %v1321_v3 = vmul.f32 %v3772_v61, %v1305_v51  ;;  %v2953_v16 = vpop.eup %2952 }
 0x226   :  { %v1320_v33 = vmul.f32 %v3782_v8, %v1304_v28  ;;  %v1335_v55 = vadd.f32 0.2548296, %v1319_v50  ;;  %v1281_v5 = vadd.f32 1.4214138, %v1265_v56  ;;  %2964 = vpow2.f32 %v1417_v42 }
 0x227   :  { %v1322_v58 = vmul.f32 %v3794_v29, %v1306_v44  ;;  %v1264_v7 = vmul.f32 %v3819_v32, %v1248_v57  ;;  %v1311_v24 = vadd.f32 -0.28449672, %v1295_v46  ;;  %v1234_v35 = vmul.f32 1.0614054, %v3832_v62 }
 0x228   :  { %v1336_v23 = vadd.f32 0.2548296, %v1320_v33  ;;  %v1421_v10 = vmul.f32 1.442695, %v1394_v54  ;;  %v3839_v12 = vmul.f32 0.5, %v3712_v13  ;;  %v1351_v6 = vmul.f32 %v3766_v21, %v1335_v55  ;;  %v2955_v21 = vpop.eup %2954 }
 0x229   :  { %v1297_v27 = vmul.f32 %v3813_v39, %v1281_v5  ;;  %v1280_v15 = vadd.f32 1.4214138, %v1264_v7  ;;  %v1338_v28 = vadd.f32 0.2548296, %v1322_v58  ;;  %v1327_v0 = vmul.f32 %v3806_v26, %v1311_v24  ;;  %v2957_v34 = vpop.eup %2956 }
 0x22a   :  { %v1352_v9 = vmul.f32 %v3782_v8, %v1336_v23  ;;  %v1250_v1 = vadd.f32 -1.4531521, %v1234_v35  ;;  %v3004_v8 = vmov -1.0   ;;  %v1337_v2 = vadd.f32 0.2548296, %v1321_v3 }
 0x22b   :  { %v1127_v50 = vsel %vm1111_vm0, 1.0, %v3004_v8  ;;  %v1313_v13 = vadd.f32 -0.28449672, %v1297_v27  ;;  %v1296_v4 = vmul.f32 %v3819_v32, %v1280_v15  ;;  %v1343_v51 = vadd.f32 0.2548296, %v1327_v0 }
 0x22c   :  { %v1432_v31 = vmul.f32 %v2953_v16, %v1352_v9  ;;  %v1266_v33 = vmul.f32 %v3832_v62, %v1250_v1  ;;  %2966 = vpow2.f32 %v1421_v10  ;;  %v1431_v42 = vmul.f32 %v2955_v21, %v1351_v6 }
 0x22d   :  { %v1329_v44 = vmul.f32 %v3813_v39, %v1313_v13  ;;  %v1312_v48 = vadd.f32 -0.28449672, %v1296_v4  ;;  %v1129_v17 = vsel %vm1113_vm1, 1.0, %v3004_v8  ;;  %v1354_v49 = vmul.f32 %v3794_v29, %v1338_v28  ;;  %v2959_v25 = vpop.eup %2958 }
 0x22e   :  { %v1359_v23 = vmul.f32 %v3806_v26, %v1343_v51  ;;  %v1282_v53 = vadd.f32 1.4214138, %v1266_v33  ;;  %v1353_v54 = vmul.f32 %v3772_v61, %v1337_v2  ;;  %v1128_v57 = vsel %vm1112_vm2, 1.0, %v3004_v8 }
 0x22f   :  { %v1345_v55 = vadd.f32 0.2548296, %v1329_v44  ;;  %v1328_v56 = vmul.f32 %v3819_v32, %v1312_v48  ;;  %v1448_v58 = vsub.f32 1.0, %v1432_v31  ;;  %v2961_v3 = vpop.eup %2960  ;;  %v1447_v5 = vsub.f32 1.0, %v1431_v42 }
 0x230   :  { %v1439_v46 = vmul.f32 %v2957_v34, %v1359_v23  ;;  %v1298_v18 = vmul.f32 %v3832_v62, %v1282_v53  ;;  %v1434_v7 = vmul.f32 %v2961_v3, %v1354_v49  ;;  %v1135_v43 = vsel %vm1119_vm3, 1.0, %v3004_v8 }
 0x231   :  { %v1361_v29 = vmul.f32 %v3813_v39, %v1345_v55  ;;  %v1344_v26 = vadd.f32 0.2548296, %v1328_v56  ;;  %v2963_v61 = vpop.eup %2962  ;;  %v1433_v35 = vmul.f32 %v2959_v25, %v1353_v54  ;;  %v1464_v15 = vmul.f32 %v1448_v58, %v1128_v57 }
 0x232   :  { %v1455_v9 = vsub.f32 1.0, %v1439_v46  ;;  %v1314_v24 = vadd.f32 -0.28449672, %v1298_v18  ;;  %v1463_v28 = vmul.f32 %v1447_v5, %v1127_v50  ;;  %v1080_v0 = vmul.f32 0.5, %v3722_v19 }
 0x233   :  { %v1441_v10 = vmul.f32 %v2963_v61, %v1361_v29  ;;  %v1360_v6 = vmul.f32 %v3819_v32, %v1344_v26  ;;  %v2965_v27 = vpop.eup %2964  ;;  %v1082_v13 = vmul.f32 0.5, %v3724_v22  ;;  %v1130_v4 = vsel %vm1114_vm4, 1.0, %v3004_v8 }
 0x234   :  { %v1471_v16 = vmul.f32 %v1455_v9, %v1135_v43  ;;  %v1330_v39 = vmul.f32 %v3832_v62, %v1314_v24  ;;  %v1450_v21 = vsub.f32 1.0, %v1434_v7  ;;  %v1449_v31 = vsub.f32 1.0, %v1433_v35  ;;  %v2836_v35 = vld [vmem:[%s4298_s5 + $0x270] ss:$8 sps:$4 sm:$0xff]  }
 0x235   :  { %v1457_v1 = vsub.f32 1.0, %v1441_v10  ;;  %v1440_v2 = vmul.f32 %v2965_v27, %v1360_v6  ;;  %v1137_v47 = vsel %vm1121_vm5, 1.0, %v3004_v8  ;;  %v1136_v51 = vsel %vm1120_vm6, 1.0, %v3004_v8 }
 0x236   :  { %v1346_v32 = vadd.f32 0.2548296, %v1330_v39  ;;  %v1480_v33 = vadd.f32 1.0, %v1464_v15  ;;  %v1487_v19 = vadd.f32 1.0, %v1471_v16  ;;  %v1479_v42 = vadd.f32 1.0, %v1463_v28 }
 0x237   :  { %v1456_v50 = vsub.f32 1.0, %v1440_v2  ;;  %v1473_v44 = vmul.f32 %v1457_v1, %v1137_v47  ;;  %v1466_v53 = vmul.f32 %v1450_v21, %v1130_v4  ;;  %v1465_v56 = vmul.f32 %v1449_v31, %v1129_v17  ;;  %v2844_v39 = vld [vmem:[%s4298_s5 + $0x264] ss:$8 sps:$4 sm:$0xff]  }
 0x238   :  { %v1362_v22 = vmul.f32 %v3832_v62, %v1346_v32  ;;  %v1088_v25 = vmul.f32 0.5, %v3745_v38  ;;  %v1138_v36 = vsel %vm1122_vm7, 1.0, %v3004_v8  ;;  %v1496_v58 = vmul.f32 %v1480_v33, %v1080_v0 }
 0x239   :  { %v2967_v34 = vpop.eup %2966  ;;  %v1472_v48 = vmul.f32 %v1456_v50, %v1136_v51  ;;  %v1503_v46 = vmul.f32 %v1487_v19, %v1087_v30  ;;  %v1489_v5 = vadd.f32 1.0, %v1473_v44  ;;  %v1495_v38 = vmul.f32 %v1479_v42, %v3839_v12  ;;  %v2842_v51 = vld [vmem:[%s4298_s5 + $0x260] ss:$8 sps:$4 sm:$0xff]   ;;  %v2850_v19 = vld [vmem:[%s4298_s5 + $0x254] ss:$8 sps:$4 sm:$0xff]  }
 0x23a   :  { %v1442_v45 = vmul.f32 %v2967_v34, %v1362_v22  ;;  %v1482_v61 = vadd.f32 1.0, %v1466_v53  ;;  %v1481_v43 = vadd.f32 1.0, %v1465_v56  ;;  %v1089_v9 = vmul.f32 0.5, %v3743_v37  ;;  %v2847_v42 = vld [vmem:[%s4298_s5 + $0x364] ss:$8 sps:$4 sm:$0xff]  }
 0x23b   :  { %v1488_v62 = vadd.f32 1.0, %v1472_v48  ;;  %v1639_v27 = vpack.c.bf16 %v1503_v46, %v1495_v38  ;;  %v1090_v12 = vmul.f32 0.5, %v3762_v52  ;;  %v1081_v37 = vmul.f32 0.5, %v3714_v14  ;;  %v2851_v46 = vld [vmem:[%s4298_s5 + $0x350] ss:$8 sps:$4 sm:$0xff]  }
 0x23c   :  { %v1458_v18 = vsub.f32 1.0, %v1442_v45  ;;  %v1505_v28 = vmul.f32 %v1489_v5, %v1089_v9  ;;  %v1498_v2 = vmul.f32 %v1482_v61, %v1082_v13  ;;  %v2839_v13 = vld [vmem:[%s4298_s5 + $0x370] ss:$8 sps:$4 sm:$0xff]   ;;  %v2862_v38 = vld [vmem:[%s4298_s5 + $0x234] ss:$8 sps:$4 sm:$0xff]  }
 0x23d   :  { %v1504_v29 = vmul.f32 %v1488_v62, %v1088_v25  ;;  %v1497_v31 = vmul.f32 %v1481_v43, %v1081_v37  ;;  %v2848_v45 = vld [vmem:[%s4298_s5 + $0x250] ss:$8 sps:$4 sm:$0xff]   ;;  %v2856_v25 = vld [vmem:[%s4298_s5 + $0x244] ss:$8 sps:$4 sm:$0xff]   ;;  %v2853_v62 = vld [vmem:[%s4298_s5 + $0x354] ss:$8 sps:$4 sm:$0xff]  }
 0x23e   :  { %v1474_v60 = vmul.f32 %v1458_v18, %v1138_v36  ;;  %v2859_v43 = vld [vmem:[%s4298_s5 + $0x344] ss:$8 sps:$4 sm:$0xff]   ;;  %v2865_v37 = vld [vmem:[%s4298_s5 + $0x334] ss:$8 sps:$4 sm:$0xff]  }
 0x23f   :  { %v1027_v49 = vpop.f32.mrf.mxu0  ;;  %v1070_v23 = vpop.f32.mrf.mxu1  ;;  %v1640_v24 = vpack.c.bf16 %v1504_v29, %v1496_v58  ;;  %v1641_v22 = vpack.c.bf16 %v1505_v28, %v1497_v31 }
 0x240   :  { %v3882_v54 = vadd.f32 %v1027_v49, %v3780_v63  ;;  %v3885_v55 = vadd.f32 %v1070_v23, %v3785_v11  ;;  %v1490_v15 = vadd.f32 1.0, %v1474_v60  ;;  %v2845_v23 = vld [vmem:[%s4298_s5 + $0x360] ss:$8 sps:$4 sm:$0xff]  }
 0x241   :  { %v1029_v57 = vpop.f32.mrf.mxu0  ;;  %v1072_v6 = vpop.f32.mrf.mxu1  ;;  %2331 = vmatprep.mubr.bf16.mxu0 %v1640_v24 }
 0x242   :  { %v3892_v3 = vmul.f32 0.70710677, %v3882_v54  ;;  %v3895_v26 = vmul.f32 0.70710677, %v3885_v55  ;;  %v3898_v17 = vadd.f32 %v1029_v57, %v3803_v20  ;;  %v1506_v4 = vmul.f32 %v1490_v15, %v1090_v12  ;;  %2332 = vmatmul.mubr.bf16.vlgmr.msra.gmra.mxu0 %v1639_v27  ;;  %v2857_v12 = vld [vmem:[%s4298_s5 + $0x340] ss:$8 sps:$4 sm:$0xff]  }
 0x243   :  { %v3922_v21 = vadd.f32 %v1072_v6, %v3830_v59  ;;  %v1031_v32 = vpop.f32.mrf.mxu0  ;;  %2386 = vmatpush1.bf16.msra.mxu0 %v2836_v35  ;;  %v1074_v33 = vpop.f32.mrf.mxu1  ;;  %v2860_v6 = vld [vmem:[%s4298_s5 + $0x230] ss:$8 sps:$4 sm:$0xff]   ;;  %v2868_v15 = vld [vmem:[%s4298_s5 + $0x224] ss:$8 sps:$4 sm:$0xff]  }
 0x244   :  { %v3902_v7 = vand.u32 2147483647, %v3892_v3  ;;  %v3909_v10 = vand.u32 2147483647, %v3895_v26  ;;  %v3919_v1 = vmul.f32 0.70710677, %v3898_v17  ;;  %v1642_v50 = vpack.c.bf16 %v1506_v4, %v1498_v2  ;;  %2387 = vmatprep.subr.bf16.mxu0 %v2844_v39 }
 0x245   :  { %v3941_v30 = vmul.f32 0.70710677, %v3922_v21  ;;  %v3944_v44 = vadd.f32 %v1031_v32, %v3780_v63  ;;  %v1033_v48 = vpop.f32.mrf.mxu0  ;;  %v3950_v53 = vadd.f32 %v1074_v33, %v3785_v11  ;;  %v1076_v29 = vpop.f32.mrf.mxu1  ;;  %vm1115_vm8 = vcmp.ge.f32.partialorder %v3892_v3, 0.0  ;;  %v2913_v3 = vld [vmem:[%s4298_s5 + $0x3b4] ss:$8 sps:$4 sm:$0xff]  }
 0x246   :  { %v1163_v16 = vmul.f32 0.3275911, %v3902_v7  ;;  %v1165_v0 = vmul.f32 0.3275911, %v3909_v10  ;;  %v3925_v14 = vand.u32 2147483647, %v3919_v1  ;;  %2374 = vmatprep.mubr.bf16.mxu1 %v1642_v50  ;;  %v3965_v11 = vadd.f32 %v1033_v48, %v3803_v20 }
 0x247   :  { %2375 = vmatmul.mubr.bf16.vlgmr.msra.gmra.mxu1 %v1641_v22  ;;  %2388 = vmatpush1.bf16.msra.mxu0 %v2842_v51  ;;  %v3956_v56 = vand.u32 2147483647, %v3941_v30  ;;  %v3959_v63 = vmul.f32 0.70710677, %v3944_v44  ;;  %v3975_v58 = vmul.f32 0.70710677, %v3950_v53  ;;  %v3998_v35 = vadd.f32 %v1076_v29, %v3830_v59 }
 0x248   :  { %v1179_v52 = vadd.f32 1.0, %v1163_v16  ;;  %v1181_v47 = vadd.f32 1.0, %v1165_v0  ;;  %v1164_v34 = vmul.f32 0.3275911, %v3925_v14  ;;  %2429 = vmatpush1.bf16.msra.mxu1 %v2839_v13  ;;  %2389 = vmatprep.subr.bf16.mxu0 %v2850_v19  ;;  %v2854_v20 = vld [vmem:[%s4298_s5 + $0x240] ss:$8 sps:$4 sm:$0xff]  }
 0x249   :  { %2430 = vmatprep.subr.bf16.mxu1 %v2847_v42  ;;  %v1166_v36 = vmul.f32 0.3275911, %v3956_v56  ;;  %v3972_v57 = vand.u32 2147483647, %v3959_v63  ;;  %v3988_v61 = vand.u32 2147483647, %v3975_v58 }
 0x24a   :  { %2968 = vrcp.f32 %v1179_v52  ;;  %v1180_v49 = vadd.f32 1.0, %v1164_v34  ;;  %v3991_v60 = vmul.f32 0.70710677, %v3965_v11  ;;  %v1371_v16 = vsub.f32 0.0, %v3902_v7  ;;  %v2863_v52 = vld [vmem:[%s4298_s5 + $0x330] ss:$8 sps:$4 sm:$0xff]  }
 0x24b   :  { %2970 = vrcp.f32 %v1181_v47  ;;  %2390 = vmatpush1.bf16.msra.mxu0 %v2848_v45  ;;  %v1182_v18 = vadd.f32 1.0, %v1166_v36  ;;  %v1171_v5 = vmul.f32 0.3275911, %v3972_v57  ;;  %v1173_v24 = vmul.f32 0.3275911, %v3988_v61 }
 0x24c   :  { %2972 = vrcp.f32 %v1180_v49  ;;  %2431 = vmatpush1.bf16.msra.mxu1 %v2845_v23  ;;  %2391 = vmatprep.subr.bf16.mxu0 %v2856_v25  ;;  %v4004_v27 = vand.u32 2147483647, %v3991_v60  ;;  %v1373_v2 = vsub.f32 0.0, %v3909_v10  ;;  %v4028_v31 = vmul.f32 0.70710677, %v3998_v35 }
 0x24d   :  { %2432 = vmatprep.subr.bf16.mxu1 %v2853_v62  ;;  %2974 = vrcp.f32 %v1182_v18  ;;  %v1187_v9 = vadd.f32 1.0, %v1171_v5  ;;  %v1189_v39 = vadd.f32 1.0, %v1173_v24  ;;  %v2866_v47 = vld [vmem:[%s4298_s5 + $0x220] ss:$8 sps:$4 sm:$0xff]   ;;  %v2871_v51 = vld [vmem:[%s4298_s5 + $0x324] ss:$8 sps:$4 sm:$0xff]   ;;  %v1387_v22 = vmul.f32 %v1371_v16, %v3902_v7 }
 0x24e   :  { %v1172_v4 = vmul.f32 0.3275911, %v4004_v27  ;;  %v1372_v13 = vsub.f32 0.0, %v3925_v14  ;;  %v2874_v19 = vld [vmem:[%s4298_s5 + $0x214] ss:$8 sps:$4 sm:$0xff]   ;;  %v1374_v42 = vsub.f32 0.0, %v3956_v56  ;;  %v1389_v45 = vmul.f32 %v1373_v2, %v3909_v10 }
 0x24f   :  { %2392 = vmatpush1.bf16.msra.mxu0 %v2854_v20  ;;  %2976 = vrcp.f32 %v1187_v9  ;;  %v4043_v48 = vand.u32 2147483647, %v4028_v31  ;;  %v1379_v25 = vsub.f32 0.0, %v3972_v57  ;;  %v2869_v7 = vld [vmem:[%s4298_s5 + $0x320] ss:$8 sps:$4 sm:$0xff]   ;;  %v1381_v29 = vsub.f32 0.0, %v3988_v61 }
 0x250   :  { %2433 = vmatpush1.bf16.msra.mxu1 %v2851_v46  ;;  %2393 = vmatprep.subr.bf16.mxu0 %v2862_v38  ;;  %2978 = vrcp.f32 %v1189_v39  ;;  %v1188_v33 = vadd.f32 1.0, %v1172_v4  ;;  %v2872_v46 = vld [vmem:[%s4298_s5 + $0x210] ss:$8 sps:$4 sm:$0xff]   ;;  %v2877_v10 = vld [vmem:[%s4298_s5 + $0x314] ss:$8 sps:$4 sm:$0xff]   ;;  %v1388_v5 = vmul.f32 %v1372_v13, %v3925_v14  ;;  %v1390_v24 = vmul.f32 %v1374_v42, %v3956_v56 }
 0x251   :  { %2434 = vmatprep.subr.bf16.mxu1 %v2859_v43  ;;  %v1174_v36 = vmul.f32 0.3275911, %v4043_v48  ;;  %v2880_v38 = vld [vmem:[%s4298_s5 + $0x204] ss:$8 sps:$4 sm:$0xff]   ;;  %v1407_v43 = vmul.f32 1.442695, %v1387_v22 }
 0x252   :  { %2980 = vrcp.f32 %v1188_v33  ;;  %v2875_v14 = vld [vmem:[%s4298_s5 + $0x310] ss:$8 sps:$4 sm:$0xff]   ;;  %v2878_v56 = vld [vmem:[%s4298_s5 + $0x200] ss:$8 sps:$4 sm:$0xff]   ;;  %v1409_v4 = vmul.f32 1.442695, %v1388_v5 }
 0x253   :  { %2394 = vmatpush1.bf16.msra.mxu0 %v2860_v6  ;;  %v1190_v6 = vadd.f32 1.0, %v1174_v36  ;;  %v2881_v22 = vld [vmem:[%s4298_s5 + $0x300] ss:$8 sps:$4 sm:$0xff]   ;;  %vm1117_vm9 = vcmp.ge.f32.partialorder %v3895_v26, 0.0  ;;  %vm1123_vm10 = vcmp.ge.f32.partialorder %v3959_v63, 0.0  ;;  %vm1116_vm11 = vcmp.ge.f32.partialorder %v3919_v1, 0.0 }
 0x254   :  { %2435 = vmatpush1.bf16.msra.mxu1 %v2857_v12  ;;  %2395 = vmatprep.subr.bf16.mxu0 %v2868_v15  ;;  %v1411_v12 = vmul.f32 1.442695, %v1389_v45  ;;  %v1395_v15 = vmul.f32 %v1379_v25, %v3972_v57  ;;  %v2886_v57 = vld [vmem:[%s4298_s5 + $0x2f4] ss:$8 sps:$4 sm:$0xff]   ;;  %v2884_v45 = vld [vmem:[%s4298_s5 + $0x2f0] ss:$8 sps:$4 sm:$0xff]  }
 0x255   :  { %2436 = vmatprep.subr.bf16.mxu1 %v2865_v37  ;;  %2982 = vrcp.f32 %v1190_v6  ;;  %vm1125_vm12 = vcmp.ge.f32.partialorder %v3975_v58, 0.0  ;;  %vm1124_vm13 = vcmp.ge.f32.partialorder %v3991_v60, 0.0  ;;  %v2917_v1 = vld [vmem:[%s4298_s5 + $0x3a0] ss:$8 sps:$4 sm:$0xff]   ;;  %vm1118_vm14 = vcmp.ge.f32.partialorder %v3941_v30, 0.0 }
 0x256   :  { %2984 = vpow2.f32 %v1407_v43  ;;  %v1140_v26 = vsel %vm1124_vm13, 1.0, %v3004_v8  ;;  %vm1126_vm15 = vcmp.ge.f32.partialorder %v4028_v31, 0.0  ;;  %v2923_v30 = vld [vmem:[%s4298_s5 + $0x390] ss:$8 sps:$4 sm:$0xff]  }
 0x257   :  { %v4012_v59 = vpop.eup %2968  ;;  %2396 = vmatpush1.bf16.msra.mxu0 %v2866_v47  ;;  %2986 = vpow2.f32 %v1411_v12 }
 0x258   :  { %v4018_v28 = vpop.eup %2970  ;;  %v1227_v0 = vmul.f32 1.0614054, %v4012_v59  ;;  %2437 = vmatpush1.bf16.msra.mxu1 %v2863_v52  ;;  %2397 = vmatprep.subr.bf16.mxu0 %v2874_v19  ;;  %v1423_v19 = vmul.f32 1.442695, %v1395_v15  ;;  %2988 = vpow2.f32 %v1409_v4  ;;  %v2890_v15 = vld [vmem:[%s4298_s5 + $0x2e0] ss:$8 sps:$4 sm:$0xff]  }
 0x259   :  { %v1229_v32 = vmul.f32 1.0614054, %v4018_v28  ;;  %v4045_v49 = vpop.eup %2972  ;;  %2438 = vmatprep.subr.bf16.mxu1 %v2871_v51  ;;  %v1413_v51 = vmul.f32 1.442695, %v1390_v24  ;;  %v2895_v4 = vld [vmem:[%s4298_s5 + $0x3e4] ss:$8 sps:$4 sm:$0xff]  }
 0x25a   :  { %v1243_v50 = vadd.f32 -1.4531521, %v1227_v0  ;;  %v1228_v62 = vmul.f32 1.0614054, %v4045_v49  ;;  %v4072_v16 = vpop.eup %2974  ;;  %v1380_v0 = vsub.f32 0.0, %v4004_v27 }
 0x25b   :  { %v1245_v34 = vadd.f32 -1.4531521, %v1229_v32  ;;  %2398 = vmatpush1.bf16.msra.mxu0 %v2872_v46  ;;  %v1230_v52 = vmul.f32 1.0614054, %v4072_v16  ;;  %v1397_v32 = vmul.f32 %v1381_v29, %v3988_v61  ;;  %v2889_v46 = vld [vmem:[%s4298_s5 + $0x3f4] ss:$8 sps:$4 sm:$0xff]   ;;  %2990 = vpow2.f32 %v1413_v51 }
 0x25c   :  { %v1259_v23 = vmul.f32 %v4012_v59, %v1243_v50  ;;  %v1244_v9 = vadd.f32 -1.4531521, %v1228_v62  ;;  %2439 = vmatpush1.bf16.msra.mxu1 %v2869_v7  ;;  %2399 = vmatprep.subr.bf16.mxu0 %v2880_v38  ;;  %v2883_v50 = vld [vmem:[%s4298_s5 + $0x304] ss:$8 sps:$4 sm:$0xff]   ;;  %v4088_v13 = vpop.eup %2976  ;;  %2992 = vpow2.f32 %v1423_v19  ;;  %v2887_v38 = vld [vmem:[%s4298_s5 + $0x3f0] ss:$8 sps:$4 sm:$0xff]  }
 0x25d   :  { %v1261_v18 = vmul.f32 %v4018_v28, %v1245_v34  ;;  %2440 = vmatprep.subr.bf16.mxu1 %v2877_v10  ;;  %v1246_v33 = vadd.f32 -1.4531521, %v1230_v52  ;;  %v1235_v42 = vmul.f32 1.0614054, %v4088_v13  ;;  %v4099_v25 = vpop.eup %2978  ;;  %v1427_v36 = vmul.f32 1.442695, %v1397_v32 }
 0x25e   :  { %v1275_v20 = vadd.f32 1.4214138, %v1259_v23  ;;  %v1260_v37 = vmul.f32 %v4045_v49, %v1244_v9  ;;  %v1396_v23 = vmul.f32 %v1380_v0, %v4004_v27  ;;  %v2892_v27 = vld [vmem:[%s4298_s5 + $0x2e4] ss:$8 sps:$4 sm:$0xff]   ;;  %v1237_v29 = vmul.f32 1.0614054, %v4099_v25 }
 0x25f   :  { %v1277_v2 = vadd.f32 1.4214138, %v1261_v18  ;;  %2400 = vmatpush1.bf16.msra.mxu0 %v2878_v56  ;;  %v1262_v62 = vmul.f32 %v4072_v16, %v1246_v33  ;;  %v1382_v18 = vsub.f32 0.0, %v4043_v48  ;;  %v4114_v43 = vpop.eup %2980  ;;  %2994 = vpow2.f32 %v1427_v36  ;;  %v2893_v19 = vld [vmem:[%s4298_s5 + $0x3e0] ss:$8 sps:$4 sm:$0xff]  }
 0x260   :  { %v1291_v39 = vmul.f32 %v4012_v59, %v1275_v20  ;;  %v1276_v47 = vadd.f32 1.4214138, %v1260_v37  ;;  %2441 = vmatpush1.bf16.msra.mxu1 %v2875_v14  ;;  %2401 = vmatprep.subr.bf16.mxu0 %v2886_v57  ;;  %v1251_v20 = vadd.f32 -1.4531521, %v1235_v42  ;;  %v1425_v12 = vmul.f32 1.442695, %v1396_v23 }
 0x261   :  { %v1293_v7 = vmul.f32 %v4018_v28, %v1277_v2  ;;  %2442 = vmatprep.subr.bf16.mxu1 %v2883_v50  ;;  %v1278_v5 = vadd.f32 1.4214138, %v1262_v62  ;;  %v2898_v14 = vld [vmem:[%s4298_s5 + $0x2d4] ss:$8 sps:$4 sm:$0xff]   ;;  %v1253_v0 = vadd.f32 -1.4531521, %v1237_v29  ;;  %v1398_v2 = vmul.f32 %v1382_v18, %v4043_v48 }
 0x262   :  { %v1307_v61 = vadd.f32 -0.28449672, %v1291_v39  ;;  %v1292_v34 = vmul.f32 %v4045_v49, %v1276_v47  ;;  %v1267_v6 = vmul.f32 %v4088_v13, %v1251_v20  ;;  %v1236_v56 = vmul.f32 1.0614054, %v4114_v43  ;;  %v2896_v48 = vld [vmem:[%s4298_s5 + $0x2d0] ss:$8 sps:$4 sm:$0xff]  }
 0x263   :  { %2402 = vmatpush2.bf16.msra.mxu0 %v2884_v45  ;;  %v1309_v39 = vadd.f32 -0.28449672, %v1293_v7  ;;  %v1294_v37 = vmul.f32 %v4072_v16, %v1278_v5  ;;  %v1269_v47 = vmul.f32 %v4099_v25, %v1253_v0  ;;  %2996 = vpow2.f32 %v1425_v12  ;;  %v2901_v45 = vld [vmem:[%s4298_s5 + $0x3d4] ss:$8 sps:$4 sm:$0xff]   ;;  %v2904_v7 = vld [vmem:[%s4298_s5 + $0x2c4] ss:$8 sps:$4 sm:$0xff]  }
 0x264   :  { %v1308_v10 = vadd.f32 -0.28449672, %v1292_v34  ;;  %v1323_v9 = vmul.f32 %v4012_v59, %v1307_v61  ;;  %2443 = vmatpush1.bf16.msra.mxu1 %v2881_v22  ;;  %2403 = vmatprep.subr.bf16.mxu0 %v2892_v27  ;;  %v1283_v57 = vadd.f32 1.4214138, %v1267_v6  ;;  %v1252_v51 = vadd.f32 -1.4531521, %v1236_v56  ;;  %v4139_v22 = vpop.eup %2982 }
 0x265   :  { %2444 = vmatprep.subr.bf16.mxu1 %v2889_v46  ;;  %v1310_v32 = vadd.f32 -0.28449672, %v1294_v37  ;;  %v1325_v61 = vmul.f32 %v4018_v28, %v1309_v39  ;;  %v1285_v42 = vadd.f32 1.4214138, %v1269_v47  ;;  %v1238_v36 = vmul.f32 1.0614054, %v4139_v22  ;;  %v2985_v27 = vpop.eup %2984 }
 0x266   :  { %v1324_v24 = vmul.f32 %v4045_v49, %v1308_v10  ;;  %v1339_v50 = vadd.f32 0.2548296, %v1323_v9  ;;  %v1299_v33 = vmul.f32 %v4088_v13, %v1283_v57  ;;  %v1268_v23 = vmul.f32 %v4114_v43, %v1252_v51  ;;  %v2899_v5 = vld [vmem:[%s4298_s5 + $0x3d0] ss:$8 sps:$4 sm:$0xff]   ;;  %v2987_v29 = vpop.eup %2986  ;;  %v2902_v12 = vld [vmem:[%s4298_s5 + $0x2c0] ss:$8 sps:$4 sm:$0xff]  }
 0x267   :  { %2404 = vmatpush2.bf16.msra.mxu0 %v2890_v15  ;;  %v1326_v34 = vmul.f32 %v4072_v16, %v1310_v32  ;;  %v1429_v46 = vmul.f32 1.442695, %v1398_v2  ;;  %v1301_v20 = vmul.f32 %v4099_v25, %v1285_v42  ;;  %v1254_v6 = vadd.f32 -1.4531521, %v1238_v36  ;;  %v2910_v39 = vld [vmem:[%s4298_s5 + $0x2b4] ss:$8 sps:$4 sm:$0xff]  }
 0x268   :  { %v1340_v52 = vadd.f32 0.2548296, %v1324_v24  ;;  %2445 = vmatpush2.bf16.msra.mxu1 %v2887_v38  ;;  %2405 = vmatprep.subr.bf16.mxu0 %v2898_v14  ;;  %v1315_v62 = vadd.f32 -0.28449672, %v1299_v33  ;;  %v1284_v18 = vadd.f32 1.4214138, %v1268_v23  ;;  %v1355_v38 = vmul.f32 %v4012_v59, %v1339_v50  ;;  %v2989_v59 = vpop.eup %2988 }
 0x269   :  { %2446 = vmatprep.subr.bf16.mxu1 %v2895_v4  ;;  %v1342_v9 = vadd.f32 0.2548296, %v1326_v34  ;;  %v1317_v15 = vadd.f32 -0.28449672, %v1301_v20  ;;  %v1270_v0 = vmul.f32 %v4139_v22, %v1254_v6  ;;  %2998 = vpow2.f32 %v1429_v46  ;;  %v2907_v56 = vld [vmem:[%s4298_s5 + $0x3c4] ss:$8 sps:$4 sm:$0xff]   ;;  %v2991_v57 = vpop.eup %2990 }
 0x26a   :  { %v1356_v10 = vmul.f32 %v4045_v49, %v1340_v52  ;;  %v1331_v24 = vmul.f32 %v4088_v13, %v1315_v62  ;;  %v1341_v49 = vadd.f32 0.2548296, %v1325_v61  ;;  %v1300_v14 = vmul.f32 %v4114_v43, %v1284_v18  ;;  %v2993_v32 = vpop.eup %2992  ;;  %v2914_v18 = vld [vmem:[%s4298_s5 + $0x2a0] ss:$8 sps:$4 sm:$0xff]  }
 0x26b   :  { %2406 = vmatpush2.bf16.msra.mxu0 %v2896_v48  ;;  %v1333_v4 = vmul.f32 %v4099_v25, %v1317_v15  ;;  %v1435_v47 = vmul.f32 %v2985_v27, %v1355_v38  ;;  %v1358_v51 = vmul.f32 %v4072_v16, %v1342_v9  ;;  %v1286_v33 = vadd.f32 1.4214138, %v1270_v0  ;;  %v2908_v48 = vld [vmem:[%s4298_s5 + $0x2b0] ss:$8 sps:$4 sm:$0xff]  }
 0x26c   :  { %2447 = vmatpush2.bf16.msra.mxu1 %v2893_v19  ;;  %2407 = vmatprep.subr.bf16.mxu0 %v2904_v7  ;;  %v1347_v37 = vadd.f32 0.2548296, %v1331_v24  ;;  %v1436_v2 = vmul.f32 %v2989_v59, %v1356_v10  ;;  %v1316_v52 = vadd.f32 -0.28449672, %v1300_v14  ;;  %v2905_v19 = vld [vmem:[%s4298_s5 + $0x3c0] ss:$8 sps:$4 sm:$0xff]   ;;  %v1357_v34 = vmul.f32 %v4018_v28, %v1341_v49  ;;  %v2995_v28 = vpop.eup %2994 }
 0x26d   :  { %2448 = vmatprep.subr.bf16.mxu1 %v2901_v45  ;;  %v1131_v61 = vsel %vm1115_vm8, 1.0, %v3004_v8  ;;  %v1349_v42 = vadd.f32 0.2548296, %v1333_v4  ;;  %v1302_v45 = vmul.f32 %v4139_v22, %v1286_v33  ;;  %v1451_v46 = vsub.f32 1.0, %v1435_v47 }
 0x26e   :  { %v1363_v50 = vmul.f32 %v4088_v13, %v1347_v37  ;;  %v1332_v16 = vmul.f32 %v4114_v43, %v1316_v52  ;;  %v2916_v13 = vld [vmem:[%s4298_s5 + $0x2a4] ss:$8 sps:$4 sm:$0xff]   ;;  %v1452_v7 = vsub.f32 1.0, %v1436_v2  ;;  %v1438_v27 = vmul.f32 %v2991_v57, %v1358_v51 }
 0x26f   :  { %2408 = vmatpush2.bf16.msra.mxu0 %v2902_v12  ;;  %v1365_v62 = vmul.f32 %v4099_v25, %v1349_v42  ;;  %v1318_v20 = vadd.f32 -0.28449672, %v1302_v45  ;;  %v1437_v38 = vmul.f32 %v2987_v29, %v1357_v34  ;;  %v1139_v9 = vsel %vm1123_vm10, 1.0, %v3004_v8  ;;  %v2911_v25 = vld [vmem:[%s4298_s5 + $0x3b0] ss:$8 sps:$4 sm:$0xff]  }
 0x270   :  { %2449 = vmatpush2.bf16.msra.mxu1 %v2899_v5  ;;  %2409 = vmatprep.subr.bf16.mxu0 %v2910_v39  ;;  %v1443_v23 = vmul.f32 %v2993_v32, %v1363_v50  ;;  %v1348_v36 = vadd.f32 0.2548296, %v1332_v16  ;;  %v2997_v5 = vpop.eup %2996  ;;  %v2922_v12 = vld [vmem:[%s4298_s5 + $0x294] ss:$8 sps:$4 sm:$0xff]   ;;  %v1132_v29 = vsel %vm1116_vm11, 1.0, %v3004_v8  ;;  %v1467_v59 = vmul.f32 %v1451_v46, %v1131_v61 }
 0x271   :  { %2450 = vmatprep.subr.bf16.mxu1 %v2907_v56  ;;  %v1445_v24 = vmul.f32 %v2995_v28, %v1365_v62  ;;  %v1334_v63 = vmul.f32 %v4139_v22, %v1318_v20  ;;  %v1468_v15 = vmul.f32 %v1452_v7, %v1132_v29  ;;  %v1454_v37 = vsub.f32 1.0, %v1438_v27  ;;  %v2920_v56 = vld [vmem:[%s4298_s5 + $0x290] ss:$8 sps:$4 sm:$0xff]   ;;  %v2928_v32 = vld [vmem:[%s4298_s5 + $0x284] ss:$8 sps:$4 sm:$0xff]  }
 0x272   :  { %v1459_v10 = vsub.f32 1.0, %v1443_v23  ;;  %v1364_v6 = vmul.f32 %v4114_v43, %v1348_v36  ;;  %v2919_v43 = vld [vmem:[%s4298_s5 + $0x3a4] ss:$8 sps:$4 sm:$0xff]   ;;  %v1133_v57 = vsel %vm1117_vm9, 1.0, %v3004_v8  ;;  %v1453_v2 = vsub.f32 1.0, %v1437_v38 }
 0x273   :  { %2410 = vmatpush2.bf16.msra.mxu0 %v2908_v48  ;;  %v1461_v14 = vsub.f32 1.0, %v1445_v24  ;;  %v1350_v0 = vadd.f32 0.2548296, %v1334_v63  ;;  %v1091_v4 = vmul.f32 0.5, %v3944_v44  ;;  %v1141_v51 = vsel %vm1125_vm12, 1.0, %v3004_v8 }
 0x274   :  { %2451 = vmatpush2.bf16.msra.mxu1 %v2905_v19  ;;  %2411 = vmatprep.subr.bf16.mxu0 %v2916_v13  ;;  %v1475_v49 = vmul.f32 %v1459_v10, %v1139_v9  ;;  %v1444_v39 = vmul.f32 %v2997_v5, %v1364_v6  ;;  %v2925_v44 = vld [vmem:[%s4298_s5 + $0x394] ss:$8 sps:$4 sm:$0xff]   ;;  %v1484_v19 = vadd.f32 1.0, %v1468_v15  ;;  %v1134_v48 = vsel %vm1118_vm14, 1.0, %v3004_v8  ;;  %v2931_v62 = vld [vmem:[%s4298_s5 + $0x384] ss:$8 sps:$4 sm:$0xff]  }
 0x275   :  { %2452 = vmatprep.subr.bf16.mxu1 %v2913_v3  ;;  %v1366_v50 = vmul.f32 %v4139_v22, %v1350_v0  ;;  %v1477_v61 = vmul.f32 %v1461_v14, %v1141_v51  ;;  %v1483_v34 = vadd.f32 1.0, %v1467_v59  ;;  %v1470_v42 = vmul.f32 %v1454_v37, %v1134_v48  ;;  %v2926_v22 = vld [vmem:[%s4298_s5 + $0x280] ss:$8 sps:$4 sm:$0xff]  }
 0x276   :  { %v1460_v52 = vsub.f32 1.0, %v1444_v39  ;;  %v1491_v47 = vadd.f32 1.0, %v1475_v49  ;;  %v2999_v33 = vpop.eup %2998  ;;  %v1469_v16 = vmul.f32 %v1453_v2, %v1133_v57  ;;  %v1084_v13 = vmul.f32 0.5, %v3898_v17  ;;  %v2929_v5 = vld [vmem:[%s4298_s5 + $0x380] ss:$8 sps:$4 sm:$0xff]  }
 0x277   :  { %2412 = vmatpush2.bf16.msra.mxu0 %v2914_v18  ;;  %v1446_v60 = vmul.f32 %v2999_v33, %v1366_v50  ;;  %v1092_v23 = vmul.f32 0.5, %v3965_v11  ;;  %v1083_v3 = vmul.f32 0.5, %v3882_v54  ;;  %v1493_v17 = vadd.f32 1.0, %v1477_v61 }
 0x278   :  { %2453 = vmatpush2.bf16.msra.mxu1 %v2911_v25  ;;  %2413 = vmatprep.subr.bf16.mxu0 %v2922_v12  ;;  %v1476_v58 = vmul.f32 %v1460_v52, %v1140_v26  ;;  %v1507_v28 = vmul.f32 %v1491_v47, %v1091_v4  ;;  %v1500_v36 = vmul.f32 %v1484_v19, %v1084_v13  ;;  %v1142_v11 = vsel %vm1126_vm15, 1.0, %v3004_v8  ;;  %v3001_v13 = vld [vmem:[%s4296_s0 + $0x8] sm:$0xff] }
 0x279   :  { %2454 = vmatprep.subr.bf16.mxu1 %v2919_v43  ;;  %v1462_v7 = vsub.f32 1.0, %v1446_v60  ;;  %v1499_v27 = vmul.f32 %v1483_v34, %v1083_v3  ;;  %v1486_v10 = vadd.f32 1.0, %v1470_v42  ;;  %v1485_v18 = vadd.f32 1.0, %v1469_v16  ;;  %v3000_v34 = vld [vmem:[%s4296_s0] sm:$0xff]  ;;  %v3002_v3 = vld [vmem:[%s4296_s0 + $0x10] sm:$0xff] }
 0x27a   :  { %v1492_v45 = vadd.f32 1.0, %v1476_v58  ;;  %v1093_v54 = vmul.f32 0.5, %v3950_v53  ;;  %v1086_v9 = vmul.f32 0.5, %v3922_v21  ;;  %v1094_v6 = vmul.f32 0.5, %v3998_v35  ;;  %v1647_v21 = vld [vmem:[%s4302_s6] sm:$0x3] }
 0x27b   :  { %2414 = vmatpush2.bf16.msra.mxu0 %v2920_v56  ;;  %v1478_v20 = vmul.f32 %v1462_v7, %v1142_v11  ;;  %v1643_v24 = vpack.c.bf16 %v1507_v28, %v1499_v27  ;;  %v1085_v8 = vmul.f32 0.5, %v3885_v55  ;;  %v1652_v55 = vrot.slane %v1647_v21, %v3299_v41 }
 0x27c   :  { %2455 = vmatpush2.bf16.msra.mxu1 %v2917_v1  ;;  %2415 = vmatprep.subr.bf16.mxu0 %v2928_v32  ;;  %v1508_v46 = vmul.f32 %v1492_v45, %v1092_v23  ;;  %v1509_v25 = vmul.f32 %v1493_v17, %v1093_v54  ;;  %v1502_v12 = vmul.f32 %v1486_v10, %v1086_v9 }
 0x27d   :  { %2456 = vmatprep.subr.bf16.mxu1 %v2925_v44  ;;  %v1494_v31 = vadd.f32 1.0, %v1478_v20  ;;  %v1501_v53 = vmul.f32 %v1485_v18, %v1085_v8  ;;  %v1656_v14 = vrot.slane %v1647_v21, %v3296_v40 }
 0x27e   :  { %v1644_v38 = vpack.c.bf16 %v1508_v46, %v1500_v36 }
 0x27f   :  { %2416 = vmatpush2.bf16.msra.mxu0 %v2926_v22  ;;  %v1510_v29 = vmul.f32 %v1494_v31, %v1094_v6  ;;  %v1645_v63 = vpack.c.bf16 %v1509_v25, %v1501_v53 }
 0x280   :  { %2457 = vmatpush2.bf16.msra.mxu1 %v2923_v30  ;;  %2417 = vmatprep.mubr.bf16.mxu0 %v1644_v38 }
 0x281   :  { %2458 = vmatprep.subr.bf16.mxu1 %v2931_v62  ;;  %v1646_v49 = vpack.c.bf16 %v1510_v29, %v1502_v12  ;;  %v3003_v62 = vld [vmem:[%s4296_s0 + $0x18] sm:$0xff] }
 0x282   :  { %2418 = vmatmul.mubr.bf16.vlgmr.msra.gmra.mxu0 %v1643_v24 }
 0x283   :  { %2460 = vmatprep.mubr.bf16.mxu1 %v1646_v49 }
 0x284   :  { %2459 = vmatpush2.bf16.msra.mxu1 %v2929_v5 }
 0x287   :  { %2461 = vmatmul.mubr.bf16.vlgmr.msra.gmra.mxu1 %v1645_v63 }
 0x302   :  { %v2333_v43 = vpop.f32.mrf.mxu0 }
 0x303   :  { %v2334_v59 = vadd.f32 %v2333_v43, %v1652_v55 }
 0x304   :  { %v2335_v35 = vpop.f32.mrf.mxu0 }
 0x305   :  { %v2336_v37 = vadd.f32 %v2335_v35, %v1656_v14 }
 0x306   :  { %v2337_v39 = vpop.f32.mrf.mxu0 }
 0x307   :  { %v2376_v15 = vpop.f32.mrf.mxu1  ;;  %v2338_v2 = vadd.f32 %v2337_v39, %v1652_v55 }
 0x308   :  { %v2339_v0 = vpop.f32.mrf.mxu0  ;;  %v2377_v57 = vadd.f32 %v2376_v15, %v2334_v59 }
 0x309   :  { %v2378_v1 = vpop.f32.mrf.mxu1  ;;  %v2340_v32 = vadd.f32 %v2339_v0, %v1656_v14 }
 0x30a   :  { %v2379_v52 = vadd.f32 %v2378_v1, %v2336_v37 }
 0x30b   :  { %v2380_v56 = vpop.f32.mrf.mxu1 }
 0x30c   :  { %v2381_v50 = vadd.f32 %v2380_v56, %v2338_v2 }
 0x30d   :  { %v2382_v26 = vpop.f32.mrf.mxu1 }
 0x30e   :  { %v2383_v19 = vadd.f32 %v2382_v26, %v2340_v32 }
 0x342   :  { %v2419_v4 = vpop.f32.mrf.mxu0 }
 0x343   :  { %v2420_v47 = vadd.f32 %v2419_v4, %v2377_v57 }
 0x344   :  { %v2421_v51 = vpop.f32.mrf.mxu0 }
 0x345   :  { %v2422_v44 = vadd.f32 %v2421_v51, %v2379_v52 }
 0x346   :  { %v2423_v33 = vpop.f32.mrf.mxu0 }
 0x347   :  { %v2462_v41 = vpop.f32.mrf.mxu1  ;;  %v2424_v48 = vadd.f32 %v2423_v33, %v2381_v50 }
 0x348   :  { %v2463_v40 = vadd.f32 %v2462_v41, %v2420_v47  ;;  %v2425_v61 = vpop.f32.mrf.mxu0 }
 0x349   :  { %v2464_v58 = vpop.f32.mrf.mxu1  ;;  %v2426_v22 = vadd.f32 %v2425_v61, %v2383_v19 }
 0x34a   :  { %v2471_v42 = vadd.f32 %v3000_v34, %v2463_v40  ;;  %v2465_v60 = vadd.f32 %v2464_v58, %v2422_v44 }
 0x34b   :  { %v2466_v16 = vpop.f32.mrf.mxu1 }
 0x34c   :  { %2475 = vst [vmem:[%s4303_s7] sm:$0xff] %v2471_v42  ;;  %v2472_v23 = vadd.f32 %v3001_v13, %v2465_v60  ;;  %v2467_v45 = vadd.f32 %v2466_v16, %v2424_v48 }
 0x34d   :  { %v2468_v30 = vpop.f32.mrf.mxu1 }
 0x34e   :  { %2476 = vst [vmem:[%s4303_s7 + $0x8] sm:$0xff] %v2472_v23  ;;  %v2473_v28 = vadd.f32 %v3002_v3, %v2467_v45  ;;  %v2469_v7 = vadd.f32 %v2468_v30, %v2426_v22 }
 0x350   :  { %2477 = vst [vmem:[%s4303_s7 + $0x10] sm:$0xff] %v2473_v28  ;;  %v2474_v36 = vadd.f32 %v3003_v62, %v2469_v7 }
 0x352   :  { %2478 = vst [vmem:[%s4303_s7 + $0x18] sm:$0xff] %v2474_v36 }

// kernel: feat_pred_head_forward.13
= control target key start
LH: loop header
LB: loop body
LE: loop exit
PB: predicated region body
PF: predicated region fallthrough
CT: control target
= control target key end

     0   :  { %s4422_s0 = inlined_call_operand.vmem [shape: f32[16,256], index: 0, kind: input, shape index: {}]   ;;  %s4423_s1 = inlined_call_operand.vmem [shape: f32[1,256], index: 1, kind: input, shape index: {}]   ;;  %s4424_s2 = inlined_call_operand.vmem [shape: f32[1,256], index: 2, kind: input, shape index: {}]   ;;  %s4425_s3 = inlined_call_operand.vmem [shape: bf16[256,1024], index: 3, kind: input, shape index: {}]   ;;  %s4426_s4 = inlined_call_operand.vmem [shape: f32[1,1024], index: 4, kind: input, shape index: {}]   ;;  %s4427_s5 = inlined_call_operand.vmem [shape: bf16[1024,256], index: 5, kind: input, shape index: {}]   ;;  %s4428_s6 = inlined_call_operand.vmem [shape: f32[1,256], index: 6, kind: input, shape index: {}]   ;;  %s4429_s7 = inlined_call_operand.vmem [shape: f32[1,256], index: 7, kind: input, shape index: {}]   ;;  %s4430_s8 = inlined_call_operand.vmem [shape: f32[1,256], index: 8, kind: input, shape index: {}]   ;;  %s4431_s9 = inlined_call_operand.hbm [shape: f32[16,256], index: 9, kind: output, shape index: {}]  }
   0x1   :  { %v3173_v0 = vld [vmem:[%s4422_s0] sm:$0xff]  ;;  %v3178_v1 = vld [vmem:[%s4422_s0 + $0x8] sm:$0xff]  ;;  %v3183_v2 = vld [vmem:[%s4422_s0 + $0x10] sm:$0xff] }
   0x2   :  { %v39_v3 = vadd.f32 %v3178_v1, %v3173_v0  ;;  %v3190_v4 = vld [vmem:[%s4422_s0 + $0x18] sm:$0xff]  ;;  %v158_v6 = vld [vmem:[%s4425_s3 + $0x1c0] sm:$0xff]  ;;  %v159_v8 = vld [vmem:[%s4425_s3 + $0x1c8] sm:$0xff] }
   0x3   :  { %v42_v5 = vadd.f32 %v3190_v4, %v3183_v2  ;;  %v162_v7 = vld [vmem:[%s4425_s3 + $0x1e0] sm:$0xff]  ;;  %v163_v10 = vld [vmem:[%s4425_s3 + $0x1e8] sm:$0xff] }
   0x4   :  { %40 = vadd.xlane.f32.xlu0 %v39_v3  ;;  %v2623_v9 = vcombine.high %v158_v6, %v162_v7  ;;  %v2622_v11 = vcombine.low %v158_v6, %v162_v7  ;;  %v150_v12 = vld [vmem:[%s4425_s3 + $0x180] sm:$0xff]  ;;  %v2625_v14 = vcombine.high %v159_v8, %v163_v10  ;;  %v2624_v15 = vcombine.low %v159_v8, %v163_v10  ;;  %v151_v17 = vld [vmem:[%s4425_s3 + $0x188] sm:$0xff] }
   0x5   :  { %v154_v13 = vld [vmem:[%s4425_s3 + $0x1a0] sm:$0xff]  ;;  %v155_v18 = vld [vmem:[%s4425_s3 + $0x1a8] sm:$0xff] }
   0x6   :  { %v2615_v16 = vcombine.high %v150_v12, %v154_v13  ;;  %v142_v19 = vld [vmem:[%s4425_s3 + $0x140] sm:$0xff]  ;;  %914 = vmatprep.subr.bf16.mxu0 %v2623_v9  ;;  %v2617_v20 = vcombine.high %v151_v17, %v155_v18  ;;  %v143_v22 = vld [vmem:[%s4425_s3 + $0x148] sm:$0xff]  ;;  %957 = vmatprep.subr.bf16.mxu1 %v2625_v14  ;;  %v2614_v24 = vcombine.low %v150_v12, %v154_v13 }
   0x7   :  { %v146_v21 = vld [vmem:[%s4425_s3 + $0x160] sm:$0xff]  ;;  %v147_v23 = vld [vmem:[%s4425_s3 + $0x168] sm:$0xff]  ;;  %915 = vmatpush1.bf16.msra.mxu0 %v2622_v11  ;;  %958 = vmatpush1.bf16.msra.mxu1 %v2624_v15  ;;  %v2616_v25 = vcombine.low %v151_v17, %v155_v18 }
   0x8   :  { %43 = vadd.xlane.f32.xlu0 %v42_v5  ;;  %916 = vmatprep.subr.bf16.mxu0 %v2615_v16  ;;  %v2607_v26 = vcombine.high %v142_v19, %v146_v21  ;;  %v2609_v27 = vcombine.high %v143_v22, %v147_v23  ;;  %v134_v28 = vld [vmem:[%s4425_s3 + $0x100] sm:$0xff]  ;;  %v135_v30 = vld [vmem:[%s4425_s3 + $0x108] sm:$0xff]  ;;  %v2606_v32 = vcombine.low %v142_v19, %v146_v21 }
   0x9   :  { %959 = vmatprep.subr.bf16.mxu1 %v2617_v20  ;;  %v138_v29 = vld [vmem:[%s4425_s3 + $0x120] sm:$0xff]  ;;  %v139_v31 = vld [vmem:[%s4425_s3 + $0x128] sm:$0xff]  ;;  %v2608_v33 = vcombine.low %v143_v22, %v147_v23 }
   0xa   :  { %v2599_v34 = vcombine.high %v134_v28, %v138_v29  ;;  %v2601_v35 = vcombine.high %v135_v30, %v139_v31  ;;  %v126_v36 = vld [vmem:[%s4425_s3 + $0xc0] sm:$0xff]  ;;  %v127_v38 = vld [vmem:[%s4425_s3 + $0xc8] sm:$0xff]  ;;  %v2598_v40 = vcombine.low %v134_v28, %v138_v29  ;;  %v2600_v43 = vcombine.low %v135_v30, %v139_v31 }
   0xb   :  { %917 = vmatpush1.bf16.msra.mxu0 %v2614_v24  ;;  %960 = vmatpush1.bf16.msra.mxu1 %v2616_v25  ;;  %v130_v37 = vld [vmem:[%s4425_s3 + $0xe0] sm:$0xff]  ;;  %v131_v39 = vld [vmem:[%s4425_s3 + $0xe8] sm:$0xff] }
   0xc   :  { %918 = vmatprep.subr.bf16.mxu0 %v2607_v26  ;;  %961 = vmatprep.subr.bf16.mxu1 %v2609_v27  ;;  %v118_v41 = vld [vmem:[%s4425_s3 + $0x80] sm:$0xff]  ;;  %v2591_v44 = vcombine.high %v126_v36, %v130_v37  ;;  %v119_v45 = vld [vmem:[%s4425_s3 + $0x88] sm:$0xff]  ;;  %v2593_v47 = vcombine.high %v127_v38, %v131_v39  ;;  %v2590_v48 = vcombine.low %v126_v36, %v130_v37 }
   0xd   :  { %v122_v42 = vld [vmem:[%s4425_s3 + $0xa0] sm:$0xff]  ;;  %v123_v46 = vld [vmem:[%s4425_s3 + $0xa8] sm:$0xff]  ;;  %v2592_v51 = vcombine.low %v127_v38, %v131_v39 }
   0xe   :  { %v110_v49 = vld [vmem:[%s4425_s3 + $0x40] sm:$0xff]  ;;  %v2583_v52 = vcombine.high %v118_v41, %v122_v42  ;;  %v111_v53 = vld [vmem:[%s4425_s3 + $0x48] sm:$0xff]  ;;  %v2585_v55 = vcombine.high %v119_v45, %v123_v46  ;;  %v2582_v56 = vcombine.low %v118_v41, %v122_v42  ;;  %v2584_v59 = vcombine.low %v119_v45, %v123_v46 }
   0xf   :  { %919 = vmatpush1.bf16.msra.mxu0 %v2606_v32  ;;  %962 = vmatpush1.bf16.msra.mxu1 %v2608_v33  ;;  %v114_v50 = vld [vmem:[%s4425_s3 + $0x60] sm:$0xff]  ;;  %v115_v54 = vld [vmem:[%s4425_s3 + $0x68] sm:$0xff] }
  0x10   :  { %920 = vmatprep.subr.bf16.mxu0 %v2599_v34  ;;  %963 = vmatprep.subr.bf16.mxu1 %v2601_v35  ;;  %v102_v57 = vld [vmem:[%s4425_s3] sm:$0xff]  ;;  %v2575_v60 = vcombine.high %v110_v49, %v114_v50  ;;  %v103_v61 = vld [vmem:[%s4425_s3 + $0x8] sm:$0xff]  ;;  %v2577_v63 = vcombine.high %v111_v53, %v115_v54  ;;  %v2574_v3 = vcombine.low %v110_v49, %v114_v50 }
  0x11   :  { %v106_v58 = vld [vmem:[%s4425_s3 + $0x20] sm:$0xff]  ;;  %v107_v62 = vld [vmem:[%s4425_s3 + $0x28] sm:$0xff]  ;;  %v2576_v7 = vcombine.low %v111_v53, %v115_v54 }
  0x12   :  { %v222_v5 = vld [vmem:[%s4425_s3 + $0x3c0] sm:$0xff]  ;;  %v2567_v8 = vcombine.high %v102_v57, %v106_v58  ;;  %v223_v9 = vld [vmem:[%s4425_s3 + $0x3c8] sm:$0xff]  ;;  %v2569_v11 = vcombine.high %v103_v61, %v107_v62  ;;  %v2566_v12 = vcombine.low %v102_v57, %v106_v58  ;;  %v2568_v13 = vcombine.low %v103_v61, %v107_v62 }
  0x13   :  { %921 = vmatpush1.bf16.msra.mxu0 %v2598_v40  ;;  %964 = vmatpush1.bf16.msra.mxu1 %v2600_v43  ;;  %v226_v6 = vld [vmem:[%s4425_s3 + $0x3e0] sm:$0xff]  ;;  %v227_v10 = vld [vmem:[%s4425_s3 + $0x3e8] sm:$0xff] }
  0x14   :  { %922 = vmatprep.subr.bf16.mxu0 %v2591_v44  ;;  %965 = vmatprep.subr.bf16.mxu1 %v2593_v47  ;;  %v2687_v14 = vcombine.high %v222_v5, %v226_v6  ;;  %v2689_v15 = vcombine.high %v223_v9, %v227_v10 }
  0x17   :  { %923 = vmatpush1.bf16.msra.mxu0 %v2590_v48  ;;  %966 = vmatpush1.bf16.msra.mxu1 %v2592_v51 }
  0x18   :  { %924 = vmatprep.subr.bf16.mxu0 %v2583_v52  ;;  %967 = vmatprep.subr.bf16.mxu1 %v2585_v55 }
  0x1b   :  { %925 = vmatpush1.bf16.msra.mxu0 %v2582_v56  ;;  %968 = vmatpush1.bf16.msra.mxu1 %v2584_v59 }
  0x1c   :  { %926 = vmatprep.subr.bf16.mxu0 %v2575_v60  ;;  %969 = vmatprep.subr.bf16.mxu1 %v2577_v63 }
  0x1f   :  { %927 = vmatpush1.bf16.msra.mxu0 %v2574_v3  ;;  %970 = vmatpush1.bf16.msra.mxu1 %v2576_v7 }
  0x20   :  { %928 = vmatprep.subr.bf16.mxu0 %v2567_v8  ;;  %971 = vmatprep.subr.bf16.mxu1 %v2569_v11 }
  0x21   :  { %14 = vsyncpa [#allocation3], 0  ;;  %v2686_v16 = vcombine.low %v222_v5, %v226_v6  ;;  %v2688_v17 = vcombine.low %v223_v9, %v227_v10  ;;  %v214_v30 = vld [vmem:[%s4425_s3 + $0x380] sm:$0xff]  ;;  %v219_v32 = vld [vmem:[%s4425_s3 + $0x3a8] sm:$0xff] }
  0x22   :  { %v206_v36 = vld [vmem:[%s4425_s3 + $0x340] sm:$0xff]  ;;  %v207_v38 = vld [vmem:[%s4425_s3 + $0x348] sm:$0xff] }
  0x23   :  { %929 = vmatpush1.bf16.msra.mxu0 %v2566_v12  ;;  %972 = vmatpush1.bf16.msra.mxu1 %v2568_v13  ;;  %v210_v37 = vld [vmem:[%s4425_s3 + $0x360] sm:$0xff]  ;;  %v211_v40 = vld [vmem:[%s4425_s3 + $0x368] sm:$0xff] }
  0x24   :  { %930 = vmatprep.subr.bf16.mxu0 %v2687_v14  ;;  %973 = vmatprep.subr.bf16.mxu1 %v2689_v15  ;;  %v2671_v39 = vcombine.high %v206_v36, %v210_v37  ;;  %v2673_v41 = vcombine.high %v207_v38, %v211_v40  ;;  %v2670_v42 = vcombine.low %v206_v36, %v210_v37  ;;  %v198_v44 = vld [vmem:[%s4425_s3 + $0x300] sm:$0xff]  ;;  %v199_v46 = vld [vmem:[%s4425_s3 + $0x308] sm:$0xff] }
  0x25   :  { %v2672_v43 = vcombine.low %v207_v38, %v211_v40  ;;  %v202_v45 = vld [vmem:[%s4425_s3 + $0x320] sm:$0xff]  ;;  %v203_v48 = vld [vmem:[%s4425_s3 + $0x328] sm:$0xff]  ;;  %v73_v38 = vlaneseq }
  0x26   :  { %v2663_v47 = vcombine.high %v198_v44, %v202_v45  ;;  %v2662_v49 = vcombine.low %v198_v44, %v202_v45  ;;  %v190_v50 = vld [vmem:[%s4425_s3 + $0x2c0] sm:$0xff]  ;;  %v2665_v52 = vcombine.high %v199_v46, %v203_v48  ;;  %v2664_v53 = vcombine.low %v199_v46, %v203_v48  ;;  %v191_v55 = vld [vmem:[%s4425_s3 + $0x2c8] sm:$0xff] }
  0x27   :  { %931 = vmatpush2.bf16.msra.mxu0 %v2686_v16  ;;  %974 = vmatpush2.bf16.msra.mxu1 %v2688_v17  ;;  %v194_v51 = vld [vmem:[%s4425_s3 + $0x2e0] sm:$0xff]  ;;  %v195_v56 = vld [vmem:[%s4425_s3 + $0x2e8] sm:$0xff] }
  0x28   :  { %v2655_v54 = vcombine.high %v190_v50, %v194_v51  ;;  %v182_v57 = vld [vmem:[%s4425_s3 + $0x280] sm:$0xff]  ;;  %v2657_v58 = vcombine.high %v191_v55, %v195_v56  ;;  %v183_v60 = vld [vmem:[%s4425_s3 + $0x288] sm:$0xff]  ;;  %v2654_v62 = vcombine.low %v190_v50, %v194_v51  ;;  %v2656_v63 = vcombine.low %v191_v55, %v195_v56 }
  0x29   :  { %v186_v59 = vld [vmem:[%s4425_s3 + $0x2a0] sm:$0xff]  ;;  %v187_v61 = vld [vmem:[%s4425_s3 + $0x2a8] sm:$0xff] }
  0x2a   :  { %v2647_v3 = vcombine.high %v182_v57, %v186_v59  ;;  %v2649_v5 = vcombine.high %v183_v60, %v187_v61  ;;  %v174_v6 = vld [vmem:[%s4425_s3 + $0x240] sm:$0xff]  ;;  %v175_v8 = vld [vmem:[%s4425_s3 + $0x248] sm:$0xff]  ;;  %v2646_v10 = vcombine.low %v182_v57, %v186_v59  ;;  %v2648_v11 = vcombine.low %v183_v60, %v187_v61  ;;  %v156_v61 = vld [vmem:[%s4425_s3 + $0x1b0] sm:$0xff] }
  0x2b   :  { %v178_v7 = vld [vmem:[%s4425_s3 + $0x260] sm:$0xff]  ;;  %v179_v9 = vld [vmem:[%s4425_s3 + $0x268] sm:$0xff] }
  0x2c   :  { %v2639_v12 = vcombine.high %v174_v6, %v178_v7  ;;  %v2641_v13 = vcombine.high %v175_v8, %v179_v9  ;;  %v166_v14 = vld [vmem:[%s4425_s3 + $0x200] sm:$0xff]  ;;  %v167_v16 = vld [vmem:[%s4425_s3 + $0x208] sm:$0xff] }
  0x2d   :  { %v170_v15 = vld [vmem:[%s4425_s3 + $0x220] sm:$0xff]  ;;  %v171_v17 = vld [vmem:[%s4425_s3 + $0x228] sm:$0xff] }
  0x2e   :  { %v38_v44 = vld [vmem:[%s4424_s2] sm:$0x3] }
  0x8d   :  { %v41_v18 = vpop.xlane.xlu0 %40 }
  0x8e   :  { %v46_v19 = vmul.f32 0.00390625, %v41_v18  ;;  %v2638_v18 = vcombine.low %v174_v6, %v178_v7  ;;  %v148_v7 = vld [vmem:[%s4425_s3 + $0x170] sm:$0xff] }
  0x90   :  { %v3303_v20 = vsub.f32 %v3173_v0, %v46_v19  ;;  %v3306_v21 = vsub.f32 %v3178_v1, %v46_v19  ;;  %v2640_v19 = vcombine.low %v175_v8, %v179_v9  ;;  %v145_v8 = vld [vmem:[%s4425_s3 + $0x158] sm:$0xff] }
  0x91   :  { %v44_v22 = vpop.xlane.xlu0 %43  ;;  %v149_v9 = vld [vmem:[%s4425_s3 + $0x178] sm:$0xff] }
  0x92   :  { %v47_v23 = vmul.f32 0.00390625, %v44_v22  ;;  %v52_v24 = vmul.f32 %v3303_v20, %v3303_v20  ;;  %v53_v25 = vmul.f32 %v3306_v21, %v3306_v21  ;;  %v2631_v22 = vcombine.high %v166_v14, %v170_v15 }
  0x94   :  { %v3313_v26 = vsub.f32 %v3183_v2, %v47_v23  ;;  %v3316_v27 = vsub.f32 %v3190_v4, %v47_v23  ;;  %v56_v28 = vadd.f32 %v53_v25, %v52_v24  ;;  %v218_v2 = vld [vmem:[%s4425_s3 + $0x3a0] sm:$0xff]  ;;  %v215_v4 = vld [vmem:[%s4425_s3 + $0x388] sm:$0xff]  ;;  %v2633_v23 = vcombine.high %v167_v16, %v171_v17 }
  0x95   :  { %v2679_v31 = vcombine.high %v214_v30, %v218_v2  ;;  %v2681_v33 = vcombine.high %v215_v4, %v219_v32  ;;  %v2678_v34 = vcombine.low %v214_v30, %v218_v2  ;;  %v2680_v35 = vcombine.low %v215_v4, %v219_v32  ;;  %v165_v30 = vld [vmem:[%s4425_s3 + $0x1f8] sm:$0xff] }
  0x96   :  { %57 = vadd.xlane.f32.xlu1 %v56_v28  ;;  %v54_v0 = vmul.f32 %v3313_v26, %v3313_v26  ;;  %v55_v1 = vmul.f32 %v3316_v27, %v3316_v27  ;;  %v2630_v24 = vcombine.low %v166_v14, %v170_v15  ;;  %v2632_v25 = vcombine.low %v167_v16, %v171_v17  ;;  %v160_v28 = vld [vmem:[%s4425_s3 + $0x1d0] sm:$0xff]  ;;  %v137_v16 = vld [vmem:[%s4425_s3 + $0x118] sm:$0xff] }
  0x97   :  { %932 = vmatprep.subr.bf16.mxu0 %v2679_v31  ;;  %975 = vmatprep.subr.bf16.mxu1 %v2681_v33  ;;  %v136_v14 = vld [vmem:[%s4425_s3 + $0x110] sm:$0xff]  ;;  %v141_v17 = vld [vmem:[%s4425_s3 + $0x138] sm:$0xff] }
  0x98   :  { %v59_v29 = vadd.f32 %v55_v1, %v54_v0  ;;  %933 = vmatpush2.bf16.msra.mxu0 %v2678_v34  ;;  %976 = vmatpush2.bf16.msra.mxu1 %v2680_v35  ;;  %v164_v0 = vld [vmem:[%s4425_s3 + $0x1f0] sm:$0xff]  ;;  %v161_v1 = vld [vmem:[%s4425_s3 + $0x1d8] sm:$0xff] }
  0x99   :  { %934 = vmatprep.subr.bf16.mxu0 %v2671_v39  ;;  %977 = vmatprep.subr.bf16.mxu1 %v2673_v41  ;;  %v2626_v2 = vcombine.low %v160_v28, %v164_v0  ;;  %v2628_v4 = vcombine.low %v161_v1, %v165_v30  ;;  %v2629_v31 = vcombine.high %v161_v1, %v165_v30  ;;  %v3418_v39 = vshrl.u32 %v73_v38, 7  ;;  %v140_v15 = vld [vmem:[%s4425_s3 + $0x130] sm:$0xff] }
  0x9a   :  { %60 = vadd.xlane.f32.xlu1 %v59_v29  ;;  %v2627_v29 = vcombine.high %v160_v28, %v164_v0  ;;  %v129_v28 = vld [vmem:[%s4425_s3 + $0xd8] sm:$0xff]  ;;  %v2602_v1 = vcombine.low %v136_v14, %v140_v15  ;;  %v112_v38 = vld [vmem:[%s4425_s3 + $0x50] sm:$0xff] }
  0x9b   :  { %v3421_v40 = vsub.s32 1, %v3418_v39  ;;  %v3424_v41 = vsub.s32 0, %v3418_v39  ;;  %v133_v0 = vld [vmem:[%s4425_s3 + $0xf8] sm:$0xff] }
  0x9c   :  { %935 = vmatpush2.bf16.msra.mxu0 %v2670_v42  ;;  %978 = vmatpush2.bf16.msra.mxu1 %v2672_v43  ;;  %v37_v42 = vld [vmem:[%s4423_s1] sm:$0x3] }
  0x9d   :  { %936 = vmatprep.subr.bf16.mxu0 %v2663_v47  ;;  %979 = vmatprep.subr.bf16.mxu1 %v2665_v52  ;;  %v80_v46 = vrot.slane %v37_v42, %v3421_v40  ;;  %v76_v48 = vrot.slane %v37_v42, %v3424_v41  ;;  %v95_v50 = vrot.slane %v38_v44, %v3421_v40  ;;  %v116_v42 = vld [vmem:[%s4425_s3 + $0x70] sm:$0xff] }
  0x9e   :  { %v91_v51 = vrot.slane %v38_v44, %v3424_v41  ;;  %v117_v44 = vld [vmem:[%s4425_s3 + $0x78] sm:$0xff] }
  0xa0   :  { %937 = vmatpush2.bf16.msra.mxu0 %v2662_v49  ;;  %980 = vmatpush2.bf16.msra.mxu1 %v2664_v53 }
  0xa1   :  { %938 = vmatprep.subr.bf16.mxu0 %v2655_v54  ;;  %981 = vmatprep.subr.bf16.mxu1 %v2657_v58 }
  0xa4   :  { %939 = vmatpush2.bf16.msra.mxu0 %v2654_v62  ;;  %982 = vmatpush2.bf16.msra.mxu1 %v2656_v63 }
  0xa5   :  { %940 = vmatprep.subr.bf16.mxu0 %v2647_v3  ;;  %983 = vmatprep.subr.bf16.mxu1 %v2649_v5  ;;  %v144_v3 = vld [vmem:[%s4425_s3 + $0x150] sm:$0xff] }
  0xa8   :  { %941 = vmatpush2.bf16.msra.mxu0 %v2646_v10  ;;  %984 = vmatpush2.bf16.msra.mxu1 %v2648_v11 }
  0xa9   :  { %942 = vmatprep.subr.bf16.mxu0 %v2639_v12  ;;  %985 = vmatprep.subr.bf16.mxu1 %v2641_v13  ;;  %v2611_v12 = vcombine.high %v144_v3, %v148_v7  ;;  %v2613_v13 = vcombine.high %v145_v8, %v149_v9 }
  0xac   :  { %943 = vmatpush2.bf16.msra.mxu0 %v2638_v18  ;;  %986 = vmatpush2.bf16.msra.mxu1 %v2640_v19  ;;  %v2610_v18 = vcombine.low %v144_v3, %v148_v7  ;;  %v2612_v19 = vcombine.low %v145_v8, %v149_v9  ;;  %v217_v3 = vld [vmem:[%s4425_s3 + $0x398] sm:$0xff] }
  0xad   :  { %944 = vmatprep.subr.bf16.mxu0 %v2631_v22  ;;  %987 = vmatprep.subr.bf16.mxu1 %v2633_v23  ;;  %v2603_v22 = vcombine.high %v136_v14, %v140_v15  ;;  %v2605_v23 = vcombine.high %v137_v16, %v141_v17 }
  0xb0   :  { %945 = vmatpush2.bf16.msra.mxu0 %v2630_v24  ;;  %988 = vmatpush2.bf16.msra.mxu1 %v2632_v25  ;;  %v128_v24 = vld [vmem:[%s4425_s3 + $0xd0] sm:$0xff] }
  0xb1   :  { %1000 = vmatprep.subr.bf16.mxu0 %v2627_v29  ;;  %1043 = vmatprep.subr.bf16.mxu1 %v2629_v31  ;;  %v132_v25 = vld [vmem:[%s4425_s3 + $0xf0] sm:$0xff]  ;;  %v2604_v29 = vcombine.low %v137_v16, %v141_v17 }
  0xb2   :  { %v2595_v30 = vcombine.high %v128_v24, %v132_v25  ;;  %v124_v31 = vld [vmem:[%s4425_s3 + $0xb0] sm:$0xff] }
 0x11f   :  { %v58_v32 = vpop.xlane.xlu1 %57 }
 0x120   :  { %v62_v33 = vmul.f32 0.00390625, %v58_v32  ;;  %v121_v32 = vld [vmem:[%s4425_s3 + $0x98] sm:$0xff] }
 0x122   :  { %v64_v34 = vadd.f32 1e-05, %v62_v33  ;;  %v125_v33 = vld [vmem:[%s4425_s3 + $0xb8] sm:$0xff] }
 0x123   :  { %v61_v35 = vpop.xlane.xlu1 %60 }
 0x124   :  { %3018 = vrsqrt.f32 %v64_v34  ;;  %v63_v36 = vmul.f32 0.00390625, %v61_v35  ;;  %v2594_v34 = vcombine.low %v128_v24, %v132_v25  ;;  %v2596_v35 = vcombine.low %v129_v28, %v133_v0 }
 0x126   :  { %v65_v37 = vadd.f32 1e-05, %v63_v36 }
 0x128   :  { %3020 = vrsqrt.f32 %v65_v37  ;;  %v2589_v37 = vcombine.high %v121_v32, %v125_v33 }
 0x131   :  { %v3019_v43 = vpop.eup %3018 }
 0x132   :  { %v69_v45 = vmul.f32 %v3019_v43, %v3306_v21  ;;  %v68_v47 = vmul.f32 %v3019_v43, %v3303_v20  ;;  %v152_v20 = vld [vmem:[%s4425_s3 + $0x190] sm:$0xff]  ;;  %v113_v43 = vld [vmem:[%s4425_s3 + $0x58] sm:$0xff] }
 0x133   :  { %v2619_v5 = vcombine.high %v152_v20, %v156_v61  ;;  %v2618_v10 = vcombine.low %v152_v20, %v156_v61 }
 0x134   :  { %v84_v53 = vmul.f32 %v80_v46, %v69_v45  ;;  %v83_v55 = vmul.f32 %v76_v48, %v68_v47  ;;  %v2579_v47 = vcombine.high %v112_v38, %v116_v42 }
 0x135   :  { %v3021_v49 = vpop.eup %3020 }
 0x136   :  { %v71_v52 = vmul.f32 %v3021_v49, %v3316_v27  ;;  %v70_v54 = vmul.f32 %v3021_v49, %v3313_v26  ;;  %v99_v21 = vadd.f32 %v95_v50, %v84_v53  ;;  %v98_v59 = vadd.f32 %v91_v51, %v83_v55  ;;  %v153_v27 = vld [vmem:[%s4425_s3 + $0x198] sm:$0xff]  ;;  %v104_v49 = vld [vmem:[%s4425_s3 + $0x10] sm:$0xff] }
 0x137   :  { %v157_v26 = vld [vmem:[%s4425_s3 + $0x1b8] sm:$0xff]  ;;  %v2578_v53 = vcombine.low %v112_v38, %v116_v42 }
 0x138   :  { %v86_v56 = vmul.f32 %v80_v46, %v71_v52  ;;  %v85_v57 = vmul.f32 %v76_v48, %v70_v54  ;;  %v2621_v6 = vcombine.high %v153_v27, %v157_v26  ;;  %v2620_v11 = vcombine.low %v153_v27, %v157_v26  ;;  %v109_v52 = vld [vmem:[%s4425_s3 + $0x38] sm:$0xff]  ;;  %v216_v26 = vld [vmem:[%s4425_s3 + $0x390] sm:$0xff] }
 0x139   :  { %v2588_v46 = vcombine.low %v121_v32, %v125_v33  ;;  %v2581_v48 = vcombine.high %v113_v43, %v117_v44  ;;  %v2580_v54 = vcombine.low %v113_v43, %v117_v44 }
 0x13a   :  { %v101_v58 = vadd.f32 %v95_v50, %v86_v56  ;;  %v100_v60 = vadd.f32 %v91_v51, %v85_v57  ;;  %v108_v50 = vld [vmem:[%s4425_s3 + $0x30] sm:$0xff]  ;;  %v105_v51 = vld [vmem:[%s4425_s3 + $0x18] sm:$0xff] }
 0x13b   :  { %v2571_v55 = vcombine.high %v104_v49, %v108_v50  ;;  %v2573_v56 = vcombine.high %v105_v51, %v109_v52  ;;  %v224_v57 = vld [vmem:[%s4425_s3 + $0x3d0] sm:$0xff]  ;;  %v2572_v20 = vcombine.low %v105_v51, %v109_v52 }
 0x13c   :  { %v231_v62 = vpack.c.bf16 %v101_v58, %v99_v21  ;;  %v3452_v63 = vpack.c.bf16 %v100_v60, %v98_v59  ;;  %v228_v21 = vld [vmem:[%s4425_s3 + $0x3f0] sm:$0xff]  ;;  %v225_v58 = vld [vmem:[%s4425_s3 + $0x3d8] sm:$0xff]  ;;  %v2570_v60 = vcombine.low %v104_v49, %v108_v50 }
 0x13d   :  { %v229_v59 = vld [vmem:[%s4425_s3 + $0x3f8] sm:$0xff]  ;;  %v2691_v61 = vcombine.high %v224_v57, %v228_v21 }
 0x13e   :  { %946 = vmatprep.mubr.bf16.mxu0 %v231_v62  ;;  %989 = vmatprep.mubr.bf16.mxu1 %v231_v62  ;;  %v2693_v27 = vcombine.high %v225_v58, %v229_v59  ;;  %v2692_v7 = vcombine.low %v225_v58, %v229_v59 }
 0x13f   :  { %947 = vmatmul.mubr.bf16.vlgmr.msra.gmra.mxu0 %v3452_v63  ;;  %990 = vmatmul.mubr.bf16.vlgmr.msra.gmra.mxu1 %v3452_v63 }
 0x140   :  { %1001 = vmatpush1.bf16.msra.mxu0 %v2626_v2  ;;  %1044 = vmatpush1.bf16.msra.mxu1 %v2628_v4  ;;  %v2597_v2 = vcombine.high %v129_v28, %v133_v0  ;;  %v120_v4 = vld [vmem:[%s4425_s3 + $0x90] sm:$0xff] }
 0x141   :  { %1032 = vmatprep.mubr.bf16.mxu0 %v231_v62  ;;  %1075 = vmatprep.mubr.bf16.mxu1 %v231_v62  ;;  %v2587_v36 = vcombine.high %v120_v4, %v124_v31  ;;  %v2586_v45 = vcombine.low %v120_v4, %v124_v31  ;;  %v220_v62 = vld [vmem:[%s4425_s3 + $0x3b0] sm:$0xff] }
 0x142   :  { %1002 = vmatprep.subr.bf16.mxu0 %v2619_v5  ;;  %1045 = vmatprep.subr.bf16.mxu1 %v2621_v6  ;;  %v221_v5 = vld [vmem:[%s4425_s3 + $0x3b8] sm:$0xff]  ;;  %v2690_v6 = vcombine.low %v224_v57, %v228_v21  ;;  %v2683_v8 = vcombine.high %v216_v26, %v220_v62  ;;  %v2682_v14 = vcombine.low %v216_v26, %v220_v62 }
 0x143   :  { %v2685_v9 = vcombine.high %v217_v3, %v221_v5  ;;  %v2684_v15 = vcombine.low %v217_v3, %v221_v5  ;;  %v2826_v26 = vld [vmem:[%s4427_s5 + $0x70] ss:$8 sps:$4 sm:$0xff]   ;;  %v2834_v3 = vld [vmem:[%s4427_s5 + $0x64] ss:$8 sps:$4 sm:$0xff]  }
 0x144   :  { %1003 = vmatpush1.bf16.msra.mxu0 %v2618_v10  ;;  %1046 = vmatpush1.bf16.msra.mxu1 %v2620_v11  ;;  %v208_v10 = vld [vmem:[%s4425_s3 + $0x350] sm:$0xff]  ;;  %v2837_v5 = vld [vmem:[%s4427_s5 + $0x164] ss:$8 sps:$4 sm:$0xff]  }
 0x145   :  { %1004 = vmatprep.subr.bf16.mxu0 %v2611_v12  ;;  %1047 = vmatprep.subr.bf16.mxu1 %v2613_v13  ;;  %v212_v11 = vld [vmem:[%s4425_s3 + $0x370] sm:$0xff]  ;;  %v209_v12 = vld [vmem:[%s4425_s3 + $0x358] sm:$0xff] }
 0x146   :  { %v213_v13 = vld [vmem:[%s4425_s3 + $0x378] sm:$0xff]  ;;  %v2675_v16 = vcombine.high %v208_v10, %v212_v11  ;;  %v2674_v24 = vcombine.low %v208_v10, %v212_v11  ;;  %v2846_v11 = vld [vmem:[%s4427_s5 + $0x44] ss:$8 sps:$4 sm:$0xff]  }
 0x147   :  { %v2677_v17 = vcombine.high %v209_v12, %v213_v13  ;;  %v2676_v25 = vcombine.low %v209_v12, %v213_v13  ;;  %v2829_v62 = vld [vmem:[%s4427_s5 + $0x170] ss:$8 sps:$4 sm:$0xff]   ;;  %v2849_v12 = vld [vmem:[%s4427_s5 + $0x144] ss:$8 sps:$4 sm:$0xff]   ;;  %v2844_v13 = vld [vmem:[%s4427_s5 + $0x40] ss:$8 sps:$4 sm:$0xff]  }
 0x148   :  { %1005 = vmatpush1.bf16.msra.mxu0 %v2610_v18  ;;  %1048 = vmatpush1.bf16.msra.mxu1 %v2612_v19  ;;  %v200_v18 = vld [vmem:[%s4425_s3 + $0x310] sm:$0xff] }
 0x149   :  { %1006 = vmatprep.subr.bf16.mxu0 %v2603_v22  ;;  %1049 = vmatprep.subr.bf16.mxu1 %v2605_v23  ;;  %v204_v19 = vld [vmem:[%s4425_s3 + $0x330] sm:$0xff]  ;;  %v201_v22 = vld [vmem:[%s4425_s3 + $0x318] sm:$0xff] }
 0x14a   :  { %v205_v23 = vld [vmem:[%s4425_s3 + $0x338] sm:$0xff]  ;;  %v2667_v28 = vcombine.high %v200_v18, %v204_v19  ;;  %v2666_v4 = vcombine.low %v200_v18, %v204_v19  ;;  %v2858_v19 = vld [vmem:[%s4427_s5 + $0x24] ss:$8 sps:$4 sm:$0xff]  }
 0x14b   :  { %v2669_v0 = vcombine.high %v201_v22, %v205_v23  ;;  %v2668_v31 = vcombine.low %v201_v22, %v205_v23  ;;  %v2841_v10 = vld [vmem:[%s4427_s5 + $0x150] ss:$8 sps:$4 sm:$0xff]   ;;  %v2861_v22 = vld [vmem:[%s4427_s5 + $0x124] ss:$8 sps:$4 sm:$0xff]   ;;  %v2856_v23 = vld [vmem:[%s4427_s5 + $0x20] ss:$8 sps:$4 sm:$0xff]  }
 0x14c   :  { %1007 = vmatpush1.bf16.msra.mxu0 %v2602_v1  ;;  %1050 = vmatpush1.bf16.msra.mxu1 %v2604_v29  ;;  %v192_v1 = vld [vmem:[%s4425_s3 + $0x2d0] sm:$0xff] }
 0x14d   :  { %1008 = vmatprep.subr.bf16.mxu0 %v2595_v30  ;;  %1051 = vmatprep.subr.bf16.mxu1 %v2597_v2  ;;  %v196_v29 = vld [vmem:[%s4425_s3 + $0x2f0] sm:$0xff]  ;;  %v193_v30 = vld [vmem:[%s4425_s3 + $0x2d8] sm:$0xff] }
 0x14e   :  { %v197_v2 = vld [vmem:[%s4425_s3 + $0x2f8] sm:$0xff]  ;;  %v2659_v32 = vcombine.high %v192_v1, %v196_v29  ;;  %v2658_v38 = vcombine.low %v192_v1, %v196_v29  ;;  %v2870_v29 = vld [vmem:[%s4427_s5 + $0x4] ss:$8 sps:$4 sm:$0xff]  }
 0x14f   :  { %v2661_v33 = vcombine.high %v193_v30, %v197_v2  ;;  %v2660_v42 = vcombine.low %v193_v30, %v197_v2  ;;  %v2853_v18 = vld [vmem:[%s4427_s5 + $0x130] ss:$8 sps:$4 sm:$0xff]   ;;  %v2873_v30 = vld [vmem:[%s4427_s5 + $0x104] ss:$8 sps:$4 sm:$0xff]   ;;  %v2868_v2 = vld [vmem:[%s4427_s5] ss:$8 sps:$4 sm:$0xff]  }
 0x150   :  { %1009 = vmatpush1.bf16.msra.mxu0 %v2594_v34  ;;  %1052 = vmatpush1.bf16.msra.mxu1 %v2596_v35  ;;  %v184_v34 = vld [vmem:[%s4425_s3 + $0x290] sm:$0xff] }
 0x151   :  { %1010 = vmatprep.subr.bf16.mxu0 %v2587_v36  ;;  %1053 = vmatprep.subr.bf16.mxu1 %v2589_v37  ;;  %v188_v35 = vld [vmem:[%s4425_s3 + $0x2b0] sm:$0xff]  ;;  %v185_v36 = vld [vmem:[%s4425_s3 + $0x298] sm:$0xff] }
 0x152   :  { %v189_v37 = vld [vmem:[%s4425_s3 + $0x2b8] sm:$0xff]  ;;  %v2651_v43 = vcombine.high %v184_v34, %v188_v35  ;;  %v2650_v49 = vcombine.low %v184_v34, %v188_v35  ;;  %v2882_v35 = vld [vmem:[%s4427_s5 + $0xe4] ss:$8 sps:$4 sm:$0xff]  }
 0x153   :  { %v2653_v44 = vcombine.high %v185_v36, %v189_v37  ;;  %v2652_v50 = vcombine.low %v185_v36, %v189_v37  ;;  %v2865_v1 = vld [vmem:[%s4427_s5 + $0x110] ss:$8 sps:$4 sm:$0xff]   ;;  %v2885_v36 = vld [vmem:[%s4427_s5 + $0x1e4] ss:$8 sps:$4 sm:$0xff]   ;;  %v2880_v37 = vld [vmem:[%s4427_s5 + $0xe0] ss:$8 sps:$4 sm:$0xff]  }
 0x154   :  { %1011 = vmatpush1.bf16.msra.mxu0 %v2586_v45  ;;  %1054 = vmatpush1.bf16.msra.mxu1 %v2588_v46  ;;  %v176_v45 = vld [vmem:[%s4425_s3 + $0x250] sm:$0xff] }
 0x155   :  { %1012 = vmatprep.subr.bf16.mxu0 %v2579_v47  ;;  %1055 = vmatprep.subr.bf16.mxu1 %v2581_v48  ;;  %v180_v46 = vld [vmem:[%s4425_s3 + $0x270] sm:$0xff]  ;;  %v177_v47 = vld [vmem:[%s4425_s3 + $0x258] sm:$0xff] }
 0x156   :  { %v181_v48 = vld [vmem:[%s4425_s3 + $0x278] sm:$0xff]  ;;  %v2643_v51 = vcombine.high %v176_v45, %v180_v46  ;;  %v2642_v57 = vcombine.low %v176_v45, %v180_v46  ;;  %v2894_v46 = vld [vmem:[%s4427_s5 + $0xc4] ss:$8 sps:$4 sm:$0xff]  }
 0x157   :  { %v2645_v52 = vcombine.high %v177_v47, %v181_v48  ;;  %v2644_v21 = vcombine.low %v177_v47, %v181_v48  ;;  %v2877_v34 = vld [vmem:[%s4427_s5 + $0x1f0] ss:$8 sps:$4 sm:$0xff]   ;;  %v2897_v47 = vld [vmem:[%s4427_s5 + $0x1c4] ss:$8 sps:$4 sm:$0xff]   ;;  %v2892_v48 = vld [vmem:[%s4427_s5 + $0xc0] ss:$8 sps:$4 sm:$0xff]  }
 0x158   :  { %1013 = vmatpush1.bf16.msra.mxu0 %v2578_v53  ;;  %1056 = vmatpush1.bf16.msra.mxu1 %v2580_v54  ;;  %v168_v53 = vld [vmem:[%s4425_s3 + $0x210] sm:$0xff] }
 0x159   :  { %1014 = vmatprep.subr.bf16.mxu0 %v2571_v55  ;;  %1057 = vmatprep.subr.bf16.mxu1 %v2573_v56  ;;  %v172_v54 = vld [vmem:[%s4425_s3 + $0x230] sm:$0xff]  ;;  %v169_v55 = vld [vmem:[%s4425_s3 + $0x218] sm:$0xff] }
 0x15a   :  { %v173_v56 = vld [vmem:[%s4425_s3 + $0x238] sm:$0xff]  ;;  %v2635_v58 = vcombine.high %v168_v53, %v172_v54 }
 0x15b   :  { %v2637_v59 = vcombine.high %v169_v55, %v173_v56  ;;  %v2889_v45 = vld [vmem:[%s4427_s5 + $0x1d0] ss:$8 sps:$4 sm:$0xff]  }
 0x15c   :  { %1015 = vmatpush1.bf16.msra.mxu0 %v2570_v60  ;;  %1058 = vmatpush1.bf16.msra.mxu1 %v2572_v20  ;;  %v2634_v60 = vcombine.low %v168_v53, %v172_v54  ;;  %v2636_v20 = vcombine.low %v169_v55, %v173_v56  ;;  %v2901_v53 = vld [vmem:[%s4427_s5 + $0x1b0] ss:$8 sps:$4 sm:$0xff]   ;;  %v2906_v54 = vld [vmem:[%s4427_s5 + $0xa4] ss:$8 sps:$4 sm:$0xff]   ;;  %v2904_v56 = vld [vmem:[%s4427_s5 + $0xa0] ss:$8 sps:$4 sm:$0xff]  }
 0x15d   :  { %1016 = vmatprep.subr.bf16.mxu0 %v2691_v61  ;;  %1059 = vmatprep.subr.bf16.mxu1 %v2693_v27  ;;  %v2828_v61 = vld [vmem:[%s4427_s5 + $0x74] ss:$8 sps:$4 sm:$0xff]   ;;  %v2909_v55 = vld [vmem:[%s4427_s5 + $0x1a4] ss:$8 sps:$4 sm:$0xff]  }
 0x15e   :  { %v2831_v27 = vld [vmem:[%s4427_s5 + $0x174] ss:$8 sps:$4 sm:$0xff]  }
 0x160   :  { %1017 = vmatpush2.bf16.msra.mxu0 %v2690_v6  ;;  %1060 = vmatpush2.bf16.msra.mxu1 %v2692_v7  ;;  %v2832_v6 = vld [vmem:[%s4427_s5 + $0x60] ss:$8 sps:$4 sm:$0xff]  }
 0x161   :  { %1018 = vmatprep.subr.bf16.mxu0 %v2683_v8  ;;  %1061 = vmatprep.subr.bf16.mxu1 %v2685_v9  ;;  %v2835_v7 = vld [vmem:[%s4427_s5 + $0x160] ss:$8 sps:$4 sm:$0xff]   ;;  %v2843_v8 = vld [vmem:[%s4427_s5 + $0x154] ss:$8 sps:$4 sm:$0xff]   ;;  %v2838_v9 = vld [vmem:[%s4427_s5 + $0x50] ss:$8 sps:$4 sm:$0xff]  }
 0x164   :  { %1019 = vmatpush2.bf16.msra.mxu0 %v2682_v14  ;;  %1062 = vmatpush2.bf16.msra.mxu1 %v2684_v15  ;;  %v2847_v14 = vld [vmem:[%s4427_s5 + $0x140] ss:$8 sps:$4 sm:$0xff]   ;;  %v2852_v15 = vld [vmem:[%s4427_s5 + $0x34] ss:$8 sps:$4 sm:$0xff]  }
 0x165   :  { %1020 = vmatprep.subr.bf16.mxu0 %v2675_v16  ;;  %1063 = vmatprep.subr.bf16.mxu1 %v2677_v17  ;;  %v2855_v16 = vld [vmem:[%s4427_s5 + $0x134] ss:$8 sps:$4 sm:$0xff]   ;;  %v2850_v17 = vld [vmem:[%s4427_s5 + $0x30] ss:$8 sps:$4 sm:$0xff]  }
 0x168   :  { %1021 = vmatpush2.bf16.msra.mxu0 %v2674_v24  ;;  %1064 = vmatpush2.bf16.msra.mxu1 %v2676_v25  ;;  %v2859_v24 = vld [vmem:[%s4427_s5 + $0x120] ss:$8 sps:$4 sm:$0xff]   ;;  %v2864_v25 = vld [vmem:[%s4427_s5 + $0x14] ss:$8 sps:$4 sm:$0xff]  }
 0x169   :  { %1022 = vmatprep.subr.bf16.mxu0 %v2667_v28  ;;  %1065 = vmatprep.subr.bf16.mxu1 %v2669_v0  ;;  %v2867_v28 = vld [vmem:[%s4427_s5 + $0x114] ss:$8 sps:$4 sm:$0xff]   ;;  %v2862_v0 = vld [vmem:[%s4427_s5 + $0x10] ss:$8 sps:$4 sm:$0xff]  }
 0x16c   :  { %1023 = vmatpush2.bf16.msra.mxu0 %v2666_v4  ;;  %1066 = vmatpush2.bf16.msra.mxu1 %v2668_v31  ;;  %v2871_v4 = vld [vmem:[%s4427_s5 + $0x100] ss:$8 sps:$4 sm:$0xff]   ;;  %v2876_v31 = vld [vmem:[%s4427_s5 + $0xf4] ss:$8 sps:$4 sm:$0xff]  }
 0x16d   :  { %1024 = vmatprep.subr.bf16.mxu0 %v2659_v32  ;;  %1067 = vmatprep.subr.bf16.mxu1 %v2661_v33  ;;  %v2879_v32 = vld [vmem:[%s4427_s5 + $0x1f4] ss:$8 sps:$4 sm:$0xff]   ;;  %v2874_v33 = vld [vmem:[%s4427_s5 + $0xf0] ss:$8 sps:$4 sm:$0xff]  }
 0x170   :  { %1025 = vmatpush2.bf16.msra.mxu0 %v2658_v38  ;;  %1068 = vmatpush2.bf16.msra.mxu1 %v2660_v42  ;;  %v2883_v38 = vld [vmem:[%s4427_s5 + $0x1e0] ss:$8 sps:$4 sm:$0xff]   ;;  %v2888_v42 = vld [vmem:[%s4427_s5 + $0xd4] ss:$8 sps:$4 sm:$0xff]  }
 0x171   :  { %1026 = vmatprep.subr.bf16.mxu0 %v2651_v43  ;;  %1069 = vmatprep.subr.bf16.mxu1 %v2653_v44  ;;  %v2891_v43 = vld [vmem:[%s4427_s5 + $0x1d4] ss:$8 sps:$4 sm:$0xff]   ;;  %v2886_v44 = vld [vmem:[%s4427_s5 + $0xd0] ss:$8 sps:$4 sm:$0xff]  }
 0x174   :  { %1027 = vmatpush2.bf16.msra.mxu0 %v2650_v49  ;;  %1070 = vmatpush2.bf16.msra.mxu1 %v2652_v50  ;;  %v2895_v49 = vld [vmem:[%s4427_s5 + $0x1c0] ss:$8 sps:$4 sm:$0xff]   ;;  %v2900_v50 = vld [vmem:[%s4427_s5 + $0xb4] ss:$8 sps:$4 sm:$0xff]  }
 0x175   :  { %1028 = vmatprep.subr.bf16.mxu0 %v2643_v51  ;;  %1071 = vmatprep.subr.bf16.mxu1 %v2645_v52  ;;  %v2903_v51 = vld [vmem:[%s4427_s5 + $0x1b4] ss:$8 sps:$4 sm:$0xff]   ;;  %v2898_v52 = vld [vmem:[%s4427_s5 + $0xb0] ss:$8 sps:$4 sm:$0xff]  }
 0x178   :  { %1029 = vmatpush2.bf16.msra.mxu0 %v2642_v57  ;;  %1072 = vmatpush2.bf16.msra.mxu1 %v2644_v21  ;;  %v2907_v57 = vld [vmem:[%s4427_s5 + $0x1a0] ss:$8 sps:$4 sm:$0xff]   ;;  %v2912_v21 = vld [vmem:[%s4427_s5 + $0x94] ss:$8 sps:$4 sm:$0xff]  }
 0x179   :  { %1030 = vmatprep.subr.bf16.mxu0 %v2635_v58  ;;  %1073 = vmatprep.subr.bf16.mxu1 %v2637_v59  ;;  %v2915_v58 = vld [vmem:[%s4427_s5 + $0x194] ss:$8 sps:$4 sm:$0xff]   ;;  %v2910_v59 = vld [vmem:[%s4427_s5 + $0x90] ss:$8 sps:$4 sm:$0xff]  }
 0x17c   :  { %1031 = vmatpush2.bf16.msra.mxu0 %v2634_v60  ;;  %1074 = vmatpush2.bf16.msra.mxu1 %v2636_v20  ;;  %v2913_v60 = vld [vmem:[%s4427_s5 + $0x190] ss:$8 sps:$4 sm:$0xff]   ;;  %v2918_v20 = vld [vmem:[%s4427_s5 + $0x84] ss:$8 sps:$4 sm:$0xff]  }
 0x17d   :  { %2306 = vmatprep.subr.bf16.mxu0 %v2828_v61  ;;  %2349 = vmatprep.subr.bf16.mxu1 %v2831_v27  ;;  %v2921_v61 = vld [vmem:[%s4427_s5 + $0x184] ss:$8 sps:$4 sm:$0xff]   ;;  %v2916_v27 = vld [vmem:[%s4427_s5 + $0x80] ss:$8 sps:$4 sm:$0xff]  }
 0x17f   :  { %1033 = vmatmul.mubr.bf16.vlgmr.msra.gmra.mxu0 %v3452_v63  ;;  %1076 = vmatmul.mubr.bf16.vlgmr.msra.gmra.mxu1 %v3452_v63  ;;  %v2840_v63 = vld [vmem:[%s4427_s5 + $0x54] ss:$8 sps:$4 sm:$0xff]  }
 0x180   :  { %2307 = vmatpush1.bf16.msra.mxu0 %v2826_v26  ;;  %2350 = vmatpush1.bf16.msra.mxu1 %v2829_v62  ;;  %v2919_v26 = vld [vmem:[%s4427_s5 + $0x180] ss:$8 sps:$4 sm:$0xff]   ;;  %v2924_v62 = vld [vmem:[%s4427_s5 + $0x274] ss:$8 sps:$4 sm:$0xff]  }
 0x181   :  { %2308 = vmatprep.subr.bf16.mxu0 %v2834_v3  ;;  %2351 = vmatprep.subr.bf16.mxu1 %v2837_v5  ;;  %v2927_v3 = vld [vmem:[%s4427_s5 + $0x374] ss:$8 sps:$4 sm:$0xff]   ;;  %v244_v5 = vsub.s32 2, %v3418_v39 }
 0x184   :  { %2309 = vmatpush1.bf16.msra.mxu0 %v2832_v6  ;;  %2352 = vmatpush1.bf16.msra.mxu1 %v2835_v7  ;;  %v3828_v6 = vld [vmem:[%s4426_s4] sm:$0xff]  ;;  %v248_v7 = vsub.s32 3, %v3418_v39 }
 0x185   :  { %2310 = vmatprep.subr.bf16.mxu0 %v2840_v63  ;;  %2353 = vmatprep.subr.bf16.mxu1 %v2843_v8  ;;  %v237_v63 = vrot.slane %v3828_v6, %v3424_v41  ;;  %v245_v8 = vrot.slane %v3828_v6, %v244_v5 }
 0x188   :  { %2311 = vmatpush1.bf16.msra.mxu0 %v2838_v9  ;;  %2354 = vmatpush1.bf16.msra.mxu1 %v2841_v10 }
 0x189   :  { %2312 = vmatprep.subr.bf16.mxu0 %v2846_v11  ;;  %2355 = vmatprep.subr.bf16.mxu1 %v2849_v12  ;;  %v241_v11 = vrot.slane %v3828_v6, %v3421_v40  ;;  %v249_v12 = vrot.slane %v3828_v6, %v248_v7 }
 0x18c   :  { %2313 = vmatpush1.bf16.msra.mxu0 %v2844_v13  ;;  %2356 = vmatpush1.bf16.msra.mxu1 %v2847_v14 }
 0x18d   :  { %2314 = vmatprep.subr.bf16.mxu0 %v2852_v15  ;;  %2357 = vmatprep.subr.bf16.mxu1 %v2855_v16 }
 0x190   :  { %2315 = vmatpush1.bf16.msra.mxu0 %v2850_v17  ;;  %2358 = vmatpush1.bf16.msra.mxu1 %v2853_v18 }
 0x191   :  { %2316 = vmatprep.subr.bf16.mxu0 %v2858_v19  ;;  %2359 = vmatprep.subr.bf16.mxu1 %v2861_v22 }
 0x194   :  { %2317 = vmatpush1.bf16.msra.mxu0 %v2856_v23  ;;  %2360 = vmatpush1.bf16.msra.mxu1 %v2859_v24 }
 0x195   :  { %2318 = vmatprep.subr.bf16.mxu0 %v2864_v25  ;;  %2361 = vmatprep.subr.bf16.mxu1 %v2867_v28 }
 0x198   :  { %2319 = vmatpush1.bf16.msra.mxu0 %v2862_v0  ;;  %2362 = vmatpush1.bf16.msra.mxu1 %v2865_v1 }
 0x199   :  { %2320 = vmatprep.subr.bf16.mxu0 %v2870_v29  ;;  %2363 = vmatprep.subr.bf16.mxu1 %v2873_v30 }
 0x19c   :  { %2321 = vmatpush1.bf16.msra.mxu0 %v2868_v2  ;;  %2364 = vmatpush1.bf16.msra.mxu1 %v2871_v4 }
 0x19d   :  { %2322 = vmatprep.subr.bf16.mxu0 %v2876_v31  ;;  %2365 = vmatprep.subr.bf16.mxu1 %v2879_v32 }
 0x1a0   :  { %2323 = vmatpush2.bf16.msra.mxu0 %v2874_v33  ;;  %2366 = vmatpush2.bf16.msra.mxu1 %v2877_v34 }
 0x1a1   :  { %2324 = vmatprep.subr.bf16.mxu0 %v2882_v35  ;;  %2367 = vmatprep.subr.bf16.mxu1 %v2885_v36 }
 0x1a4   :  { %2325 = vmatpush2.bf16.msra.mxu0 %v2880_v37  ;;  %2368 = vmatpush2.bf16.msra.mxu1 %v2883_v38 }
 0x1a5   :  { %2326 = vmatprep.subr.bf16.mxu0 %v2888_v42  ;;  %2369 = vmatprep.subr.bf16.mxu1 %v2891_v43 }
 0x1a8   :  { %2327 = vmatpush2.bf16.msra.mxu0 %v2886_v44  ;;  %2370 = vmatpush2.bf16.msra.mxu1 %v2889_v45 }
 0x1a9   :  { %2328 = vmatprep.subr.bf16.mxu0 %v2894_v46  ;;  %2371 = vmatprep.subr.bf16.mxu1 %v2897_v47 }
 0x1ac   :  { %2329 = vmatpush2.bf16.msra.mxu0 %v2892_v48  ;;  %2372 = vmatpush2.bf16.msra.mxu1 %v2895_v49 }
 0x1ad   :  { %2330 = vmatprep.subr.bf16.mxu0 %v2900_v50  ;;  %2373 = vmatprep.subr.bf16.mxu1 %v2903_v51 }
 0x1b0   :  { %2331 = vmatpush2.bf16.msra.mxu0 %v2898_v52  ;;  %2374 = vmatpush2.bf16.msra.mxu1 %v2901_v53 }
 0x1b1   :  { %2332 = vmatprep.subr.bf16.mxu0 %v2906_v54  ;;  %2375 = vmatprep.subr.bf16.mxu1 %v2909_v55 }
 0x1b4   :  { %2333 = vmatpush2.bf16.msra.mxu0 %v2904_v56  ;;  %2376 = vmatpush2.bf16.msra.mxu1 %v2907_v57  ;;  %v252_v57 = vsub.s32 4, %v3418_v39 }
 0x1b5   :  { %2334 = vmatprep.subr.bf16.mxu0 %v2912_v21  ;;  %2377 = vmatprep.subr.bf16.mxu1 %v2915_v58 }
 0x1b8   :  { %2335 = vmatpush2.bf16.msra.mxu0 %v2910_v59  ;;  %2378 = vmatpush2.bf16.msra.mxu1 %v2913_v60 }
 0x1b9   :  { %2336 = vmatprep.subr.bf16.mxu0 %v2918_v20  ;;  %2379 = vmatprep.subr.bf16.mxu1 %v2921_v61  ;;  %v260_v20 = vsub.s32 6, %v3418_v39 }
 0x1bc   :  { %2337 = vmatpush2.bf16.msra.mxu0 %v2916_v27  ;;  %2380 = vmatpush2.bf16.msra.mxu1 %v2919_v26 }
 0x1bd   :  { %2392 = vmatprep.subr.bf16.mxu0 %v2924_v62  ;;  %2435 = vmatprep.subr.bf16.mxu1 %v2927_v3 }
 0x1ff   :  { %v948_v9 = vpop.f32.mrf.mxu0  ;;  %v991_v10 = vpop.f32.mrf.mxu1 }
 0x200   :  { %v3837_v13 = vadd.f32 %v948_v9, %v237_v63  ;;  %v3839_v14 = vadd.f32 %v991_v10, %v245_v8 }
 0x201   :  { %v950_v15 = vpop.f32.mrf.mxu0  ;;  %v993_v16 = vpop.f32.mrf.mxu1 }
 0x202   :  { %v3842_v17 = vmul.f32 0.70710677, %v3837_v13  ;;  %v3845_v18 = vmul.f32 0.70710677, %v3839_v14  ;;  %v3847_v19 = vadd.f32 %v950_v15, %v241_v11  ;;  %v3849_v22 = vadd.f32 %v993_v16, %v249_v12 }
 0x203   :  { %v952_v28 = vpop.f32.mrf.mxu0  ;;  %v995_v32 = vpop.f32.mrf.mxu1 }
 0x204   :  { %v1150_v23 = vand.u32 2147483647, %v3842_v17  ;;  %v3853_v24 = vand.u32 2147483647, %v3845_v18  ;;  %v3856_v25 = vmul.f32 0.70710677, %v3847_v19  ;;  %v3866_v36 = vadd.f32 %v952_v28, %v237_v63 }
 0x205   :  { %v3861_v30 = vmul.f32 0.70710677, %v3849_v22  ;;  %v954_v33 = vpop.f32.mrf.mxu0  ;;  %v3868_v37 = vadd.f32 %v995_v32, %v245_v8  ;;  %v997_v48 = vpop.f32.mrf.mxu1  ;;  %v3905_v63 = vrot.slane %v3828_v6, %v252_v57  ;;  %v256_v28 = vsub.s32 5, %v3418_v39 }
 0x206   :  { %v1166_v0 = vmul.f32 0.3275911, %v1150_v23  ;;  %v1168_v1 = vmul.f32 0.3275911, %v3853_v24  ;;  %v1151_v29 = vand.u32 2147483647, %v3856_v25  ;;  %v3870_v38 = vadd.f32 %v954_v33, %v241_v11 }
 0x207   :  { %v3864_v35 = vand.u32 2147483647, %v3861_v30  ;;  %v3874_v43 = vmul.f32 0.70710677, %v3866_v36  ;;  %v3877_v45 = vmul.f32 0.70710677, %v3868_v37  ;;  %v3887_v52 = vadd.f32 %v997_v48, %v249_v12 }
 0x208   :  { %v1182_v2 = vadd.f32 1.0, %v1166_v0  ;;  %v1184_v4 = vadd.f32 1.0, %v1168_v1  ;;  %v1167_v31 = vmul.f32 0.3275911, %v1151_v29  ;;  %v3881_v47 = vmul.f32 0.70710677, %v3870_v38 }
 0x209   :  { %v1169_v42 = vmul.f32 0.3275911, %v3864_v35  ;;  %v1158_v46 = vand.u32 2147483647, %v3874_v43  ;;  %v1160_v50 = vand.u32 2147483647, %v3877_v45  ;;  %v3910_v11 = vrot.slane %v3828_v6, %v260_v20 }
 0x20a   :  { %3022 = vrcp.f32 %v1182_v2  ;;  %v1183_v34 = vadd.f32 1.0, %v1167_v31  ;;  %v3885_v51 = vand.u32 2147483647, %v3881_v47  ;;  %v1375_v58 = vsub.f32 0.0, %v1151_v29 }
 0x20b   :  { %3024 = vrcp.f32 %v1184_v4  ;;  %v1185_v44 = vadd.f32 1.0, %v1169_v42  ;;  %v1174_v49 = vmul.f32 0.3275911, %v1158_v46  ;;  %v1176_v54 = vmul.f32 0.3275911, %v1160_v50 }
 0x20c   :  { %3026 = vrcp.f32 %v1183_v34  ;;  %v1175_v55 = vmul.f32 0.3275911, %v3885_v51  ;;  %v3894_v60 = vmul.f32 0.70710677, %v3887_v52  ;;  %v1374_v26 = vsub.f32 0.0, %v1150_v23 }
 0x20d   :  { %3028 = vrcp.f32 %v1185_v44  ;;  %v1190_v53 = vadd.f32 1.0, %v1174_v49  ;;  %v1192_v56 = vadd.f32 1.0, %v1176_v54  ;;  %v1382_v5 = vsub.f32 0.0, %v1158_v46 }
 0x20e   :  { %v1191_v59 = vadd.f32 1.0, %v1175_v55  ;;  %v3902_v7 = vand.u32 2147483647, %v3894_v60  ;;  %v1391_v10 = vmul.f32 %v1375_v58, %v1151_v29  ;;  %v1390_v0 = vmul.f32 %v1374_v26, %v1150_v23 }
 0x20f   :  { %3030 = vrcp.f32 %v1190_v53  ;;  %v1376_v2 = vsub.f32 0.0, %v3853_v24  ;;  %v1377_v4 = vsub.f32 0.0, %v3864_v35  ;;  %v1398_v33 = vmul.f32 %v1382_v5, %v1158_v46 }
 0x210   :  { %3032 = vrcp.f32 %v1192_v56  ;;  %v1177_v16 = vmul.f32 0.3275911, %v3902_v7  ;;  %v1408_v42 = vmul.f32 1.442695, %v1391_v10  ;;  %v1384_v48 = vsub.f32 0.0, %v1160_v50 }
 0x211   :  { %3034 = vrcp.f32 %v1191_v59  ;;  %v1383_v49 = vsub.f32 0.0, %v3885_v51  ;;  %v1406_v55 = vmul.f32 1.442695, %v1390_v0  ;;  %v1392_v56 = vmul.f32 %v1376_v2, %v3853_v24 }
 0x212   :  { %v1193_v34 = vadd.f32 1.0, %v1177_v16  ;;  %v1393_v58 = vmul.f32 %v1377_v4, %v3864_v35  ;;  %v1422_v59 = vmul.f32 1.442695, %v1398_v33  ;;  %v3928_v20 = vrot.slane %v3828_v6, %v256_v28 }
 0x213   :  { %v1400_v5 = vmul.f32 %v1384_v48, %v1160_v50  ;;  %v1399_v10 = vmul.f32 %v1383_v49, %v3885_v51  ;;  %vm1118_vm0 = vcmp.ge.f32.partialorder %v3842_v17, 0.0  ;;  %vm1120_vm1 = vcmp.ge.f32.partialorder %v3845_v18, 0.0 }
 0x214   :  { %3036 = vrcp.f32 %v1193_v34  ;;  %v1412_v16 = vmul.f32 1.442695, %v1393_v58  ;;  %vm1119_vm2 = vcmp.ge.f32.partialorder %v3856_v25, 0.0  ;;  %vm1126_vm3 = vcmp.ge.f32.partialorder %v3874_v43, 0.0 }
 0x215   :  { %3038 = vpow2.f32 %v1408_v42  ;;  %v1424_v42 = vmul.f32 1.442695, %v1399_v10  ;;  %vm1121_vm4 = vcmp.ge.f32.partialorder %v3861_v30, 0.0  ;;  %vm1128_vm5 = vcmp.ge.f32.partialorder %v3877_v45, 0.0 }
 0x216   :  { %3040 = vpow2.f32 %v1406_v55  ;;  %vm1127_vm6 = vcmp.ge.f32.partialorder %v3881_v47, 0.0  ;;  %vm1129_vm7 = vcmp.ge.f32.partialorder %v3894_v60, 0.0  ;;  %v1094_v30 = vmul.f32 0.5, %v3866_v36 }
 0x217   :  { %v3891_v21 = vpop.eup %3022  ;;  %3042 = vpow2.f32 %v1422_v59 }
 0x218   :  { %v3897_v61 = vpop.eup %3024  ;;  %v1230_v27 = vmul.f32 1.0614054, %v3891_v21 }
 0x219   :  { %v1232_v62 = vmul.f32 1.0614054, %v3897_v61  ;;  %v3907_v8 = vpop.eup %3026 }
 0x21a   :  { %v1246_v3 = vadd.f32 -1.4531521, %v1230_v27  ;;  %v1231_v15 = vmul.f32 1.0614054, %v3907_v8  ;;  %v3919_v29 = vpop.eup %3028  ;;  %v264_v27 = vsub.s32 7, %v3418_v39 }
 0x21b   :  { %v1248_v9 = vadd.f32 -1.4531521, %v1232_v62  ;;  %v1233_v44 = vmul.f32 1.0614054, %v3919_v29 }
 0x21c   :  { %v1262_v12 = vmul.f32 %v3891_v21, %v1246_v3  ;;  %v1247_v32 = vadd.f32 -1.4531521, %v1231_v15  ;;  %v3931_v26 = vpop.eup %3030  ;;  %v3955_v59 = vrot.slane %v3828_v6, %v264_v27 }
 0x21d   :  { %v1264_v1 = vmul.f32 %v3897_v61, %v1248_v9  ;;  %v1249_v57 = vadd.f32 -1.4531521, %v1233_v44  ;;  %v1238_v35 = vmul.f32 1.0614054, %v3931_v26  ;;  %v3938_v39 = vpop.eup %3032 }
 0x21e   :  { %v1278_v31 = vadd.f32 1.4214138, %v1262_v12  ;;  %v1263_v54 = vmul.f32 %v3907_v8, %v1247_v32  ;;  %v1410_v12 = vmul.f32 1.442695, %v1392_v56  ;;  %v1240_v4 = vmul.f32 1.0614054, %v3938_v39  ;;  %v3944_v32 = vpop.eup %3034 }
 0x21f   :  { %v1280_v53 = vadd.f32 1.4214138, %v1264_v1  ;;  %v1265_v3 = vmul.f32 %v3919_v29, %v1249_v57  ;;  %v1254_v0 = vadd.f32 -1.4531521, %v1238_v35  ;;  %v1385_v1 = vsub.f32 0.0, %v3902_v7 }
 0x220   :  { %v1294_v23 = vmul.f32 %v3891_v21, %v1278_v31  ;;  %v1279_v46 = vadd.f32 1.4214138, %v1263_v54  ;;  %v1426_v31 = vmul.f32 1.442695, %v1400_v5  ;;  %3044 = vpow2.f32 %v1410_v12 }
 0x221   :  { %v1296_v9 = vmul.f32 %v3897_v61, %v1280_v53  ;;  %v1281_v15 = vadd.f32 1.4214138, %v1265_v3  ;;  %v1270_v34 = vmul.f32 %v3931_v26, %v1254_v0  ;;  %v1256_v48 = vadd.f32 -1.4531521, %v1240_v4 }
 0x222   :  { %v1310_v62 = vadd.f32 -0.28449672, %v1294_v23  ;;  %v1295_v24 = vmul.f32 %v3907_v8, %v1279_v46  ;;  %v1239_v49 = vmul.f32 1.0614054, %v3944_v32  ;;  %3046 = vpow2.f32 %v1412_v16 }
 0x223   :  { %v1297_v2 = vmul.f32 %v3919_v29, %v1281_v15  ;;  %v1312_v51 = vadd.f32 -0.28449672, %v1296_v9  ;;  %v1286_v53 = vadd.f32 1.4214138, %v1270_v34  ;;  %v1401_v54 = vmul.f32 %v1385_v1, %v3902_v7 }
 0x224   :  { %v1311_v28 = vadd.f32 -0.28449672, %v1295_v24  ;;  %v1326_v50 = vmul.f32 %v3891_v21, %v1310_v62  ;;  %v1272_v56 = vmul.f32 %v3938_v39, %v1256_v48  ;;  %3048 = vpow2.f32 %v1426_v31  ;;  %v3957_v62 = vpop.eup %3036 }
 0x225   :  { %v1313_v44 = vadd.f32 -0.28449672, %v1297_v2  ;;  %v1255_v57 = vadd.f32 -1.4531521, %v1239_v49  ;;  %v1302_v46 = vmul.f32 %v3931_v26, %v1286_v53  ;;  %v1328_v3 = vmul.f32 %v3897_v61, %v1312_v51  ;;  %v3039_v16 = vpop.eup %3038 }
 0x226   :  { %v1327_v33 = vmul.f32 %v3907_v8, %v1311_v28  ;;  %v1342_v55 = vadd.f32 0.2548296, %v1326_v50  ;;  %v1288_v5 = vadd.f32 1.4214138, %v1272_v56  ;;  %3050 = vpow2.f32 %v1424_v42 }
 0x227   :  { %v1329_v58 = vmul.f32 %v3919_v29, %v1313_v44  ;;  %v1271_v7 = vmul.f32 %v3944_v32, %v1255_v57  ;;  %v1318_v24 = vadd.f32 -0.28449672, %v1302_v46  ;;  %v1241_v35 = vmul.f32 1.0614054, %v3957_v62 }
 0x228   :  { %v1343_v23 = vadd.f32 0.2548296, %v1327_v33  ;;  %v1428_v10 = vmul.f32 1.442695, %v1401_v54  ;;  %v3964_v12 = vmul.f32 0.5, %v3837_v13  ;;  %v1358_v6 = vmul.f32 %v3891_v21, %v1342_v55  ;;  %v3041_v21 = vpop.eup %3040 }
 0x229   :  { %v1304_v27 = vmul.f32 %v3938_v39, %v1288_v5  ;;  %v1287_v15 = vadd.f32 1.4214138, %v1271_v7  ;;  %v1345_v28 = vadd.f32 0.2548296, %v1329_v58  ;;  %v1334_v0 = vmul.f32 %v3931_v26, %v1318_v24  ;;  %v3043_v34 = vpop.eup %3042 }
 0x22a   :  { %v1359_v9 = vmul.f32 %v3907_v8, %v1343_v23  ;;  %v1257_v1 = vadd.f32 -1.4531521, %v1241_v35  ;;  %v3116_v8 = vmov -1.0   ;;  %v1344_v2 = vadd.f32 0.2548296, %v1328_v3 }
 0x22b   :  { %v1134_v50 = vsel %vm1118_vm0, 1.0, %v3116_v8  ;;  %v1320_v13 = vadd.f32 -0.28449672, %v1304_v27  ;;  %v1303_v4 = vmul.f32 %v3944_v32, %v1287_v15  ;;  %v1350_v51 = vadd.f32 0.2548296, %v1334_v0 }
 0x22c   :  { %v1439_v31 = vmul.f32 %v3039_v16, %v1359_v9  ;;  %v1273_v33 = vmul.f32 %v3957_v62, %v1257_v1  ;;  %3052 = vpow2.f32 %v1428_v10  ;;  %v1438_v42 = vmul.f32 %v3041_v21, %v1358_v6 }
 0x22d   :  { %v1336_v44 = vmul.f32 %v3938_v39, %v1320_v13  ;;  %v1319_v48 = vadd.f32 -0.28449672, %v1303_v4  ;;  %v1136_v17 = vsel %vm1120_vm1, 1.0, %v3116_v8  ;;  %v1361_v49 = vmul.f32 %v3919_v29, %v1345_v28  ;;  %v3045_v25 = vpop.eup %3044 }
 0x22e   :  { %v1366_v23 = vmul.f32 %v3931_v26, %v1350_v51  ;;  %v1289_v53 = vadd.f32 1.4214138, %v1273_v33  ;;  %v1360_v54 = vmul.f32 %v3897_v61, %v1344_v2  ;;  %v1135_v57 = vsel %vm1119_vm2, 1.0, %v3116_v8 }
 0x22f   :  { %v1352_v55 = vadd.f32 0.2548296, %v1336_v44  ;;  %v1335_v56 = vmul.f32 %v3944_v32, %v1319_v48  ;;  %v1455_v58 = vsub.f32 1.0, %v1439_v31  ;;  %v3047_v3 = vpop.eup %3046  ;;  %v1454_v5 = vsub.f32 1.0, %v1438_v42 }
 0x230   :  { %v1446_v46 = vmul.f32 %v3043_v34, %v1366_v23  ;;  %v1305_v18 = vmul.f32 %v3957_v62, %v1289_v53  ;;  %v1441_v7 = vmul.f32 %v3047_v3, %v1361_v49  ;;  %v1142_v43 = vsel %vm1126_vm3, 1.0, %v3116_v8 }
 0x231   :  { %v1368_v29 = vmul.f32 %v3938_v39, %v1352_v55  ;;  %v1351_v26 = vadd.f32 0.2548296, %v1335_v56  ;;  %v3049_v61 = vpop.eup %3048  ;;  %v1440_v35 = vmul.f32 %v3045_v25, %v1360_v54  ;;  %v1471_v15 = vmul.f32 %v1455_v58, %v1135_v57 }
 0x232   :  { %v1462_v9 = vsub.f32 1.0, %v1446_v46  ;;  %v1321_v24 = vadd.f32 -0.28449672, %v1305_v18  ;;  %v1470_v28 = vmul.f32 %v1454_v5, %v1134_v50  ;;  %v1087_v0 = vmul.f32 0.5, %v3847_v19 }
 0x233   :  { %v1448_v10 = vmul.f32 %v3049_v61, %v1368_v29  ;;  %v1367_v6 = vmul.f32 %v3944_v32, %v1351_v26  ;;  %v3051_v27 = vpop.eup %3050  ;;  %v1089_v13 = vmul.f32 0.5, %v3849_v22  ;;  %v1137_v4 = vsel %vm1121_vm4, 1.0, %v3116_v8 }
 0x234   :  { %v1478_v16 = vmul.f32 %v1462_v9, %v1142_v43  ;;  %v1337_v39 = vmul.f32 %v3957_v62, %v1321_v24  ;;  %v1457_v21 = vsub.f32 1.0, %v1441_v7  ;;  %v1456_v31 = vsub.f32 1.0, %v1440_v35  ;;  %v2922_v35 = vld [vmem:[%s4427_s5 + $0x270] ss:$8 sps:$4 sm:$0xff]  }
 0x235   :  { %v1464_v1 = vsub.f32 1.0, %v1448_v10  ;;  %v1447_v2 = vmul.f32 %v3051_v27, %v1367_v6  ;;  %v1144_v47 = vsel %vm1128_vm5, 1.0, %v3116_v8  ;;  %v1143_v51 = vsel %vm1127_vm6, 1.0, %v3116_v8 }
 0x236   :  { %v1353_v32 = vadd.f32 0.2548296, %v1337_v39  ;;  %v1487_v33 = vadd.f32 1.0, %v1471_v15  ;;  %v1494_v19 = vadd.f32 1.0, %v1478_v16  ;;  %v1486_v42 = vadd.f32 1.0, %v1470_v28 }
 0x237   :  { %v1463_v50 = vsub.f32 1.0, %v1447_v2  ;;  %v1480_v44 = vmul.f32 %v1464_v1, %v1144_v47  ;;  %v1473_v53 = vmul.f32 %v1457_v21, %v1137_v4  ;;  %v1472_v56 = vmul.f32 %v1456_v31, %v1136_v17  ;;  %v2930_v39 = vld [vmem:[%s4427_s5 + $0x264] ss:$8 sps:$4 sm:$0xff]  }
 0x238   :  { %v1369_v22 = vmul.f32 %v3957_v62, %v1353_v32  ;;  %v1095_v25 = vmul.f32 0.5, %v3870_v38  ;;  %v1145_v36 = vsel %vm1129_vm7, 1.0, %v3116_v8  ;;  %v1503_v58 = vmul.f32 %v1487_v33, %v1087_v0 }
 0x239   :  { %v3053_v34 = vpop.eup %3052  ;;  %v1479_v48 = vmul.f32 %v1463_v50, %v1143_v51  ;;  %v1510_v46 = vmul.f32 %v1494_v19, %v1094_v30  ;;  %v1496_v5 = vadd.f32 1.0, %v1480_v44  ;;  %v1502_v38 = vmul.f32 %v1486_v42, %v3964_v12  ;;  %v2928_v51 = vld [vmem:[%s4427_s5 + $0x260] ss:$8 sps:$4 sm:$0xff]   ;;  %v2936_v19 = vld [vmem:[%s4427_s5 + $0x254] ss:$8 sps:$4 sm:$0xff]  }
 0x23a   :  { %v1449_v45 = vmul.f32 %v3053_v34, %v1369_v22  ;;  %v1489_v61 = vadd.f32 1.0, %v1473_v53  ;;  %v1488_v43 = vadd.f32 1.0, %v1472_v56  ;;  %v1096_v9 = vmul.f32 0.5, %v3868_v37  ;;  %v2933_v42 = vld [vmem:[%s4427_s5 + $0x364] ss:$8 sps:$4 sm:$0xff]  }
 0x23b   :  { %v1495_v62 = vadd.f32 1.0, %v1479_v48  ;;  %v1646_v27 = vpack.c.bf16 %v1510_v46, %v1502_v38  ;;  %v1097_v12 = vmul.f32 0.5, %v3887_v52  ;;  %v1088_v37 = vmul.f32 0.5, %v3839_v14  ;;  %v2937_v46 = vld [vmem:[%s4427_s5 + $0x350] ss:$8 sps:$4 sm:$0xff]  }
 0x23c   :  { %v1465_v18 = vsub.f32 1.0, %v1449_v45  ;;  %v1512_v28 = vmul.f32 %v1496_v5, %v1096_v9  ;;  %v1505_v2 = vmul.f32 %v1489_v61, %v1089_v13  ;;  %v2925_v13 = vld [vmem:[%s4427_s5 + $0x370] ss:$8 sps:$4 sm:$0xff]   ;;  %v2948_v38 = vld [vmem:[%s4427_s5 + $0x234] ss:$8 sps:$4 sm:$0xff]  }
 0x23d   :  { %v1511_v29 = vmul.f32 %v1495_v62, %v1095_v25  ;;  %v1504_v31 = vmul.f32 %v1488_v43, %v1088_v37  ;;  %v2934_v45 = vld [vmem:[%s4427_s5 + $0x250] ss:$8 sps:$4 sm:$0xff]   ;;  %v2942_v25 = vld [vmem:[%s4427_s5 + $0x244] ss:$8 sps:$4 sm:$0xff]   ;;  %v2939_v62 = vld [vmem:[%s4427_s5 + $0x354] ss:$8 sps:$4 sm:$0xff]  }
 0x23e   :  { %v1481_v60 = vmul.f32 %v1465_v18, %v1145_v36  ;;  %v2945_v43 = vld [vmem:[%s4427_s5 + $0x344] ss:$8 sps:$4 sm:$0xff]   ;;  %v2951_v37 = vld [vmem:[%s4427_s5 + $0x334] ss:$8 sps:$4 sm:$0xff]  }
 0x23f   :  { %v1034_v49 = vpop.f32.mrf.mxu0  ;;  %v1077_v23 = vpop.f32.mrf.mxu1  ;;  %v1647_v24 = vpack.c.bf16 %v1511_v29, %v1503_v58  ;;  %v1648_v22 = vpack.c.bf16 %v1512_v28, %v1504_v31 }
 0x240   :  { %v4007_v54 = vadd.f32 %v1034_v49, %v3905_v63  ;;  %v4010_v55 = vadd.f32 %v1077_v23, %v3910_v11  ;;  %v1497_v15 = vadd.f32 1.0, %v1481_v60  ;;  %v2931_v23 = vld [vmem:[%s4427_s5 + $0x360] ss:$8 sps:$4 sm:$0xff]  }
 0x241   :  { %v1036_v57 = vpop.f32.mrf.mxu0  ;;  %v1079_v6 = vpop.f32.mrf.mxu1  ;;  %2338 = vmatprep.mubr.bf16.mxu0 %v1647_v24 }
 0x242   :  { %v4017_v3 = vmul.f32 0.70710677, %v4007_v54  ;;  %v4020_v26 = vmul.f32 0.70710677, %v4010_v55  ;;  %v4023_v17 = vadd.f32 %v1036_v57, %v3928_v20  ;;  %v1513_v4 = vmul.f32 %v1497_v15, %v1097_v12  ;;  %2339 = vmatmul.mubr.bf16.vlgmr.msra.gmra.mxu0 %v1646_v27  ;;  %v2943_v12 = vld [vmem:[%s4427_s5 + $0x340] ss:$8 sps:$4 sm:$0xff]  }
 0x243   :  { %v4047_v21 = vadd.f32 %v1079_v6, %v3955_v59  ;;  %v1038_v32 = vpop.f32.mrf.mxu0  ;;  %2393 = vmatpush1.bf16.msra.mxu0 %v2922_v35  ;;  %v1081_v33 = vpop.f32.mrf.mxu1  ;;  %v2946_v6 = vld [vmem:[%s4427_s5 + $0x230] ss:$8 sps:$4 sm:$0xff]   ;;  %v2954_v15 = vld [vmem:[%s4427_s5 + $0x224] ss:$8 sps:$4 sm:$0xff]  }
 0x244   :  { %v4027_v7 = vand.u32 2147483647, %v4017_v3  ;;  %v4034_v10 = vand.u32 2147483647, %v4020_v26  ;;  %v4044_v1 = vmul.f32 0.70710677, %v4023_v17  ;;  %v1649_v50 = vpack.c.bf16 %v1513_v4, %v1505_v2  ;;  %2394 = vmatprep.subr.bf16.mxu0 %v2930_v39 }
 0x245   :  { %v4066_v30 = vmul.f32 0.70710677, %v4047_v21  ;;  %v4069_v44 = vadd.f32 %v1038_v32, %v3905_v63  ;;  %v1040_v48 = vpop.f32.mrf.mxu0  ;;  %v4075_v53 = vadd.f32 %v1081_v33, %v3910_v11  ;;  %v1083_v29 = vpop.f32.mrf.mxu1  ;;  %vm1122_vm8 = vcmp.ge.f32.partialorder %v4017_v3, 0.0  ;;  %v2999_v3 = vld [vmem:[%s4427_s5 + $0x3b4] ss:$8 sps:$4 sm:$0xff]  }
 0x246   :  { %v1170_v16 = vmul.f32 0.3275911, %v4027_v7  ;;  %v1172_v0 = vmul.f32 0.3275911, %v4034_v10  ;;  %v4050_v14 = vand.u32 2147483647, %v4044_v1  ;;  %2381 = vmatprep.mubr.bf16.mxu1 %v1649_v50  ;;  %v4090_v11 = vadd.f32 %v1040_v48, %v3928_v20 }
 0x247   :  { %2382 = vmatmul.mubr.bf16.vlgmr.msra.gmra.mxu1 %v1648_v22  ;;  %2395 = vmatpush1.bf16.msra.mxu0 %v2928_v51  ;;  %v4081_v56 = vand.u32 2147483647, %v4066_v30  ;;  %v4084_v63 = vmul.f32 0.70710677, %v4069_v44  ;;  %v4100_v58 = vmul.f32 0.70710677, %v4075_v53  ;;  %v4123_v35 = vadd.f32 %v1083_v29, %v3955_v59 }
 0x248   :  { %v1186_v52 = vadd.f32 1.0, %v1170_v16  ;;  %v1188_v47 = vadd.f32 1.0, %v1172_v0  ;;  %v1171_v34 = vmul.f32 0.3275911, %v4050_v14  ;;  %2436 = vmatpush1.bf16.msra.mxu1 %v2925_v13  ;;  %2396 = vmatprep.subr.bf16.mxu0 %v2936_v19  ;;  %v2940_v20 = vld [vmem:[%s4427_s5 + $0x240] ss:$8 sps:$4 sm:$0xff]  }
 0x249   :  { %2437 = vmatprep.subr.bf16.mxu1 %v2933_v42  ;;  %v1173_v36 = vmul.f32 0.3275911, %v4081_v56  ;;  %v4097_v57 = vand.u32 2147483647, %v4084_v63  ;;  %v4113_v61 = vand.u32 2147483647, %v4100_v58 }
 0x24a   :  { %3054 = vrcp.f32 %v1186_v52  ;;  %v1187_v49 = vadd.f32 1.0, %v1171_v34  ;;  %v4116_v60 = vmul.f32 0.70710677, %v4090_v11  ;;  %v1378_v16 = vsub.f32 0.0, %v4027_v7  ;;  %v2949_v52 = vld [vmem:[%s4427_s5 + $0x330] ss:$8 sps:$4 sm:$0xff]  }
 0x24b   :  { %3056 = vrcp.f32 %v1188_v47  ;;  %2397 = vmatpush1.bf16.msra.mxu0 %v2934_v45  ;;  %v1189_v18 = vadd.f32 1.0, %v1173_v36  ;;  %v1178_v5 = vmul.f32 0.3275911, %v4097_v57  ;;  %v1180_v24 = vmul.f32 0.3275911, %v4113_v61 }
 0x24c   :  { %3058 = vrcp.f32 %v1187_v49  ;;  %2438 = vmatpush1.bf16.msra.mxu1 %v2931_v23  ;;  %2398 = vmatprep.subr.bf16.mxu0 %v2942_v25  ;;  %v4129_v27 = vand.u32 2147483647, %v4116_v60  ;;  %v1380_v2 = vsub.f32 0.0, %v4034_v10  ;;  %v4153_v31 = vmul.f32 0.70710677, %v4123_v35 }
 0x24d   :  { %2439 = vmatprep.subr.bf16.mxu1 %v2939_v62  ;;  %3060 = vrcp.f32 %v1189_v18  ;;  %v1194_v9 = vadd.f32 1.0, %v1178_v5  ;;  %v1196_v39 = vadd.f32 1.0, %v1180_v24  ;;  %v2952_v47 = vld [vmem:[%s4427_s5 + $0x220] ss:$8 sps:$4 sm:$0xff]   ;;  %v2957_v51 = vld [vmem:[%s4427_s5 + $0x324] ss:$8 sps:$4 sm:$0xff]   ;;  %v1394_v22 = vmul.f32 %v1378_v16, %v4027_v7 }
 0x24e   :  { %v1179_v4 = vmul.f32 0.3275911, %v4129_v27  ;;  %v1379_v13 = vsub.f32 0.0, %v4050_v14  ;;  %v2960_v19 = vld [vmem:[%s4427_s5 + $0x214] ss:$8 sps:$4 sm:$0xff]   ;;  %v1381_v42 = vsub.f32 0.0, %v4081_v56  ;;  %v1396_v45 = vmul.f32 %v1380_v2, %v4034_v10 }
 0x24f   :  { %2399 = vmatpush1.bf16.msra.mxu0 %v2940_v20  ;;  %3062 = vrcp.f32 %v1194_v9  ;;  %v4168_v48 = vand.u32 2147483647, %v4153_v31  ;;  %v1386_v25 = vsub.f32 0.0, %v4097_v57  ;;  %v2955_v7 = vld [vmem:[%s4427_s5 + $0x320] ss:$8 sps:$4 sm:$0xff]   ;;  %v1388_v29 = vsub.f32 0.0, %v4113_v61 }
 0x250   :  { %2440 = vmatpush1.bf16.msra.mxu1 %v2937_v46  ;;  %2400 = vmatprep.subr.bf16.mxu0 %v2948_v38  ;;  %3064 = vrcp.f32 %v1196_v39  ;;  %v1195_v33 = vadd.f32 1.0, %v1179_v4  ;;  %v2958_v46 = vld [vmem:[%s4427_s5 + $0x210] ss:$8 sps:$4 sm:$0xff]   ;;  %v2963_v10 = vld [vmem:[%s4427_s5 + $0x314] ss:$8 sps:$4 sm:$0xff]   ;;  %v1395_v5 = vmul.f32 %v1379_v13, %v4050_v14  ;;  %v1397_v24 = vmul.f32 %v1381_v42, %v4081_v56 }
 0x251   :  { %2441 = vmatprep.subr.bf16.mxu1 %v2945_v43  ;;  %v1181_v36 = vmul.f32 0.3275911, %v4168_v48  ;;  %v2966_v38 = vld [vmem:[%s4427_s5 + $0x204] ss:$8 sps:$4 sm:$0xff]   ;;  %v1414_v43 = vmul.f32 1.442695, %v1394_v22 }
 0x252   :  { %3066 = vrcp.f32 %v1195_v33  ;;  %v2961_v14 = vld [vmem:[%s4427_s5 + $0x310] ss:$8 sps:$4 sm:$0xff]   ;;  %v2964_v56 = vld [vmem:[%s4427_s5 + $0x200] ss:$8 sps:$4 sm:$0xff]   ;;  %v1416_v4 = vmul.f32 1.442695, %v1395_v5 }
 0x253   :  { %2401 = vmatpush1.bf16.msra.mxu0 %v2946_v6  ;;  %v1197_v6 = vadd.f32 1.0, %v1181_v36  ;;  %v2967_v22 = vld [vmem:[%s4427_s5 + $0x300] ss:$8 sps:$4 sm:$0xff]   ;;  %vm1124_vm9 = vcmp.ge.f32.partialorder %v4020_v26, 0.0  ;;  %vm1130_vm10 = vcmp.ge.f32.partialorder %v4084_v63, 0.0  ;;  %vm1123_vm11 = vcmp.ge.f32.partialorder %v4044_v1, 0.0 }
 0x254   :  { %2442 = vmatpush1.bf16.msra.mxu1 %v2943_v12  ;;  %2402 = vmatprep.subr.bf16.mxu0 %v2954_v15  ;;  %v1418_v12 = vmul.f32 1.442695, %v1396_v45  ;;  %v1402_v15 = vmul.f32 %v1386_v25, %v4097_v57  ;;  %v2972_v57 = vld [vmem:[%s4427_s5 + $0x2f4] ss:$8 sps:$4 sm:$0xff]   ;;  %v2970_v45 = vld [vmem:[%s4427_s5 + $0x2f0] ss:$8 sps:$4 sm:$0xff]  }
 0x255   :  { %2443 = vmatprep.subr.bf16.mxu1 %v2951_v37  ;;  %3068 = vrcp.f32 %v1197_v6  ;;  %vm1132_vm12 = vcmp.ge.f32.partialorder %v4100_v58, 0.0  ;;  %vm1131_vm13 = vcmp.ge.f32.partialorder %v4116_v60, 0.0  ;;  %v3003_v1 = vld [vmem:[%s4427_s5 + $0x3a0] ss:$8 sps:$4 sm:$0xff]   ;;  %vm1125_vm14 = vcmp.ge.f32.partialorder %v4066_v30, 0.0 }
 0x256   :  { %3070 = vpow2.f32 %v1414_v43  ;;  %v1147_v26 = vsel %vm1131_vm13, 1.0, %v3116_v8  ;;  %vm1133_vm15 = vcmp.ge.f32.partialorder %v4153_v31, 0.0  ;;  %v3009_v30 = vld [vmem:[%s4427_s5 + $0x390] ss:$8 sps:$4 sm:$0xff]  }
 0x257   :  { %v4137_v59 = vpop.eup %3054  ;;  %2403 = vmatpush1.bf16.msra.mxu0 %v2952_v47  ;;  %3072 = vpow2.f32 %v1418_v12 }
 0x258   :  { %v4143_v28 = vpop.eup %3056  ;;  %v1234_v0 = vmul.f32 1.0614054, %v4137_v59  ;;  %2444 = vmatpush1.bf16.msra.mxu1 %v2949_v52  ;;  %2404 = vmatprep.subr.bf16.mxu0 %v2960_v19  ;;  %v1430_v19 = vmul.f32 1.442695, %v1402_v15  ;;  %3074 = vpow2.f32 %v1416_v4  ;;  %v2976_v15 = vld [vmem:[%s4427_s5 + $0x2e0] ss:$8 sps:$4 sm:$0xff]  }
 0x259   :  { %v1236_v32 = vmul.f32 1.0614054, %v4143_v28  ;;  %v4170_v49 = vpop.eup %3058  ;;  %2445 = vmatprep.subr.bf16.mxu1 %v2957_v51  ;;  %v1420_v51 = vmul.f32 1.442695, %v1397_v24  ;;  %v2981_v4 = vld [vmem:[%s4427_s5 + $0x3e4] ss:$8 sps:$4 sm:$0xff]  }
 0x25a   :  { %v1250_v50 = vadd.f32 -1.4531521, %v1234_v0  ;;  %v1235_v62 = vmul.f32 1.0614054, %v4170_v49  ;;  %v4197_v16 = vpop.eup %3060  ;;  %v1387_v0 = vsub.f32 0.0, %v4129_v27 }
 0x25b   :  { %v1252_v34 = vadd.f32 -1.4531521, %v1236_v32  ;;  %2405 = vmatpush1.bf16.msra.mxu0 %v2958_v46  ;;  %v1237_v52 = vmul.f32 1.0614054, %v4197_v16  ;;  %v1404_v32 = vmul.f32 %v1388_v29, %v4113_v61  ;;  %v2975_v46 = vld [vmem:[%s4427_s5 + $0x3f4] ss:$8 sps:$4 sm:$0xff]   ;;  %3076 = vpow2.f32 %v1420_v51 }
 0x25c   :  { %v1266_v23 = vmul.f32 %v4137_v59, %v1250_v50  ;;  %v1251_v9 = vadd.f32 -1.4531521, %v1235_v62  ;;  %2446 = vmatpush1.bf16.msra.mxu1 %v2955_v7  ;;  %2406 = vmatprep.subr.bf16.mxu0 %v2966_v38  ;;  %v2969_v50 = vld [vmem:[%s4427_s5 + $0x304] ss:$8 sps:$4 sm:$0xff]   ;;  %v4213_v13 = vpop.eup %3062  ;;  %3078 = vpow2.f32 %v1430_v19  ;;  %v2973_v38 = vld [vmem:[%s4427_s5 + $0x3f0] ss:$8 sps:$4 sm:$0xff]  }
 0x25d   :  { %v1268_v18 = vmul.f32 %v4143_v28, %v1252_v34  ;;  %2447 = vmatprep.subr.bf16.mxu1 %v2963_v10  ;;  %v1253_v33 = vadd.f32 -1.4531521, %v1237_v52  ;;  %v1242_v42 = vmul.f32 1.0614054, %v4213_v13  ;;  %v4224_v25 = vpop.eup %3064  ;;  %v1434_v36 = vmul.f32 1.442695, %v1404_v32 }
 0x25e   :  { %v1282_v20 = vadd.f32 1.4214138, %v1266_v23  ;;  %v1267_v37 = vmul.f32 %v4170_v49, %v1251_v9  ;;  %v1403_v23 = vmul.f32 %v1387_v0, %v4129_v27  ;;  %v2978_v27 = vld [vmem:[%s4427_s5 + $0x2e4] ss:$8 sps:$4 sm:$0xff]   ;;  %v1244_v29 = vmul.f32 1.0614054, %v4224_v25 }
 0x25f   :  { %v1284_v2 = vadd.f32 1.4214138, %v1268_v18  ;;  %2407 = vmatpush1.bf16.msra.mxu0 %v2964_v56  ;;  %v1269_v62 = vmul.f32 %v4197_v16, %v1253_v33  ;;  %v1389_v18 = vsub.f32 0.0, %v4168_v48  ;;  %v4239_v43 = vpop.eup %3066  ;;  %3080 = vpow2.f32 %v1434_v36  ;;  %v2979_v19 = vld [vmem:[%s4427_s5 + $0x3e0] ss:$8 sps:$4 sm:$0xff]  }
 0x260   :  { %v1298_v39 = vmul.f32 %v4137_v59, %v1282_v20  ;;  %v1283_v47 = vadd.f32 1.4214138, %v1267_v37  ;;  %2448 = vmatpush1.bf16.msra.mxu1 %v2961_v14  ;;  %2408 = vmatprep.subr.bf16.mxu0 %v2972_v57  ;;  %v1258_v20 = vadd.f32 -1.4531521, %v1242_v42  ;;  %v1432_v12 = vmul.f32 1.442695, %v1403_v23 }
 0x261   :  { %v1300_v7 = vmul.f32 %v4143_v28, %v1284_v2  ;;  %2449 = vmatprep.subr.bf16.mxu1 %v2969_v50  ;;  %v1285_v5 = vadd.f32 1.4214138, %v1269_v62  ;;  %v2984_v14 = vld [vmem:[%s4427_s5 + $0x2d4] ss:$8 sps:$4 sm:$0xff]   ;;  %v1260_v0 = vadd.f32 -1.4531521, %v1244_v29  ;;  %v1405_v2 = vmul.f32 %v1389_v18, %v4168_v48 }
 0x262   :  { %v1314_v61 = vadd.f32 -0.28449672, %v1298_v39  ;;  %v1299_v34 = vmul.f32 %v4170_v49, %v1283_v47  ;;  %v1274_v6 = vmul.f32 %v4213_v13, %v1258_v20  ;;  %v1243_v56 = vmul.f32 1.0614054, %v4239_v43  ;;  %v2982_v48 = vld [vmem:[%s4427_s5 + $0x2d0] ss:$8 sps:$4 sm:$0xff]  }
 0x263   :  { %2409 = vmatpush2.bf16.msra.mxu0 %v2970_v45  ;;  %v1316_v39 = vadd.f32 -0.28449672, %v1300_v7  ;;  %v1301_v37 = vmul.f32 %v4197_v16, %v1285_v5  ;;  %v1276_v47 = vmul.f32 %v4224_v25, %v1260_v0  ;;  %3082 = vpow2.f32 %v1432_v12  ;;  %v2987_v45 = vld [vmem:[%s4427_s5 + $0x3d4] ss:$8 sps:$4 sm:$0xff]   ;;  %v2990_v7 = vld [vmem:[%s4427_s5 + $0x2c4] ss:$8 sps:$4 sm:$0xff]  }
 0x264   :  { %v1315_v10 = vadd.f32 -0.28449672, %v1299_v34  ;;  %v1330_v9 = vmul.f32 %v4137_v59, %v1314_v61  ;;  %2450 = vmatpush1.bf16.msra.mxu1 %v2967_v22  ;;  %2410 = vmatprep.subr.bf16.mxu0 %v2978_v27  ;;  %v1290_v57 = vadd.f32 1.4214138, %v1274_v6  ;;  %v1259_v51 = vadd.f32 -1.4531521, %v1243_v56  ;;  %v4264_v22 = vpop.eup %3068 }
 0x265   :  { %2451 = vmatprep.subr.bf16.mxu1 %v2975_v46  ;;  %v1317_v32 = vadd.f32 -0.28449672, %v1301_v37  ;;  %v1332_v61 = vmul.f32 %v4143_v28, %v1316_v39  ;;  %v1292_v42 = vadd.f32 1.4214138, %v1276_v47  ;;  %v1245_v36 = vmul.f32 1.0614054, %v4264_v22  ;;  %v3071_v27 = vpop.eup %3070 }
 0x266   :  { %v1331_v24 = vmul.f32 %v4170_v49, %v1315_v10  ;;  %v1346_v50 = vadd.f32 0.2548296, %v1330_v9  ;;  %v1306_v33 = vmul.f32 %v4213_v13, %v1290_v57  ;;  %v1275_v23 = vmul.f32 %v4239_v43, %v1259_v51  ;;  %v2985_v5 = vld [vmem:[%s4427_s5 + $0x3d0] ss:$8 sps:$4 sm:$0xff]   ;;  %v3073_v29 = vpop.eup %3072  ;;  %v2988_v12 = vld [vmem:[%s4427_s5 + $0x2c0] ss:$8 sps:$4 sm:$0xff]  }
 0x267   :  { %2411 = vmatpush2.bf16.msra.mxu0 %v2976_v15  ;;  %v1333_v34 = vmul.f32 %v4197_v16, %v1317_v32  ;;  %v1436_v46 = vmul.f32 1.442695, %v1405_v2  ;;  %v1308_v20 = vmul.f32 %v4224_v25, %v1292_v42  ;;  %v1261_v6 = vadd.f32 -1.4531521, %v1245_v36  ;;  %v2996_v39 = vld [vmem:[%s4427_s5 + $0x2b4] ss:$8 sps:$4 sm:$0xff]  }
 0x268   :  { %v1347_v52 = vadd.f32 0.2548296, %v1331_v24  ;;  %2452 = vmatpush2.bf16.msra.mxu1 %v2973_v38  ;;  %2412 = vmatprep.subr.bf16.mxu0 %v2984_v14  ;;  %v1322_v62 = vadd.f32 -0.28449672, %v1306_v33  ;;  %v1291_v18 = vadd.f32 1.4214138, %v1275_v23  ;;  %v1362_v38 = vmul.f32 %v4137_v59, %v1346_v50  ;;  %v3075_v59 = vpop.eup %3074 }
 0x269   :  { %2453 = vmatprep.subr.bf16.mxu1 %v2981_v4  ;;  %v1349_v9 = vadd.f32 0.2548296, %v1333_v34  ;;  %v1324_v15 = vadd.f32 -0.28449672, %v1308_v20  ;;  %v1277_v0 = vmul.f32 %v4264_v22, %v1261_v6  ;;  %3084 = vpow2.f32 %v1436_v46  ;;  %v2993_v56 = vld [vmem:[%s4427_s5 + $0x3c4] ss:$8 sps:$4 sm:$0xff]   ;;  %v3077_v57 = vpop.eup %3076 }
 0x26a   :  { %v1363_v10 = vmul.f32 %v4170_v49, %v1347_v52  ;;  %v1338_v24 = vmul.f32 %v4213_v13, %v1322_v62  ;;  %v1348_v49 = vadd.f32 0.2548296, %v1332_v61  ;;  %v1307_v14 = vmul.f32 %v4239_v43, %v1291_v18  ;;  %v3079_v32 = vpop.eup %3078  ;;  %v3000_v18 = vld [vmem:[%s4427_s5 + $0x2a0] ss:$8 sps:$4 sm:$0xff]  }
 0x26b   :  { %2413 = vmatpush2.bf16.msra.mxu0 %v2982_v48  ;;  %v1340_v4 = vmul.f32 %v4224_v25, %v1324_v15  ;;  %v1442_v47 = vmul.f32 %v3071_v27, %v1362_v38  ;;  %v1365_v51 = vmul.f32 %v4197_v16, %v1349_v9  ;;  %v1293_v33 = vadd.f32 1.4214138, %v1277_v0  ;;  %v2994_v48 = vld [vmem:[%s4427_s5 + $0x2b0] ss:$8 sps:$4 sm:$0xff]  }
 0x26c   :  { %2454 = vmatpush2.bf16.msra.mxu1 %v2979_v19  ;;  %2414 = vmatprep.subr.bf16.mxu0 %v2990_v7  ;;  %v1354_v37 = vadd.f32 0.2548296, %v1338_v24  ;;  %v1443_v2 = vmul.f32 %v3075_v59, %v1363_v10  ;;  %v1323_v52 = vadd.f32 -0.28449672, %v1307_v14  ;;  %v2991_v19 = vld [vmem:[%s4427_s5 + $0x3c0] ss:$8 sps:$4 sm:$0xff]   ;;  %v1364_v34 = vmul.f32 %v4143_v28, %v1348_v49  ;;  %v3081_v28 = vpop.eup %3080 }
 0x26d   :  { %2455 = vmatprep.subr.bf16.mxu1 %v2987_v45  ;;  %v1138_v61 = vsel %vm1122_vm8, 1.0, %v3116_v8  ;;  %v1356_v42 = vadd.f32 0.2548296, %v1340_v4  ;;  %v1309_v45 = vmul.f32 %v4264_v22, %v1293_v33  ;;  %v1458_v46 = vsub.f32 1.0, %v1442_v47 }
 0x26e   :  { %v1370_v50 = vmul.f32 %v4213_v13, %v1354_v37  ;;  %v1339_v16 = vmul.f32 %v4239_v43, %v1323_v52  ;;  %v3002_v13 = vld [vmem:[%s4427_s5 + $0x2a4] ss:$8 sps:$4 sm:$0xff]   ;;  %v1459_v7 = vsub.f32 1.0, %v1443_v2  ;;  %v1445_v27 = vmul.f32 %v3077_v57, %v1365_v51 }
 0x26f   :  { %2415 = vmatpush2.bf16.msra.mxu0 %v2988_v12  ;;  %v1372_v62 = vmul.f32 %v4224_v25, %v1356_v42  ;;  %v1325_v20 = vadd.f32 -0.28449672, %v1309_v45  ;;  %v1444_v38 = vmul.f32 %v3073_v29, %v1364_v34  ;;  %v1146_v9 = vsel %vm1130_vm10, 1.0, %v3116_v8  ;;  %v2997_v25 = vld [vmem:[%s4427_s5 + $0x3b0] ss:$8 sps:$4 sm:$0xff]  }
 0x270   :  { %2456 = vmatpush2.bf16.msra.mxu1 %v2985_v5  ;;  %2416 = vmatprep.subr.bf16.mxu0 %v2996_v39  ;;  %v1450_v23 = vmul.f32 %v3079_v32, %v1370_v50  ;;  %v1355_v36 = vadd.f32 0.2548296, %v1339_v16  ;;  %v3083_v5 = vpop.eup %3082  ;;  %v3008_v12 = vld [vmem:[%s4427_s5 + $0x294] ss:$8 sps:$4 sm:$0xff]   ;;  %v1139_v29 = vsel %vm1123_vm11, 1.0, %v3116_v8  ;;  %v1474_v59 = vmul.f32 %v1458_v46, %v1138_v61 }
 0x271   :  { %2457 = vmatprep.subr.bf16.mxu1 %v2993_v56  ;;  %v1452_v24 = vmul.f32 %v3081_v28, %v1372_v62  ;;  %v1341_v63 = vmul.f32 %v4264_v22, %v1325_v20  ;;  %v1475_v15 = vmul.f32 %v1459_v7, %v1139_v29  ;;  %v1461_v37 = vsub.f32 1.0, %v1445_v27  ;;  %v3006_v56 = vld [vmem:[%s4427_s5 + $0x290] ss:$8 sps:$4 sm:$0xff]   ;;  %v3014_v32 = vld [vmem:[%s4427_s5 + $0x284] ss:$8 sps:$4 sm:$0xff]  }
 0x272   :  { %v1466_v10 = vsub.f32 1.0, %v1450_v23  ;;  %v1371_v6 = vmul.f32 %v4239_v43, %v1355_v36  ;;  %v3005_v43 = vld [vmem:[%s4427_s5 + $0x3a4] ss:$8 sps:$4 sm:$0xff]   ;;  %v1140_v57 = vsel %vm1124_vm9, 1.0, %v3116_v8  ;;  %v1460_v2 = vsub.f32 1.0, %v1444_v38 }
 0x273   :  { %2417 = vmatpush2.bf16.msra.mxu0 %v2994_v48  ;;  %v1468_v14 = vsub.f32 1.0, %v1452_v24  ;;  %v1357_v0 = vadd.f32 0.2548296, %v1341_v63  ;;  %v1098_v4 = vmul.f32 0.5, %v4069_v44  ;;  %v1148_v51 = vsel %vm1132_vm12, 1.0, %v3116_v8 }
 0x274   :  { %2458 = vmatpush2.bf16.msra.mxu1 %v2991_v19  ;;  %2418 = vmatprep.subr.bf16.mxu0 %v3002_v13  ;;  %v1482_v49 = vmul.f32 %v1466_v10, %v1146_v9  ;;  %v1451_v39 = vmul.f32 %v3083_v5, %v1371_v6  ;;  %v3011_v44 = vld [vmem:[%s4427_s5 + $0x394] ss:$8 sps:$4 sm:$0xff]   ;;  %v1491_v19 = vadd.f32 1.0, %v1475_v15  ;;  %v1141_v48 = vsel %vm1125_vm14, 1.0, %v3116_v8  ;;  %v3017_v62 = vld [vmem:[%s4427_s5 + $0x384] ss:$8 sps:$4 sm:$0xff]  }
 0x275   :  { %2459 = vmatprep.subr.bf16.mxu1 %v2999_v3  ;;  %v1373_v50 = vmul.f32 %v4264_v22, %v1357_v0  ;;  %v1484_v61 = vmul.f32 %v1468_v14, %v1148_v51  ;;  %v1490_v34 = vadd.f32 1.0, %v1474_v59  ;;  %v1477_v42 = vmul.f32 %v1461_v37, %v1141_v48  ;;  %v3012_v22 = vld [vmem:[%s4427_s5 + $0x280] ss:$8 sps:$4 sm:$0xff]  }
 0x276   :  { %v1467_v52 = vsub.f32 1.0, %v1451_v39  ;;  %v1498_v47 = vadd.f32 1.0, %v1482_v49  ;;  %v3085_v33 = vpop.eup %3084  ;;  %v1476_v16 = vmul.f32 %v1460_v2, %v1140_v57  ;;  %v1091_v13 = vmul.f32 0.5, %v4023_v17  ;;  %v3015_v5 = vld [vmem:[%s4427_s5 + $0x380] ss:$8 sps:$4 sm:$0xff]  }
 0x277   :  { %2419 = vmatpush2.bf16.msra.mxu0 %v3000_v18  ;;  %v1453_v60 = vmul.f32 %v3085_v33, %v1373_v50  ;;  %v1099_v23 = vmul.f32 0.5, %v4090_v11  ;;  %v1090_v3 = vmul.f32 0.5, %v4007_v54  ;;  %v1500_v17 = vadd.f32 1.0, %v1484_v61 }
 0x278   :  { %2460 = vmatpush2.bf16.msra.mxu1 %v2997_v25  ;;  %2420 = vmatprep.subr.bf16.mxu0 %v3008_v12  ;;  %v1483_v58 = vmul.f32 %v1467_v52, %v1147_v26  ;;  %v1514_v28 = vmul.f32 %v1498_v47, %v1098_v4  ;;  %v1507_v36 = vmul.f32 %v1491_v19, %v1091_v13  ;;  %v1149_v11 = vsel %vm1133_vm15, 1.0, %v3116_v8  ;;  %v3090_v13 = vld [vmem:[%s4422_s0] sm:$0xff] }
 0x279   :  { %2461 = vmatprep.subr.bf16.mxu1 %v3005_v43  ;;  %v1469_v7 = vsub.f32 1.0, %v1453_v60  ;;  %v1506_v27 = vmul.f32 %v1490_v34, %v1090_v3  ;;  %v1493_v10 = vadd.f32 1.0, %v1477_v42  ;;  %v1492_v18 = vadd.f32 1.0, %v1476_v16 }
 0x27a   :  { %v1499_v45 = vadd.f32 1.0, %v1483_v58  ;;  %v1100_v54 = vmul.f32 0.5, %v4075_v53  ;;  %v1093_v9 = vmul.f32 0.5, %v4047_v21  ;;  %v1101_v6 = vmul.f32 0.5, %v4123_v35  ;;  %v1654_v21 = vld [vmem:[%s4428_s6] sm:$0x3] }
 0x27b   :  { %2421 = vmatpush2.bf16.msra.mxu0 %v3006_v56  ;;  %v1485_v20 = vmul.f32 %v1469_v7, %v1149_v11  ;;  %v1650_v24 = vpack.c.bf16 %v1514_v28, %v1506_v27  ;;  %v1092_v8 = vmul.f32 0.5, %v4010_v55  ;;  %v1659_v55 = vrot.slane %v1654_v21, %v3424_v41 }
 0x27c   :  { %2462 = vmatpush2.bf16.msra.mxu1 %v3003_v1  ;;  %2422 = vmatprep.subr.bf16.mxu0 %v3014_v32  ;;  %v1515_v46 = vmul.f32 %v1499_v45, %v1099_v23  ;;  %v1516_v25 = vmul.f32 %v1500_v17, %v1100_v54  ;;  %v1509_v12 = vmul.f32 %v1493_v10, %v1093_v9  ;;  %v3091_v45 = vld [vmem:[%s4422_s0 + $0x8] sm:$0xff] }
 0x27d   :  { %2463 = vmatprep.subr.bf16.mxu1 %v3011_v44  ;;  %v1501_v31 = vadd.f32 1.0, %v1485_v20  ;;  %v1508_v53 = vmul.f32 %v1492_v18, %v1092_v8  ;;  %v1663_v14 = vrot.slane %v1654_v21, %v3421_v40 }
 0x27e   :  { %v1651_v38 = vpack.c.bf16 %v1515_v46, %v1507_v36  ;;  %v3092_v36 = vld [vmem:[%s4422_s0 + $0x10] sm:$0xff]  ;;  %v3093_v46 = vld [vmem:[%s4422_s0 + $0x18] sm:$0xff] }
 0x27f   :  { %2423 = vmatpush2.bf16.msra.mxu0 %v3012_v22  ;;  %v1517_v29 = vmul.f32 %v1501_v31, %v1101_v6  ;;  %v1652_v63 = vpack.c.bf16 %v1516_v25, %v1508_v53 }
 0x280   :  { %2464 = vmatpush2.bf16.msra.mxu1 %v3009_v30  ;;  %2424 = vmatprep.mubr.bf16.mxu0 %v1651_v38 }
 0x281   :  { %2465 = vmatprep.subr.bf16.mxu1 %v3017_v62  ;;  %v1653_v49 = vpack.c.bf16 %v1517_v29, %v1509_v12 }
 0x282   :  { %2425 = vmatmul.mubr.bf16.vlgmr.msra.gmra.mxu0 %v1650_v24 }
 0x283   :  { %2467 = vmatprep.mubr.bf16.mxu1 %v1653_v49 }
 0x284   :  { %2466 = vmatpush2.bf16.msra.mxu1 %v3015_v5 }
 0x287   :  { %2468 = vmatmul.mubr.bf16.vlgmr.msra.gmra.mxu1 %v1652_v63 }
 0x302   :  { %v2340_v43 = vpop.f32.mrf.mxu0 }
 0x303   :  { %v2341_v59 = vadd.f32 %v2340_v43, %v1659_v55 }
 0x304   :  { %v2342_v35 = vpop.f32.mrf.mxu0 }
 0x305   :  { %v2343_v37 = vadd.f32 %v2342_v35, %v1663_v14 }
 0x306   :  { %v2344_v39 = vpop.f32.mrf.mxu0 }
 0x307   :  { %v2383_v15 = vpop.f32.mrf.mxu1  ;;  %v2345_v2 = vadd.f32 %v2344_v39, %v1659_v55  ;;  %v2483_v55 = vld [vmem:[%s4430_s8] sm:$0x3] }
 0x308   :  { %v2346_v0 = vpop.f32.mrf.mxu0  ;;  %v2384_v57 = vadd.f32 %v2383_v15, %v2341_v59  ;;  %v2482_v15 = vld [vmem:[%s4429_s7] sm:$0x3]  ;;  %s3117_s7 = smov [#allocation2]  }
 0x309   :  { %v2385_v1 = vpop.f32.mrf.mxu1  ;;  %v2347_v32 = vadd.f32 %v2346_v0, %v1663_v14  ;;  %v2520_v14 = vrot.slane %v2482_v15, %v3424_v41  ;;  %v2524_v39 = vrot.slane %v2482_v15, %v3421_v40  ;;  %v2535_v0 = vrot.slane %v2483_v55, %v3424_v41  ;;  %s2555_s8 = sshll.u32 %s3117_s7, 4  ;;  %s2556_s8 = int_to_ptr.vmem [resolvable:$true] %s2555_s8 }
 0x30a   :  { %v2386_v52 = vadd.f32 %v2385_v1, %v2343_v37  ;;  %s3094_s12 = scalar_lea.vmem %s2556_s8, 512  ;;  %p3099_p1 = scmp.lt.s32.totalorder %s2556_s8, %s2556_s8 }
 0x30b   :  { %v2387_v56 = vpop.f32.mrf.mxu1  ;;  %p3095_p0 = scmp.ne.s32.totalorder %s2556_s8, %s3094_s12  ;;  %p3100_p2 = scmp.lt.s32.totalorder %s3094_s12, %s3094_s12 }
 0x30c   :  { %v2388_v50 = vadd.f32 %v2387_v56, %v2345_v2  ;;  %v2539_v56 = vrot.slane %v2483_v55, %v3421_v40 }
 0x30d   :  { %v2389_v26 = vpop.f32.mrf.mxu1  ;;  %p3101_p3 = por %p3100_p2, %p3099_p1 }
 0x30e   :  { %v2390_v48 = vadd.f32 %v2389_v26, %v2347_v32 }
 0x30f   :  { %p3102_p4 = pnand %p3101_p3, %p3095_p0 }
 0x342   :  { %v2426_v4 = vpop.f32.mrf.mxu0 }
 0x343   :  { %v2427_v47 = vadd.f32 %v2426_v4, %v2384_v57 }
 0x344   :  { %v2428_v51 = vpop.f32.mrf.mxu0 }
 0x345   :  { %v2429_v44 = vadd.f32 %v2428_v51, %v2386_v52 }
 0x346   :  { %v2430_v33 = vpop.f32.mrf.mxu0 }
 0x347   :  { %v2469_v19 = vpop.f32.mrf.mxu1  ;;  %v2431_v58 = vadd.f32 %v2430_v33, %v2388_v50 }
 0x348   :  { %v2470_v61 = vadd.f32 %v2469_v19, %v2427_v47  ;;  %v2432_v34 = vpop.f32.mrf.mxu0 }
 0x349   :  { %v2471_v42 = vpop.f32.mrf.mxu1  ;;  %v2433_v22 = vadd.f32 %v2432_v34, %v2390_v48 }
 0x34a   :  { %v2472_v60 = vadd.f32 %v2471_v42, %v2429_v44  ;;  %v2478_v23 = vadd.f32 %v3090_v13, %v2470_v61 }
 0x34b   :  { %v2473_v16 = vpop.f32.mrf.mxu1 }
 0x34c   :  { %v2479_v30 = vadd.f32 %v3091_v45, %v2472_v60  ;;  %v2474_v3 = vadd.f32 %v2473_v16, %v2431_v58 }
 0x34d   :  { %v2475_v28 = vpop.f32.mrf.mxu1 }
 0x34e   :  { %v2476_v7 = vadd.f32 %v2475_v28, %v2433_v22  ;;  %v2484_v62 = vadd.f32 %v2479_v30, %v2478_v23  ;;  %v2480_v17 = vadd.f32 %v3092_v36, %v2474_v3 }
 0x350   :  { %v2481_v11 = vadd.f32 %v3093_v46, %v2476_v7  ;;  %2485 = vadd.xlane.f32.xlu0 %v2484_v62 }
 0x352   :  { %v2487_v27 = vadd.f32 %v2481_v11, %v2480_v17 }
 0x354   :  { %2488 = vadd.xlane.f32.xlu1 %v2487_v27 }
 0x3d9   :  { %v2486_v10 = vpop.xlane.xlu0 %2485 }
 0x3da   :  { %v2490_v20 = vmul.f32 0.00390625, %v2486_v10 }
 0x3dc   :  { %v2492_v18 = vsub.f32 %v2478_v23, %v2490_v20  ;;  %v2493_v54 = vsub.f32 %v2479_v30, %v2490_v20 }
 0x3dd   :  { %v2489_v5 = vpop.xlane.xlu1 %2488 }
 0x3de   :  { %v2491_v38 = vmul.f32 0.00390625, %v2489_v5  ;;  %v2496_v9 = vmul.f32 %v2492_v18, %v2492_v18  ;;  %v2497_v24 = vmul.f32 %v2493_v54, %v2493_v54 }
 0x3e0   :  { %v2494_v6 = vsub.f32 %v2480_v17, %v2491_v38  ;;  %v2495_v31 = vsub.f32 %v2481_v11, %v2491_v38  ;;  %v2500_v8 = vadd.f32 %v2497_v24, %v2496_v9 }
 0x3e2   :  { %2501 = vadd.xlane.f32.xlu0 %v2500_v8  ;;  %v2498_v25 = vmul.f32 %v2494_v6, %v2494_v6  ;;  %v2499_v12 = vmul.f32 %v2495_v31, %v2495_v31 }
 0x3e4   :  { %v2503_v29 = vadd.f32 %v2499_v12, %v2498_v25 }
 0x3e6   :  { %2504 = vadd.xlane.f32.xlu1 %v2503_v29 }
 0x46b   :  { %v2502_v53 = vpop.xlane.xlu0 %2501 }
 0x46c   :  { %v2506_v49 = vmul.f32 0.00390625, %v2502_v53 }
 0x46e   :  { %v2508_v63 = vadd.f32 1e-05, %v2506_v49 }
 0x46f   :  { %v2505_v43 = vpop.xlane.xlu1 %2504 }
 0x470   :  { %3086 = vrsqrt.f32 %v2508_v63  ;;  %v2507_v21 = vmul.f32 0.00390625, %v2505_v43 }
 0x472   :  { %v2509_v35 = vadd.f32 1e-05, %v2507_v21 }
 0x474   :  { %3088 = vrsqrt.f32 %v2509_v35 }
 0x47d   :  { %v3087_v1 = vpop.eup %3086 }
 0x47e   :  { %v2512_v59 = vmul.f32 %v3087_v1, %v2492_v18  ;;  %v2513_v37 = vmul.f32 %v3087_v1, %v2493_v54 }
 0x480   :  { %v2527_v57 = vmul.f32 %v2520_v14, %v2512_v59  ;;  %v2528_v2 = vmul.f32 %v2524_v39, %v2513_v37 }
 0x481   :  { %v3089_v4 = vpop.eup %3088 }
 0x482   :  { %v2514_v52 = vmul.f32 %v3089_v4, %v2494_v6  ;;  %v2515_v32 = vmul.f32 %v3089_v4, %v2495_v31  ;;  %v2542_v47 = vadd.f32 %v2535_v0, %v2527_v57  ;;  %v2543_v51 = vadd.f32 %v2539_v56, %v2528_v2 }
 0x484   :  { %v2529_v26 = vmul.f32 %v2520_v14, %v2514_v52  ;;  %v2530_v50 = vmul.f32 %v2524_v39, %v2515_v32  ;;  %2546 = vst [vmem:[#allocation2] sm:$0xff] %v2542_v47  ;;  %2547 = vst [vmem:[#allocation2 + $0x8] sm:$0xff] %v2543_v51 }
 0x486   :  { %v2544_v44 = vadd.f32 %v2535_v0, %v2529_v26  ;;  %v2545_v33 = vadd.f32 %v2539_v56, %v2530_v50 }
 0x488   :  { %2548 = vst [vmem:[#allocation2 + $0x10] sm:$0xff] %v2544_v44  ;;  %2549 = vst [vmem:[#allocation2 + $0x18] sm:$0xff] %v2545_v33 }
 0x489   :  { %3105 = shalt.err (!%p3102_p4)
}
 0x48a   :  { %s3118_s13 = smov 256   ;;  %s3119_s14 = smov 16  }
 0x48b   :  { %2561 = dma.vmem_to_hbm [thread:$0]  %s2556_s8, 512, %s4431_s9, [#allocation3], %s3118_s13, %s3118_s13, %s3119_s14  }
 0x48c   :  { %3114 = dma.done.wait [#allocation3], 512  }
 0x48d   :  { %3115 = vsyncadd [#allocation3], 4294966784 }
 0x48e   :  { %2565 = vsyncpa [#allocation3], 1 }

</bundles_post_ra>
